<compile_context>
chip_gen: v7x
topology: tpu7x:2x2x1
jax: 0.10.0
libtpu: 0.0.40
codegen_flags: <defaults>
</compile_context>

<pallas_src>
import math
import functools

import jax
import jax.numpy as jnp
from jax import lax
from jax.experimental import pallas as pl
from jax.experimental.pallas import tpu as pltpu

_SQRT1_2 = 1.0 / math.sqrt(2.0)


def _erf(x, recip):
    # TODO(synk): torch.nn.GELU() uses exact erf; this is the Abramowitz&Stegun
    # 7.1.26 rational approximation (max abs err ~1.5e-7) -> only exp + one
    # reciprocal, both of which issue on the (otherwise idle) EUP slot.
    a1, a2, a3, a4, a5 = 0.254829592, -0.284496736, 1.421413741, -1.453152027, 1.061405429
    p = 0.3275911
    s = jnp.where(x >= 0.0, 1.0, -1.0)
    ax = jnp.abs(x)
    t = recip(1.0 + p * ax)
    poly = ((((a5 * t + a4) * t + a3) * t + a2) * t + a1) * t
    return s * (1.0 - poly * jnp.exp(-ax * ax))


def _gelu(x, recip=lambda v: 1.0 / v):
    return 0.5 * x * (1.0 + _erf(x * _SQRT1_2, recip))


def _down2d_kernel(H, W, Cin, Cout, d, eps,
                   x_ref, w1_ref, w2_ref, pvec_ref, gavg_ref,
                   out_ref, xp1_ref, xp2_ref):
    P = H * W
    Ho, Wo = H // d, W // d
    # approx reciprocal -> EUP; relieves the VALU slots the GELU tail would
    # otherwise saturate once the matmuls run in bf16.
    recip = lambda v: pl.reciprocal(v, approx=True)

    # packed per-channel parameters (f32): rows = b1, gn1_w, gn1_b, b2, gn2_w, gn2_b
    b1, g1, be1 = pvec_ref[0:1, :], pvec_ref[1:2, :], pvec_ref[2:3, :]
    b2, g2, be2 = pvec_ref[3:4, :], pvec_ref[4:5, :], pvec_ref[5:6, :]
    gavg = gavg_ref[...]          # (C, C) block-diag group-average matrix, 1/(P*cg) folded in

    def group_norm(x2d, gamma, beta):
        # two-pass GN (mean, then centered sum of squares): no E[x^2]-E[x]^2
        # cancellation.  Group reduce + broadcast-back = one tiny (1,C)x(C,C) matmul.
        # TODO(synk): this could move off the MXU onto an XLU lane-group
        # reduction to avoid two small MXU drains on the serial path.
        mean = jnp.dot(jnp.sum(x2d, axis=0, keepdims=True), gavg,
                       preferred_element_type=jnp.float32)           # (1, C)
        xc = x2d - mean
        var = jnp.dot(jnp.sum(xc * xc, axis=0, keepdims=True), gavg,
                      preferred_element_type=jnp.float32)            # (1, C)
        # TODO(synk): on v6e/v7x the scale/shift + GELU tail could run in bf16
        # (2-per-lane VPU); kept f32 so the same kernel stays correct on v5e.
        return xc * lax.rsqrt(var + eps) * gamma + beta

    def stage_padded(dst_ref, interior_f32):
        # zero only the thin border; done EVERY step so the batch grid axis can
        # stay "parallel" while the scratch is reused across steps.
        c = dst_ref.shape[-1]
        zrow = jnp.zeros((1, W + 2, c), jnp.float32)
        dst_ref[0:1, :, :] = zrow
        dst_ref[H + 1:H + 2, :, :] = zrow
        zcol = jnp.zeros((H, 1, c), jnp.float32)
        dst_ref[1:H + 1, 0:1, :] = zcol
        dst_ref[1:H + 1, W + 1:W + 2, :] = zcol
        dst_ref[1:H + 1, 1:W + 1, :] = interior_f32

    def conv3x3(xp_ref, w_ref, bias, cin):
        # 3x3 conv as 9 per-tap MXU matmuls: bf16 operands, f32 accumulation.
        # No (P, 9*C) im2col column matrix is ever materialized.
        # TODO(synk): at realistic channel counts, group taps into row-triples
        # (K = 3*C) so the contraction fills the 256-wide MXU on v6e/v7x.
        acc = bias                                            # (1, Cout) f32
        for k in range(9):
            dy, dx = divmod(k, 3)
            tap = xp_ref[dy:dy + H, dx:dx + W, :].reshape(P, cin).astype(jnp.bfloat16)
            acc = acc + jnp.dot(tap, w_ref[k], preferred_element_type=jnp.float32)
        return acc                                            # (P, Cout) f32

    # ---- conv1 (in-kernel; wrapper-side im2col removed) ----
    stage_padded(xp1_ref, x_ref[0].astype(jnp.float32))
    x1 = _gelu(group_norm(conv3x3(xp1_ref, w1_ref, b1, Cin), g1, be1), recip)

    # ---- conv2: stage x1 into the second zero-bordered scratch ----
    stage_padded(xp2_ref, x1.reshape(H, W, Cout))
    x2 = _gelu(group_norm(conv3x3(xp2_ref, w2_ref, b2, Cout), g2, be2), recip)

    # ---- MaxPool2d(d): entirely in registers, lane dim (C) untouched ----
    hpool = jnp.max(x2.reshape(Ho, d, W, Cout), axis=1)               # (Ho, W, C)
    pooled = jnp.max(hpool.reshape(Ho, Wo, d, Cout), axis=2)          # (Ho, Wo, C)

    # lane-dense store: (C, Ho*Wo) -> wrapper reshape gives NCHW directly
    out_ref[0] = pooled.reshape(Ho * Wo, Cout).T.astype(out_ref.dtype)


def down2d_pallas(x_nchw, params, *, num_groups=8, down=2, eps=1e-5):
    N, Cin, H, W = x_nchw.shape
    Cout = params["w1"].shape[0]
    d = down
    Ho, Wo = H // d, W // d
    cg = Cout // num_groups
    assert Cout % num_groups == 0 and H % d == 0 and W % d == 0
    # TODO(synk): real deployments should keep Cout a multiple of 128 (256 on
    # v6e/v7x) for lane fill; at Cout=16 most lanes are masked.

    # raw NHWC input in bf16: halved HBM bytes, no 9x im2col inflation
    x_nhwc = jnp.transpose(x_nchw, (0, 2, 3, 1)).astype(jnp.bfloat16)
    # torch conv weights (Cout, Cin, kh, kw) -> per-tap (9, Cin, Cout), bf16
    w1 = jnp.transpose(params["w1"], (2, 3, 1, 0)).reshape(9, Cin, Cout).astype(jnp.bfloat16)
    w2 = jnp.transpose(params["w2"], (2, 3, 1, 0)).reshape(9, Cout, Cout).astype(jnp.bfloat16)
    # six per-channel vectors packed into one (6, Cout) f32 input
    pvec = jnp.stack([params["b1"], params["gn1_w"], params["gn1_b"],
                      params["b2"], params["gn2_w"], params["gn2_b"]],
                     axis=0).astype(jnp.float32)
    # block-diagonal group-average matrix (1/(H*W*cg) folded in), hoisted out of
    # the kernel as a constant input
    ch = jnp.arange(Cout)
    gavg = ((ch[:, None] // cg) == (ch[None, :] // cg)).astype(jnp.float32) / float(H * W * cg)

    kernel = functools.partial(_down2d_kernel, H, W, Cin, Cout, d, eps)

    out = pl.pallas_call(
        kernel,
        out_shape=jax.ShapeDtypeStruct((N, Cout, Ho * Wo), jnp.float32),
        grid_spec=pltpu.PrefetchScalarGridSpec(
            num_scalar_prefetch=0,
            grid=(N,),
            in_specs=[
                pl.BlockSpec((1, H, W, Cin), lambda n: (n, 0, 0, 0)),
                # TODO(synk): pipeline_mode=pl.Buffered(1) on the constant-index
                # weight/param blocks would single-buffer them (VMEM win on v7x).
                pl.BlockSpec((9, Cin, Cout), lambda n: (0, 0, 0)),
                pl.BlockSpec((9, Cout, Cout), lambda n: (0, 0, 0)),
                pl.BlockSpec((6, Cout), lambda n: (0, 0)),
                pl.BlockSpec((Cout, Cout), lambda n: (0, 0)),
            ],
            out_specs=pl.BlockSpec((1, Cout, Ho * Wo), lambda n: (n, 0, 0)),
            scratch_shapes=[
                # TODO(synk): these padded scratches could be bf16 on v6e/v7x to
                # halve scratch VMEM (kept f32: proven unaligned-store path).
                pltpu.VMEM((H + 2, W + 2, Cin), jnp.float32),    # zero-bordered conv1 input
                pltpu.VMEM((H + 2, W + 2, Cout), jnp.float32),   # zero-bordered x1 for conv2
            ],
        ),
        compiler_params=pltpu.CompilerParams(
            # samples are independent -> shard the batch axis across v7x's 2 TCs
            # TODO(synk): when N == 1 (or for large H*W*C) add a row-strip grid
            # axis with a 1-row halo so VMEM stays bounded and both TCs are busy.
            dimension_semantics=("parallel",),
            vmem_limit_bytes=48 * 1024 * 1024,
        ),
    )(x_nhwc, w1, w2, pvec, gavg)

    return out.reshape(N, Cout, Ho, Wo)


def _reference(x_nchw, params, num_groups=8, down=2, eps=1e-5):
    """Pure-JAX reference for Down2d forward.  Conv operands are cast to bf16
    (f32 accumulation) to mirror the kernel's MXU numerics; GN / GELU / pool
    stay in f32 exactly like the kernel."""
    x = jnp.transpose(x_nchw, (0, 2, 3, 1)).astype(jnp.float32)  # NHWC

    def conv3x3(x, w, b):
        N, H, W, Cin = x.shape
        Cout = w.shape[0]
        xp = jnp.pad(x.astype(jnp.bfloat16), ((0, 0), (1, 1), (1, 1), (0, 0)))
        wb = w.astype(jnp.bfloat16)
        out = jnp.zeros((N, H, W, Cout), jnp.float32)
        for dy in range(3):
            for dx in range(3):
                out = out + jnp.einsum("nhwc,oc->nhwo",
                                       xp[:, dy:dy + H, dx:dx + W, :], wb[:, :, dy, dx],
                                       preferred_element_type=jnp.float32)
        return out + b

    def gn(x, gamma, beta):
        N, H, W, C = x.shape
        g = num_groups
        xr = x.reshape(N, H, W, g, C // g)
        mean = xr.mean(axis=(1, 2, 4), keepdims=True)
        var = ((xr - mean) ** 2).mean(axis=(1, 2, 4), keepdims=True)
        xn = ((xr - mean) / jnp.sqrt(var + eps)).reshape(N, H, W, C)
        return xn * gamma + beta

    h = _gelu(gn(conv3x3(x, params["w1"], params["b1"]), params["gn1_w"], params["gn1_b"]))
    h = _gelu(gn(conv3x3(h, params["w2"], params["b2"]), params["gn2_w"], params["gn2_b"]))
    N, H, W, C = h.shape
    h = h.reshape(N, H // down, down, W // down, down, C).max(axis=(2, 4))
    return jnp.transpose(h, (0, 3, 1, 2))


if __name__ == "__main__":
    N, Cin, Cout, H, W, down = 2, 4, 16, 16, 16, 2
    key = jax.random.PRNGKey(0)
    ks = jax.random.split(key, 9)
    params = {
        "w1": jax.random.normal(ks[0], (Cout, Cin, 3, 3), jnp.float32) * 0.2,
        "b1": jax.random.normal(ks[1], (Cout,), jnp.float32) * 0.1,
        "gn1_w": 1.0 + 0.1 * jax.random.normal(ks[2], (Cout,), jnp.float32),
        "gn1_b": 0.1 * jax.random.normal(ks[3], (Cout,), jnp.float32),
        "w2": jax.random.normal(ks[4], (Cout, Cout, 3, 3), jnp.float32) * 0.2,
        "b2": jax.random.normal(ks[5], (Cout,), jnp.float32) * 0.1,
        "gn2_w": 1.0 + 0.1 * jax.random.normal(ks[6], (Cout,), jnp.float32),
        "gn2_b": 0.1 * jax.random.normal(ks[7], (Cout,), jnp.float32),
    }
    x = jax.random.normal(ks[8], (N, Cin, H, W), jnp.float32)

    out = jax.block_until_ready(down2d_pallas(x, params, num_groups=8, down=down))
    ref = jax.block_until_ready(_reference(x, params, num_groups=8, down=down))
    assert out.shape == (N, Cout, H // down, W // down), out.shape
    # tolerance loosened vs. the f32 version: approx-EUP reciprocal in the
    # kernel's GELU is the only numerics difference vs. the bf16-matched ref.
    err = float(jnp.max(jnp.abs(out - ref)))
    if err > 2e-2:
        raise AssertionError(f"kernel/reference mismatch: max abs err = {err}")
    print("KERNEL_OK")
</pallas_src>

<mosaic_0001>
module attributes {stable_mosaic.version = 11 : i64} {
  func.func @_down2d_kernel(%arg0: i32, %arg1: memref<1x16x16x4xbf16, #tpu.memory_space<vmem>>, %arg2: memref<9x4x16xbf16, #tpu.memory_space<vmem>>, %arg3: memref<9x16x16xbf16, #tpu.memory_space<vmem>>, %arg4: memref<6x16xf32, #tpu.memory_space<vmem>>, %arg5: memref<16x16xf32, #tpu.memory_space<vmem>>, %arg6: memref<1x16x64xf32, #tpu.memory_space<vmem>>, %arg7: memref<18x18x4xf32, #tpu.memory_space<vmem>>, %arg8: memref<18x18x16xf32, #tpu.memory_space<vmem>>) attributes {dimension_semantics = [#tpu.dimension_semantics<parallel>], iteration_bounds = array<i64: 2>, scalar_prefetch = 0 : i64, scratch_operands = 2 : i64, tpu.core_type = #tpu.core_type<tc>, window_params = [{transform_indices = @transform_0, window_bounds = array<i64: 1, 16, 16, 4>}, {pipeline_mode = #tpu.pipeline_mode<synchronous>, transform_indices = @transform_1, window_bounds = array<i64: 9, 4, 16>}, {pipeline_mode = #tpu.pipeline_mode<synchronous>, transform_indices = @transform_2, window_bounds = array<i64: 9, 16, 16>}, {pipeline_mode = #tpu.pipeline_mode<synchronous>, transform_indices = @transform_3, window_bounds = array<i64: 6, 16>}, {pipeline_mode = #tpu.pipeline_mode<synchronous>, transform_indices = @transform_4, window_bounds = array<i64: 16, 16>}, {transform_indices = @transform_5, window_bounds = array<i64: 1, 16, 64>}]} {
    %c0 = arith.constant 0 : index
    %c0_0 = arith.constant 0 : index
    %0 = vector.load %arg4[%c0, %c0_0] : memref<6x16xf32, #tpu.memory_space<vmem>>, vector<1x16xf32>
    %c1 = arith.constant 1 : index
    %c0_1 = arith.constant 0 : index
    %1 = vector.load %arg4[%c1, %c0_1] : memref<6x16xf32, #tpu.memory_space<vmem>>, vector<1x16xf32>
    %c2 = arith.constant 2 : index
    %c0_2 = arith.constant 0 : index
    %2 = vector.load %arg4[%c2, %c0_2] : memref<6x16xf32, #tpu.memory_space<vmem>>, vector<1x16xf32>
    %c3 = arith.constant 3 : index
    %c0_3 = arith.constant 0 : index
    %3 = vector.load %arg4[%c3, %c0_3] : memref<6x16xf32, #tpu.memory_space<vmem>>, vector<1x16xf32>
    %c4 = arith.constant 4 : index
    %c0_4 = arith.constant 0 : index
    %4 = vector.load %arg4[%c4, %c0_4] : memref<6x16xf32, #tpu.memory_space<vmem>>, vector<1x16xf32>
    %c5 = arith.constant 5 : index
    %c0_5 = arith.constant 0 : index
    %5 = vector.load %arg4[%c5, %c0_5] : memref<6x16xf32, #tpu.memory_space<vmem>>, vector<1x16xf32>
    %c0_6 = arith.constant 0 : index
    %c0_7 = arith.constant 0 : index
    %6 = vector.load %arg5[%c0_6, %c0_7] : memref<16x16xf32, #tpu.memory_space<vmem>>, vector<16x16xf32>
    %c0_8 = arith.constant 0 : index
    %c0_9 = arith.constant 0 : index
    %c0_10 = arith.constant 0 : index
    %c0_11 = arith.constant 0 : index
    %7 = vector.load %arg1[%c0_8, %c0_9, %c0_10, %c0_11] : memref<1x16x16x4xbf16, #tpu.memory_space<vmem>>, vector<1x16x16x4xbf16>
    %8 = vector.shape_cast %7 : vector<1x16x16x4xbf16> to vector<16x16x4xbf16>
    %9 = arith.extf %8 : vector<16x16x4xbf16> to vector<16x16x4xf32>
    %cst = arith.constant 0.000000e+00 : f32
    %10 = vector.broadcast %cst : f32 to vector<1x18x4xf32>
    %c0_12 = arith.constant 0 : index
    %c0_13 = arith.constant 0 : index
    %c0_14 = arith.constant 0 : index
    %11 = vector.load %arg7[%c0_12, %c0_13, %c0_14] : memref<18x18x4xf32, #tpu.memory_space<vmem>>, vector<1x18x4xf32>
    tpu.vector_store %arg7[%c0_12, %c0_13, %c0_14], %10 {strides = array<i32>} : memref<18x18x4xf32, #tpu.memory_space<vmem>>, vector<1x18x4xf32>,
    %c17 = arith.constant 17 : index
    %c0_15 = arith.constant 0 : index
    %c0_16 = arith.constant 0 : index
    %12 = vector.load %arg7[%c17, %c0_15, %c0_16] : memref<18x18x4xf32, #tpu.memory_space<vmem>>, vector<1x18x4xf32>
    tpu.vector_store %arg7[%c17, %c0_15, %c0_16], %10 {strides = array<i32>} : memref<18x18x4xf32, #tpu.memory_space<vmem>>, vector<1x18x4xf32>,
    %cst_17 = arith.constant 0.000000e+00 : f32
    %13 = vector.broadcast %cst_17 : f32 to vector<16x1x4xf32>
    %c1_18 = arith.constant 1 : index
    %c0_19 = arith.constant 0 : index
    %c0_20 = arith.constant 0 : index
    %14 = vector.load %arg7[%c1_18, %c0_19, %c0_20] : memref<18x18x4xf32, #tpu.memory_space<vmem>>, vector<16x1x4xf32>
    tpu.vector_store %arg7[%c1_18, %c0_19, %c0_20], %13 {strides = array<i32>} : memref<18x18x4xf32, #tpu.memory_space<vmem>>, vector<16x1x4xf32>,
    %c1_21 = arith.constant 1 : index
    %c17_22 = arith.constant 17 : index
    %c0_23 = arith.constant 0 : index
    %15 = vector.load %arg7[%c1_21, %c17_22, %c0_23] : memref<18x18x4xf32, #tpu.memory_space<vmem>>, vector<16x1x4xf32>
    tpu.vector_store %arg7[%c1_21, %c17_22, %c0_23], %13 {strides = array<i32>} : memref<18x18x4xf32, #tpu.memory_space<vmem>>, vector<16x1x4xf32>,
    %c1_24 = arith.constant 1 : index
    %c1_25 = arith.constant 1 : index
    %c0_26 = arith.constant 0 : index
    %16 = vector.load %arg7[%c1_24, %c1_25, %c0_26] : memref<18x18x4xf32, #tpu.memory_space<vmem>>, vector<16x16x4xf32>
    tpu.vector_store %arg7[%c1_24, %c1_25, %c0_26], %9 {strides = array<i32>} : memref<18x18x4xf32, #tpu.memory_space<vmem>>, vector<16x16x4xf32>,
    %c0_27 = arith.constant 0 : index
    %c0_28 = arith.constant 0 : index
    %c0_29 = arith.constant 0 : index
    %17 = vector.load %arg7[%c0_27, %c0_28, %c0_29] : memref<18x18x4xf32, #tpu.memory_space<vmem>>, vector<16x16x4xf32>
    %18 = vector.shape_cast %17 : vector<16x16x4xf32> to vector<256x4xf32>
    %19 = arith.truncf %18 : vector<256x4xf32> to vector<256x4xbf16>
    %c0_30 = arith.constant 0 : index
    %c0_31 = arith.constant 0 : index
    %c0_32 = arith.constant 0 : index
    %20 = vector.load %arg2[%c0_30, %c0_31, %c0_32] : memref<9x4x16xbf16, #tpu.memory_space<vmem>>, vector<1x4x16xbf16>
    %21 = vector.shape_cast %20 : vector<1x4x16xbf16> to vector<4x16xbf16>
    %cst_33 = arith.constant dense<0.000000e+00> : vector<256x16xf32>
    %22 = tpu.matmul %19, %21, %cst_33 {dimension_numbers = #tpu.dot_dimension_numbers<[1], [0], [0], [1], [0, 0, 1, 1], [], []>} : vector<256x4xbf16>, vector<4x16xbf16>, vector<256x16xf32> -> vector<256x16xf32>
    %23 = vector.broadcast %0 : vector<1x16xf32> to vector<256x16xf32>
    %24 = arith.addf %23, %22 : vector<256x16xf32>
    %c0_34 = arith.constant 0 : index
    %c1_35 = arith.constant 1 : index
    %c0_36 = arith.constant 0 : index
    %25 = vector.load %arg7[%c0_34, %c1_35, %c0_36] : memref<18x18x4xf32, #tpu.memory_space<vmem>>, vector<16x16x4xf32>
    %26 = vector.shape_cast %25 : vector<16x16x4xf32> to vector<256x4xf32>
    %27 = arith.truncf %26 : vector<256x4xf32> to vector<256x4xbf16>
    %c1_37 = arith.constant 1 : index
    %c0_38 = arith.constant 0 : index
    %c0_39 = arith.constant 0 : index
    %28 = vector.load %arg2[%c1_37, %c0_38, %c0_39] : memref<9x4x16xbf16, #tpu.memory_space<vmem>>, vector<1x4x16xbf16>
    %29 = vector.shape_cast %28 : vector<1x4x16xbf16> to vector<4x16xbf16>
    %cst_40 = arith.constant dense<0.000000e+00> : vector<256x16xf32>
    %30 = tpu.matmul %27, %29, %cst_40 {dimension_numbers = #tpu.dot_dimension_numbers<[1], [0], [0], [1], [0, 0, 1, 1], [], []>} : vector<256x4xbf16>, vector<4x16xbf16>, vector<256x16xf32> -> vector<256x16xf32>
    %31 = arith.addf %24, %30 : vector<256x16xf32>
    %c0_41 = arith.constant 0 : index
    %c2_42 = arith.constant 2 : index
    %c0_43 = arith.constant 0 : index
    %32 = vector.load %arg7[%c0_41, %c2_42, %c0_43] : memref<18x18x4xf32, #tpu.memory_space<vmem>>, vector<16x16x4xf32>
    %33 = vector.shape_cast %32 : vector<16x16x4xf32> to vector<256x4xf32>
    %34 = arith.truncf %33 : vector<256x4xf32> to vector<256x4xbf16>
    %c2_44 = arith.constant 2 : index
    %c0_45 = arith.constant 0 : index
    %c0_46 = arith.constant 0 : index
    %35 = vector.load %arg2[%c2_44, %c0_45, %c0_46] : memref<9x4x16xbf16, #tpu.memory_space<vmem>>, vector<1x4x16xbf16>
    %36 = vector.shape_cast %35 : vector<1x4x16xbf16> to vector<4x16xbf16>
    %cst_47 = arith.constant dense<0.000000e+00> : vector<256x16xf32>
    %37 = tpu.matmul %34, %36, %cst_47 {dimension_numbers = #tpu.dot_dimension_numbers<[1], [0], [0], [1], [0, 0, 1, 1], [], []>} : vector<256x4xbf16>, vector<4x16xbf16>, vector<256x16xf32> -> vector<256x16xf32>
    %38 = arith.addf %31, %37 : vector<256x16xf32>
    %c1_48 = arith.constant 1 : index
    %c0_49 = arith.constant 0 : index
    %c0_50 = arith.constant 0 : index
    %39 = vector.load %arg7[%c1_48, %c0_49, %c0_50] : memref<18x18x4xf32, #tpu.memory_space<vmem>>, vector<16x16x4xf32>
    %40 = vector.shape_cast %39 : vector<16x16x4xf32> to vector<256x4xf32>
    %41 = arith.truncf %40 : vector<256x4xf32> to vector<256x4xbf16>
    %c3_51 = arith.constant 3 : index
    %c0_52 = arith.constant 0 : index
    %c0_53 = arith.constant 0 : index
    %42 = vector.load %arg2[%c3_51, %c0_52, %c0_53] : memref<9x4x16xbf16, #tpu.memory_space<vmem>>, vector<1x4x16xbf16>
    %43 = vector.shape_cast %42 : vector<1x4x16xbf16> to vector<4x16xbf16>
    %cst_54 = arith.constant dense<0.000000e+00> : vector<256x16xf32>
    %44 = tpu.matmul %41, %43, %cst_54 {dimension_numbers = #tpu.dot_dimension_numbers<[1], [0], [0], [1], [0, 0, 1, 1], [], []>} : vector<256x4xbf16>, vector<4x16xbf16>, vector<256x16xf32> -> vector<256x16xf32>
    %45 = arith.addf %38, %44 : vector<256x16xf32>
    %c1_55 = arith.constant 1 : index
    %c1_56 = arith.constant 1 : index
    %c0_57 = arith.constant 0 : index
    %46 = vector.load %arg7[%c1_55, %c1_56, %c0_57] : memref<18x18x4xf32, #tpu.memory_space<vmem>>, vector<16x16x4xf32>
    %47 = vector.shape_cast %46 : vector<16x16x4xf32> to vector<256x4xf32>
    %48 = arith.truncf %47 : vector<256x4xf32> to vector<256x4xbf16>
    %c4_58 = arith.constant 4 : index
    %c0_59 = arith.constant 0 : index
    %c0_60 = arith.constant 0 : index
    %49 = vector.load %arg2[%c4_58, %c0_59, %c0_60] : memref<9x4x16xbf16, #tpu.memory_space<vmem>>, vector<1x4x16xbf16>
    %50 = vector.shape_cast %49 : vector<1x4x16xbf16> to vector<4x16xbf16>
    %cst_61 = arith.constant dense<0.000000e+00> : vector<256x16xf32>
    %51 = tpu.matmul %48, %50, %cst_61 {dimension_numbers = #tpu.dot_dimension_numbers<[1], [0], [0], [1], [0, 0, 1, 1], [], []>} : vector<256x4xbf16>, vector<4x16xbf16>, vector<256x16xf32> -> vector<256x16xf32>
    %52 = arith.addf %45, %51 : vector<256x16xf32>
    %c1_62 = arith.constant 1 : index
    %c2_63 = arith.constant 2 : index
    %c0_64 = arith.constant 0 : index
    %53 = vector.load %arg7[%c1_62, %c2_63, %c0_64] : memref<18x18x4xf32, #tpu.memory_space<vmem>>, vector<16x16x4xf32>
    %54 = vector.shape_cast %53 : vector<16x16x4xf32> to vector<256x4xf32>
    %55 = arith.truncf %54 : vector<256x4xf32> to vector<256x4xbf16>
    %c5_65 = arith.constant 5 : index
    %c0_66 = arith.constant 0 : index
    %c0_67 = arith.constant 0 : index
    %56 = vector.load %arg2[%c5_65, %c0_66, %c0_67] : memref<9x4x16xbf16, #tpu.memory_space<vmem>>, vector<1x4x16xbf16>
    %57 = vector.shape_cast %56 : vector<1x4x16xbf16> to vector<4x16xbf16>
    %cst_68 = arith.constant dense<0.000000e+00> : vector<256x16xf32>
    %58 = tpu.matmul %55, %57, %cst_68 {dimension_numbers = #tpu.dot_dimension_numbers<[1], [0], [0], [1], [0, 0, 1, 1], [], []>} : vector<256x4xbf16>, vector<4x16xbf16>, vector<256x16xf32> -> vector<256x16xf32>
    %59 = arith.addf %52, %58 : vector<256x16xf32>
    %c2_69 = arith.constant 2 : index
    %c0_70 = arith.constant 0 : index
    %c0_71 = arith.constant 0 : index
    %60 = vector.load %arg7[%c2_69, %c0_70, %c0_71] : memref<18x18x4xf32, #tpu.memory_space<vmem>>, vector<16x16x4xf32>
    %61 = vector.shape_cast %60 : vector<16x16x4xf32> to vector<256x4xf32>
    %62 = arith.truncf %61 : vector<256x4xf32> to vector<256x4xbf16>
    %c6 = arith.constant 6 : index
    %c0_72 = arith.constant 0 : index
    %c0_73 = arith.constant 0 : index
    %63 = vector.load %arg2[%c6, %c0_72, %c0_73] : memref<9x4x16xbf16, #tpu.memory_space<vmem>>, vector<1x4x16xbf16>
    %64 = vector.shape_cast %63 : vector<1x4x16xbf16> to vector<4x16xbf16>
    %cst_74 = arith.constant dense<0.000000e+00> : vector<256x16xf32>
    %65 = tpu.matmul %62, %64, %cst_74 {dimension_numbers = #tpu.dot_dimension_numbers<[1], [0], [0], [1], [0, 0, 1, 1], [], []>} : vector<256x4xbf16>, vector<4x16xbf16>, vector<256x16xf32> -> vector<256x16xf32>
    %66 = arith.addf %59, %65 : vector<256x16xf32>
    %c2_75 = arith.constant 2 : index
    %c1_76 = arith.constant 1 : index
    %c0_77 = arith.constant 0 : index
    %67 = vector.load %arg7[%c2_75, %c1_76, %c0_77] : memref<18x18x4xf32, #tpu.memory_space<vmem>>, vector<16x16x4xf32>
    %68 = vector.shape_cast %67 : vector<16x16x4xf32> to vector<256x4xf32>
    %69 = arith.truncf %68 : vector<256x4xf32> to vector<256x4xbf16>
    %c7 = arith.constant 7 : index
    %c0_78 = arith.constant 0 : index
    %c0_79 = arith.constant 0 : index
    %70 = vector.load %arg2[%c7, %c0_78, %c0_79] : memref<9x4x16xbf16, #tpu.memory_space<vmem>>, vector<1x4x16xbf16>
    %71 = vector.shape_cast %70 : vector<1x4x16xbf16> to vector<4x16xbf16>
    %cst_80 = arith.constant dense<0.000000e+00> : vector<256x16xf32>
    %72 = tpu.matmul %69, %71, %cst_80 {dimension_numbers = #tpu.dot_dimension_numbers<[1], [0], [0], [1], [0, 0, 1, 1], [], []>} : vector<256x4xbf16>, vector<4x16xbf16>, vector<256x16xf32> -> vector<256x16xf32>
    %73 = arith.addf %66, %72 : vector<256x16xf32>
    %c2_81 = arith.constant 2 : index
    %c2_82 = arith.constant 2 : index
    %c0_83 = arith.constant 0 : index
    %74 = vector.load %arg7[%c2_81, %c2_82, %c0_83] : memref<18x18x4xf32, #tpu.memory_space<vmem>>, vector<16x16x4xf32>
    %75 = vector.shape_cast %74 : vector<16x16x4xf32> to vector<256x4xf32>
    %76 = arith.truncf %75 : vector<256x4xf32> to vector<256x4xbf16>
    %c8 = arith.constant 8 : index
    %c0_84 = arith.constant 0 : index
    %c0_85 = arith.constant 0 : index
    %77 = vector.load %arg2[%c8, %c0_84, %c0_85] : memref<9x4x16xbf16, #tpu.memory_space<vmem>>, vector<1x4x16xbf16>
    %78 = vector.shape_cast %77 : vector<1x4x16xbf16> to vector<4x16xbf16>
    %cst_86 = arith.constant dense<0.000000e+00> : vector<256x16xf32>
    %79 = tpu.matmul %76, %78, %cst_86 {dimension_numbers = #tpu.dot_dimension_numbers<[1], [0], [0], [1], [0, 0, 1, 1], [], []>} : vector<256x4xbf16>, vector<4x16xbf16>, vector<256x16xf32> -> vector<256x16xf32>
    %80 = arith.addf %73, %79 : vector<256x16xf32>
    %cst_87 = arith.constant dense<0.000000e+00> : vector<16xf32>
    %81 = vector.multi_reduction <add>, %80, %cst_87 [0] : vector<256x16xf32> to vector<16xf32>
    %82 = vector.shape_cast %81 : vector<16xf32> to vector<1x16xf32>
    %cst_88 = arith.constant dense<0.000000e+00> : vector<1x16xf32>
    %83 = tpu.matmul %82, %6, %cst_88 {dimension_numbers = #tpu.dot_dimension_numbers<[1], [0], [0], [1], [0, 0, 1, 1], [], []>} : vector<1x16xf32>, vector<16x16xf32>, vector<1x16xf32> -> vector<1x16xf32>
    %84 = vector.broadcast %83 : vector<1x16xf32> to vector<256x16xf32>
    %85 = arith.subf %80, %84 : vector<256x16xf32>
    %86 = arith.mulf %85, %85 : vector<256x16xf32>
    %cst_89 = arith.constant dense<0.000000e+00> : vector<16xf32>
    %87 = vector.multi_reduction <add>, %86, %cst_89 [0] : vector<256x16xf32> to vector<16xf32>
    %88 = vector.shape_cast %87 : vector<16xf32> to vector<1x16xf32>
    %cst_90 = arith.constant dense<0.000000e+00> : vector<1x16xf32>
    %89 = tpu.matmul %88, %6, %cst_90 {dimension_numbers = #tpu.dot_dimension_numbers<[1], [0], [0], [1], [0, 0, 1, 1], [], []>} : vector<1x16xf32>, vector<16x16xf32>, vector<1x16xf32> -> vector<1x16xf32>
    %cst_91 = arith.constant 9.99999974E-6 : f32
    %90 = vector.broadcast %cst_91 : f32 to vector<1x16xf32>
    %91 = arith.addf %89, %90 : vector<1x16xf32>
    %92 = math.rsqrt %91 : vector<1x16xf32>
    %93 = vector.broadcast %92 : vector<1x16xf32> to vector<256x16xf32>
    %94 = arith.mulf %85, %93 : vector<256x16xf32>
    %95 = vector.broadcast %1 : vector<1x16xf32> to vector<256x16xf32>
    %96 = arith.mulf %94, %95 : vector<256x16xf32>
    %97 = vector.broadcast %2 : vector<1x16xf32> to vector<256x16xf32>
    %98 = arith.addf %96, %97 : vector<256x16xf32>
    %cst_92 = arith.constant 5.000000e-01 : f32
    %99 = vector.broadcast %cst_92 : f32 to vector<256x16xf32>
    %100 = arith.mulf %99, %98 : vector<256x16xf32>
    %cst_93 = arith.constant 0.707106769 : f32
    %101 = vector.broadcast %cst_93 : f32 to vector<256x16xf32>
    %102 = arith.mulf %98, %101 : vector<256x16xf32>
    %cst_94 = arith.constant 0.000000e+00 : f32
    %103 = vector.broadcast %cst_94 : f32 to vector<256x16xf32>
    %104 = arith.cmpf oge, %102, %103 : vector<256x16xf32>
    %cst_95 = arith.constant 1.000000e+00 : f32
    %cst_96 = arith.constant -1.000000e+00 : f32
    %105 = vector.broadcast %cst_95 : f32 to vector<256x16xf32>
    %106 = vector.broadcast %cst_96 : f32 to vector<256x16xf32>
    %107 = arith.select %104, %105, %106 : vector<256x16xi1>, vector<256x16xf32>
    %108 = math.absf %102 : vector<256x16xf32>
    %cst_97 = arith.constant 0.327591091 : f32
    %109 = vector.broadcast %cst_97 : f32 to vector<256x16xf32>
    %110 = arith.mulf %109, %108 : vector<256x16xf32>
    %cst_98 = arith.constant 1.000000e+00 : f32
    %111 = vector.broadcast %cst_98 : f32 to vector<256x16xf32>
    %112 = arith.addf %111, %110 : vector<256x16xf32>
    %113 = tpu.reciprocal %112 {approx = true} : vector<256x16xf32> -> vector<256x16xf32>
    %cst_99 = arith.constant 1.06140542 : f32
    %114 = vector.broadcast %cst_99 : f32 to vector<256x16xf32>
    %115 = arith.mulf %114, %113 : vector<256x16xf32>
    %cst_100 = arith.constant -1.45315206 : f32
    %116 = vector.broadcast %cst_100 : f32 to vector<256x16xf32>
    %117 = arith.addf %115, %116 : vector<256x16xf32>
    %118 = arith.mulf %117, %113 : vector<256x16xf32>
    %cst_101 = arith.constant 1.42141378 : f32
    %119 = vector.broadcast %cst_101 : f32 to vector<256x16xf32>
    %120 = arith.addf %118, %119 : vector<256x16xf32>
    %121 = arith.mulf %120, %113 : vector<256x16xf32>
    %cst_102 = arith.constant -0.284496725 : f32
    %122 = vector.broadcast %cst_102 : f32 to vector<256x16xf32>
    %123 = arith.addf %121, %122 : vector<256x16xf32>
    %124 = arith.mulf %123, %113 : vector<256x16xf32>
    %cst_103 = arith.constant 0.254829586 : f32
    %125 = vector.broadcast %cst_103 : f32 to vector<256x16xf32>
    %126 = arith.addf %124, %125 : vector<256x16xf32>
    %127 = arith.mulf %126, %113 : vector<256x16xf32>
    %cst_104 = arith.constant 0.000000e+00 : f32
    %128 = vector.broadcast %cst_104 : f32 to vector<256x16xf32>
    %129 = arith.subf %128, %108 : vector<256x16xf32>
    %130 = arith.mulf %129, %108 : vector<256x16xf32>
    %131 = math.exp %130 : vector<256x16xf32>
    %132 = arith.mulf %127, %131 : vector<256x16xf32>
    %cst_105 = arith.constant 1.000000e+00 : f32
    %133 = vector.broadcast %cst_105 : f32 to vector<256x16xf32>
    %134 = arith.subf %133, %132 : vector<256x16xf32>
    %135 = arith.mulf %107, %134 : vector<256x16xf32>
    %cst_106 = arith.constant 1.000000e+00 : f32
    %136 = vector.broadcast %cst_106 : f32 to vector<256x16xf32>
    %137 = arith.addf %136, %135 : vector<256x16xf32>
    %138 = arith.mulf %100, %137 : vector<256x16xf32>
    %139 = vector.shape_cast %138 : vector<256x16xf32> to vector<16x16x16xf32>
    %cst_107 = arith.constant 0.000000e+00 : f32
    %140 = vector.broadcast %cst_107 : f32 to vector<1x18x16xf32>
    %c0_108 = arith.constant 0 : index
    %c0_109 = arith.constant 0 : index
    %c0_110 = arith.constant 0 : index
    %141 = vector.load %arg8[%c0_108, %c0_109, %c0_110] : memref<18x18x16xf32, #tpu.memory_space<vmem>>, vector<1x18x16xf32>
    tpu.vector_store %arg8[%c0_108, %c0_109, %c0_110], %140 {strides = array<i32>} : memref<18x18x16xf32, #tpu.memory_space<vmem>>, vector<1x18x16xf32>,
    %c17_111 = arith.constant 17 : index
    %c0_112 = arith.constant 0 : index
    %c0_113 = arith.constant 0 : index
    %142 = vector.load %arg8[%c17_111, %c0_112, %c0_113] : memref<18x18x16xf32, #tpu.memory_space<vmem>>, vector<1x18x16xf32>
    tpu.vector_store %arg8[%c17_111, %c0_112, %c0_113], %140 {strides = array<i32>} : memref<18x18x16xf32, #tpu.memory_space<vmem>>, vector<1x18x16xf32>,
    %cst_114 = arith.constant 0.000000e+00 : f32
    %143 = vector.broadcast %cst_114 : f32 to vector<16x1x16xf32>
    %c1_115 = arith.constant 1 : index
    %c0_116 = arith.constant 0 : index
    %c0_117 = arith.constant 0 : index
    %144 = vector.load %arg8[%c1_115, %c0_116, %c0_117] : memref<18x18x16xf32, #tpu.memory_space<vmem>>, vector<16x1x16xf32>
    tpu.vector_store %arg8[%c1_115, %c0_116, %c0_117], %143 {strides = array<i32>} : memref<18x18x16xf32, #tpu.memory_space<vmem>>, vector<16x1x16xf32>,
    %c1_118 = arith.constant 1 : index
    %c17_119 = arith.constant 17 : index
    %c0_120 = arith.constant 0 : index
    %145 = vector.load %arg8[%c1_118, %c17_119, %c0_120] : memref<18x18x16xf32, #tpu.memory_space<vmem>>, vector<16x1x16xf32>
    tpu.vector_store %arg8[%c1_118, %c17_119, %c0_120], %143 {strides = array<i32>} : memref<18x18x16xf32, #tpu.memory_space<vmem>>, vector<16x1x16xf32>,
    %c1_121 = arith.constant 1 : index
    %c1_122 = arith.constant 1 : index
    %c0_123 = arith.constant 0 : index
    %146 = vector.load %arg8[%c1_121, %c1_122, %c0_123] : memref<18x18x16xf32, #tpu.memory_space<vmem>>, vector<16x16x16xf32>
    tpu.vector_store %arg8[%c1_121, %c1_122, %c0_123], %139 {strides = array<i32>} : memref<18x18x16xf32, #tpu.memory_space<vmem>>, vector<16x16x16xf32>,
    %c0_124 = arith.constant 0 : index
    %c0_125 = arith.constant 0 : index
    %c0_126 = arith.constant 0 : index
    %147 = vector.load %arg8[%c0_124, %c0_125, %c0_126] : memref<18x18x16xf32, #tpu.memory_space<vmem>>, vector<16x16x16xf32>
    %148 = vector.shape_cast %147 : vector<16x16x16xf32> to vector<256x16xf32>
    %149 = arith.truncf %148 : vector<256x16xf32> to vector<256x16xbf16>
    %c0_127 = arith.constant 0 : index
    %c0_128 = arith.constant 0 : index
    %c0_129 = arith.constant 0 : index
    %150 = vector.load %arg3[%c0_127, %c0_128, %c0_129] : memref<9x16x16xbf16, #tpu.memory_space<vmem>>, vector<1x16x16xbf16>
    %151 = vector.shape_cast %150 : vector<1x16x16xbf16> to vector<16x16xbf16>
    %cst_130 = arith.constant dense<0.000000e+00> : vector<256x16xf32>
    %152 = tpu.matmul %149, %151, %cst_130 {dimension_numbers = #tpu.dot_dimension_numbers<[1], [0], [0], [1], [0, 0, 1, 1], [], []>} : vector<256x16xbf16>, vector<16x16xbf16>, vector<256x16xf32> -> vector<256x16xf32>
    %153 = vector.broadcast %3 : vector<1x16xf32> to vector<256x16xf32>
    %154 = arith.addf %153, %152 : vector<256x16xf32>
    %c0_131 = arith.constant 0 : index
    %c1_132 = arith.constant 1 : index
    %c0_133 = arith.constant 0 : index
    %155 = vector.load %arg8[%c0_131, %c1_132, %c0_133] : memref<18x18x16xf32, #tpu.memory_space<vmem>>, vector<16x16x16xf32>
    %156 = vector.shape_cast %155 : vector<16x16x16xf32> to vector<256x16xf32>
    %157 = arith.truncf %156 : vector<256x16xf32> to vector<256x16xbf16>
    %c1_134 = arith.constant 1 : index
    %c0_135 = arith.constant 0 : index
    %c0_136 = arith.constant 0 : index
    %158 = vector.load %arg3[%c1_134, %c0_135, %c0_136] : memref<9x16x16xbf16, #tpu.memory_space<vmem>>, vector<1x16x16xbf16>
    %159 = vector.shape_cast %158 : vector<1x16x16xbf16> to vector<16x16xbf16>
    %cst_137 = arith.constant dense<0.000000e+00> : vector<256x16xf32>
    %160 = tpu.matmul %157, %159, %cst_137 {dimension_numbers = #tpu.dot_dimension_numbers<[1], [0], [0], [1], [0, 0, 1, 1], [], []>} : vector<256x16xbf16>, vector<16x16xbf16>, vector<256x16xf32> -> vector<256x16xf32>
    %161 = arith.addf %154, %160 : vector<256x16xf32>
    %c0_138 = arith.constant 0 : index
    %c2_139 = arith.constant 2 : index
    %c0_140 = arith.constant 0 : index
    %162 = vector.load %arg8[%c0_138, %c2_139, %c0_140] : memref<18x18x16xf32, #tpu.memory_space<vmem>>, vector<16x16x16xf32>
    %163 = vector.shape_cast %162 : vector<16x16x16xf32> to vector<256x16xf32>
    %164 = arith.truncf %163 : vector<256x16xf32> to vector<256x16xbf16>
    %c2_141 = arith.constant 2 : index
    %c0_142 = arith.constant 0 : index
    %c0_143 = arith.constant 0 : index
    %165 = vector.load %arg3[%c2_141, %c0_142, %c0_143] : memref<9x16x16xbf16, #tpu.memory_space<vmem>>, vector<1x16x16xbf16>
    %166 = vector.shape_cast %165 : vector<1x16x16xbf16> to vector<16x16xbf16>
    %cst_144 = arith.constant dense<0.000000e+00> : vector<256x16xf32>
    %167 = tpu.matmul %164, %166, %cst_144 {dimension_numbers = #tpu.dot_dimension_numbers<[1], [0], [0], [1], [0, 0, 1, 1], [], []>} : vector<256x16xbf16>, vector<16x16xbf16>, vector<256x16xf32> -> vector<256x16xf32>
    %168 = arith.addf %161, %167 : vector<256x16xf32>
    %c1_145 = arith.constant 1 : index
    %c0_146 = arith.constant 0 : index
    %c0_147 = arith.constant 0 : index
    %169 = vector.load %arg8[%c1_145, %c0_146, %c0_147] : memref<18x18x16xf32, #tpu.memory_space<vmem>>, vector<16x16x16xf32>
    %170 = vector.shape_cast %169 : vector<16x16x16xf32> to vector<256x16xf32>
    %171 = arith.truncf %170 : vector<256x16xf32> to vector<256x16xbf16>
    %c3_148 = arith.constant 3 : index
    %c0_149 = arith.constant 0 : index
    %c0_150 = arith.constant 0 : index
    %172 = vector.load %arg3[%c3_148, %c0_149, %c0_150] : memref<9x16x16xbf16, #tpu.memory_space<vmem>>, vector<1x16x16xbf16>
    %173 = vector.shape_cast %172 : vector<1x16x16xbf16> to vector<16x16xbf16>
    %cst_151 = arith.constant dense<0.000000e+00> : vector<256x16xf32>
    %174 = tpu.matmul %171, %173, %cst_151 {dimension_numbers = #tpu.dot_dimension_numbers<[1], [0], [0], [1], [0, 0, 1, 1], [], []>} : vector<256x16xbf16>, vector<16x16xbf16>, vector<256x16xf32> -> vector<256x16xf32>
    %175 = arith.addf %168, %174 : vector<256x16xf32>
    %c1_152 = arith.constant 1 : index
    %c1_153 = arith.constant 1 : index
    %c0_154 = arith.constant 0 : index
    %176 = vector.load %arg8[%c1_152, %c1_153, %c0_154] : memref<18x18x16xf32, #tpu.memory_space<vmem>>, vector<16x16x16xf32>
    %177 = vector.shape_cast %176 : vector<16x16x16xf32> to vector<256x16xf32>
    %178 = arith.truncf %177 : vector<256x16xf32> to vector<256x16xbf16>
    %c4_155 = arith.constant 4 : index
    %c0_156 = arith.constant 0 : index
    %c0_157 = arith.constant 0 : index
    %179 = vector.load %arg3[%c4_155, %c0_156, %c0_157] : memref<9x16x16xbf16, #tpu.memory_space<vmem>>, vector<1x16x16xbf16>
    %180 = vector.shape_cast %179 : vector<1x16x16xbf16> to vector<16x16xbf16>
    %cst_158 = arith.constant dense<0.000000e+00> : vector<256x16xf32>
    %181 = tpu.matmul %178, %180, %cst_158 {dimension_numbers = #tpu.dot_dimension_numbers<[1], [0], [0], [1], [0, 0, 1, 1], [], []>} : vector<256x16xbf16>, vector<16x16xbf16>, vector<256x16xf32> -> vector<256x16xf32>
    %182 = arith.addf %175, %181 : vector<256x16xf32>
    %c1_159 = arith.constant 1 : index
    %c2_160 = arith.constant 2 : index
    %c0_161 = arith.constant 0 : index
    %183 = vector.load %arg8[%c1_159, %c2_160, %c0_161] : memref<18x18x16xf32, #tpu.memory_space<vmem>>, vector<16x16x16xf32>
    %184 = vector.shape_cast %183 : vector<16x16x16xf32> to vector<256x16xf32>
    %185 = arith.truncf %184 : vector<256x16xf32> to vector<256x16xbf16>
    %c5_162 = arith.constant 5 : index
    %c0_163 = arith.constant 0 : index
    %c0_164 = arith.constant 0 : index
    %186 = vector.load %arg3[%c5_162, %c0_163, %c0_164] : memref<9x16x16xbf16, #tpu.memory_space<vmem>>, vector<1x16x16xbf16>
    %187 = vector.shape_cast %186 : vector<1x16x16xbf16> to vector<16x16xbf16>
    %cst_165 = arith.constant dense<0.000000e+00> : vector<256x16xf32>
    %188 = tpu.matmul %185, %187, %cst_165 {dimension_numbers = #tpu.dot_dimension_numbers<[1], [0], [0], [1], [0, 0, 1, 1], [], []>} : vector<256x16xbf16>, vector<16x16xbf16>, vector<256x16xf32> -> vector<256x16xf32>
    %189 = arith.addf %182, %188 : vector<256x16xf32>
    %c2_166 = arith.constant 2 : index
    %c0_167 = arith.constant 0 : index
    %c0_168 = arith.constant 0 : index
    %190 = vector.load %arg8[%c2_166, %c0_167, %c0_168] : memref<18x18x16xf32, #tpu.memory_space<vmem>>, vector<16x16x16xf32>
    %191 = vector.shape_cast %190 : vector<16x16x16xf32> to vector<256x16xf32>
    %192 = arith.truncf %191 : vector<256x16xf32> to vector<256x16xbf16>
    %c6_169 = arith.constant 6 : index
    %c0_170 = arith.constant 0 : index
    %c0_171 = arith.constant 0 : index
    %193 = vector.load %arg3[%c6_169, %c0_170, %c0_171] : memref<9x16x16xbf16, #tpu.memory_space<vmem>>, vector<1x16x16xbf16>
    %194 = vector.shape_cast %193 : vector<1x16x16xbf16> to vector<16x16xbf16>
    %cst_172 = arith.constant dense<0.000000e+00> : vector<256x16xf32>
    %195 = tpu.matmul %192, %194, %cst_172 {dimension_numbers = #tpu.dot_dimension_numbers<[1], [0], [0], [1], [0, 0, 1, 1], [], []>} : vector<256x16xbf16>, vector<16x16xbf16>, vector<256x16xf32> -> vector<256x16xf32>
    %196 = arith.addf %189, %195 : vector<256x16xf32>
    %c2_173 = arith.constant 2 : index
    %c1_174 = arith.constant 1 : index
    %c0_175 = arith.constant 0 : index
    %197 = vector.load %arg8[%c2_173, %c1_174, %c0_175] : memref<18x18x16xf32, #tpu.memory_space<vmem>>, vector<16x16x16xf32>
    %198 = vector.shape_cast %197 : vector<16x16x16xf32> to vector<256x16xf32>
    %199 = arith.truncf %198 : vector<256x16xf32> to vector<256x16xbf16>
    %c7_176 = arith.constant 7 : index
    %c0_177 = arith.constant 0 : index
    %c0_178 = arith.constant 0 : index
    %200 = vector.load %arg3[%c7_176, %c0_177, %c0_178] : memref<9x16x16xbf16, #tpu.memory_space<vmem>>, vector<1x16x16xbf16>
    %201 = vector.shape_cast %200 : vector<1x16x16xbf16> to vector<16x16xbf16>
    %cst_179 = arith.constant dense<0.000000e+00> : vector<256x16xf32>
    %202 = tpu.matmul %199, %201, %cst_179 {dimension_numbers = #tpu.dot_dimension_numbers<[1], [0], [0], [1], [0, 0, 1, 1], [], []>} : vector<256x16xbf16>, vector<16x16xbf16>, vector<256x16xf32> -> vector<256x16xf32>
    %203 = arith.addf %196, %202 : vector<256x16xf32>
    %c2_180 = arith.constant 2 : index
    %c2_181 = arith.constant 2 : index
    %c0_182 = arith.constant 0 : index
    %204 = vector.load %arg8[%c2_180, %c2_181, %c0_182] : memref<18x18x16xf32, #tpu.memory_space<vmem>>, vector<16x16x16xf32>
    %205 = vector.shape_cast %204 : vector<16x16x16xf32> to vector<256x16xf32>
    %206 = arith.truncf %205 : vector<256x16xf32> to vector<256x16xbf16>
    %c8_183 = arith.constant 8 : index
    %c0_184 = arith.constant 0 : index
    %c0_185 = arith.constant 0 : index
    %207 = vector.load %arg3[%c8_183, %c0_184, %c0_185] : memref<9x16x16xbf16, #tpu.memory_space<vmem>>, vector<1x16x16xbf16>
    %208 = vector.shape_cast %207 : vector<1x16x16xbf16> to vector<16x16xbf16>
    %cst_186 = arith.constant dense<0.000000e+00> : vector<256x16xf32>
    %209 = tpu.matmul %206, %208, %cst_186 {dimension_numbers = #tpu.dot_dimension_numbers<[1], [0], [0], [1], [0, 0, 1, 1], [], []>} : vector<256x16xbf16>, vector<16x16xbf16>, vector<256x16xf32> -> vector<256x16xf32>
    %210 = arith.addf %203, %209 : vector<256x16xf32>
    %cst_187 = arith.constant dense<0.000000e+00> : vector<16xf32>
    %211 = vector.multi_reduction <add>, %210, %cst_187 [0] : vector<256x16xf32> to vector<16xf32>
    %212 = vector.shape_cast %211 : vector<16xf32> to vector<1x16xf32>
    %cst_188 = arith.constant dense<0.000000e+00> : vector<1x16xf32>
    %213 = tpu.matmul %212, %6, %cst_188 {dimension_numbers = #tpu.dot_dimension_numbers<[1], [0], [0], [1], [0, 0, 1, 1], [], []>} : vector<1x16xf32>, vector<16x16xf32>, vector<1x16xf32> -> vector<1x16xf32>
    %214 = vector.broadcast %213 : vector<1x16xf32> to vector<256x16xf32>
    %215 = arith.subf %210, %214 : vector<256x16xf32>
    %216 = arith.mulf %215, %215 : vector<256x16xf32>
    %cst_189 = arith.constant dense<0.000000e+00> : vector<16xf32>
    %217 = vector.multi_reduction <add>, %216, %cst_189 [0] : vector<256x16xf32> to vector<16xf32>
    %218 = vector.shape_cast %217 : vector<16xf32> to vector<1x16xf32>
    %cst_190 = arith.constant dense<0.000000e+00> : vector<1x16xf32>
    %219 = tpu.matmul %218, %6, %cst_190 {dimension_numbers = #tpu.dot_dimension_numbers<[1], [0], [0], [1], [0, 0, 1, 1], [], []>} : vector<1x16xf32>, vector<16x16xf32>, vector<1x16xf32> -> vector<1x16xf32>
    %cst_191 = arith.constant 9.99999974E-6 : f32
    %220 = vector.broadcast %cst_191 : f32 to vector<1x16xf32>
    %221 = arith.addf %219, %220 : vector<1x16xf32>
    %222 = math.rsqrt %221 : vector<1x16xf32>
    %223 = vector.broadcast %222 : vector<1x16xf32> to vector<256x16xf32>
    %224 = arith.mulf %215, %223 : vector<256x16xf32>
    %225 = vector.broadcast %4 : vector<1x16xf32> to vector<256x16xf32>
    %226 = arith.mulf %224, %225 : vector<256x16xf32>
    %227 = vector.broadcast %5 : vector<1x16xf32> to vector<256x16xf32>
    %228 = arith.addf %226, %227 : vector<256x16xf32>
    %cst_192 = arith.constant 5.000000e-01 : f32
    %229 = vector.broadcast %cst_192 : f32 to vector<256x16xf32>
    %230 = arith.mulf %229, %228 : vector<256x16xf32>
    %cst_193 = arith.constant 0.707106769 : f32
    %231 = vector.broadcast %cst_193 : f32 to vector<256x16xf32>
    %232 = arith.mulf %228, %231 : vector<256x16xf32>
    %cst_194 = arith.constant 0.000000e+00 : f32
    %233 = vector.broadcast %cst_194 : f32 to vector<256x16xf32>
    %234 = arith.cmpf oge, %232, %233 : vector<256x16xf32>
    %cst_195 = arith.constant 1.000000e+00 : f32
    %cst_196 = arith.constant -1.000000e+00 : f32
    %235 = vector.broadcast %cst_195 : f32 to vector<256x16xf32>
    %236 = vector.broadcast %cst_196 : f32 to vector<256x16xf32>
    %237 = arith.select %234, %235, %236 : vector<256x16xi1>, vector<256x16xf32>
    %238 = math.absf %232 : vector<256x16xf32>
    %cst_197 = arith.constant 0.327591091 : f32
    %239 = vector.broadcast %cst_197 : f32 to vector<256x16xf32>
    %240 = arith.mulf %239, %238 : vector<256x16xf32>
    %cst_198 = arith.constant 1.000000e+00 : f32
    %241 = vector.broadcast %cst_198 : f32 to vector<256x16xf32>
    %242 = arith.addf %241, %240 : vector<256x16xf32>
    %243 = tpu.reciprocal %242 {approx = true} : vector<256x16xf32> -> vector<256x16xf32>
    %cst_199 = arith.constant 1.06140542 : f32
    %244 = vector.broadcast %cst_199 : f32 to vector<256x16xf32>
    %245 = arith.mulf %244, %243 : vector<256x16xf32>
    %cst_200 = arith.constant -1.45315206 : f32
    %246 = vector.broadcast %cst_200 : f32 to vector<256x16xf32>
    %247 = arith.addf %245, %246 : vector<256x16xf32>
    %248 = arith.mulf %247, %243 : vector<256x16xf32>
    %cst_201 = arith.constant 1.42141378 : f32
    %249 = vector.broadcast %cst_201 : f32 to vector<256x16xf32>
    %250 = arith.addf %248, %249 : vector<256x16xf32>
    %251 = arith.mulf %250, %243 : vector<256x16xf32>
    %cst_202 = arith.constant -0.284496725 : f32
    %252 = vector.broadcast %cst_202 : f32 to vector<256x16xf32>
    %253 = arith.addf %251, %252 : vector<256x16xf32>
    %254 = arith.mulf %253, %243 : vector<256x16xf32>
    %cst_203 = arith.constant 0.254829586 : f32
    %255 = vector.broadcast %cst_203 : f32 to vector<256x16xf32>
    %256 = arith.addf %254, %255 : vector<256x16xf32>
    %257 = arith.mulf %256, %243 : vector<256x16xf32>
    %cst_204 = arith.constant 0.000000e+00 : f32
    %258 = vector.broadcast %cst_204 : f32 to vector<256x16xf32>
    %259 = arith.subf %258, %238 : vector<256x16xf32>
    %260 = arith.mulf %259, %238 : vector<256x16xf32>
    %261 = math.exp %260 : vector<256x16xf32>
    %262 = arith.mulf %257, %261 : vector<256x16xf32>
    %cst_205 = arith.constant 1.000000e+00 : f32
    %263 = vector.broadcast %cst_205 : f32 to vector<256x16xf32>
    %264 = arith.subf %263, %262 : vector<256x16xf32>
    %265 = arith.mulf %237, %264 : vector<256x16xf32>
    %cst_206 = arith.constant 1.000000e+00 : f32
    %266 = vector.broadcast %cst_206 : f32 to vector<256x16xf32>
    %267 = arith.addf %266, %265 : vector<256x16xf32>
    %268 = arith.mulf %230, %267 : vector<256x16xf32>
    %269 = vector.shape_cast %268 : vector<256x16xf32> to vector<8x2x16x16xf32>
    %cst_207 = arith.constant dense<0xFF800000> : vector<8x16x16xf32>
    %270 = vector.multi_reduction <maximumf>, %269, %cst_207 [1] : vector<8x2x16x16xf32> to vector<8x16x16xf32>
    %271 = vector.shape_cast %270 : vector<8x16x16xf32> to vector<8x8x2x16xf32>
    %cst_208 = arith.constant dense<0xFF800000> : vector<8x8x16xf32>
    %272 = vector.multi_reduction <maximumf>, %271, %cst_208 [2] : vector<8x8x2x16xf32> to vector<8x8x16xf32>
    %273 = vector.shape_cast %272 : vector<8x8x16xf32> to vector<64x16xf32>
    %274 = tpu.transpose %273, [1, 0] : vector<64x16xf32> -> vector<16x64xf32>
    %c0_209 = arith.constant 0 : index
    %c0_210 = arith.constant 0 : index
    %c0_211 = arith.constant 0 : index
    %275 = vector.load %arg6[%c0_209, %c0_210, %c0_211] : memref<1x16x64xf32, #tpu.memory_space<vmem>>, vector<1x16x64xf32>
    %276 = vector.shape_cast %275 : vector<1x16x64xf32> to vector<16x64xf32>
    %277 = vector.shape_cast %274 : vector<16x64xf32> to vector<1x16x64xf32>
    tpu.vector_store %arg6[%c0_209, %c0_210, %c0_211], %277 {strides = array<i32>} : memref<1x16x64xf32, #tpu.memory_space<vmem>>, vector<1x16x64xf32>,
    return
  }
  func.func @transform_0(%arg0: i32) -> (i32, i32, i32, i32) {
    %c0_i32 = arith.constant 0 : i32
    %c0_i32_0 = arith.constant 0 : i32
    %c0_i32_1 = arith.constant 0 : i32
    %c0_i32_2 = arith.constant 0 : i32
    return %arg0, %c0_i32, %c0_i32_0, %c0_i32_1 : i32, i32, i32, i32
  }
  func.func @transform_1(%arg0: i32) -> (i32, i32, i32) {
    %c0_i32 = arith.constant 0 : i32
    %c0_i32_0 = arith.constant 0 : i32
    %c0_i32_1 = arith.constant 0 : i32
    %c0_i32_2 = arith.constant 0 : i32
    return %c0_i32, %c0_i32_0, %c0_i32_1 : i32, i32, i32
  }
  func.func @transform_2(%arg0: i32) -> (i32, i32, i32) {
    %c0_i32 = arith.constant 0 : i32
    %c0_i32_0 = arith.constant 0 : i32
    %c0_i32_1 = arith.constant 0 : i32
    %c0_i32_2 = arith.constant 0 : i32
    return %c0_i32, %c0_i32_0, %c0_i32_1 : i32, i32, i32
  }
  func.func @transform_3(%arg0: i32) -> (i32, i32) {
    %c0_i32 = arith.constant 0 : i32
    %c0_i32_0 = arith.constant 0 : i32
    %c0_i32_1 = arith.constant 0 : i32
    return %c0_i32, %c0_i32_0 : i32, i32
  }
  func.func @transform_4(%arg0: i32) -> (i32, i32) {
    %c0_i32 = arith.constant 0 : i32
    %c0_i32_0 = arith.constant 0 : i32
    %c0_i32_1 = arith.constant 0 : i32
    return %c0_i32, %c0_i32_0 : i32, i32
  }
  func.func @transform_5(%arg0: i32) -> (i32, i32, i32) {
    %c0_i32 = arith.constant 0 : i32
    %c0_i32_0 = arith.constant 0 : i32
    %c0_i32_1 = arith.constant 0 : i32
    return %arg0, %c0_i32, %c0_i32_0 : i32, i32, i32
  }
}

</mosaic_0001>

<bundles_post_ra>
// kernel: tpu_custom_call.1
= control target key start
LH: loop header
LB: loop body
LE: loop exit
PB: predicated region body
PF: predicated region fallthrough
CT: control target
= control target key end

     0   :  { %10 = vsyncpa [#allocation5], 0  ;;  %s16611_s0 = inlined_call_operand.vmem [shape: bf16[2,16,16,4], index: 0, kind: input, shape index: {}]   ;;  %s16612_s1 = inlined_call_operand.vmem [shape: bf16[9,4,16], index: 1, kind: input, shape index: {}]   ;;  %s16613_s2 = inlined_call_operand.vmem [shape: bf16[9,16,16], index: 2, kind: input, shape index: {}]   ;;  %s16614_s3 = inlined_call_operand.vmem [shape: f32[6,16], index: 3, kind: input, shape index: {}]   ;;  %s16615_s4 = inlined_call_operand.vmem [shape: f32[16,16], index: 4, kind: input, shape index: {}]   ;;  %s16616_s5 = inlined_call_operand.hbm [shape: f32[2,16,64], index: 5, kind: output, shape index: {}]  }
   0x1   :  { %12 = vsyncpa [#allocation5 + $0x1], 0  ;;  %s11860_s18 = smov 0   ;;  %s11862_s19 = smov 0  }
   0x2   :  { %s11864_s20 = smov 0   ;;  %s11866_s21 = smov 0  }
   0x3 LB: > { %s11881_s22 = sadd.s32 4294967295, %s11820_s21   ;;  %s9463_s23 = sadd.s32 4294967294, %s11820_s21   ;;  %s11820_s21 = sphi %s11866_s21, %s17560_s21   ;;  %s11816_s20 = sphi %s11864_s20, %s17559_s20   ;;  %s11812_s19 = sphi %s11862_s19, %s17558_s19   ;;  %s11808_s18 = sphi %s11860_s18, %s17557_s18  }
   0x4   : > { %s11885_s24 = sadd.s32 1, %s11820_s21   ;;  %s135_s25 = sadd.s32 1, %s11816_s20 }
   0x5   : > { %s132_s26 = ssub.s32 %s11820_s21, %s11885_s24  ;;  %p145_p0 = scmp.ne.s32.totalorder %s11816_s20, %s11812_s19 }
   0x6   : > { %p133_p1 = scmp.eq.s32.totalorder %s132_s26, 0  ;;  %p146_p2 = scmp.eq.s32.totalorder %s11881_s22, 1 }
   0x7   : > { %p151_p3 = scmp.ne.s32.totalorder %s11812_s19, %s11808_s18  ;;  %p152_p4 = scmp.eq.s32.totalorder %s9463_s23, 1 }
   0x8   : > { %s11896_s27 = scalar_select %p133_p1, %s11816_s20, %s135_s25  }
   0x9   : > { %p11898_p5 = por %p146_p2, %p145_p0  ;;  %p11902_p6 = por %p152_p4, %p151_p3 }
   0xa   : > { %p9466_p7 = scmp.ge.s32.totalorder %s11820_s21, 1  ;;  %p190_p8 = scmp.lt.s32.totalorder %s11820_s21, 3 }
   0xc   : > { %p191_p9 = pnand %p9466_p7, %p190_p8 }
   0xe   : > { %194 = sbr.rel (%p191_p9) target bundleno = 3509 (0xdb5), region = 40 }
  0x15   : > { %v419_v0 = vld [vmem:[%s16612_s1] sm:$0x3]  ;;  %vm468_vm0 = vcmask 1041408   ;;  %vm296_vm1 = vcmask 31744   ;;  %p218_p10 = scmp.lt.s32.totalorder %s11881_s22, 1  ;;  %v16617_v2 = vmov 0.0  }
  0x16   : > { %11433 = vmatprep.subr.msk.bf16.mxu0 %vm468_vm0, %v419_v0  ;;  %v470_v1 = vsel %vm468_vm0, %v419_v0, 0  ;;  %297 = vst.msk [vmem:[#allocation2] sm:$0xff] %vm296_vm1, %v16617_v2  ;;  %298 = vst.msk [vmem:[#allocation2 + $0x8] sm:$0xff] %vm296_vm1, %v16617_v2  ;;  %v11925_v3 = vld [vmem:[%s16612_s1 + $0x2] sm:$0x3]  ;;  %vm306_vm2 = vcmask 24576  }
  0x17   : > { %302 = vst.msk [vmem:[#allocation2 + $0x198] sm:$0xff] %vm296_vm1, %v16617_v2  ;;  %303 = vst.msk [vmem:[#allocation2 + $0x1a0] sm:$0xff] %vm296_vm1, %v16617_v2  ;;  %vm299_vm3 = vcmask 25600   ;;  %10206 = vmatpush3.bf16.msra.mxu0 %v470_v1  ;;  %s11928_s9 = scalar_select %p218_p10, %s11881_s22, 1  ;;  %v768_v56 = vsel %vm468_vm0, %v11925_v3, 0  ;;  %vm16624_vm4 = vcmask 130048  }
  0x18   : > { %307 = vst.msk [vmem:[#allocation2 + $0x18] sm:$0x1] %vm306_vm2, %v16617_v2  ;;  %308 = vst.msk [vmem:[#allocation2 + $0x30] sm:$0x1] %vm306_vm2, %v16617_v2  ;;  %11434 = vmatprep.subr.msk.bf16.mxu0 %vm468_vm0, %v11925_v3  ;;  %v12061_v59 = vld [vmem:[%s16612_s1 + $0x4] sm:$0x3] }
  0x19   : > { %309 = vst.msk [vmem:[#allocation2 + $0x48] sm:$0x1] %vm306_vm2, %v16617_v2  ;;  %310 = vst.msk [vmem:[#allocation2 + $0x60] sm:$0x1] %vm306_vm2, %v16617_v2  ;;  %s9806_s10 = sshll.u32 %s11928_s9, 7  ;;  %vm16623_vm5 = vmmov 0  }
  0x1a   : > { %311 = vst.msk [vmem:[#allocation2 + $0x78] sm:$0x1] %vm306_vm2, %v16617_v2  ;;  %312 = vst.msk [vmem:[#allocation2 + $0x90] sm:$0x1] %vm306_vm2, %v16617_v2  ;;  %s12004_s13 = scalar_lea.vmem %s16611_s0, %s9806_s10  ;;  %10515 = vmatprep.mubr.msk.f32.mxu1 %vm16623_vm5, %v16617_v2  ;;  %s215_s16 = sand.u32 1, %s11812_s19  }
  0x1b   : > { %313 = vst.msk [vmem:[#allocation2 + $0xa8] sm:$0x1] %vm306_vm2, %v16617_v2  ;;  %314 = vst.msk [vmem:[#allocation2 + $0xc0] sm:$0x1] %vm306_vm2, %v16617_v2  ;;  %v9809_v4 = vld [vmem:[%s12004_s13] sm:$0xff]   ;;  %v9872_v5 = vld [vmem:[%s12004_s13 + $0x8] sm:$0xff]  }
  0x1c   : > { %315 = vst.msk [vmem:[#allocation2 + $0xd8] sm:$0x1] %vm306_vm2, %v16617_v2  ;;  %316 = vst.msk [vmem:[#allocation2 + $0xf0] sm:$0x1] %vm306_vm2, %v16617_v2  ;;  %v9873_v6 = vld [vmem:[%s12004_s13 + $0x10] sm:$0xff]   ;;  %v9810_v7 = vunpack.c.l.bf16 %v9809_v4  ;;  %v9811_v8 = vunpack.c.h.bf16 %v9809_v4  ;;  %v9814_v9 = vunpack.c.l.bf16 %v9872_v5  ;;  %v9815_v10 = vunpack.c.h.bf16 %v9872_v5  ;;  %v9874_v11 = vld [vmem:[%s12004_s13 + $0x18] sm:$0xff]  }
  0x1d   : > { %317 = vst.msk [vmem:[#allocation2 + $0x108] sm:$0x1] %vm306_vm2, %v16617_v2  ;;  %318 = vst.msk [vmem:[#allocation2 + $0x120] sm:$0x1] %vm306_vm2, %v16617_v2  ;;  %v9875_v12 = vld [vmem:[%s12004_s13 + $0x20] sm:$0xff]   ;;  %v9876_v13 = vld [vmem:[%s12004_s13 + $0x28] sm:$0xff]   ;;  %v9818_v16 = vunpack.c.l.bf16 %v9873_v6  ;;  %v9819_v17 = vunpack.c.h.bf16 %v9873_v6  ;;  %v9822_v18 = vunpack.c.l.bf16 %v9874_v11  ;;  %v9823_v19 = vunpack.c.h.bf16 %v9874_v11 }
  0x1e   : > { %319 = vst.msk [vmem:[#allocation2 + $0x138] sm:$0x1] %vm306_vm2, %v16617_v2  ;;  %320 = vst.msk [vmem:[#allocation2 + $0x150] sm:$0x1] %vm306_vm2, %v16617_v2  ;;  %v371_v14 = vld [vmem:[#allocation2] sm:$0xff]  ;;  %v372_v15 = vld [vmem:[#allocation2 + $0x8] sm:$0xff]  ;;  %v9826_v22 = vunpack.c.l.bf16 %v9875_v12  ;;  %v9827_v23 = vunpack.c.h.bf16 %v9875_v12  ;;  %v9830_v24 = vunpack.c.l.bf16 %v9876_v13  ;;  %v9831_v28 = vunpack.c.h.bf16 %v9876_v13 }
  0x1f   : > { %321 = vst.msk [vmem:[#allocation2 + $0x168] sm:$0x1] %vm306_vm2, %v16617_v2  ;;  %322 = vst.msk [vmem:[#allocation2 + $0x180] sm:$0x1] %vm306_vm2, %v16617_v2  ;;  %v9877_v20 = vld [vmem:[%s12004_s13 + $0x30] sm:$0xff]   ;;  %v403_v21 = vpack.c.bf16 %v372_v15, %v371_v14  ;;  %v9878_v25 = vld [vmem:[%s12004_s13 + $0x38] sm:$0xff]  }
  0x20   : > { %323 = vst.msk [vmem:[#allocation2 + $0x29] sm:$0x1] %vm306_vm2, %v16617_v2  ;;  %324 = vst.msk [vmem:[#allocation2 + $0x41] sm:$0x1] %vm306_vm2, %v16617_v2  ;;  %v9879_v26 = vld [vmem:[%s12004_s13 + $0x40] sm:$0xff]   ;;  %v9880_v27 = vld [vmem:[%s12004_s13 + $0x48] sm:$0xff]   ;;  %v9834_v29 = vunpack.c.l.bf16 %v9877_v20  ;;  %v9835_v30 = vunpack.c.h.bf16 %v9877_v20  ;;  %v9838_v31 = vunpack.c.l.bf16 %v9878_v25  ;;  %v9839_v35 = vunpack.c.h.bf16 %v9878_v25 }
  0x21   : > { %325 = vst.msk [vmem:[#allocation2 + $0x59] sm:$0x1] %vm306_vm2, %v16617_v2  ;;  %326 = vst.msk [vmem:[#allocation2 + $0x71] sm:$0x1] %vm306_vm2, %v16617_v2  ;;  %v9881_v32 = vld [vmem:[%s12004_s13 + $0x50] sm:$0xff]   ;;  %v9882_v33 = vld [vmem:[%s12004_s13 + $0x58] sm:$0xff]   ;;  %10207 = vmatprep.mubr.msk.bf16.mxu0 %vm296_vm1, %v403_v21  ;;  %v9842_v36 = vunpack.c.l.bf16 %v9879_v26  ;;  %v9843_v37 = vunpack.c.h.bf16 %v9879_v26  ;;  %v9846_v38 = vunpack.c.l.bf16 %v9880_v27  ;;  %v9847_v41 = vunpack.c.h.bf16 %v9880_v27 }
  0x22   : > { %327 = vst.msk [vmem:[#allocation2 + $0x89] sm:$0x1] %vm306_vm2, %v16617_v2  ;;  %328 = vst.msk [vmem:[#allocation2 + $0xa1] sm:$0x1] %vm306_vm2, %v16617_v2  ;;  %v9883_v34 = vld [vmem:[%s12004_s13 + $0x60] sm:$0xff]   ;;  %v9884_v39 = vld [vmem:[%s12004_s13 + $0x68] sm:$0xff]   ;;  %v9850_v42 = vunpack.c.l.bf16 %v9881_v32  ;;  %v9851_v43 = vunpack.c.h.bf16 %v9881_v32  ;;  %v9854_v44 = vunpack.c.l.bf16 %v9882_v33  ;;  %v9855_v45 = vunpack.c.h.bf16 %v9882_v33 }
  0x23   : > { %329 = vst.msk [vmem:[#allocation2 + $0xb9] sm:$0x1] %vm306_vm2, %v16617_v2  ;;  %330 = vst.msk [vmem:[#allocation2 + $0xd1] sm:$0x1] %vm306_vm2, %v16617_v2  ;;  %v9885_v40 = vld [vmem:[%s12004_s13 + $0x70] sm:$0xff]   ;;  %v9858_v46 = vunpack.c.l.bf16 %v9883_v34  ;;  %v9859_v47 = vunpack.c.h.bf16 %v9883_v34  ;;  %v9862_v48 = vunpack.c.l.bf16 %v9884_v39  ;;  %v9863_v49 = vunpack.c.h.bf16 %v9884_v39  ;;  %s9467_s17 = sshll.u32 %s215_s16, 4 }
  0x24   : > { %331 = vst.msk [vmem:[#allocation2 + $0xe9] sm:$0x1] %vm306_vm2, %v16617_v2  ;;  %332 = vst.msk [vmem:[#allocation2 + $0x101] sm:$0x1] %vm306_vm2, %v16617_v2  ;;  %v9866_v50 = vunpack.c.l.bf16 %v9885_v40  ;;  %v9867_v51 = vunpack.c.h.bf16 %v9885_v40  ;;  %s217_s23 = scalar_lea.vmem [#allocation4], %s9467_s17  ;;  %s9807_s26 = sshll.u32 %s11881_s22, 8 }
  0x25   : > { %333 = vst.msk [vmem:[#allocation2 + $0x119] sm:$0x1] %vm306_vm2, %v16617_v2  ;;  %334 = vst.msk [vmem:[#allocation2 + $0x131] sm:$0x1] %vm306_vm2, %v16617_v2  ;;  %s9401_s25 = sshll.u32 %s217_s23, 4  ;;  %s16568_s7 = scalar_lea.hbm %s16616_s5, %s9807_s26  ;;  %s16563_s25 = int_to_ptr.vmem [resolvable:$true] %s9401_s25 }
  0x26   : > { %335 = vst.msk [vmem:[#allocation2 + $0x149] sm:$0x1] %vm306_vm2, %v16617_v2  ;;  %336 = vst.msk [vmem:[#allocation2 + $0x161] sm:$0x1] %vm306_vm2, %v16617_v2  ;;  %s16570_s8 = scalar_lea.sflag [#allocation5], %s215_s16  ;;  %s11758_s9 = scalar_lea.vmem %s16563_s25, 256 }
  0x27   : > { %337 = vst.msk [vmem:[#allocation2 + $0x179] sm:$0x1] %vm306_vm2, %v16617_v2  ;;  %338 = vst.msk [vmem:[#allocation2 + $0x191] sm:$0x1] %vm306_vm2, %v16617_v2  ;;  %p11759_p11 = scmp.ne.s32.totalorder %s16563_s25, %s11758_s9  ;;  %s11827_s22 = smov [#allocation4]  }
  0x28   : > { %300 = vst.msk [vmem:[#allocation2 + $0x10] sm:$0x3] %vm299_vm3, %v16617_v2  ;;  %304 = vst.msk [vmem:[#allocation2 + $0x1a8] sm:$0x3] %vm299_vm3, %v16617_v2  ;;  %s11762_s10 = sshll.u32 %s11827_s22, 4  ;;  %s11763_s10 = int_to_ptr.vmem [resolvable:$false] %s11762_s10 }
  0x29   : > { %339 = vst.msk [vmem:[#allocation2 + $0x19] sm:$0xff] %vm296_vm1, %v9810_v7  ;;  %340 = vst.msk [vmem:[#allocation2 + $0x21] sm:$0xff] %vm296_vm1, %v9811_v8  ;;  %p11760_p12 = pnand %p11759_p11, %p11898_p5  ;;  %s11764_s11 = scalar_lea.vmem %s11763_s10, 512 }
  0x2a   : > { %341 = vst.msk [vmem:[#allocation2 + $0x31] sm:$0xff] %vm296_vm1, %v9814_v9  ;;  %342 = vst.msk [vmem:[#allocation2 + $0x39] sm:$0xff] %vm296_vm1, %v9815_v10  ;;  %p11765_p0 = scmp.lt.s32.totalorder %s16563_s25, %s11763_s10  ;;  %p11766_p1 = scmp.lt.s32.totalorder %s11764_s11, %s11758_s9 }
  0x2b   : > { %343 = vst.msk [vmem:[#allocation2 + $0x49] sm:$0xff] %vm296_vm1, %v9818_v16  ;;  %344 = vst.msk [vmem:[#allocation2 + $0x51] sm:$0xff] %vm296_vm1, %v9819_v17  ;;  %p11761_p13 = pneg %p11760_p12 }
  0x2c   : > { %345 = vst.msk [vmem:[#allocation2 + $0x61] sm:$0xff] %vm296_vm1, %v9822_v18  ;;  %346 = vst.msk [vmem:[#allocation2 + $0x69] sm:$0xff] %vm296_vm1, %v9823_v19  ;;  %p11767_p2 = por %p11766_p1, %p11765_p0 }
  0x2d   : > { %347 = vst.msk [vmem:[#allocation2 + $0x79] sm:$0xff] %vm296_vm1, %v9826_v22  ;;  %348 = vst.msk [vmem:[#allocation2 + $0x81] sm:$0xff] %vm296_vm1, %v9827_v23 }
  0x2e   : > { %349 = vst.msk [vmem:[#allocation2 + $0x91] sm:$0xff] %vm296_vm1, %v9830_v24  ;;  %350 = vst.msk [vmem:[#allocation2 + $0x99] sm:$0xff] %vm296_vm1, %v9831_v28  ;;  %p11768_p3 = pnand %p11767_p2, %p11761_p13 }
  0x2f   : > { %351 = vst.msk [vmem:[#allocation2 + $0xa9] sm:$0xff] %vm296_vm1, %v9834_v29  ;;  %352 = vst.msk [vmem:[#allocation2 + $0xb1] sm:$0xff] %vm296_vm1, %v9835_v30 }
  0x30   : > { %353 = vst.msk [vmem:[#allocation2 + $0xc1] sm:$0xff] %vm296_vm1, %v9838_v31  ;;  %354 = vst.msk [vmem:[#allocation2 + $0xc9] sm:$0xff] %vm296_vm1, %v9839_v35  ;;  %v373_v52 = vld [vmem:[#allocation2 + $0x18] sm:$0xff]  ;;  %v374_v53 = vld [vmem:[#allocation2 + $0x20] sm:$0xff] }
  0x31   : > { %355 = vst.msk [vmem:[#allocation2 + $0xd9] sm:$0xff] %vm296_vm1, %v9842_v36  ;;  %356 = vst.msk [vmem:[#allocation2 + $0xe1] sm:$0xff] %vm296_vm1, %v9843_v37  ;;  %v375_v54 = vld [vmem:[#allocation2 + $0x30] sm:$0xff]  ;;  %v12052_v55 = vpack.c.bf16 %v374_v53, %v373_v52  ;;  %v376_v57 = vld [vmem:[#allocation2 + $0x38] sm:$0xff] }
  0x32   : > { %357 = vst.msk [vmem:[#allocation2 + $0xf1] sm:$0xff] %vm296_vm1, %v9846_v38  ;;  %358 = vst.msk [vmem:[#allocation2 + $0xf9] sm:$0xff] %vm296_vm1, %v9847_v41  ;;  %v12056_v58 = vpack.c.bf16 %v376_v57, %v375_v54  ;;  %v377_v60 = vld [vmem:[#allocation2 + $0x48] sm:$0xff]  ;;  %v378_v61 = vld [vmem:[#allocation2 + $0x50] sm:$0xff] }
  0x33   : > { %359 = vst.msk [vmem:[#allocation2 + $0x109] sm:$0xff] %vm296_vm1, %v9850_v42  ;;  %360 = vst.msk [vmem:[#allocation2 + $0x111] sm:$0xff] %vm296_vm1, %v9851_v43  ;;  %10208 = vmatmul.mubr.msk.bf16.vlgmr.msra.gmra.mrb[0].mxu0 %vm296_vm1, %v12052_v55  ;;  %v379_v62 = vld [vmem:[#allocation2 + $0x60] sm:$0xff]  ;;  %v380_v63 = vld [vmem:[#allocation2 + $0x68] sm:$0xff]  ;;  %v12069_v0 = vpack.c.bf16 %v378_v61, %v377_v60 }
  0x34   : > { %361 = vst.msk [vmem:[#allocation2 + $0x121] sm:$0xff] %vm296_vm1, %v9854_v44  ;;  %362 = vst.msk [vmem:[#allocation2 + $0x129] sm:$0xff] %vm296_vm1, %v9855_v45  ;;  %10240 = vmatpush3.bf16.msra.mxu0 %v768_v56  ;;  %10211 = vmatprep.mubr.msk.bf16.mxu0 %vm296_vm1, %v12056_v58  ;;  %v12071_v1 = vpack.c.bf16 %v380_v63, %v379_v62  ;;  %v381_v3 = vld [vmem:[#allocation2 + $0x78] sm:$0xff]  ;;  %v382_v4 = vld [vmem:[#allocation2 + $0x80] sm:$0xff]  ;;  %v1062_v45 = vsel %vm468_vm0, %v12061_v59, 0 }
  0x35   : > { %363 = vst.msk [vmem:[#allocation2 + $0x139] sm:$0xff] %vm296_vm1, %v9858_v46  ;;  %364 = vst.msk [vmem:[#allocation2 + $0x141] sm:$0xff] %vm296_vm1, %v9859_v47  ;;  %11435 = vmatprep.subr.msk.bf16.mxu0 %vm468_vm0, %v12061_v59  ;;  %v383_v5 = vld [vmem:[#allocation2 + $0x90] sm:$0xff]  ;;  %v384_v6 = vld [vmem:[#allocation2 + $0x98] sm:$0xff]  ;;  %v12077_v7 = vpack.c.bf16 %v382_v4, %v381_v3 }
  0x36   : > { %365 = vst.msk [vmem:[#allocation2 + $0x151] sm:$0xff] %vm296_vm1, %v9862_v48  ;;  %366 = vst.msk [vmem:[#allocation2 + $0x159] sm:$0xff] %vm296_vm1, %v9863_v49  ;;  %v12079_v8 = vpack.c.bf16 %v384_v6, %v383_v5  ;;  %v385_v9 = vld [vmem:[#allocation2 + $0xa8] sm:$0xff]  ;;  %v386_v10 = vld [vmem:[#allocation2 + $0xb0] sm:$0xff] }
  0x37   : > { %367 = vst.msk [vmem:[#allocation2 + $0x169] sm:$0xff] %vm296_vm1, %v9866_v50  ;;  %368 = vst.msk [vmem:[#allocation2 + $0x171] sm:$0xff] %vm296_vm1, %v9867_v51  ;;  %v387_v11 = vld [vmem:[#allocation2 + $0xc0] sm:$0xff]  ;;  %v388_v12 = vld [vmem:[#allocation2 + $0xc8] sm:$0xff]  ;;  %v12085_v13 = vpack.c.bf16 %v386_v10, %v385_v9 }
  0x38   : > { %v12087_v14 = vpack.c.bf16 %v388_v12, %v387_v11  ;;  %v389_v15 = vld [vmem:[#allocation2 + $0xd8] sm:$0xff]  ;;  %v390_v16 = vld [vmem:[#allocation2 + $0xe0] sm:$0xff]  ;;  %v670_v36 = vld [vmem:[#allocation2 + $0x9] sm:$0xff]  ;;  %4316 = vst.msk [vmem:[#allocation3] sm:$0xff] %vm16624_vm4, %v16617_v2 }
  0x39   : > { %v391_v17 = vld [vmem:[#allocation2 + $0xf0] sm:$0xff]  ;;  %v392_v18 = vld [vmem:[#allocation2 + $0xf8] sm:$0xff]  ;;  %v12093_v19 = vpack.c.bf16 %v390_v16, %v389_v15  ;;  %v669_v35 = vld [vmem:[#allocation2 + $0x1] sm:$0xff]  ;;  %4317 = vst.msk [vmem:[#allocation3 + $0x8] sm:$0xff] %vm16624_vm4, %v16617_v2 }
  0x3a   : > { %v12095_v20 = vpack.c.bf16 %v392_v18, %v391_v17  ;;  %v393_v21 = vld [vmem:[#allocation2 + $0x108] sm:$0xff]  ;;  %v394_v22 = vld [vmem:[#allocation2 + $0x110] sm:$0xff]  ;;  %v701_v38 = vpack.c.bf16 %v670_v36, %v669_v35  ;;  %v671_v39 = vld [vmem:[#allocation2 + $0x19] sm:$0xff]  ;;  %4321 = vst.msk [vmem:[#allocation3 + $0x198] sm:$0xff] %vm16624_vm4, %v16617_v2 }
  0x3b   : > { %10212 = vmatmul.mubr.msk.bf16.gmra.mrb[4].mxu0 %vm296_vm1, %v12069_v0  ;;  %v395_v23 = vld [vmem:[#allocation2 + $0x120] sm:$0xff]  ;;  %v396_v24 = vld [vmem:[#allocation2 + $0x128] sm:$0xff]  ;;  %v12101_v25 = vpack.c.bf16 %v394_v22, %v393_v21  ;;  %v673_v41 = vld [vmem:[#allocation2 + $0x31] sm:$0xff]  ;;  %4322 = vst.msk [vmem:[#allocation3 + $0x1a0] sm:$0xff] %vm16624_vm4, %v16617_v2 }
  0x3c   : > { %10215 = vmatprep.mubr.msk.bf16.mxu0 %vm296_vm1, %v12071_v1  ;;  %v12103_v26 = vpack.c.bf16 %v396_v24, %v395_v23  ;;  %v397_v27 = vld [vmem:[#allocation2 + $0x138] sm:$0xff]  ;;  %v398_v28 = vld [vmem:[#allocation2 + $0x140] sm:$0xff]  ;;  %v675_v47 = vld [vmem:[#allocation2 + $0x49] sm:$0xff] }
  0x3d   : > { %v399_v29 = vld [vmem:[#allocation2 + $0x150] sm:$0xff]  ;;  %v400_v30 = vld [vmem:[#allocation2 + $0x158] sm:$0xff]  ;;  %v12109_v31 = vpack.c.bf16 %v398_v28, %v397_v27  ;;  %v672_v40 = vld [vmem:[#allocation2 + $0x21] sm:$0xff] }
  0x3e   : > { %v12111_v32 = vpack.c.bf16 %v400_v30, %v399_v29  ;;  %v401_v33 = vld [vmem:[#allocation2 + $0x168] sm:$0xff]  ;;  %v402_v34 = vld [vmem:[#allocation2 + $0x170] sm:$0xff]  ;;  %v674_v42 = vld [vmem:[#allocation2 + $0x39] sm:$0xff]  ;;  %v12122_v43 = vpack.c.bf16 %v672_v40, %v671_v39 }
  0x3f   : > { %v12117_v37 = vpack.c.bf16 %v402_v34, %v401_v33  ;;  %v12124_v44 = vpack.c.bf16 %v674_v42, %v673_v41  ;;  %v12131_v46 = vld [vmem:[%s16612_s1 + $0x6] sm:$0x3]  ;;  %v676_v48 = vld [vmem:[#allocation2 + $0x51] sm:$0xff]  ;;  %v678_v50 = vld [vmem:[#allocation2 + $0x69] sm:$0xff] }
  0x40   : > { %v677_v49 = vld [vmem:[#allocation2 + $0x61] sm:$0xff]  ;;  %v12139_v51 = vpack.c.bf16 %v676_v48, %v675_v47  ;;  %v679_v53 = vld [vmem:[#allocation2 + $0x79] sm:$0xff]  ;;  %v681_v56 = vld [vmem:[#allocation2 + $0x91] sm:$0xff] }
  0x41   : > { %v12141_v52 = vpack.c.bf16 %v678_v50, %v677_v49  ;;  %v680_v54 = vld [vmem:[#allocation2 + $0x81] sm:$0xff]  ;;  %v682_v57 = vld [vmem:[#allocation2 + $0x99] sm:$0xff]  ;;  %v683_v61 = vld [vmem:[#allocation2 + $0xa9] sm:$0xff] }
  0x42   : > { %v12147_v59 = vpack.c.bf16 %v680_v54, %v679_v53  ;;  %v12149_v60 = vpack.c.bf16 %v682_v57, %v681_v56  ;;  %v684_v62 = vld [vmem:[#allocation2 + $0xb1] sm:$0xff]  ;;  %v685_v63 = vld [vmem:[#allocation2 + $0xc1] sm:$0xff]  ;;  %v686_v3 = vld [vmem:[#allocation2 + $0xc9] sm:$0xff]  ;;  %v1356_v56 = vsel %vm468_vm0, %v12131_v46, 0 }
  0x43   : > { %10216 = vmatmul.mubr.msk.bf16.gmra.mrb[8].mxu0 %vm296_vm1, %v12077_v7  ;;  %v12155_v4 = vpack.c.bf16 %v684_v62, %v683_v61  ;;  %v12157_v5 = vpack.c.bf16 %v686_v3, %v685_v63  ;;  %v687_v6 = vld [vmem:[#allocation2 + $0xd9] sm:$0xff]  ;;  %v688_v9 = vld [vmem:[#allocation2 + $0xe1] sm:$0xff]  ;;  %v689_v10 = vld [vmem:[#allocation2 + $0xf1] sm:$0xff] }
  0x44   : > { %10219 = vmatprep.mubr.msk.bf16.mxu0 %vm296_vm1, %v12079_v8  ;;  %v690_v11 = vld [vmem:[#allocation2 + $0xf9] sm:$0xff]  ;;  %v12163_v12 = vpack.c.bf16 %v688_v9, %v687_v6  ;;  %v691_v16 = vld [vmem:[#allocation2 + $0x109] sm:$0xff]  ;;  %v692_v17 = vld [vmem:[#allocation2 + $0x111] sm:$0xff] }
  0x45   : > { %v12165_v15 = vpack.c.bf16 %v690_v11, %v689_v10  ;;  %v693_v18 = vld [vmem:[#allocation2 + $0x121] sm:$0xff]  ;;  %v694_v21 = vld [vmem:[#allocation2 + $0x129] sm:$0xff]  ;;  %v12171_v22 = vpack.c.bf16 %v692_v17, %v691_v16  ;;  %v695_v24 = vld [vmem:[#allocation2 + $0x139] sm:$0xff] }
  0x46   : > { %v12173_v23 = vpack.c.bf16 %v694_v21, %v693_v18  ;;  %v696_v27 = vld [vmem:[#allocation2 + $0x141] sm:$0xff]  ;;  %v697_v28 = vld [vmem:[#allocation2 + $0x151] sm:$0xff]  ;;  %v698_v29 = vld [vmem:[#allocation2 + $0x159] sm:$0xff] }
  0x47   : > { %v9886_v30 = vld [vmem:[%s12004_s13 + $0x78] sm:$0xff]   ;;  %v12180_v33 = vpack.c.bf16 %v696_v27, %v695_v24  ;;  %v12182_v36 = vpack.c.bf16 %v698_v29, %v697_v28  ;;  %v963_v40 = vld [vmem:[#allocation2 + $0x2] sm:$0xff]  ;;  %v964_v41 = vld [vmem:[#allocation2 + $0xa] sm:$0xff] }
  0x48   : > { %v9870_v34 = vunpack.c.l.bf16 %v9886_v30  ;;  %v9871_v35 = vunpack.c.h.bf16 %v9886_v30  ;;  %v700_v39 = vld [vmem:[#allocation2 + $0x171] sm:$0xff]  ;;  %v965_v47 = vld [vmem:[#allocation2 + $0x1a] sm:$0xff]  ;;  %v966_v48 = vld [vmem:[#allocation2 + $0x22] sm:$0xff] }
  0x49   : > { %v967_v49 = vld [vmem:[#allocation2 + $0x32] sm:$0xff]  ;;  %v968_v50 = vld [vmem:[#allocation2 + $0x3a] sm:$0xff]  ;;  %v12195_v53 = vpack.c.bf16 %v966_v48, %v965_v47  ;;  %v9538_v57 = vld [vmem:[%s16612_s1 + $0x8] sm:$0x3] }
  0x4a   : > { %369 = vst.msk [vmem:[#allocation2 + $0x181] sm:$0xff] %vm296_vm1, %v9870_v34  ;;  %370 = vst.msk [vmem:[#allocation2 + $0x189] sm:$0xff] %vm296_vm1, %v9871_v35  ;;  %v12197_v54 = vpack.c.bf16 %v968_v50, %v967_v49  ;;  %v969_v61 = vld [vmem:[#allocation2 + $0x4a] sm:$0xff]  ;;  %v970_v62 = vld [vmem:[#allocation2 + $0x52] sm:$0xff] }
  0x4b   : > { %10220 = vmatmul.mubr.msk.bf16.gmra.mrb[12].mxu0 %vm296_vm1, %v12085_v13  ;;  %v971_v63 = vld [vmem:[#allocation2 + $0x62] sm:$0xff]  ;;  %v972_v3 = vld [vmem:[#allocation2 + $0x6a] sm:$0xff]  ;;  %v12209_v6 = vpack.c.bf16 %v970_v62, %v969_v61  ;;  %v973_v9 = vld [vmem:[#allocation2 + $0x7a] sm:$0xff] }
  0x4c   : > { %10223 = vmatprep.mubr.msk.bf16.mxu0 %vm296_vm1, %v12087_v14  ;;  %v974_v10 = vld [vmem:[#allocation2 + $0x82] sm:$0xff]  ;;  %v975_v11 = vld [vmem:[#allocation2 + $0x92] sm:$0xff]  ;;  %v976_v16 = vld [vmem:[#allocation2 + $0x9a] sm:$0xff] }
  0x4d   : > { %v12217_v17 = vpack.c.bf16 %v974_v10, %v973_v9  ;;  %v12219_v18 = vpack.c.bf16 %v976_v16, %v975_v11  ;;  %v977_v21 = vld [vmem:[#allocation2 + $0xaa] sm:$0xff]  ;;  %v978_v24 = vld [vmem:[#allocation2 + $0xb2] sm:$0xff]  ;;  %v979_v27 = vld [vmem:[#allocation2 + $0xc2] sm:$0xff] }
  0x4e   : > { %v980_v28 = vld [vmem:[#allocation2 + $0xca] sm:$0xff]  ;;  %v12225_v29 = vpack.c.bf16 %v978_v24, %v977_v21  ;;  %v981_v34 = vld [vmem:[#allocation2 + $0xda] sm:$0xff]  ;;  %v982_v35 = vld [vmem:[#allocation2 + $0xe2] sm:$0xff]  ;;  %v1650_v24 = vsel %vm468_vm0, %v9538_v57, 0 }
  0x4f   : > { %v12227_v30 = vpack.c.bf16 %v980_v28, %v979_v27  ;;  %v986_v47 = vld [vmem:[#allocation2 + $0x112] sm:$0xff]  ;;  %v987_v48 = vld [vmem:[#allocation2 + $0x122] sm:$0xff]  ;;  %v988_v49 = vld [vmem:[#allocation2 + $0x12a] sm:$0xff] }
  0x50   : > { %v989_v61 = vld [vmem:[#allocation2 + $0x13a] sm:$0xff]  ;;  %v990_v62 = vld [vmem:[#allocation2 + $0x142] sm:$0xff]  ;;  %v993_v11 = vld [vmem:[#allocation2 + $0x16a] sm:$0xff] }
  0x51   : > { %v12249_v9 = vpack.c.bf16 %v990_v62, %v989_v61  ;;  %v994_v16 = vld [vmem:[#allocation2 + $0x172] sm:$0xff]  ;;  %v9555_v27 = vld [vmem:[%s16612_s1 + $0xa] sm:$0x3]  ;;  %v9606_v62 = vld [vmem:[%s16612_s1 + $0x10] sm:$0x3] }
  0x52   : > { %v12257_v21 = vpack.c.bf16 %v994_v16, %v993_v11 }
  0x53   : > { %10224 = vmatmul.mubr.msk.bf16.gmra.mrb[16].mxu0 %vm296_vm1, %v12093_v19 }
  0x54   : > { %10227 = vmatprep.mubr.msk.bf16.mxu0 %vm296_vm1, %v12095_v20 }
  0x5b   : > { %10228 = vmatmul.mubr.msk.bf16.gmra.mrb[20].mxu0 %vm296_vm1, %v12101_v25 }
  0x5c   : > { %10231 = vmatprep.mubr.msk.bf16.mxu0 %vm296_vm1, %v12103_v26 }
  0x63   : > { %10232 = vmatmul.mubr.msk.bf16.gmra.mrb[24].mxu0 %vm296_vm1, %v12109_v31 }
  0x64   : > { %10235 = vmatprep.mubr.msk.bf16.mxu0 %vm296_vm1, %v12111_v32 }
  0x6b   : > { %10236 = vmatmul.mubr.msk.bf16.gmra.mrb[28].mxu0 %vm296_vm1, %v12117_v37 }
  0x6c   : > { %10241 = vmatprep.mubr.msk.bf16.mxu0 %vm296_vm1, %v701_v38  ;;  %v699_v38 = vld [vmem:[#allocation2 + $0x169] sm:$0xff] }
  0x6d   : > { %v12190_v42 = vpack.c.bf16 %v700_v39, %v699_v38  ;;  %v983_v38 = vld [vmem:[#allocation2 + $0xf2] sm:$0xff]  ;;  %v984_v39 = vld [vmem:[#allocation2 + $0xfa] sm:$0xff] }
  0x73   : > { %10242 = vmatmul.mubr.msk.bf16.vlgmr.msra.gmra.mrb[0].mxu0 %vm296_vm1, %v12122_v43 }
  0x74   : > { %10274 = vmatpush3.bf16.msra.mxu0 %v1062_v45  ;;  %10245 = vmatprep.mubr.msk.bf16.mxu0 %vm296_vm1, %v12124_v44  ;;  %v995_v45 = vpack.c.bf16 %v964_v41, %v963_v40  ;;  %v12233_v40 = vpack.c.bf16 %v982_v35, %v981_v34  ;;  %v12235_v41 = vpack.c.bf16 %v984_v39, %v983_v38  ;;  %v1944_v34 = vsel %vm468_vm0, %v9555_v27, 0  ;;  %v9572_v35 = vld [vmem:[%s16612_s1 + $0xc] sm:$0x3] }
  0x75   : > { %11436 = vmatprep.subr.msk.bf16.mxu0 %vm468_vm0, %v12131_v46  ;;  %v12211_v46 = vpack.c.bf16 %v972_v3, %v971_v63  ;;  %v991_v63 = vld [vmem:[#allocation2 + $0x152] sm:$0xff]  ;;  %v992_v3 = vld [vmem:[#allocation2 + $0x15a] sm:$0xff]  ;;  %v1582_v38 = vld [vmem:[#allocation2 + $0x189] sm:$0xff] }
  0x76   : > { %v12251_v10 = vpack.c.bf16 %v992_v3, %v991_v63 }
  0x7b   : > { %10246 = vmatmul.mubr.msk.bf16.gmra.mrb[4].mxu0 %vm296_vm1, %v12139_v51 }
  0x7c   : > { %10249 = vmatprep.mubr.msk.bf16.mxu0 %vm296_vm1, %v12141_v52 }
  0x83   : > { %10250 = vmatmul.mubr.msk.bf16.gmra.mrb[8].mxu0 %vm296_vm1, %v12147_v59 }
  0x84   : > { %10253 = vmatprep.mubr.msk.bf16.mxu0 %vm296_vm1, %v12149_v60 }
  0x8b   : > { %10254 = vmatmul.mubr.msk.bf16.gmra.mrb[12].mxu0 %vm296_vm1, %v12155_v4 }
  0x8c   : > { %10257 = vmatprep.mubr.msk.bf16.mxu0 %vm296_vm1, %v12157_v5 }
  0x93   : > { %10258 = vmatmul.mubr.msk.bf16.gmra.mrb[16].mxu0 %vm296_vm1, %v12163_v12 }
  0x94   : > { %10261 = vmatprep.mubr.msk.bf16.mxu0 %vm296_vm1, %v12165_v15 }
  0x9b   : > { %10262 = vmatmul.mubr.msk.bf16.gmra.mrb[20].mxu0 %vm296_vm1, %v12171_v22 }
  0x9c   : > { %10265 = vmatprep.mubr.msk.bf16.mxu0 %vm296_vm1, %v12173_v23 }
  0xa3   : > { %10266 = vmatmul.mubr.msk.bf16.gmra.mrb[24].mxu0 %vm296_vm1, %v12180_v33 }
  0xa4   : > { %10269 = vmatprep.mubr.msk.bf16.mxu0 %vm296_vm1, %v12182_v36 }
  0xab   : > { %10270 = vmatmul.mubr.msk.bf16.gmra.mrb[28].mxu0 %vm296_vm1, %v12190_v42 }
  0xac   : > { %10275 = vmatprep.mubr.msk.bf16.mxu0 %vm296_vm1, %v995_v45  ;;  %v985_v45 = vld [vmem:[#allocation2 + $0x10a] sm:$0xff] }
  0xad   : > { %v12241_v50 = vpack.c.bf16 %v986_v47, %v985_v45  ;;  %v2239_v45 = vsel %vm468_vm0, %v9572_v35, 0  ;;  %v9589_v47 = vld [vmem:[%s16612_s1 + $0xe] sm:$0x3] }
  0xae   : > { %v2533_v61 = vsel %vm468_vm0, %v9589_v47, 0 }
  0xb3   : > { %10276 = vmatmul.mubr.msk.bf16.vlgmr.msra.gmra.mrb[0].mxu0 %vm296_vm1, %v12195_v53 }
  0xb4   : > { %10308 = vmatpush3.bf16.msra.mxu0 %v1356_v56  ;;  %10279 = vmatprep.mubr.msk.bf16.mxu0 %vm296_vm1, %v12197_v54  ;;  %v12243_v56 = vpack.c.bf16 %v988_v49, %v987_v48  ;;  %v1876_v48 = vld [vmem:[#allocation2 + $0x18a] sm:$0xff] }
  0xb5   : > { %11437 = vmatprep.subr.msk.bf16.mxu0 %vm468_vm0, %v9538_v57  ;;  %v1288_v57 = vld [vmem:[#allocation2 + $0x188] sm:$0xff] }
  0xbb   : > { %10280 = vmatmul.mubr.msk.bf16.gmra.mrb[4].mxu0 %vm296_vm1, %v12209_v6 }
  0xbc   : > { %10283 = vmatprep.mubr.msk.bf16.mxu0 %vm296_vm1, %v12211_v46 }
  0xc3   : > { %10284 = vmatmul.mubr.msk.bf16.gmra.mrb[8].mxu0 %vm296_vm1, %v12217_v17 }
  0xc4   : > { %10287 = vmatprep.mubr.msk.bf16.mxu0 %vm296_vm1, %v12219_v18 }
  0xcb   : > { %10288 = vmatmul.mubr.msk.bf16.gmra.mrb[12].mxu0 %vm296_vm1, %v12225_v29 }
  0xcc   : > { %10291 = vmatprep.mubr.msk.bf16.mxu0 %vm296_vm1, %v12227_v30 }
  0xd3   : > { %10292 = vmatmul.mubr.msk.bf16.gmra.mrb[16].mxu0 %vm296_vm1, %v12233_v40 }
  0xd4   : > { %10295 = vmatprep.mubr.msk.bf16.mxu0 %vm296_vm1, %v12235_v41 }
  0xdb   : > { %10296 = vmatmul.mubr.msk.bf16.gmra.mrb[20].mxu0 %vm296_vm1, %v12241_v50 }
  0xdc   : > { %10299 = vmatprep.mubr.msk.bf16.mxu0 %vm296_vm1, %v12243_v56 }
  0xe3   : > { %10300 = vmatmul.mubr.msk.bf16.gmra.mrb[24].mxu0 %vm296_vm1, %v12249_v9 }
  0xe4   : > { %10303 = vmatprep.mubr.msk.bf16.mxu0 %vm296_vm1, %v12251_v10 }
  0xeb   : > { %10304 = vmatmul.mubr.msk.bf16.gmra.mrb[28].mxu0 %vm296_vm1, %v12257_v21 }
  0xec   : > { %10309 = vmatprep.mubr.msk.bf16.mxu0 %vm296_vm1, %v12052_v55  ;;  %v1287_v55 = vld [vmem:[#allocation2 + $0x180] sm:$0xff] }
  0xed   : > { %v12296_v28 = vpack.c.bf16 %v1288_v57, %v1287_v55 }
  0xf3   : > { %10310 = vmatmul.mubr.msk.bf16.vlgmr.msra.gmra.mrb[0].mxu0 %vm296_vm1, %v12056_v58 }
  0xf4   : > { %10342 = vmatpush3.bf16.msra.mxu0 %v1650_v24  ;;  %10313 = vmatprep.mubr.msk.bf16.mxu0 %vm296_vm1, %v12069_v0 }
  0xf5   : > { %11438 = vmatprep.subr.msk.bf16.mxu0 %vm468_vm0, %v9555_v27 }
  0xfb   : > { %10314 = vmatmul.mubr.msk.bf16.gmra.mrb[4].mxu0 %vm296_vm1, %v12071_v1 }
  0xfc   : > { %10317 = vmatprep.mubr.msk.bf16.mxu0 %vm296_vm1, %v12077_v7 }
 0x103   : > { %10318 = vmatmul.mubr.msk.bf16.gmra.mrb[8].mxu0 %vm296_vm1, %v12079_v8 }
 0x104   : > { %10321 = vmatprep.mubr.msk.bf16.mxu0 %vm296_vm1, %v12085_v13 }
 0x10b   : > { %10322 = vmatmul.mubr.msk.bf16.gmra.mrb[12].mxu0 %vm296_vm1, %v12087_v14 }
 0x10c   : > { %10325 = vmatprep.mubr.msk.bf16.mxu0 %vm296_vm1, %v12093_v19 }
 0x113   : > { %10326 = vmatmul.mubr.msk.bf16.gmra.mrb[16].mxu0 %vm296_vm1, %v12095_v20 }
 0x114   : > { %10329 = vmatprep.mubr.msk.bf16.mxu0 %vm296_vm1, %v12101_v25 }
 0x11b   : > { %10330 = vmatmul.mubr.msk.bf16.gmra.mrb[20].mxu0 %vm296_vm1, %v12103_v26 }
 0x11c   : > { %10333 = vmatprep.mubr.msk.bf16.mxu0 %vm296_vm1, %v12109_v31 }
 0x123   : > { %10334 = vmatmul.mubr.msk.bf16.gmra.mrb[24].mxu0 %vm296_vm1, %v12111_v32 }
 0x124   : > { %10337 = vmatprep.mubr.msk.bf16.mxu0 %vm296_vm1, %v12117_v37 }
 0x12b   : > { %10338 = vmatmul.mubr.msk.bf16.gmra.mrb[28].mxu0 %vm296_vm1, %v12296_v28 }
 0x12c   : > { %10343 = vmatprep.mubr.msk.bf16.mxu0 %vm296_vm1, %v12122_v43  ;;  %v1581_v43 = vld [vmem:[#allocation2 + $0x181] sm:$0xff] }
 0x12d   : > { %v12335_v39 = vpack.c.bf16 %v1582_v38, %v1581_v43 }
 0x133   : > { %10344 = vmatmul.mubr.msk.bf16.vlgmr.msra.gmra.mrb[0].mxu0 %vm296_vm1, %v12124_v44 }
 0x134   : > { %10376 = vmatpush3.bf16.msra.mxu0 %v1944_v34  ;;  %10347 = vmatprep.mubr.msk.bf16.mxu0 %vm296_vm1, %v12139_v51 }
 0x135   : > { %11439 = vmatprep.subr.msk.bf16.mxu0 %vm468_vm0, %v9572_v35 }
 0x13b   : > { %10348 = vmatmul.mubr.msk.bf16.gmra.mrb[4].mxu0 %vm296_vm1, %v12141_v52 }
 0x13c   : > { %10351 = vmatprep.mubr.msk.bf16.mxu0 %vm296_vm1, %v12147_v59 }
 0x143   : > { %10352 = vmatmul.mubr.msk.bf16.gmra.mrb[8].mxu0 %vm296_vm1, %v12149_v60 }
 0x144   : > { %10355 = vmatprep.mubr.msk.bf16.mxu0 %vm296_vm1, %v12155_v4 }
 0x14b   : > { %10356 = vmatmul.mubr.msk.bf16.gmra.mrb[12].mxu0 %vm296_vm1, %v12157_v5 }
 0x14c   : > { %10359 = vmatprep.mubr.msk.bf16.mxu0 %vm296_vm1, %v12163_v12 }
 0x153   : > { %10360 = vmatmul.mubr.msk.bf16.gmra.mrb[16].mxu0 %vm296_vm1, %v12165_v15 }
 0x154   : > { %10363 = vmatprep.mubr.msk.bf16.mxu0 %vm296_vm1, %v12171_v22 }
 0x15b   : > { %10364 = vmatmul.mubr.msk.bf16.gmra.mrb[20].mxu0 %vm296_vm1, %v12173_v23 }
 0x15c   : > { %10367 = vmatprep.mubr.msk.bf16.mxu0 %vm296_vm1, %v12180_v33 }
 0x163   : > { %10368 = vmatmul.mubr.msk.bf16.gmra.mrb[24].mxu0 %vm296_vm1, %v12182_v36 }
 0x164   : > { %10371 = vmatprep.mubr.msk.bf16.mxu0 %vm296_vm1, %v12190_v42 }
 0x16b   : > { %10372 = vmatmul.mubr.msk.bf16.gmra.mrb[28].mxu0 %vm296_vm1, %v12335_v39 }
 0x16c   : > { %10377 = vmatprep.mubr.msk.bf16.mxu0 %vm296_vm1, %v12195_v53  ;;  %v1875_v53 = vld [vmem:[#allocation2 + $0x182] sm:$0xff] }
 0x16d   : > { %v1892_v49 = vpack.c.bf16 %v1876_v48, %v1875_v53 }
 0x173   : > { %10378 = vmatmul.mubr.msk.bf16.vlgmr.msra.gmra.mrb[0].mxu0 %vm296_vm1, %v12197_v54 }
 0x174   : > { %10410 = vmatpush3.bf16.msra.mxu0 %v2239_v45  ;;  %10381 = vmatprep.mubr.msk.bf16.mxu0 %vm296_vm1, %v12209_v6 }
 0x175   : > { %11440 = vmatprep.subr.msk.bf16.mxu0 %vm468_vm0, %v9589_v47 }
 0x17b   : > { %10382 = vmatmul.mubr.msk.bf16.gmra.mrb[4].mxu0 %vm296_vm1, %v12211_v46 }
 0x17c   : > { %10385 = vmatprep.mubr.msk.bf16.mxu0 %vm296_vm1, %v12217_v17 }
 0x183   : > { %10386 = vmatmul.mubr.msk.bf16.gmra.mrb[8].mxu0 %vm296_vm1, %v12219_v18 }
 0x184   : > { %10389 = vmatprep.mubr.msk.bf16.mxu0 %vm296_vm1, %v12225_v29 }
 0x18b   : > { %10390 = vmatmul.mubr.msk.bf16.gmra.mrb[12].mxu0 %vm296_vm1, %v12227_v30 }
 0x18c   : > { %10393 = vmatprep.mubr.msk.bf16.mxu0 %vm296_vm1, %v12233_v40 }
 0x193   : > { %10394 = vmatmul.mubr.msk.bf16.gmra.mrb[16].mxu0 %vm296_vm1, %v12235_v41 }
 0x194   : > { %10397 = vmatprep.mubr.msk.bf16.mxu0 %vm296_vm1, %v12241_v50 }
 0x19b   : > { %10398 = vmatmul.mubr.msk.bf16.gmra.mrb[20].mxu0 %vm296_vm1, %v12243_v56 }
 0x19c   : > { %10401 = vmatprep.mubr.msk.bf16.mxu0 %vm296_vm1, %v12249_v9 }
 0x1a3   : > { %10402 = vmatmul.mubr.msk.bf16.gmra.mrb[24].mxu0 %vm296_vm1, %v12251_v10 }
 0x1a4   : > { %10405 = vmatprep.mubr.msk.bf16.mxu0 %vm296_vm1, %v12257_v21 }
 0x1ab   : > { %10406 = vmatmul.mubr.msk.bf16.gmra.mrb[28].mxu0 %vm296_vm1, %v1892_v49 }
 0x1ac   : > { %10411 = vmatprep.mubr.msk.bf16.mxu0 %vm296_vm1, %v12056_v58  ;;  %v2170_v58 = vld [vmem:[#allocation2 + $0x198] sm:$0xff] }
 0x1b3   : > { %10412 = vmatmul.mubr.msk.bf16.vlgmr.msra.gmra.mrb[0].mxu0 %vm296_vm1, %v12069_v0  ;;  %v2171_v0 = vld [vmem:[#allocation2 + $0x1a0] sm:$0xff] }
 0x1b4   : > { %10444 = vmatpush3.bf16.msra.mxu0 %v2533_v61  ;;  %10415 = vmatprep.mubr.msk.bf16.mxu0 %vm296_vm1, %v12071_v1  ;;  %v2187_v1 = vpack.c.bf16 %v2171_v0, %v2170_v58 }
 0x1b5   : > { %11441 = vmatprep.subr.msk.bf16.mxu0 %vm468_vm0, %v9606_v62 }
 0x1bb   : > { %10416 = vmatmul.mubr.msk.bf16.gmra.mrb[4].mxu0 %vm296_vm1, %v12077_v7  ;;  %v2827_v7 = vsel %vm468_vm0, %v9606_v62, 0 }
 0x1bc   : > { %10419 = vmatprep.mubr.msk.bf16.mxu0 %vm296_vm1, %v12079_v8  ;;  %v2464_v8 = vld [vmem:[#allocation2 + $0x199] sm:$0xff] }
 0x1c3   : > { %10420 = vmatmul.mubr.msk.bf16.gmra.mrb[8].mxu0 %vm296_vm1, %v12085_v13  ;;  %v2465_v13 = vld [vmem:[#allocation2 + $0x1a1] sm:$0xff] }
 0x1c4   : > { %10423 = vmatprep.mubr.msk.bf16.mxu0 %vm296_vm1, %v12087_v14  ;;  %v2481_v14 = vpack.c.bf16 %v2465_v13, %v2464_v8 }
 0x1cb   : > { %10424 = vmatmul.mubr.msk.bf16.gmra.mrb[12].mxu0 %vm296_vm1, %v12093_v19  ;;  %v2758_v19 = vld [vmem:[#allocation2 + $0x19a] sm:$0xff] }
 0x1cc   : > { %10427 = vmatprep.mubr.msk.bf16.mxu0 %vm296_vm1, %v12095_v20  ;;  %v2759_v20 = vld [vmem:[#allocation2 + $0x1a2] sm:$0xff] }
 0x1d3   : > { %10428 = vmatmul.mubr.msk.bf16.gmra.mrb[16].mxu0 %vm296_vm1, %v12101_v25  ;;  %v2775_v25 = vpack.c.bf16 %v2759_v20, %v2758_v19 }
 0x1d4   : > { %10431 = vmatprep.mubr.msk.bf16.mxu0 %vm296_vm1, %v12103_v26  ;;  %v230_v26 = vld [vmem:[%s16615_s4] sm:$0xff] }
 0x1db   : > { %10432 = vmatmul.mubr.msk.bf16.gmra.mrb[20].mxu0 %vm296_vm1, %v12109_v31  ;;  %v231_v31 = vld [vmem:[%s16615_s4 + $0x8] sm:$0xff] }
 0x1dc   : > { %10435 = vmatprep.mubr.msk.bf16.mxu0 %vm296_vm1, %v12111_v32  ;;  %v11823_v32 = vmov 0.0|0.0  }
 0x1dd   : > { %10845 = vmatprep.subr.bf16.mxu1 %v11823_v32 }
 0x1e3   : > { %10436 = vmatmul.mubr.msk.bf16.gmra.mrb[24].mxu0 %vm296_vm1, %v12117_v37  ;;  %v12487_v37 = vpack.c.bf16 %v231_v31, %v230_v26 }
 0x1e4   : > { %10439 = vmatprep.mubr.msk.bf16.mxu0 %vm296_vm1, %v12296_v28 }
 0x1e5   : > { %16777 = vst [vmem:[#allocation7_spill] sm:$0xff] %v12487_v37  ;;  %10847 = vmatpush3.bf16.msra.mxu1 %v12487_v37 }
 0x1e6   : > { %10848 = vmatprep.subr.bf16.mxu1 %v11823_v32 }
 0x1eb   : > { %10440 = vmatmul.mubr.msk.bf16.gmra.mrb[28].mxu0 %vm296_vm1, %v2187_v1 }
 0x1ec   : > { %10445 = vmatprep.mubr.msk.bf16.mxu0 %vm296_vm1, %v12124_v44  ;;  %v12498_v44 = vld [vmem:[%s16614_s3] ss:$0 sm:$0xff] }
 0x1f3   : > { %10446 = vmatmul.mubr.msk.bf16.vlgmr.msra.gmra.mrb[0].mxu0 %vm296_vm1, %v12139_v51 }
 0x1f4   : > { %10478 = vmatpush3.bf16.msra.mxu0 %v2827_v7  ;;  %10449 = vmatprep.mubr.msk.bf16.mxu0 %vm296_vm1, %v12141_v52 }
 0x1f5   : > { %10851 = vmatprep.subr.bf16.mxu0 %v11823_v32 }
 0x1fb   : > { %10450 = vmatmul.mubr.msk.bf16.gmra.mrb[4].mxu0 %vm296_vm1, %v12147_v59 }
 0x1fc   : > { %10453 = vmatprep.mubr.msk.bf16.mxu0 %vm296_vm1, %v12149_v60 }
 0x203   : > { %10454 = vmatmul.mubr.msk.bf16.gmra.mrb[8].mxu0 %vm296_vm1, %v12155_v4 }
 0x204   : > { %10457 = vmatprep.mubr.msk.bf16.mxu0 %vm296_vm1, %v12157_v5 }
 0x20b   : > { %10458 = vmatmul.mubr.msk.bf16.gmra.mrb[12].mxu0 %vm296_vm1, %v12163_v12 }
 0x20c   : > { %10461 = vmatprep.mubr.msk.bf16.mxu0 %vm296_vm1, %v12165_v15 }
 0x213   : > { %10462 = vmatmul.mubr.msk.bf16.gmra.mrb[16].mxu0 %vm296_vm1, %v12171_v22 }
 0x214   : > { %10465 = vmatprep.mubr.msk.bf16.mxu0 %vm296_vm1, %v12173_v23 }
 0x21b   : > { %10466 = vmatmul.mubr.msk.bf16.gmra.mrb[20].mxu0 %vm296_vm1, %v12180_v33 }
 0x21c   : > { %10469 = vmatprep.mubr.msk.bf16.mxu0 %vm296_vm1, %v12182_v36 }
 0x223   : > { %10470 = vmatmul.mubr.msk.bf16.gmra.mrb[24].mxu0 %vm296_vm1, %v12190_v42 }
 0x224   : > { %10473 = vmatprep.mubr.msk.bf16.mxu0 %vm296_vm1, %v12335_v39 }
 0x22b   : > { %10474 = vmatmul.mubr.msk.bf16.gmra.mrb[28].mxu0 %vm296_vm1, %v2481_v14 }
 0x22c   : > { %10479 = vmatprep.mubr.msk.bf16.mxu0 %vm296_vm1, %v12197_v54 }
 0x233   : > { %10480 = vmatmul.mubr.msk.bf16.vlgmr.msra.gmra.mrb[0].mxu0 %vm296_vm1, %v12209_v6 }
 0x234   : > { %10483 = vmatprep.mubr.msk.bf16.mxu0 %vm296_vm1, %v12211_v46  ;;  %10853 = vmatpush3.bf16.msra.mxu0 %v12487_v37 }
 0x235   : > { %10854 = vmatprep.subr.bf16.mxu0 %v11823_v32 }
 0x23b   : > { %10484 = vmatmul.mubr.msk.bf16.gmra.mrb[4].mxu0 %vm296_vm1, %v12217_v17 }
 0x23c   : > { %10487 = vmatprep.mubr.msk.bf16.mxu0 %vm296_vm1, %v12219_v18 }
 0x243   : > { %10488 = vmatmul.mubr.msk.bf16.gmra.mrb[8].mxu0 %vm296_vm1, %v12225_v29 }
 0x244   : > { %10491 = vmatprep.mubr.msk.bf16.mxu0 %vm296_vm1, %v12227_v30 }
 0x24b   : > { %10492 = vmatmul.mubr.msk.bf16.gmra.mrb[12].mxu0 %vm296_vm1, %v12233_v40 }
 0x24c   : > { %10495 = vmatprep.mubr.msk.bf16.mxu0 %vm296_vm1, %v12235_v41 }
 0x253   : > { %10496 = vmatmul.mubr.msk.bf16.gmra.mrb[16].mxu0 %vm296_vm1, %v12241_v50 }
 0x254   : > { %10499 = vmatprep.mubr.msk.bf16.mxu0 %vm296_vm1, %v12243_v56 }
 0x25b   : > { %10500 = vmatmul.mubr.msk.bf16.gmra.mrb[20].mxu0 %vm296_vm1, %v12249_v9 }
 0x25c   : > { %10503 = vmatprep.mubr.msk.bf16.mxu0 %vm296_vm1, %v12251_v10 }
 0x263   : > { %10504 = vmatmul.mubr.msk.bf16.gmra.mrb[24].mxu0 %vm296_vm1, %v12257_v21 }
 0x264   : > { %10507 = vmatprep.mubr.msk.bf16.mxu0 %vm296_vm1, %v1892_v49 }
 0x26b   : > { %10508 = vmatmul.mubr.msk.bf16.gmra.mrb[28].mxu0 %vm296_vm1, %v2775_v25 }
 0x26c   : > { %10835 = vmatprep.mubr.msk.f32.mxu0 %vm16623_vm5, %v16617_v2 }
 0x306   : > { %v10481_v51 = vpop.f32.mrb[0].mxu0 }
 0x307   : > { %v2863_v52 = vpop.f32.mrb[1].mxu0  ;;  %v12504_v5 = vadd.f32 %v10481_v51, %v12498_v44 }
 0x308   : > { %v12501_v59 = vadd.f32 %v12498_v44, %v2863_v52  ;;  %v10482_v60 = vpop.f32.mrb[2].mxu0 }
 0x309   : > { %v2866_v4 = vpop.f32.mrb[3].mxu0  ;;  %v12512_v22 = vadd.f32 %v10482_v60, %v12498_v44  ;;  %v3026_v36 = vsel %vm16624_vm4, %v12504_v5, 0.0 }
 0x30a   : > { %v12507_v12 = vadd.f32 %v12498_v44, %v2866_v4  ;;  %v3023_v15 = vsel %vm16624_vm4, %v12501_v59, 0.0 }
 0x30b   : > { %v3028_v46 = vsel %vm16624_vm4, %v12512_v22, 0.0 }
 0x30c   : > { %v3024_v23 = vsel %vm16624_vm4, %v12507_v12, 0.0 }
 0x30d   : > { %v3025_v33 = vadd.f32 %v3024_v23, %v3023_v15 }
 0x30e   : > { %v10485_v42 = vpop.f32.mrb[4].mxu0 }
 0x30f   : > { %v3027_v54 = vadd.f32 %v3026_v36, %v3025_v33  ;;  %v2879_v6 = vpop.f32.mrb[5].mxu0  ;;  %v12524_v40 = vadd.f32 %v10485_v42, %v12498_v44 }
 0x310   : > { %v12521_v17 = vadd.f32 %v12498_v44, %v2879_v6  ;;  %v10486_v18 = vpop.f32.mrb[6].mxu0 }
 0x311   : > { %v3029_v29 = vadd.f32 %v3028_v46, %v3027_v54  ;;  %v2882_v30 = vpop.f32.mrb[7].mxu0  ;;  %v12532_v63 = vadd.f32 %v10486_v18, %v12498_v44  ;;  %v3034_v10 = vsel %vm16624_vm4, %v12524_v40, 0.0 }
 0x312   : > { %v3030_v41 = vsel %vm16624_vm4, %v12521_v17, 0.0  ;;  %v12529_v50 = vadd.f32 %v12498_v44, %v2882_v30 }
 0x313   : > { %v3031_v56 = vadd.f32 %v3030_v41, %v3029_v29  ;;  %v3036_v24 = vsel %vm16624_vm4, %v12532_v63, 0.0 }
 0x314   : > { %v3032_v3 = vsel %vm16624_vm4, %v12529_v50, 0.0 }
 0x315   : > { %v3033_v9 = vadd.f32 %v3032_v3, %v3031_v56 }
 0x316   : > { %v10489_v11 = vpop.f32.mrb[8].mxu0 }
 0x317   : > { %v3035_v16 = vadd.f32 %v3034_v10, %v3033_v9  ;;  %v2895_v21 = vpop.f32.mrb[9].mxu0  ;;  %v12544_v34 = vadd.f32 %v10489_v11, %v12498_v44 }
 0x318   : > { %v12541_v27 = vadd.f32 %v12498_v44, %v2895_v21  ;;  %v10490_v55 = vpop.f32.mrb[10].mxu0 }
 0x319   : > { %v3037_v57 = vadd.f32 %v3036_v24, %v3035_v16  ;;  %v2898_v28 = vpop.f32.mrb[11].mxu0  ;;  %v12552_v39 = vadd.f32 %v10490_v55, %v12498_v44  ;;  %v3042_v53 = vsel %vm16624_vm4, %v12544_v34, 0.0 }
 0x31a   : > { %v3038_v35 = vsel %vm16624_vm4, %v12541_v27, 0.0  ;;  %v12549_v43 = vadd.f32 %v12498_v44, %v2898_v28 }
 0x31b   : > { %v3039_v38 = vadd.f32 %v3038_v35, %v3037_v57  ;;  %v3044_v62 = vsel %vm16624_vm4, %v12552_v39, 0.0 }
 0x31c   : > { %v3040_v45 = vsel %vm16624_vm4, %v12549_v43, 0.0 }
 0x31d   : > { %v3041_v47 = vadd.f32 %v3040_v45, %v3039_v38 }
 0x31e   : > { %v10493_v48 = vpop.f32.mrb[12].mxu0 }
 0x31f   : > { %v3043_v49 = vadd.f32 %v3042_v53, %v3041_v47  ;;  %v2911_v61 = vpop.f32.mrb[13].mxu0  ;;  %v12564_v8 = vadd.f32 %v10493_v48, %v12498_v44 }
 0x320   : > { %v12561_v58 = vadd.f32 %v12498_v44, %v2911_v61  ;;  %v10494_v0 = vpop.f32.mrb[14].mxu0 }
 0x321   : > { %v3045_v1 = vadd.f32 %v3044_v62, %v3043_v49  ;;  %v2914_v7 = vpop.f32.mrb[15].mxu0  ;;  %v12572_v20 = vadd.f32 %v10494_v0, %v12498_v44  ;;  %v3050_v31 = vsel %vm16624_vm4, %v12564_v8, 0.0 }
 0x322   : > { %v3046_v13 = vsel %vm16624_vm4, %v12561_v58, 0.0  ;;  %v12569_v14 = vadd.f32 %v12498_v44, %v2914_v7 }
 0x323   : > { %v3047_v19 = vadd.f32 %v3046_v13, %v3045_v1  ;;  %v3052_v60 = vsel %vm16624_vm4, %v12572_v20, 0.0 }
 0x324   : > { %v3048_v25 = vsel %vm16624_vm4, %v12569_v14, 0.0 }
 0x325   : > { %v3049_v26 = vadd.f32 %v3048_v25, %v3047_v19 }
 0x326   : > { %v10497_v32 = vpop.f32.mrb[16].mxu0 }
 0x327   : > { %v3051_v51 = vadd.f32 %v3050_v31, %v3049_v26  ;;  %v2927_v52 = vpop.f32.mrb[17].mxu0  ;;  %v12584_v36 = vadd.f32 %v10497_v32, %v12498_v44 }
 0x328   : > { %v12581_v4 = vadd.f32 %v12498_v44, %v2927_v52  ;;  %v10498_v15 = vpop.f32.mrb[18].mxu0 }
 0x329   : > { %v3053_v23 = vadd.f32 %v3052_v60, %v3051_v51  ;;  %v2930_v33 = vpop.f32.mrb[19].mxu0  ;;  %v12592_v46 = vadd.f32 %v10498_v15, %v12498_v44  ;;  %v3058_v30 = vsel %vm16624_vm4, %v12584_v36, 0.0 }
 0x32a   : > { %v3054_v42 = vsel %vm16624_vm4, %v12581_v4, 0.0  ;;  %v12589_v54 = vadd.f32 %v12498_v44, %v2930_v33 }
 0x32b   : > { %v3055_v6 = vadd.f32 %v3054_v42, %v3053_v23  ;;  %v3060_v9 = vsel %vm16624_vm4, %v12592_v46, 0.0 }
 0x32c   : > { %v3056_v18 = vsel %vm16624_vm4, %v12589_v54, 0.0 }
 0x32d   : > { %v3057_v29 = vadd.f32 %v3056_v18, %v3055_v6 }
 0x32e   : > { %v10501_v41 = vpop.f32.mrb[20].mxu0 }
 0x32f   : > { %v3059_v56 = vadd.f32 %v3058_v30, %v3057_v29  ;;  %v2943_v3 = vpop.f32.mrb[21].mxu0  ;;  %v12604_v24 = vadd.f32 %v10501_v41, %v12498_v44 }
 0x330   : > { %v12601_v10 = vadd.f32 %v12498_v44, %v2943_v3  ;;  %v10502_v11 = vpop.f32.mrb[22].mxu0 }
 0x331   : > { %v3061_v16 = vadd.f32 %v3060_v9, %v3059_v56  ;;  %v2946_v21 = vpop.f32.mrb[23].mxu0  ;;  %v12612_v35 = vadd.f32 %v10502_v11, %v12498_v44  ;;  %v3066_v47 = vsel %vm16624_vm4, %v12604_v24, 0.0 }
 0x332   : > { %v3062_v55 = vsel %vm16624_vm4, %v12601_v10, 0.0  ;;  %v12609_v57 = vadd.f32 %v12498_v44, %v2946_v21 }
 0x333   : > { %v3063_v28 = vadd.f32 %v3062_v55, %v3061_v16  ;;  %v3068_v61 = vsel %vm16624_vm4, %v12612_v35, 0.0 }
 0x334   : > { %v3064_v38 = vsel %vm16624_vm4, %v12609_v57, 0.0 }
 0x335   : > { %v3065_v45 = vadd.f32 %v3064_v38, %v3063_v28 }
 0x336   : > { %v10505_v53 = vpop.f32.mrb[24].mxu0 }
 0x337   : > { %v3067_v48 = vadd.f32 %v3066_v47, %v3065_v45  ;;  %v2959_v49 = vpop.f32.mrb[25].mxu0  ;;  %v12624_v13 = vadd.f32 %v10505_v53, %v12498_v44 }
 0x338   : > { %v12621_v62 = vadd.f32 %v12498_v44, %v2959_v49  ;;  %v10506_v0 = vpop.f32.mrb[26].mxu0 }
 0x339   : > { %v3069_v1 = vadd.f32 %v3068_v61, %v3067_v48  ;;  %v2962_v7 = vpop.f32.mrb[27].mxu0  ;;  %v12632_v31 = vadd.f32 %v10506_v0, %v12498_v44  ;;  %v3074_v52 = vsel %vm16624_vm4, %v12624_v13, 0.0 }
 0x33a   : > { %v3070_v19 = vsel %vm16624_vm4, %v12621_v62, 0.0  ;;  %v12629_v25 = vadd.f32 %v12498_v44, %v2962_v7 }
 0x33b   : > { %v3071_v26 = vadd.f32 %v3070_v19, %v3069_v1  ;;  %v3076_v33 = vsel %vm16624_vm4, %v12632_v31, 0.0 }
 0x33c   : > { %v3072_v32 = vsel %vm16624_vm4, %v12629_v25, 0.0 }
 0x33d   : > { %v3073_v51 = vadd.f32 %v3072_v32, %v3071_v26 }
 0x33e   : > { %v10509_v60 = vpop.f32.mrb[28].mxu0 }
 0x33f   : > { %v3075_v15 = vadd.f32 %v3074_v52, %v3073_v51  ;;  %v2975_v23 = vpop.f32.mrb[29].mxu0  ;;  %v12644_v30 = vadd.f32 %v10509_v60, %v12498_v44 }
 0x340   : > { %v12641_v42 = vadd.f32 %v12498_v44, %v2975_v23  ;;  %v10510_v6 = vpop.f32.mrb[30].mxu0 }
 0x341   : > { %v3077_v18 = vadd.f32 %v3076_v33, %v3075_v15  ;;  %v2978_v29 = vpop.f32.mrb[31].mxu0  ;;  %v12652_v9 = vadd.f32 %v10510_v6, %v12498_v44  ;;  %v3082_v21 = vsel %vm16624_vm4, %v12644_v30, 0.0 }
 0x342   : > { %v3078_v41 = vsel %vm16624_vm4, %v12641_v42, 0.0  ;;  %v12649_v56 = vadd.f32 %v12498_v44, %v2978_v29  ;;  %v3165_v44 = vlaneseq }
 0x343   : > { %v3079_v3 = vadd.f32 %v3078_v41, %v3077_v18  ;;  %v3084_v28 = vsel %vm16624_vm4, %v12652_v9, 0.0 }
 0x344   : > { %v3080_v11 = vsel %vm16624_vm4, %v12649_v56, 0.0  ;;  %v12664_v0 = vshrl.u32 %v3165_v44, 7 }
 0x345   : > { %v3081_v16 = vadd.f32 %v3080_v11, %v3079_v3 }
 0x346   : > { %16778 = vst [vmem:[#allocation8_spill] sm:$0xff] %v12664_v0  ;;  %v12667_v19 = vsub.s32 0, %v12664_v0 }
 0x347   : > { %v3083_v55 = vadd.f32 %v3082_v21, %v3081_v16 }
 0x348   : > { %16779 = vst [vmem:[#allocation9_spill] sm:$0xff] %v12667_v19 }
 0x349   : > { %v3085_v38 = vadd.f32 %v3084_v28, %v3083_v55 }
 0x34b   : > { %v3086_v45 = vrot.slane %v3085_v38, 4 }
 0x34d   : > { %v3087_v47 = vadd.f32 %v3086_v45, %v3085_v38 }
 0x34f   : > { %v3088_v53 = vrot.slane %v3087_v47, 2 }
 0x351   : > { %v3089_v48 = vadd.f32 %v3088_v53, %v3087_v47 }
 0x353   : > { %v3090_v49 = vrot.slane %v3089_v48, 1 }
 0x355   : > { %v3091_v61 = vadd.f32 %v3090_v49, %v3089_v48 }
 0x357   : > { %10516 = vmatmul.mubr.msk.f32.vlgmr.msra.gmra.mrb[0].mxu1 %vm16624_vm4, %v3091_v61 }
 0x358   : > { %10850 = vmatpush3.bf16.msra.mxu1 %v12487_v37  ;;  %10522 = vmatprep.mubr.msk.f32.mxu1 %vm16623_vm5, %v16617_v2 }
 0x42a   : > { %v3161_v1 = vpop.f32.mrb[0].mxu1 }
 0x42b   : > { %v10517_v7 = vpop.f32.mrb[1].mxu1  ;;  %v12670_v26 = vrot.slane %v3161_v1, %v12667_v19 }
 0x42d   : > { %v12674_v32 = vsub.f32 %v12501_v59, %v12670_v26  ;;  %v12678_v51 = vsub.f32 %v12507_v12, %v12670_v26  ;;  %v12682_v52 = vsub.f32 %v12504_v5, %v12670_v26  ;;  %v12686_v60 = vsub.f32 %v12512_v22, %v12670_v26 }
 0x42e   : > { %v12694_v59 = vsub.f32 %v12521_v17, %v12670_v26  ;;  %v12700_v5 = vsub.f32 %v12529_v50, %v12670_v26  ;;  %v12708_v29 = vsub.f32 %v12524_v40, %v12670_v26  ;;  %v12715_v50 = vsub.f32 %v12532_v63, %v12670_v26 }
 0x42f   : > { %v3201_v15 = vmul.f32 %v12674_v32, %v12674_v32  ;;  %v3202_v23 = vmul.f32 %v12678_v51, %v12678_v51  ;;  %v3203_v12 = vmul.f32 %v12682_v52, %v12682_v52  ;;  %v3204_v22 = vmul.f32 %v12686_v60, %v12686_v60 }
 0x430   : > { %v3205_v17 = vmul.f32 %v12694_v59, %v12694_v59  ;;  %v3206_v11 = vmul.f32 %v12700_v5, %v12700_v5  ;;  %v12722_v40 = vsub.f32 %v12541_v27, %v12670_v26  ;;  %v3207_v55 = vmul.f32 %v12708_v29, %v12708_v29 }
 0x431   : > { %v3233_v33 = vsel %vm16624_vm4, %v3201_v15, 0.0  ;;  %v3234_v6 = vsel %vm16624_vm4, %v3202_v23, 0.0  ;;  %v3236_v41 = vsel %vm16624_vm4, %v3203_v12, 0.0  ;;  %v3238_v16 = vsel %vm16624_vm4, %v3204_v22, 0.0 }
 0x432   : > { %v3235_v18 = vadd.f32 %v3234_v6, %v3233_v33  ;;  %v3240_v28 = vsel %vm16624_vm4, %v3205_v17, 0.0  ;;  %v12729_v63 = vsub.f32 %v12549_v43, %v12670_v26  ;;  %v3208_v45 = vmul.f32 %v12715_v50, %v12715_v50 }
 0x433   : > { %v3242_v47 = vsel %vm16624_vm4, %v3206_v11, 0.0  ;;  %v12736_v27 = vsub.f32 %v12544_v34, %v12670_v26  ;;  %v3209_v48 = vmul.f32 %v12722_v40, %v12722_v40  ;;  %v3244_v49 = vsel %vm16624_vm4, %v3207_v55, 0.0 }
 0x434   : > { %v3237_v3 = vadd.f32 %v3236_v41, %v3235_v18  ;;  %v12743_v43 = vsub.f32 %v12552_v39, %v12670_v26  ;;  %v3210_v44 = vmul.f32 %v12729_v63, %v12729_v63  ;;  %v3246_v1 = vsel %vm16624_vm4, %v3208_v45, 0.0 }
 0x435   : > { %v12750_v34 = vsub.f32 %v12561_v58, %v12670_v26  ;;  %v3211_v15 = vmul.f32 %v12736_v27, %v12736_v27  ;;  %v3248_v23 = vsel %vm16624_vm4, %v3209_v48, 0.0  ;;  %v12757_v39 = vsub.f32 %v12569_v14, %v12670_v26 }
 0x436   : > { %v3239_v21 = vadd.f32 %v3238_v16, %v3237_v3  ;;  %v3212_v22 = vmul.f32 %v12743_v43, %v12743_v43  ;;  %v3250_v33 = vsel %vm16624_vm4, %v3210_v44, 0.0  ;;  %v12764_v58 = vsub.f32 %v12564_v8, %v12670_v26 }
 0x437   : > { %v3213_v18 = vmul.f32 %v12750_v34, %v12750_v34  ;;  %v3252_v17 = vsel %vm16624_vm4, %v3211_v15, 0.0  ;;  %v12771_v14 = vsub.f32 %v12572_v20, %v12670_v26  ;;  %v3214_v3 = vmul.f32 %v12757_v39, %v12757_v39 }
 0x438   : > { %v3241_v38 = vadd.f32 %v3240_v28, %v3239_v21  ;;  %v3254_v11 = vsel %vm16624_vm4, %v3212_v22, 0.0  ;;  %v12778_v8 = vsub.f32 %v12581_v4, %v12670_v26  ;;  %v3215_v21 = vmul.f32 %v12764_v58, %v12764_v58 }
 0x439   : > { %v3256_v55 = vsel %vm16624_vm4, %v3213_v18, 0.0  ;;  %v12785_v20 = vsub.f32 %v12589_v54, %v12670_v26  ;;  %v3258_v45 = vsel %vm16624_vm4, %v3214_v3, 0.0  ;;  %v12792_v4 = vsub.f32 %v12584_v36, %v12670_v26 }
 0x43a   : > { %v3243_v53 = vadd.f32 %v3242_v47, %v3241_v38  ;;  %v3216_v38 = vmul.f32 %v12771_v14, %v12771_v14  ;;  %v3260_v48 = vsel %vm16624_vm4, %v3215_v21, 0.0  ;;  %v12799_v54 = vsub.f32 %v12592_v46, %v12670_v26 }
 0x43b   : > { %v12806_v36 = vsub.f32 %v12601_v10, %v12670_v26  ;;  %v12813_v46 = vsub.f32 %v12609_v57, %v12670_v26  ;;  %v12820_v10 = vsub.f32 %v12604_v24, %v12670_v26  ;;  %v12827_v57 = vsub.f32 %v12612_v35, %v12670_v26 }
 0x43c   : > { %v3245_v61 = vadd.f32 %v3244_v49, %v3243_v53  ;;  %v3217_v53 = vmul.f32 %v12778_v8, %v12778_v8  ;;  %v3262_v44 = vsel %vm16624_vm4, %v3216_v38, 0.0  ;;  %v12834_v24 = vsub.f32 %v12621_v62, %v12670_v26 }
 0x43d   : > { %v12841_v35 = vsub.f32 %v12629_v25, %v12670_v26  ;;  %v12848_v62 = vsub.f32 %v12624_v13, %v12670_v26  ;;  %v12855_v25 = vsub.f32 %v12632_v31, %v12670_v26  ;;  %v12862_v13 = vsub.f32 %v12641_v42, %v12670_v26 }
 0x43e   : > { %v3247_v7 = vadd.f32 %v3246_v1, %v3245_v61  ;;  %v3218_v61 = vmul.f32 %v12785_v20, %v12785_v20  ;;  %v3264_v15 = vsel %vm16624_vm4, %v3217_v53, 0.0  ;;  %v12869_v31 = vsub.f32 %v12649_v56, %v12670_v26 }
 0x43f   : > { %v3199_v42 = vsub.f32 %v12644_v30, %v12670_v26 }
 0x440   : > { %v3249_v12 = vadd.f32 %v3248_v23, %v3247_v7  ;;  %v3219_v7 = vmul.f32 %v12792_v4, %v12792_v4  ;;  %v3266_v22 = vsel %vm16624_vm4, %v3218_v61, 0.0  ;;  %v3230_v56 = vmul.f32 %v12869_v31, %v12869_v31 }
 0x442   : > { %v3251_v6 = vadd.f32 %v3250_v33, %v3249_v12  ;;  %v3220_v12 = vmul.f32 %v12799_v54, %v12799_v54  ;;  %v3268_v18 = vsel %vm16624_vm4, %v3219_v7, 0.0 }
 0x444   : > { %v3253_v41 = vadd.f32 %v3252_v17, %v3251_v6  ;;  %v3221_v6 = vmul.f32 %v12806_v36, %v12806_v36  ;;  %v3270_v3 = vsel %vm16624_vm4, %v3220_v12, 0.0 }
 0x446   : > { %v3255_v16 = vadd.f32 %v3254_v11, %v3253_v41  ;;  %v3222_v41 = vmul.f32 %v12813_v46, %v12813_v46  ;;  %v3272_v21 = vsel %vm16624_vm4, %v3221_v6, 0.0 }
 0x448   : > { %v3257_v28 = vadd.f32 %v3256_v55, %v3255_v16  ;;  %v3223_v16 = vmul.f32 %v12820_v10, %v12820_v10  ;;  %v3274_v38 = vsel %vm16624_vm4, %v3222_v41, 0.0 }
 0x44a   : > { %v3259_v47 = vadd.f32 %v3258_v45, %v3257_v28  ;;  %v3224_v28 = vmul.f32 %v12827_v57, %v12827_v57  ;;  %v3276_v53 = vsel %vm16624_vm4, %v3223_v16, 0.0 }
 0x44c   : > { %v3261_v49 = vadd.f32 %v3260_v48, %v3259_v47  ;;  %v3225_v47 = vmul.f32 %v12834_v24, %v12834_v24  ;;  %v3278_v61 = vsel %vm16624_vm4, %v3224_v28, 0.0 }
 0x44e   : > { %v3263_v1 = vadd.f32 %v3262_v44, %v3261_v49  ;;  %v3226_v49 = vmul.f32 %v12841_v35, %v12841_v35  ;;  %v3280_v7 = vsel %vm16624_vm4, %v3225_v47, 0.0 }
 0x450   : > { %v3265_v23 = vadd.f32 %v3264_v15, %v3263_v1  ;;  %v3227_v1 = vmul.f32 %v12848_v62, %v12848_v62  ;;  %v3282_v12 = vsel %vm16624_vm4, %v3226_v49, 0.0 }
 0x452   : > { %v3267_v33 = vadd.f32 %v3266_v22, %v3265_v23  ;;  %v3228_v23 = vmul.f32 %v12855_v25, %v12855_v25  ;;  %v3284_v6 = vsel %vm16624_vm4, %v3227_v1, 0.0 }
 0x454   : > { %v3269_v17 = vadd.f32 %v3268_v18, %v3267_v33  ;;  %v3229_v33 = vmul.f32 %v12862_v13, %v12862_v13  ;;  %v3286_v41 = vsel %vm16624_vm4, %v3228_v23, 0.0 }
 0x456   : > { %v3271_v11 = vadd.f32 %v3270_v3, %v3269_v17  ;;  %v3200_v17 = vsub.f32 %v12652_v9, %v12670_v26  ;;  %v3288_v16 = vsel %vm16624_vm4, %v3229_v33, 0.0 }
 0x458   : > { %v3273_v55 = vadd.f32 %v3272_v21, %v3271_v11  ;;  %v3231_v11 = vmul.f32 %v3199_v42, %v3199_v42  ;;  %v3232_v30 = vmul.f32 %v3200_v17, %v3200_v17 }
 0x45a   : > { %v3275_v45 = vadd.f32 %v3274_v38, %v3273_v55  ;;  %v3290_v55 = vsel %vm16624_vm4, %v3230_v56, 0.0  ;;  %v3292_v38 = vsel %vm16624_vm4, %v3231_v11, 0.0  ;;  %v3294_v47 = vsel %vm16624_vm4, %v3232_v30, 0.0 }
 0x45c   : > { %v3277_v48 = vadd.f32 %v3276_v53, %v3275_v45 }
 0x45e   : > { %v3279_v44 = vadd.f32 %v3278_v61, %v3277_v48 }
 0x460   : > { %v3281_v15 = vadd.f32 %v3280_v7, %v3279_v44 }
 0x462   : > { %v3283_v22 = vadd.f32 %v3282_v12, %v3281_v15 }
 0x464   : > { %v3285_v18 = vadd.f32 %v3284_v6, %v3283_v22 }
 0x466   : > { %v3287_v3 = vadd.f32 %v3286_v41, %v3285_v18 }
 0x468   : > { %v3289_v21 = vadd.f32 %v3288_v16, %v3287_v3 }
 0x46a   : > { %v3291_v28 = vadd.f32 %v3290_v55, %v3289_v21 }
 0x46c   : > { %v3293_v45 = vadd.f32 %v3292_v38, %v3291_v28 }
 0x46e   : > { %v3295_v9 = vadd.f32 %v3294_v47, %v3293_v45 }
 0x470   : > { %v3296_v26 = vrot.slane %v3295_v9, 4 }
 0x472   : > { %v3297_v53 = vadd.f32 %v3296_v26, %v3295_v9 }
 0x474   : > { %v3298_v48 = vrot.slane %v3297_v53, 2 }
 0x476   : > { %v3299_v49 = vadd.f32 %v3298_v48, %v3297_v53  ;;  %v12947_v53 = vld [vmem:[%s16614_s3 + $0x2] ss:$0 sm:$0xff] }
 0x478   : > { %v3300_v61 = vrot.slane %v3299_v49, 1 }
 0x47a   : > { %v3301_v44 = vadd.f32 %v3300_v61, %v3299_v49 }
 0x47c   : > { %10523 = vmatmul.mubr.msk.f32.vlgmr.msra.gmra.mrb[2].mxu1 %vm16624_vm4, %v3301_v44 }
 0x54f   : > { %v3371_v1 = vpop.f32.mrb[2].mxu1 }
 0x550   : > { %v3372_v7 = vadd.f32 1e-05, %v3371_v1  ;;  %v10524_v15 = vpop.f32.mrb[3].mxu1 }
 0x552   : > { %11497 = vrsqrt.f32 %v3372_v7 }
 0x55c   : > { %v11498_v23 = vpop.eup %11497 }
 0x55d   : > { %v3379_v12 = vrot.slane %v11498_v23, %v12667_v19 }
 0x55f   : > { %v3380_v22 = vmul.f32 %v3379_v12, %v12674_v32  ;;  %v3381_v33 = vmul.f32 %v3379_v12, %v12678_v51  ;;  %v3382_v6 = vmul.f32 %v3379_v12, %v12682_v52  ;;  %v3383_v18 = vmul.f32 %v3379_v12, %v12686_v60 }
 0x560   : > { %v3384_v56 = vmul.f32 %v3379_v12, %v12694_v59  ;;  %v3385_v41 = vmul.f32 %v3379_v12, %v12700_v5  ;;  %v3386_v3 = vmul.f32 %v3379_v12, %v12708_v29  ;;  %v3387_v11 = vmul.f32 %v3379_v12, %v12715_v50  ;;  %v12910_v50 = vld [vmem:[%s16614_s3 + $0x1] ss:$0 sm:$0xff] }
 0x561   : > { %v3388_v16 = vmul.f32 %v3379_v12, %v12722_v40  ;;  %v3389_v21 = vmul.f32 %v3379_v12, %v12729_v63  ;;  %v3390_v32 = vmul.f32 %v3379_v12, %v12736_v27  ;;  %v3391_v51 = vmul.f32 %v3379_v12, %v12743_v43 }
 0x562   : > { %v3392_v52 = vmul.f32 %v3379_v12, %v12750_v34  ;;  %v3393_v60 = vmul.f32 %v3379_v12, %v12757_v39  ;;  %v3394_v59 = vmul.f32 %v3379_v12, %v12764_v58  ;;  %v3395_v5 = vmul.f32 %v3379_v12, %v12771_v14 }
 0x563   : > { %v3396_v29 = vmul.f32 %v3379_v12, %v12778_v8  ;;  %v3397_v40 = vmul.f32 %v3379_v12, %v12785_v20  ;;  %v3398_v63 = vmul.f32 %v3379_v12, %v12792_v4  ;;  %v3399_v27 = vmul.f32 %v3379_v12, %v12799_v54 }
 0x564   : > { %v3400_v43 = vmul.f32 %v3379_v12, %v12806_v36  ;;  %v3401_v34 = vmul.f32 %v3379_v12, %v12813_v46  ;;  %v3402_v39 = vmul.f32 %v3379_v12, %v12820_v10  ;;  %v3403_v58 = vmul.f32 %v3379_v12, %v12827_v57 }
 0x565   : > { %v3404_v14 = vmul.f32 %v3379_v12, %v12834_v24  ;;  %v3405_v8 = vmul.f32 %v3379_v12, %v12841_v35  ;;  %v3406_v30 = vmul.f32 %v3379_v12, %v12848_v62  ;;  %v3407_v20 = vmul.f32 %v3379_v12, %v12855_v25 }
 0x566   : > { %v3408_v4 = vmul.f32 %v3379_v12, %v12862_v13  ;;  %v3409_v54 = vmul.f32 %v3379_v12, %v12869_v31  ;;  %v3410_v55 = vmul.f32 %v3379_v12, %v3199_v42  ;;  %v12925_v36 = vmul.f32 %v3379_v12, %v3200_v17 }
 0x567   : > { %v3416_v46 = vmul.f32 %v12910_v50, %v3380_v22  ;;  %v3417_v10 = vmul.f32 %v12910_v50, %v3381_v33  ;;  %v3418_v57 = vmul.f32 %v12910_v50, %v3382_v6  ;;  %v3419_v24 = vmul.f32 %v12910_v50, %v3383_v18 }
 0x568   : > { %v3420_v35 = vmul.f32 %v12910_v50, %v3384_v56  ;;  %v3421_v62 = vmul.f32 %v12910_v50, %v3385_v41  ;;  %v3422_v25 = vmul.f32 %v12910_v50, %v3386_v3  ;;  %v3423_v13 = vmul.f32 %v12910_v50, %v3387_v11 }
 0x569   : > { %v3424_v31 = vmul.f32 %v12910_v50, %v3388_v16  ;;  %v3425_v42 = vmul.f32 %v12910_v50, %v3389_v21  ;;  %v3426_v17 = vmul.f32 %v12910_v50, %v3390_v32  ;;  %v3427_v28 = vmul.f32 %v12910_v50, %v3391_v51 }
 0x56a   : > { %v3428_v38 = vmul.f32 %v12910_v50, %v3392_v52  ;;  %v3429_v45 = vmul.f32 %v12910_v50, %v3393_v60  ;;  %v3430_v47 = vmul.f32 %v12910_v50, %v3394_v59  ;;  %v3431_v9 = vmul.f32 %v12910_v50, %v3395_v5 }
 0x56b   : > { %v3432_v26 = vmul.f32 %v12910_v50, %v3396_v29  ;;  %v3433_v48 = vmul.f32 %v12910_v50, %v3397_v40  ;;  %v3434_v49 = vmul.f32 %v12910_v50, %v3398_v63  ;;  %v3435_v61 = vmul.f32 %v12910_v50, %v3399_v27 }
 0x56c   : > { %v3436_v44 = vmul.f32 %v12910_v50, %v3400_v43  ;;  %v3437_v1 = vmul.f32 %v12910_v50, %v3401_v34  ;;  %v3438_v7 = vmul.f32 %v12910_v50, %v3402_v39  ;;  %v3439_v15 = vmul.f32 %v12910_v50, %v3403_v58 }
 0x56d   : > { %v3440_v23 = vmul.f32 %v12910_v50, %v3404_v14  ;;  %v3441_v12 = vmul.f32 %v12910_v50, %v3405_v8  ;;  %v3442_v22 = vmul.f32 %v12910_v50, %v3406_v30  ;;  %v3443_v33 = vmul.f32 %v12910_v50, %v3407_v20 }
 0x56e   : > { %v3444_v6 = vmul.f32 %v12910_v50, %v3408_v4  ;;  %v3445_v18 = vmul.f32 %v12910_v50, %v3409_v54  ;;  %v3446_v56 = vmul.f32 %v12910_v50, %v3410_v55  ;;  %v3452_v41 = vadd.f32 %v12947_v53, %v3416_v46 }
 0x56f   : > { %v3453_v3 = vadd.f32 %v12947_v53, %v3417_v10  ;;  %v3454_v11 = vadd.f32 %v12947_v53, %v3418_v57  ;;  %v3455_v16 = vadd.f32 %v12947_v53, %v3419_v24  ;;  %v3456_v21 = vadd.f32 %v12947_v53, %v3420_v35 }
 0x570   : > { %v3457_v32 = vadd.f32 %v12947_v53, %v3421_v62  ;;  %v12970_v51 = vadd.f32 %v12947_v53, %v3422_v25  ;;  %v3459_v52 = vadd.f32 %v12947_v53, %v3423_v13  ;;  %v3460_v60 = vadd.f32 %v12947_v53, %v3424_v31 }
 0x571   : > { %v3461_v59 = vadd.f32 %v12947_v53, %v3425_v42  ;;  %v3462_v5 = vadd.f32 %v12947_v53, %v3426_v17  ;;  %v3463_v29 = vadd.f32 %v12947_v53, %v3427_v28  ;;  %v3464_v40 = vadd.f32 %v12947_v53, %v3428_v38 }
 0x572   : > { %v3465_v63 = vadd.f32 %v12947_v53, %v3429_v45  ;;  %v3466_v27 = vadd.f32 %v12947_v53, %v3430_v47  ;;  %v3467_v43 = vadd.f32 %v12947_v53, %v3431_v9  ;;  %v3468_v34 = vadd.f32 %v12947_v53, %v3432_v26 }
 0x573   : > { %v3469_v39 = vadd.f32 %v12947_v53, %v3433_v48  ;;  %v12984_v58 = vadd.f32 %v12947_v53, %v3434_v49  ;;  %v12987_v14 = vadd.f32 %v12947_v53, %v3435_v61  ;;  %v12990_v8 = vadd.f32 %v12947_v53, %v3436_v44 }
 0x574   : > { %v12993_v30 = vadd.f32 %v12947_v53, %v3437_v1  ;;  %v12996_v20 = vadd.f32 %v12947_v53, %v3438_v7  ;;  %v12999_v4 = vadd.f32 %v12947_v53, %v3439_v15  ;;  %v13002_v54 = vadd.f32 %v12947_v53, %v3440_v23 }
 0x575   : > { %v13005_v55 = vadd.f32 %v12947_v53, %v3441_v12  ;;  %v13008_v46 = vadd.f32 %v12947_v53, %v3442_v22  ;;  %v13011_v10 = vadd.f32 %v12947_v53, %v3443_v33  ;;  %v13014_v57 = vadd.f32 %v12947_v53, %v3444_v6 }
 0x576   : > { %v13017_v24 = vadd.f32 %v12947_v53, %v3445_v18  ;;  %v13020_v35 = vadd.f32 %v12947_v53, %v3446_v56  ;;  %v13022_v62 = vmul.f32 0.5, %v3452_v41  ;;  %v13024_v25 = vmul.f32 0.5, %v3453_v3 }
 0x577   : > { %v13026_v13 = vmul.f32 0.5, %v3454_v11  ;;  %v13028_v31 = vmul.f32 0.5, %v3455_v16  ;;  %v13030_v42 = vmul.f32 0.5, %v3456_v21  ;;  %v13032_v17 = vmul.f32 0.5, %v3457_v32 }
 0x578   : > { %16780 = vst [vmem:[#allocation10_spill] sm:$0xff] %v13022_v62  ;;  %16781 = vst [vmem:[#allocation11_spill] sm:$0xff] %v13024_v25  ;;  %v13035_v28 = vmul.f32 0.5, %v12970_v51  ;;  %v13037_v38 = vmul.f32 0.5, %v3459_v52  ;;  %v13039_v45 = vmul.f32 0.5, %v3460_v60  ;;  %v13041_v47 = vmul.f32 0.5, %v3461_v59 }
 0x579   : > { %16782 = vst [vmem:[#allocation12_spill] sm:$0xff] %v13026_v13  ;;  %16783 = vst [vmem:[#allocation13_spill] sm:$0xff] %v13028_v31  ;;  %v13043_v9 = vmul.f32 0.5, %v3462_v5  ;;  %v13045_v26 = vmul.f32 0.5, %v3463_v29  ;;  %v13047_v48 = vmul.f32 0.5, %v3464_v40  ;;  %v13049_v49 = vmul.f32 0.5, %v3465_v63 }
 0x57a   : > { %16784 = vst [vmem:[#allocation14_spill] sm:$0xff] %v13030_v42  ;;  %16785 = vst [vmem:[#allocation15_spill] sm:$0xff] %v13032_v17  ;;  %v13051_v61 = vmul.f32 0.5, %v3466_v27  ;;  %v13053_v44 = vmul.f32 0.5, %v3467_v43  ;;  %v13055_v1 = vmul.f32 0.5, %v3468_v34  ;;  %v13057_v7 = vmul.f32 0.5, %v3469_v39 }
 0x57b   : > { %16786 = vst [vmem:[#allocation16_spill] sm:$0xff] %v13035_v28  ;;  %16787 = vst [vmem:[#allocation17_spill] sm:$0xff] %v13037_v38  ;;  %v13060_v15 = vmul.f32 0.5, %v12984_v58  ;;  %v13063_v23 = vmul.f32 0.5, %v12987_v14  ;;  %v13066_v12 = vmul.f32 0.5, %v12990_v8  ;;  %v13069_v22 = vmul.f32 0.5, %v12993_v30 }
 0x57c   : > { %16788 = vst [vmem:[#allocation18_spill] sm:$0xff] %v13039_v45  ;;  %16789 = vst [vmem:[#allocation19_spill] sm:$0xff] %v13041_v47  ;;  %v13072_v33 = vmul.f32 0.5, %v12996_v20  ;;  %v13075_v6 = vmul.f32 0.5, %v12999_v4  ;;  %v13078_v18 = vmul.f32 0.5, %v13002_v54  ;;  %v13081_v56 = vmul.f32 0.5, %v13005_v55 }
 0x57d   : > { %16790 = vst [vmem:[#allocation20_spill] sm:$0xff] %v13043_v9  ;;  %16791 = vst [vmem:[#allocation21_spill] sm:$0xff] %v13045_v26  ;;  %v13084_v2 = vmul.f32 0.5, %v13008_v46  ;;  %v13087_v0 = vmul.f32 0.5, %v13011_v10  ;;  %v13090_v19 = vmul.f32 0.5, %v13014_v57  ;;  %v13093_v37 = vmul.f32 0.5, %v13017_v24 }
 0x57e   : > { %16792 = vst [vmem:[#allocation22_spill] sm:$0xff] %v13047_v48  ;;  %16793 = vst [vmem:[#allocation23_spill] sm:$0xff] %v13049_v49 }
 0x57f   : > { %16794 = vst [vmem:[#allocation24_spill] sm:$0xff] %v13051_v61  ;;  %16795 = vst [vmem:[#allocation25_spill] sm:$0xff] %v13053_v44 }
 0x580   : > { %16796 = vst [vmem:[#allocation26_spill] sm:$0xff] %v13055_v1  ;;  %16797 = vst [vmem:[#allocation27_spill] sm:$0xff] %v13057_v7 }
 0x581   : > { %16798 = vst [vmem:[#allocation28_spill] sm:$0xff] %v13060_v15  ;;  %16799 = vst [vmem:[#allocation29_spill] sm:$0xff] %v13063_v23 }
 0x582   : > { %16800 = vst [vmem:[#allocation30_spill] sm:$0xff] %v13066_v12  ;;  %16801 = vst [vmem:[#allocation31_spill] sm:$0xff] %v13069_v22  ;;  %v13104_v22 = vmul.f32 0.70710677, %v3455_v16  ;;  %v13115_v12 = vmul.f32 0.70710677, %v3459_v52 }
 0x583   : > { %16802 = vst [vmem:[#allocation32_spill] sm:$0xff] %v13072_v33  ;;  %16803 = vst [vmem:[#allocation33_spill] sm:$0xff] %v13075_v6  ;;  %v13096_v6 = vmul.f32 0.5, %v13020_v35  ;;  %v13098_v33 = vmul.f32 0.70710677, %v3452_v41 }
 0x584   : > { %16804 = vst [vmem:[#allocation34_spill] sm:$0xff] %v13078_v18  ;;  %16805 = vst [vmem:[#allocation35_spill] sm:$0xff] %v13081_v56  ;;  %v13100_v18 = vmul.f32 0.70710677, %v3453_v3  ;;  %v13102_v56 = vmul.f32 0.70710677, %v3454_v11 }
 0x585   : > { %16806 = vst [vmem:[#allocation36_spill] sm:$0xff] %v13084_v2  ;;  %16807 = vst [vmem:[#allocation37_spill] sm:$0xff] %v13087_v0  ;;  %v13106_v2 = vmul.f32 0.70710677, %v3456_v21  ;;  %v13108_v0 = vmul.f32 0.70710677, %v3457_v32 }
 0x586   : > { %16808 = vst [vmem:[#allocation38_spill] sm:$0xff] %v13090_v19  ;;  %16809 = vst [vmem:[#allocation39_spill] sm:$0xff] %v13093_v37  ;;  %v3447_v19 = vmul.f32 %v12910_v50, %v12925_v36  ;;  %v13113_v37 = vmul.f32 0.70710677, %v12970_v51  ;;  %v13117_v41 = vmul.f32 0.70710677, %v3460_v60 }
 0x587   : > { %16810 = vst [vmem:[#allocation40_spill] sm:$0xff] %v13096_v6  ;;  %v13119_v3 = vmul.f32 0.70710677, %v3461_v59  ;;  %v13121_v11 = vmul.f32 0.70710677, %v3462_v5  ;;  %vm3548_vm6 = vcmp.ge.f32.partialorder %v13098_v33, 0.0 }
 0x588   : > { %v13123_v16 = vmul.f32 0.70710677, %v3463_v29  ;;  %v13125_v21 = vmul.f32 0.70710677, %v3464_v40  ;;  %v13127_v32 = vmul.f32 0.70710677, %v3465_v63  ;;  %v3483_v52 = vadd.f32 %v12947_v53, %v3447_v19 }
 0x589   : > { %v13129_v6 = vmul.f32 0.70710677, %v3466_v27  ;;  %v13131_v50 = vmul.f32 0.70710677, %v3467_v43  ;;  %v13133_v36 = vmul.f32 0.70710677, %v3468_v34 }
 0x58a   : > { %v13135_v51 = vmul.f32 0.70710677, %v3469_v39  ;;  %v13139_v60 = vmul.f32 0.70710677, %v12984_v58  ;;  %v13142_v59 = vmul.f32 0.70710677, %v12987_v14 }
 0x58b   : > { %v13145_v5 = vmul.f32 0.70710677, %v12990_v8  ;;  %v13148_v29 = vmul.f32 0.70710677, %v12993_v30  ;;  %v13151_v40 = vmul.f32 0.70710677, %v12996_v20 }
 0x58c   : > { %v13154_v63 = vmul.f32 0.70710677, %v12999_v4  ;;  %v13157_v19 = vmul.f32 0.70710677, %v13002_v54  ;;  %v13160_v53 = vmul.f32 0.70710677, %v13005_v55 }
 0x58d   : > { %v13163_v27 = vmul.f32 0.70710677, %v13008_v46  ;;  %v13166_v43 = vmul.f32 0.70710677, %v13011_v10  ;;  %v13169_v34 = vmul.f32 0.70710677, %v13014_v57 }
 0x58e   : > { %v13172_v39 = vmul.f32 0.70710677, %v13017_v24  ;;  %v13174_v58 = vmul.f32 0.5, %v3483_v52  ;;  %v13177_v14 = vmul.f32 0.70710677, %v13020_v35  ;;  %vm3549_vm7 = vcmp.ge.f32.partialorder %v13100_v18, 0.0 }
 0x58f   : > { %v13179_v8 = vmul.f32 0.70710677, %v3483_v52  ;;  %vm3550_vm8 = vcmp.ge.f32.partialorder %v13102_v56, 0.0  ;;  %vm3551_vm9 = vcmp.ge.f32.partialorder %v13104_v22, 0.0  ;;  %vm3552_vm10 = vcmp.ge.f32.partialorder %v13106_v2, 0.0 }
 0x590   : > { %16811 = vst [vmem:[#allocation41_spill] sm:$0xff] %v13174_v58  ;;  %vm3553_vm11 = vcmp.ge.f32.partialorder %v13108_v0, 0.0  ;;  %vm3570_vm2 = vcmp.ge.f32.partialorder %v13151_v40, 0.0  ;;  %vm3571_vm3 = vcmp.ge.f32.partialorder %v13154_v63, 0.0  ;;  %vm3572_vm5 = vcmp.ge.f32.partialorder %v13157_v19, 0.0 }
 0x591   : > { %vm3573_vm4 = vcmp.ge.f32.partialorder %v13160_v53, 0.0  ;;  %vm3574_vm12 = vcmp.ge.f32.partialorder %v13163_v27, 0.0  ;;  %vm3575_vm13 = vcmp.ge.f32.partialorder %v13166_v43, 0.0  ;;  %vm3576_vm14 = vcmp.ge.f32.partialorder %v13169_v34, 0.0 }
 0x592   : > { %vm3577_vm15 = vcmp.ge.f32.partialorder %v13172_v39, 0.0  ;;  %vm3578_vm0 = vcmp.ge.f32.partialorder %v13177_v14, 0.0  ;;  %vm3579_vm1 = vcmp.ge.f32.partialorder %v13179_v8, 0.0  ;;  %v16625_v30 = vmov -1.0  }
 0x593   : > { %v13216_v20 = vsel %vm3548_vm6, 1.0, %v16625_v30  ;;  %v13221_v4 = vsel %vm3549_vm7, 1.0, %v16625_v30  ;;  %v13226_v54 = vsel %vm3550_vm8, 1.0, %v16625_v30  ;;  %v13231_v55 = vsel %vm3551_vm9, 1.0, %v16625_v30 }
 0x594   : > { %16812 = vst [vmem:[#allocation42_spill] sm:$0xff] %v13216_v20  ;;  %16813 = vst [vmem:[#allocation43_spill] sm:$0xff] %v13221_v4  ;;  %v13236_v46 = vsel %vm3552_vm10, 1.0, %v16625_v30  ;;  %v13241_v10 = vsel %vm3553_vm11, 1.0, %v16625_v30  ;;  %vm16818_vm6 = vcmp.ge.f32.partialorder %v13113_v37, 0.0  ;;  %vm16820_vm7 = vcmp.ge.f32.partialorder %v13115_v12, 0.0 }
 0x595   : > { %16814 = vst [vmem:[#allocation44_spill] sm:$0xff] %v13226_v54  ;;  %16815 = vst [vmem:[#allocation45_spill] sm:$0xff] %v13231_v55  ;;  %v13246_v57 = vsel %vm16818_vm6, 1.0, %v16625_v30  ;;  %v13251_v24 = vsel %vm16820_vm7, 1.0, %v16625_v30  ;;  %vm16822_vm8 = vcmp.ge.f32.partialorder %v13117_v41, 0.0  ;;  %vm16824_vm9 = vcmp.ge.f32.partialorder %v13119_v3, 0.0 }
 0x596   : > { %16816 = vst [vmem:[#allocation46_spill] sm:$0xff] %v13236_v46  ;;  %16817 = vst [vmem:[#allocation47_spill] sm:$0xff] %v13241_v10  ;;  %v13256_v35 = vsel %vm16822_vm8, 1.0, %v16625_v30  ;;  %v13261_v52 = vsel %vm16824_vm9, 1.0, %v16625_v30  ;;  %vm16826_vm10 = vcmp.ge.f32.partialorder %v13121_v11, 0.0  ;;  %vm16828_vm11 = vcmp.ge.f32.partialorder %v13123_v16, 0.0 }
 0x597   : > { %16819 = vst [vmem:[#allocation48_spill] sm:$0xff] %v13246_v57  ;;  %16821 = vst [vmem:[#allocation49_spill] sm:$0xff] %v13251_v24  ;;  %v13266_v58 = vsel %vm16826_vm10, 1.0, %v16625_v30  ;;  %v13271_v23 = vsel %vm16828_vm11, 1.0, %v16625_v30  ;;  %vm16830_vm6 = vcmp.ge.f32.partialorder %v13125_v21, 0.0  ;;  %vm16832_vm7 = vcmp.ge.f32.partialorder %v13127_v32, 0.0 }
 0x598   : > { %16823 = vst [vmem:[#allocation50_spill] sm:$0xff] %v13256_v35  ;;  %16825 = vst [vmem:[#allocation51_spill] sm:$0xff] %v13261_v52  ;;  %v13276_v15 = vsel %vm16830_vm6, 1.0, %v16625_v30  ;;  %v13281_v7 = vsel %vm16832_vm7, 1.0, %v16625_v30  ;;  %vm16834_vm8 = vcmp.ge.f32.partialorder %v13129_v6, 0.0  ;;  %vm16836_vm9 = vcmp.ge.f32.partialorder %v13131_v50, 0.0 }
 0x599   : > { %16827 = vst [vmem:[#allocation52_spill] sm:$0xff] %v13266_v58  ;;  %16829 = vst [vmem:[#allocation53_spill] sm:$0xff] %v13271_v23  ;;  %v13286_v1 = vsel %vm16834_vm8, 1.0, %v16625_v30  ;;  %v13291_v44 = vsel %vm16836_vm9, 1.0, %v16625_v30  ;;  %vm16838_vm10 = vcmp.ge.f32.partialorder %v13133_v36, 0.0  ;;  %vm16840_vm11 = vcmp.ge.f32.partialorder %v13135_v51, 0.0 }
 0x59a   : > { %16831 = vst [vmem:[#allocation54_spill] sm:$0xff] %v13276_v15  ;;  %16833 = vst [vmem:[#allocation55_spill] sm:$0xff] %v13281_v7  ;;  %v13296_v61 = vsel %vm16838_vm10, 1.0, %v16625_v30  ;;  %v13301_v49 = vsel %vm16840_vm11, 1.0, %v16625_v30  ;;  %vm16842_vm6 = vcmp.ge.f32.partialorder %v13139_v60, 0.0  ;;  %vm16844_vm7 = vcmp.ge.f32.partialorder %v13142_v59, 0.0 }
 0x59b   : > { %16835 = vst [vmem:[#allocation56_spill] sm:$0xff] %v13286_v1  ;;  %16837 = vst [vmem:[#allocation57_spill] sm:$0xff] %v13291_v44  ;;  %v13306_v48 = vsel %vm16842_vm6, 1.0, %v16625_v30  ;;  %v13311_v26 = vsel %vm16844_vm7, 1.0, %v16625_v30  ;;  %vm16846_vm8 = vcmp.ge.f32.partialorder %v13145_v5, 0.0  ;;  %vm16848_vm9 = vcmp.ge.f32.partialorder %v13148_v29, 0.0 }
 0x59c   : > { %16839 = vst [vmem:[#allocation58_spill] sm:$0xff] %v13296_v61  ;;  %16841 = vst [vmem:[#allocation59_spill] sm:$0xff] %v13301_v49  ;;  %v13316_v9 = vsel %vm16846_vm8, 1.0, %v16625_v30  ;;  %v13321_v47 = vsel %vm16848_vm9, 1.0, %v16625_v30  ;;  %v13326_v45 = vsel %vm3570_vm2, 1.0, %v16625_v30  ;;  %v13331_v38 = vsel %vm3571_vm3, 1.0, %v16625_v30 }
 0x59d   : > { %16843 = vst [vmem:[#allocation60_spill] sm:$0xff] %v13306_v48  ;;  %16845 = vst [vmem:[#allocation61_spill] sm:$0xff] %v13311_v26  ;;  %v13336_v28 = vsel %vm3572_vm5, 1.0, %v16625_v30  ;;  %v13341_v17 = vsel %vm3573_vm4, 1.0, %v16625_v30  ;;  %v13346_v42 = vsel %vm3574_vm12, 1.0, %v16625_v30  ;;  %v13351_v31 = vsel %vm3575_vm13, 1.0, %v16625_v30 }
 0x59e   : > { %16847 = vst [vmem:[#allocation62_spill] sm:$0xff] %v13316_v9  ;;  %16849 = vst [vmem:[#allocation63_spill] sm:$0xff] %v13321_v47  ;;  %v13356_v13 = vsel %vm3576_vm14, 1.0, %v16625_v30  ;;  %v13361_v25 = vsel %vm3577_vm15, 1.0, %v16625_v30  ;;  %v13366_v62 = vsel %vm3578_vm0, 1.0, %v16625_v30  ;;  %vm17050_vm4 = vcmask 130048  }
 0x59f   : > { %16850 = vst [vmem:[#allocation64_spill] sm:$0xff] %v13326_v45  ;;  %16851 = vst [vmem:[#allocation65_spill] sm:$0xff] %v13331_v38  ;;  %vm4325_vm5 = vcmask 122880   ;;  %vm16771_vm12 = vcmask 123904  }
 0x5a0   : > { %16852 = vst [vmem:[#allocation66_spill] sm:$0xff] %v13336_v28  ;;  %16853 = vst [vmem:[#allocation67_spill] sm:$0xff] %v13341_v17  ;;  %v13380_v17 = vand.u32 2147483647, %v13102_v56  ;;  %v13386_v28 = vand.u32 2147483647, %v13106_v2 }
 0x5a1   : > { %16854 = vst [vmem:[#allocation68_spill] sm:$0xff] %v13346_v42  ;;  %16855 = vst [vmem:[#allocation69_spill] sm:$0xff] %v13351_v31  ;;  %v13371_v42 = vsel %vm3579_vm1, 1.0, %v16625_v30  ;;  %v13374_v31 = vand.u32 2147483647, %v13098_v33 }
 0x5a2   : > { %16856 = vst [vmem:[#allocation70_spill] sm:$0xff] %v13356_v13  ;;  %16857 = vst [vmem:[#allocation71_spill] sm:$0xff] %v13361_v25  ;;  %v13377_v13 = vand.u32 2147483647, %v13100_v18  ;;  %v13383_v25 = vand.u32 2147483647, %v13104_v22 }
 0x5a3   : > { %16858 = vst [vmem:[#allocation72_spill] sm:$0xff] %v13366_v62  ;;  %16859 = vst [vmem:[#allocation73_spill] sm:$0xff] %v13371_v42  ;;  %v13389_v62 = vand.u32 2147483647, %v13108_v0  ;;  %v13392_v30 = vand.u32 2147483647, %v13113_v37 }
 0x5a4   : > { %v13395_v33 = vand.u32 2147483647, %v13115_v12  ;;  %v13398_v18 = vand.u32 2147483647, %v13117_v41  ;;  %v13401_v56 = vand.u32 2147483647, %v13119_v3  ;;  %vm17111_vm13 = vmmov %vm17050_vm4 }
 0x5a5   : > { %16860 = vst [vmem:[#allocation74_spill] sm:$0xff] %v13389_v62  ;;  %16861 = vst [vmem:[#allocation75_spill] sm:$0xff] %v13392_v30  ;;  %v13404_v22 = vand.u32 2147483647, %v13121_v11  ;;  %v13407_v2 = vand.u32 2147483647, %v13123_v16 }
 0x5a6   : > { %16862 = vst [vmem:[#allocation76_spill] sm:$0xff] %v13395_v33  ;;  %16863 = vst [vmem:[#allocation77_spill] sm:$0xff] %v13398_v18  ;;  %v13410_v0 = vand.u32 2147483647, %v13125_v21  ;;  %v13413_v37 = vand.u32 2147483647, %v13127_v32 }
 0x5a7   : > { %16864 = vst [vmem:[#allocation78_spill] sm:$0xff] %v13401_v56  ;;  %16865 = vst [vmem:[#allocation79_spill] sm:$0xff] %v13404_v22  ;;  %v13416_v12 = vand.u32 2147483647, %v13129_v6  ;;  %v13419_v41 = vand.u32 2147483647, %v13131_v50 }
 0x5a8   : > { %16866 = vst [vmem:[#allocation80_spill] sm:$0xff] %v13407_v2  ;;  %16867 = vst [vmem:[#allocation81_spill] sm:$0xff] %v13410_v0  ;;  %v13422_v3 = vand.u32 2147483647, %v13133_v36  ;;  %v13425_v11 = vand.u32 2147483647, %v13135_v51 }
 0x5a9   : > { %16868 = vst [vmem:[#allocation82_spill] sm:$0xff] %v13413_v37  ;;  %16869 = vst [vmem:[#allocation83_spill] sm:$0xff] %v13416_v12  ;;  %v13428_v16 = vand.u32 2147483647, %v13139_v60  ;;  %v13431_v21 = vand.u32 2147483647, %v13142_v59 }
 0x5aa   : > { %16870 = vst [vmem:[#allocation84_spill] sm:$0xff] %v13419_v41  ;;  %16871 = vst [vmem:[#allocation85_spill] sm:$0xff] %v13422_v3  ;;  %v13434_v32 = vand.u32 2147483647, %v13145_v5  ;;  %v13437_v6 = vand.u32 2147483647, %v13148_v29 }
 0x5ab   : > { %16872 = vst [vmem:[#allocation86_spill] sm:$0xff] %v13425_v11  ;;  %16873 = vst [vmem:[#allocation87_spill] sm:$0xff] %v13428_v16  ;;  %v13440_v50 = vand.u32 2147483647, %v13151_v40  ;;  %v13443_v36 = vand.u32 2147483647, %v13154_v63 }
 0x5ac   : > { %16874 = vst [vmem:[#allocation88_spill] sm:$0xff] %v13431_v21  ;;  %16875 = vst [vmem:[#allocation89_spill] sm:$0xff] %v13434_v32  ;;  %v13446_v51 = vand.u32 2147483647, %v13157_v19  ;;  %v13449_v60 = vand.u32 2147483647, %v13160_v53 }
 0x5ad   : > { %16876 = vst [vmem:[#allocation90_spill] sm:$0xff] %v13437_v6  ;;  %16877 = vst [vmem:[#allocation91_spill] sm:$0xff] %v13440_v50  ;;  %v13452_v59 = vand.u32 2147483647, %v13163_v27  ;;  %v13455_v5 = vand.u32 2147483647, %v13166_v43 }
 0x5ae   : > { %16878 = vst [vmem:[#allocation92_spill] sm:$0xff] %v13443_v36  ;;  %16879 = vst [vmem:[#allocation93_spill] sm:$0xff] %v13446_v51  ;;  %v13458_v29 = vand.u32 2147483647, %v13169_v34  ;;  %v13461_v40 = vand.u32 2147483647, %v13172_v39 }
 0x5af   : > { %16880 = vst [vmem:[#allocation94_spill] sm:$0xff] %v13449_v60  ;;  %16881 = vst [vmem:[#allocation95_spill] sm:$0xff] %v13452_v59  ;;  %v13464_v63 = vand.u32 2147483647, %v13177_v14  ;;  %v13467_v19 = vand.u32 2147483647, %v13179_v8 }
 0x5b0   : > { %16882 = vst [vmem:[#allocation96_spill] sm:$0xff] %v13455_v5  ;;  %16883 = vst [vmem:[#allocation97_spill] sm:$0xff] %v13458_v29  ;;  %v3644_v53 = vmul.f32 0.3275911, %v13374_v31  ;;  %v3645_v27 = vmul.f32 0.3275911, %v13377_v13 }
 0x5b1   : > { %16884 = vst [vmem:[#allocation98_spill] sm:$0xff] %v13461_v40  ;;  %16885 = vst [vmem:[#allocation99_spill] sm:$0xff] %v13464_v63  ;;  %v3646_v42 = vmul.f32 0.3275911, %v13380_v17  ;;  %v3647_v43 = vmul.f32 0.3275911, %v13383_v25 }
 0x5b2   : > { %16886 = vst [vmem:[#allocation100_spill] sm:$0xff] %v13467_v19  ;;  %v3648_v34 = vmul.f32 0.3275911, %v13386_v28  ;;  %v3649_v38 = vmul.f32 0.3275911, %v13389_v62  ;;  %vm17116_vm14 = vmmov %vm17050_vm4 }
 0x5b3   : > { %v3650_v39 = vmul.f32 0.3275911, %v13392_v30  ;;  %v3651_v14 = vmul.f32 0.3275911, %v13395_v33  ;;  %v3652_v45 = vmul.f32 0.3275911, %v13398_v18  ;;  %vm17117_vm15 = vmmov %vm17050_vm4 }
 0x5b4   : > { %v3653_v8 = vmul.f32 0.3275911, %v13401_v56  ;;  %v3654_v47 = vmul.f32 0.3275911, %v13404_v22  ;;  %v3655_v9 = vmul.f32 0.3275911, %v13407_v2  ;;  %vm17118_vm0 = vmmov %vm17050_vm4 }
 0x5b5   : > { %v3656_v26 = vmul.f32 0.3275911, %v13410_v0  ;;  %v3657_v48 = vmul.f32 0.3275911, %v13413_v37  ;;  %v3658_v49 = vmul.f32 0.3275911, %v13416_v12  ;;  %vm17119_vm1 = vmmov %vm17118_vm0 }
 0x5b6   : > { %v3659_v61 = vmul.f32 0.3275911, %v13419_v41  ;;  %v3660_v44 = vmul.f32 0.3275911, %v13422_v3  ;;  %v3661_v1 = vmul.f32 0.3275911, %v13425_v11  ;;  %vm17124_vm2 = vmmov %vm17118_vm0 }
 0x5b7   : > { %v3662_v7 = vmul.f32 0.3275911, %v13428_v16  ;;  %v3663_v15 = vmul.f32 0.3275911, %v13431_v21  ;;  %v3664_v23 = vmul.f32 0.3275911, %v13434_v32  ;;  %vm17125_vm3 = vmmov %vm17118_vm0 }
 0x5b8   : > { %v3665_v58 = vmul.f32 0.3275911, %v13437_v6  ;;  %v3666_v52 = vmul.f32 0.3275911, %v13440_v50  ;;  %v3667_v35 = vmul.f32 0.3275911, %v13443_v36  ;;  %vm17126_vm10 = vmmov %vm17118_vm0 }
 0x5b9   : > { %v3668_v24 = vmul.f32 0.3275911, %v13446_v51  ;;  %v3669_v57 = vmul.f32 0.3275911, %v13449_v60  ;;  %v3670_v10 = vmul.f32 0.3275911, %v13452_v59  ;;  %vm17127_vm11 = vmmov %vm17118_vm0 }
 0x5ba   : > { %v3671_v46 = vmul.f32 0.3275911, %v13455_v5  ;;  %v3672_v55 = vmul.f32 0.3275911, %v13458_v29  ;;  %v3673_v54 = vmul.f32 0.3275911, %v13461_v40  ;;  %vm17132_vm6 = vmmov %vm17118_vm0 }
 0x5bb   : > { %v3674_v4 = vmul.f32 0.3275911, %v13464_v63  ;;  %v3675_v20 = vmul.f32 0.3275911, %v13467_v19  ;;  %v3676_v6 = vadd.f32 1.0, %v3644_v53  ;;  %v3677_v50 = vadd.f32 1.0, %v3645_v27  ;;  %vm17133_vm7 = vmmov %vm17118_vm0 }
 0x5bc   : > { %v3678_v32 = vadd.f32 1.0, %v3646_v42  ;;  %v3679_v36 = vadd.f32 1.0, %v3647_v43  ;;  %v3680_v21 = vadd.f32 1.0, %v3648_v34  ;;  %v3681_v51 = vadd.f32 1.0, %v3649_v38  ;;  %vm17134_vm8 = vmmov %vm17118_vm0 }
 0x5bd   : > { %v3682_v16 = vadd.f32 1.0, %v3650_v39  ;;  %v3683_v60 = vadd.f32 1.0, %v3651_v14  ;;  %v3684_v11 = vadd.f32 1.0, %v3652_v45  ;;  %v3685_v59 = vadd.f32 1.0, %v3653_v8  ;;  %vm17135_vm9 = vmmov %vm17118_vm0 }
 0x5be   : > { %v3686_v3 = vadd.f32 1.0, %v3654_v47  ;;  %v3687_v5 = vadd.f32 1.0, %v3655_v9  ;;  %v3688_v41 = vadd.f32 1.0, %v3656_v26  ;;  %v3689_v29 = vadd.f32 1.0, %v3657_v48 }
 0x5bf   : > { %v13501_v12 = vadd.f32 1.0, %v3658_v49  ;;  %v13503_v40 = vadd.f32 1.0, %v3659_v61  ;;  %v13505_v63 = vadd.f32 1.0, %v3660_v44  ;;  %v13507_v53 = vadd.f32 1.0, %v3661_v1 }
 0x5c0   : > { %v13509_v42 = vadd.f32 1.0, %v3662_v7  ;;  %v13511_v27 = vadd.f32 1.0, %v3663_v15  ;;  %v13513_v38 = vadd.f32 1.0, %v3664_v23  ;;  %v13515_v45 = vadd.f32 1.0, %v3665_v58 }
 0x5c1   : > { %v13517_v47 = vadd.f32 1.0, %v3666_v52  ;;  %11499 = vrcp.f32 %v3676_v6  ;;  %v13519_v9 = vadd.f32 1.0, %v3667_v35  ;;  %v13521_v26 = vadd.f32 1.0, %v3668_v24 }
 0x5c2   : > { %v13523_v48 = vadd.f32 1.0, %v3669_v57  ;;  %11501 = vrcp.f32 %v3677_v50  ;;  %v13525_v49 = vadd.f32 1.0, %v3670_v10  ;;  %v13527_v61 = vadd.f32 1.0, %v3671_v46 }
 0x5c3   : > { %v13529_v44 = vadd.f32 1.0, %v3672_v55  ;;  %11503 = vrcp.f32 %v3678_v32  ;;  %v13531_v1 = vadd.f32 1.0, %v3673_v54  ;;  %v13533_v7 = vadd.f32 1.0, %v3674_v4 }
 0x5c4   : > { %v13535_v15 = vadd.f32 1.0, %v3675_v20  ;;  %11505 = vrcp.f32 %v3679_v36  ;;  %v4028_v23 = vsub.f32 0.0, %v13374_v31 }
 0x5c5   : > { %11507 = vrcp.f32 %v3680_v21 }
 0x5c6   : > { %11509 = vrcp.f32 %v3681_v51  ;;  %v13596_v10 = vmul.f32 %v4028_v23, %v13374_v31  ;;  %v16912_v31 = vsub.f32 0.0, %v13380_v17 }
 0x5c7   : > { %11511 = vrcp.f32 %v3682_v16 }
 0x5c8   : > { %11513 = vrcp.f32 %v3683_v60  ;;  %16907 = vst [vmem:[#allocation104_spill] sm:$0xff] %v13596_v10  ;;  %v13613_v23 = vmul.f32 %v16912_v31, %v13380_v17 }
 0x5c9   : > { %11515 = vrcp.f32 %v3684_v11 }
 0x5ca   : > { %11517 = vrcp.f32 %v3685_v59  ;;  %16913 = vst [vmem:[#allocation108_spill] sm:$0xff] %v13613_v23 }
 0x5cb   : > { %v13555_v39 = vpop.eup %11499  ;;  %11519 = vrcp.f32 %v3686_v3 }
 0x5cc   : > { %v13560_v24 = vpop.eup %11501  ;;  %11521 = vrcp.f32 %v3687_v5  ;;  %v3740_v3 = vmul.f32 1.0614054, %v13555_v39 }
 0x5cd   : > { %v13565_v20 = vpop.eup %11503  ;;  %11523 = vrcp.f32 %v3688_v41  ;;  %v3741_v8 = vmul.f32 1.0614054, %v13560_v24 }
 0x5ce   : > { %v13570_v4 = vpop.eup %11505  ;;  %11525 = vrcp.f32 %v3689_v29  ;;  %v3742_v5 = vmul.f32 1.0614054, %v13565_v20 }
 0x5cf   : > { %16898 = vst [vmem:[#allocation101_spill] sm:$0xff] %v13570_v4  ;;  %v13575_v55 = vpop.eup %11507  ;;  %11527 = vrcp.f32 %v13501_v12  ;;  %v3743_v41 = vmul.f32 1.0614054, %v13570_v4  ;;  %v3772_v12 = vadd.f32 -1.4531521, %v3740_v3 }
 0x5d0   : > { %v13581_v11 = vpop.eup %11509  ;;  %11529 = vrcp.f32 %v13503_v40  ;;  %v3744_v29 = vmul.f32 1.0614054, %v13575_v55  ;;  %v3773_v57 = vadd.f32 -1.4531521, %v3741_v8  ;;  %v3774_v58 = vadd.f32 -1.4531521, %v3742_v5 }
 0x5d1   : > { %v13587_v54 = vpop.eup %11511  ;;  %11531 = vrcp.f32 %v13505_v63  ;;  %v3745_v40 = vmul.f32 1.0614054, %v13581_v11  ;;  %v3775_v3 = vadd.f32 -1.4531521, %v3743_v41  ;;  %v16909_v8 = vsub.f32 0.0, %v13377_v13 }
 0x5d2   : > { %16905 = vst [vmem:[#allocation102_spill] sm:$0xff] %v13587_v54  ;;  %v13591_v43 = vpop.eup %11513  ;;  %11533 = vrcp.f32 %v13507_v53  ;;  %v3746_v63 = vmul.f32 1.0614054, %v13587_v54  ;;  %v3776_v53 = vadd.f32 -1.4531521, %v3744_v29  ;;  %v13635_v31 = vmul.f32 %v13565_v20, %v3774_v58 }
 0x5d3   : > { %16906 = vst [vmem:[#allocation103_spill] sm:$0xff] %v13591_v43  ;;  %v13598_v59 = vpop.eup %11515  ;;  %11535 = vrcp.f32 %v13509_v42  ;;  %v13605_v46 = vmul.f32 %v16909_v8, %v13377_v13  ;;  %v16914_v42 = vsub.f32 0.0, %v13383_v25  ;;  %v3747_v13 = vmul.f32 1.0614054, %v13591_v43 }
 0x5d4   : > { %16908 = vst [vmem:[#allocation105_spill] sm:$0xff] %v13598_v59  ;;  %v13607_v36 = vpop.eup %11517  ;;  %11537 = vrcp.f32 %v13511_v27  ;;  %v13625_v8 = vmul.f32 %v13555_v39, %v3772_v12  ;;  %v13628_v27 = vmul.f32 %v13560_v24, %v3773_v57  ;;  %v3748_v17 = vmul.f32 1.0614054, %v13598_v59 }
 0x5d5   : > { %16910 = vst [vmem:[#allocation106_spill] sm:$0xff] %v13605_v46  ;;  %16911 = vst [vmem:[#allocation107_spill] sm:$0xff] %v13607_v36  ;;  %v13618_v5 = vmul.f32 %v16914_v42, %v13383_v25  ;;  %v13620_v41 = vpop.eup %11519  ;;  %11539 = vrcp.f32 %v13513_v38  ;;  %v3777_v25 = vadd.f32 -1.4531521, %v3745_v40  ;;  %v3749_v38 = vmul.f32 1.0614054, %v13607_v36 }
 0x5d6   : > { %16916 = vst [vmem:[#allocation110_spill] sm:$0xff] %v13620_v41  ;;  %v13630_v29 = vpop.eup %11521  ;;  %11541 = vrcp.f32 %v13515_v45  ;;  %v3778_v12 = vadd.f32 -1.4531521, %v3746_v63  ;;  %v13642_v57 = vmul.f32 %v13570_v4, %v3775_v3  ;;  %v3750_v45 = vmul.f32 1.0614054, %v13620_v41 }
 0x5d7   : > { %16915 = vst [vmem:[#allocation109_spill] sm:$0xff] %v13618_v5  ;;  %16917 = vst [vmem:[#allocation111_spill] sm:$0xff] %v13630_v29  ;;  %v13637_v42 = vpop.eup %11523  ;;  %11543 = vrcp.f32 %v13517_v47  ;;  %v3751_v40 = vmul.f32 1.0614054, %v13630_v29  ;;  %v13650_v58 = vmul.f32 %v13575_v55, %v3776_v53  ;;  %v3779_v3 = vadd.f32 -1.4531521, %v3747_v13 }
 0x5d8   : > { %16918 = vst [vmem:[#allocation112_spill] sm:$0xff] %v13637_v42  ;;  %v13644_v19 = vpop.eup %11525  ;;  %11545 = vrcp.f32 %v13519_v9  ;;  %v3752_v47 = vmul.f32 1.0614054, %v13637_v42  ;;  %v3780_v5 = vadd.f32 -1.4531521, %v3748_v17  ;;  %v13662_v23 = vmul.f32 %v13581_v11, %v3777_v25 }
 0x5d9   : > { %16919 = vst [vmem:[#allocation113_spill] sm:$0xff] %v13644_v19  ;;  %v13652_v21 = vpop.eup %11527  ;;  %11547 = vrcp.f32 %v13521_v26  ;;  %v3753_v63 = vmul.f32 1.0614054, %v13644_v19  ;;  %v3781_v32 = vadd.f32 -1.4531521, %v3749_v38  ;;  %v13669_v46 = vmul.f32 %v13587_v54, %v3778_v12 }
 0x5da   : > { %16920 = vst [vmem:[#allocation114_spill] sm:$0xff] %v13652_v21  ;;  %v13657_v60 = vpop.eup %11529  ;;  %11549 = vrcp.f32 %v13523_v48  ;;  %v3754_v9 = vmul.f32 1.0614054, %v13652_v21  ;;  %v3782_v17 = vadd.f32 -1.4531521, %v3750_v45  ;;  %v11488_v45 = vld [vmem:[%s16613_s2] sm:$0xff]  }
 0x5db   : > { %16921 = vst [vmem:[#allocation115_spill] sm:$0xff] %v13657_v60  ;;  %v13664_v53 = vpop.eup %11531  ;;  %11551 = vrcp.f32 %v13525_v49  ;;  %v3755_v26 = vmul.f32 1.0614054, %v13657_v60  ;;  %v3783_v10 = vadd.f32 -1.4531521, %v3751_v40  ;;  %v13704_v34 = vmul.f32 %v13607_v36, %v3781_v32  ;;  %10525 = vmatprep.subr.bf16.mxu1 %v11488_v45 }
 0x5dc   : > { %16922 = vst [vmem:[#allocation116_spill] sm:$0xff] %v13664_v53  ;;  %v13671_v13 = vpop.eup %11533  ;;  %11553 = vrcp.f32 %v13527_v61  ;;  %v3756_v48 = vmul.f32 1.0614054, %v13664_v53  ;;  %v3784_v16 = vadd.f32 -1.4531521, %v3752_v47  ;;  %v13684_v61 = vmul.f32 %v13591_v43, %v3779_v3  ;;  %10526 = vmatpush3.bf16.msra.mxu1 %v11488_v45 }
 0x5dd   : > { %16923 = vst [vmem:[#allocation117_spill] sm:$0xff] %v13671_v13  ;;  %v13675_v25 = vpop.eup %11535  ;;  %11555 = vrcp.f32 %v13529_v44  ;;  %v3757_v49 = vmul.f32 1.0614054, %v13671_v13  ;;  %v3785_v35 = vadd.f32 -1.4531521, %v3753_v63  ;;  %v13694_v63 = vmul.f32 %v13598_v59, %v3780_v5 }
 0x5de   : > { %16924 = vst [vmem:[#allocation118_spill] sm:$0xff] %v13675_v25  ;;  %v13679_v38 = vpop.eup %11537  ;;  %11557 = vrcp.f32 %v13531_v1  ;;  %v3758_v12 = vmul.f32 1.0614054, %v13675_v25  ;;  %v3786_v52 = vadd.f32 -1.4531521, %v3754_v9  ;;  %v11489_v1 = vld [vmem:[%s16613_s2 + $0x8] sm:$0xff]   ;;  %v13710_v51 = vmul.f32 %v13620_v41, %v3782_v17 }
 0x5df   : > { %16925 = vst [vmem:[#allocation119_spill] sm:$0xff] %v13679_v38  ;;  %v13689_v40 = vpop.eup %11539  ;;  %11559 = vrcp.f32 %v13533_v7  ;;  %v3759_v44 = vmul.f32 1.0614054, %v13679_v38  ;;  %v3787_v47 = vadd.f32 -1.4531521, %v3755_v26  ;;  %v13713_v50 = vmul.f32 %v13630_v29, %v3783_v10  ;;  %10559 = vmatprep.subr.bf16.mxu1 %v11489_v1 }
 0x5e0   : > { %16926 = vst [vmem:[#allocation120_spill] sm:$0xff] %v13689_v40  ;;  %v13699_v3 = vpop.eup %11541  ;;  %11561 = vrcp.f32 %v13535_v15  ;;  %v3760_v9 = vmul.f32 1.0614054, %v13689_v40  ;;  %v3788_v14 = vadd.f32 -1.4531521, %v3756_v48  ;;  %v3816_v32 = vmul.f32 %v13637_v42, %v3784_v16 }
 0x5e1   : > { %16927 = vst [vmem:[#allocation121_spill] sm:$0xff] %v13699_v3  ;;  %v13706_v7 = vpop.eup %11543  ;;  %v3761_v5 = vmul.f32 1.0614054, %v13699_v3  ;;  %v3789_v26 = vadd.f32 -1.4531521, %v3757_v49  ;;  %v3817_v37 = vmul.f32 %v13644_v19, %v3785_v35  ;;  %v3818_v2 = vmul.f32 %v13652_v21, %v3786_v52 }
 0x5e2   : > { %16928 = vst [vmem:[#allocation122_spill] sm:$0xff] %v13706_v7  ;;  %v13715_v15 = vpop.eup %11545  ;;  %v3762_v48 = vmul.f32 1.0614054, %v13706_v7  ;;  %v3790_v6 = vadd.f32 -1.4531521, %v3758_v12  ;;  %v3819_v10 = vmul.f32 %v13657_v60, %v3787_v47  ;;  %v3820_v12 = vmul.f32 %v13664_v53, %v3788_v14 }
 0x5e3   : > { %16929 = vst [vmem:[#allocation123_spill] sm:$0xff] %v13715_v15  ;;  %v13720_v0 = vpop.eup %11547  ;;  %v3763_v49 = vmul.f32 1.0614054, %v13715_v15  ;;  %v3791_v17 = vadd.f32 -1.4531521, %v3759_v44  ;;  %v3821_v44 = vmul.f32 %v13671_v13, %v3789_v26 }
 0x5e4   : > { %16930 = vst [vmem:[#allocation124_spill] sm:$0xff] %v13720_v0  ;;  %v13725_v45 = vpop.eup %11549  ;;  %v3764_v22 = vmul.f32 1.0614054, %v13720_v0  ;;  %v3792_v56 = vadd.f32 -1.4531521, %v3760_v9  ;;  %v3822_v14 = vmul.f32 %v13675_v25, %v3790_v6 }
 0x5e5   : > { %16931 = vst [vmem:[#allocation125_spill] sm:$0xff] %v13725_v45  ;;  %v13730_v16 = vadd.f32 1.4214138, %v13625_v8  ;;  %v13732_v35 = vpop.eup %11551  ;;  %v3765_v1 = vmul.f32 1.0614054, %v13725_v45  ;;  %v3823_v26 = vmul.f32 %v13679_v38, %v3791_v17 }
 0x5e6   : > { %16932 = vst [vmem:[#allocation126_spill] sm:$0xff] %v13732_v35  ;;  %v3793_v18 = vadd.f32 -1.4531521, %v3761_v5  ;;  %v13737_v52 = vadd.f32 1.4214138, %v13628_v27  ;;  %v13739_v47 = vpop.eup %11553 }
 0x5e7   : > { %16933 = vst [vmem:[#allocation127_spill] sm:$0xff] %v13739_v47  ;;  %v3766_v33 = vmul.f32 1.0614054, %v13732_v35  ;;  %v3794_v9 = vadd.f32 -1.4531521, %v3762_v48  ;;  %v13746_v30 = vpop.eup %11555  ;;  %v3824_v48 = vmul.f32 %v13689_v40, %v3792_v56 }
 0x5e8   : > { %v13744_v8 = vadd.f32 1.4214138, %v13635_v31  ;;  %16934 = vst [vmem:[#allocation128_spill] sm:$0xff] %v13746_v30  ;;  %v3767_v62 = vmul.f32 1.0614054, %v13739_v47  ;;  %v13751_v13 = vpop.eup %11557 }
 0x5e9   : > { %v3795_v5 = vadd.f32 -1.4531521, %v3763_v49  ;;  %v3839_v27 = vadd.f32 1.4214138, %v13642_v57  ;;  %16935 = vst [vmem:[#allocation129_spill] sm:$0xff] %v13751_v13  ;;  %v13756_v31 = vpop.eup %11559  ;;  %v3825_v49 = vmul.f32 %v13699_v3, %v3793_v18 }
 0x5ea   : > { %v3768_v53 = vmul.f32 1.0614054, %v13746_v30  ;;  %v3796_v60 = vadd.f32 -1.4531521, %v3764_v22  ;;  %v3840_v6 = vadd.f32 1.4214138, %v13650_v58  ;;  %v13760_v17 = vpop.eup %11561  ;;  %v3826_v22 = vmul.f32 %v13706_v7, %v3794_v9 }
 0x5eb   : > { %16936 = vst [vmem:[#allocation130_spill] sm:$0xff] %v13756_v31  ;;  %v3769_v25 = vmul.f32 1.0614054, %v13751_v13  ;;  %v3797_v21 = vadd.f32 -1.4531521, %v3765_v1  ;;  %16937 = vst [vmem:[#allocation131_spill] sm:$0xff] %v13760_v17  ;;  %v3827_v58 = vmul.f32 %v13715_v15, %v3795_v5 }
 0x5ec   : > { %v3798_v19 = vadd.f32 -1.4531521, %v3766_v33  ;;  %v3770_v57 = vmul.f32 1.0614054, %v13756_v31  ;;  %v3799_v38 = vadd.f32 -1.4531521, %v3767_v62  ;;  %v3828_v33 = vmul.f32 %v13720_v0, %v3796_v60 }
 0x5ed   : > { %v3800_v42 = vadd.f32 -1.4531521, %v3768_v53  ;;  %v3771_v56 = vmul.f32 1.0614054, %v13760_v17  ;;  %v3801_v40 = vadd.f32 -1.4531521, %v3769_v25  ;;  %v3829_v62 = vmul.f32 %v13725_v45, %v3797_v21 }
 0x5ee   : > { %v3841_v29 = vadd.f32 1.4214138, %v13662_v23  ;;  %v3802_v41 = vadd.f32 -1.4531521, %v3770_v57  ;;  %v3842_v18 = vadd.f32 1.4214138, %v13669_v46  ;;  %v3830_v53 = vmul.f32 %v13732_v35, %v3798_v19 }
 0x5ef   : > { %v3843_v1 = vadd.f32 1.4214138, %v13684_v61  ;;  %v3803_v3 = vadd.f32 -1.4531521, %v3771_v56  ;;  %v3844_v9 = vadd.f32 1.4214138, %v13694_v63  ;;  %v3831_v25 = vmul.f32 %v13739_v47, %v3799_v38 }
 0x5f0   : > { %v3832_v5 = vmul.f32 %v13746_v30, %v3800_v42  ;;  %v3845_v23 = vadd.f32 1.4214138, %v13704_v34  ;;  %v3846_v57 = vadd.f32 1.4214138, %v13710_v51  ;;  %v3833_v60 = vmul.f32 %v13751_v13, %v3801_v40 }
 0x5f1   : > { %v3847_v46 = vadd.f32 1.4214138, %v13713_v50  ;;  %v3848_v61 = vadd.f32 1.4214138, %v3816_v32  ;;  %v3849_v56 = vadd.f32 1.4214138, %v3817_v37  ;;  %v3834_v21 = vmul.f32 %v13756_v31, %v3802_v41 }
 0x5f2   : > { %v3850_v45 = vadd.f32 1.4214138, %v3818_v2  ;;  %v3851_v19 = vadd.f32 1.4214138, %v3819_v10  ;;  %v3852_v35 = vadd.f32 1.4214138, %v3820_v12  ;;  %v3835_v63 = vmul.f32 %v13760_v17, %v3803_v3 }
 0x5f3   : > { %v3853_v38 = vadd.f32 1.4214138, %v3821_v44  ;;  %v3854_v47 = vadd.f32 1.4214138, %v3822_v14  ;;  %v3855_v42 = vadd.f32 1.4214138, %v3823_v26  ;;  %v3868_v2 = vmul.f32 %v13555_v39, %v13730_v16 }
 0x5f4   : > { %v3856_v30 = vadd.f32 1.4214138, %v3824_v48  ;;  %v3857_v34 = vadd.f32 1.4214138, %v3825_v49  ;;  %v3858_v0 = vadd.f32 1.4214138, %v3826_v22  ;;  %v3869_v12 = vmul.f32 %v13560_v24, %v13737_v52 }
 0x5f5   : > { %v16938_v51 = vsub.f32 0.0, %v13386_v28  ;;  %v3859_v50 = vadd.f32 1.4214138, %v3827_v58  ;;  %v3860_v37 = vadd.f32 1.4214138, %v3828_v33  ;;  %v3870_v48 = vmul.f32 %v13565_v20, %v13744_v8 }
 0x5f6   : > { %v3861_v32 = vadd.f32 1.4214138, %v3829_v62  ;;  %v3862_v41 = vadd.f32 1.4214138, %v3830_v53  ;;  %v3863_v10 = vadd.f32 1.4214138, %v3831_v25  ;;  %v3872_v49 = vmul.f32 %v13575_v55, %v3840_v6 }
 0x5f7   : > { %v13784_v40 = vmul.f32 %v16938_v51, %v13386_v28  ;;  %v3864_v3 = vadd.f32 1.4214138, %v3832_v5  ;;  %v3865_v44 = vadd.f32 1.4214138, %v3833_v60  ;;  %v3866_v14 = vadd.f32 1.4214138, %v3834_v21 }
 0x5f8   : > { %v3867_v26 = vadd.f32 1.4214138, %v3835_v63  ;;  %v3871_v28 = vmul.f32 %v13570_v4, %v3839_v27  ;;  %v3873_v22 = vmul.f32 %v13581_v11, %v3841_v29  ;;  %v3874_v16 = vmul.f32 %v13587_v54, %v3842_v18  ;;  %v16940_v62 = vld [vmem:[#allocation110_spill] sm:$0xff]  ;;  %v16941_v25 = vld [vmem:[#allocation111_spill] sm:$0xff]  ;;  %v16942_v60 = vld [vmem:[#allocation112_spill] sm:$0xff] }
 0x5f9   : > { %16939 = vst [vmem:[#allocation132_spill] sm:$0xff] %v13784_v40  ;;  %v3875_v58 = vmul.f32 %v13591_v43, %v3843_v1  ;;  %v3876_v33 = vmul.f32 %v13598_v59, %v3844_v9  ;;  %v3877_v52 = vmul.f32 %v13607_v36, %v3845_v23  ;;  %v3878_v53 = vmul.f32 %v16940_v62, %v3846_v57  ;;  %v16943_v21 = vld [vmem:[#allocation113_spill] sm:$0xff]  ;;  %v16944_v63 = vld [vmem:[#allocation114_spill] sm:$0xff]  ;;  %v16945_v51 = vld [vmem:[#allocation115_spill] sm:$0xff] }
 0x5fa   : > { %v3879_v5 = vmul.f32 %v16941_v25, %v3847_v46  ;;  %v3880_v8 = vmul.f32 %v16942_v60, %v3848_v61  ;;  %v3881_v27 = vmul.f32 %v16943_v21, %v3849_v56  ;;  %v3882_v6 = vmul.f32 %v16944_v63, %v3850_v45  ;;  %v16946_v40 = vld [vmem:[#allocation116_spill] sm:$0xff]  ;;  %v16947_v54 = vld [vmem:[#allocation117_spill] sm:$0xff]  ;;  %v16948_v43 = vld [vmem:[#allocation118_spill] sm:$0xff] }
 0x5fb   : > { %v3883_v29 = vmul.f32 %v16945_v51, %v3851_v19  ;;  %v3884_v18 = vmul.f32 %v16946_v40, %v3852_v35  ;;  %v3885_v1 = vmul.f32 %v16947_v54, %v3853_v38  ;;  %v3886_v9 = vmul.f32 %v16948_v43, %v3854_v47  ;;  %v16949_v59 = vld [vmem:[#allocation119_spill] sm:$0xff]  ;;  %v16950_v36 = vld [vmem:[#allocation120_spill] sm:$0xff]  ;;  %v16951_v62 = vld [vmem:[#allocation121_spill] sm:$0xff] }
 0x5fc   : > { %v3887_v23 = vmul.f32 %v16949_v59, %v3855_v42  ;;  %v3888_v57 = vmul.f32 %v16950_v36, %v3856_v30  ;;  %v3889_v46 = vmul.f32 %v16951_v62, %v3857_v34  ;;  %v3890_v61 = vmul.f32 %v13706_v7, %v3858_v0  ;;  %v16952_v21 = vld [vmem:[#allocation124_spill] sm:$0xff]  ;;  %v16953_v63 = vld [vmem:[#allocation125_spill] sm:$0xff]  ;;  %v16954_v35 = vld [vmem:[#allocation126_spill] sm:$0xff] }
 0x5fd   : > { %v3891_v56 = vmul.f32 %v13715_v15, %v3859_v50  ;;  %v3892_v45 = vmul.f32 %v16952_v21, %v3860_v37  ;;  %v3893_v19 = vmul.f32 %v16953_v63, %v3861_v32  ;;  %v3900_v51 = vadd.f32 -0.28449672, %v3868_v2  ;;  %v16955_v38 = vld [vmem:[#allocation127_spill] sm:$0xff]  ;;  %v16956_v47 = vld [vmem:[#allocation128_spill] sm:$0xff]  ;;  %v16957_v21 = vld [vmem:[#allocation74_spill] sm:$0xff] }
 0x5fe   : > { %v3894_v40 = vmul.f32 %v16954_v35, %v3862_v41  ;;  %v3895_v54 = vmul.f32 %v16955_v38, %v3863_v10  ;;  %v3896_v43 = vmul.f32 %v16956_v47, %v3864_v3  ;;  %v3901_v42 = vadd.f32 -0.28449672, %v3869_v12 }
 0x5ff   : > { %v3897_v30 = vmul.f32 %v13751_v13, %v3865_v44  ;;  %v3898_v34 = vmul.f32 %v13756_v31, %v3866_v14  ;;  %v3899_v0 = vmul.f32 %v13760_v17, %v3867_v26  ;;  %v3902_v7 = vadd.f32 -0.28449672, %v3870_v48 }
 0x600   : > { %v3903_v50 = vadd.f32 -0.28449672, %v3871_v28  ;;  %v3904_v15 = vadd.f32 -0.28449672, %v3872_v49  ;;  %v3905_v37 = vadd.f32 -0.28449672, %v3873_v22  ;;  %v3932_v3 = vmul.f32 %v13555_v39, %v3900_v51 }
 0x601   : > { %v16958_v32 = vsub.f32 0.0, %v16957_v21  ;;  %v3906_v41 = vadd.f32 -0.28449672, %v3874_v16  ;;  %v3907_v10 = vadd.f32 -0.28449672, %v3875_v58  ;;  %v3933_v14 = vmul.f32 %v13560_v24, %v3901_v42 }
 0x602   : > { %v3908_v38 = vadd.f32 -0.28449672, %v3876_v33  ;;  %v3909_v12 = vadd.f32 -0.28449672, %v3877_v52  ;;  %v3910_v44 = vadd.f32 -0.28449672, %v3878_v53  ;;  %v3934_v49 = vmul.f32 %v13565_v20, %v3902_v7 }
 0x603   : > { %v13824_v2 = vmul.f32 %v16958_v32, %v16957_v21  ;;  %v3911_v13 = vadd.f32 -0.28449672, %v3879_v5  ;;  %v3912_v26 = vadd.f32 -0.28449672, %v3880_v8  ;;  %v3913_v48 = vadd.f32 -0.28449672, %v3881_v27 }
 0x604   : > { %v3914_v28 = vadd.f32 -0.28449672, %v3882_v6  ;;  %v3915_v22 = vadd.f32 -0.28449672, %v3883_v29  ;;  %v3916_v17 = vadd.f32 -0.28449672, %v3884_v18  ;;  %v3935_v21 = vmul.f32 %v13570_v4, %v3903_v50 }
 0x605   : > { %16959 = vst [vmem:[#allocation126_spill] sm:$0xff] %v13824_v2  ;;  %v3917_v31 = vadd.f32 -0.28449672, %v3885_v1  ;;  %v3918_v16 = vadd.f32 -0.28449672, %v3886_v9  ;;  %v3936_v51 = vmul.f32 %v13575_v55, %v3904_v15  ;;  %v3937_v42 = vmul.f32 %v13581_v11, %v3905_v37  ;;  %v16960_v32 = vld [vmem:[#allocation102_spill] sm:$0xff] }
 0x606   : > { %v3919_v58 = vadd.f32 -0.28449672, %v3887_v23  ;;  %v3920_v33 = vadd.f32 -0.28449672, %v3888_v57  ;;  %v3921_v52 = vadd.f32 -0.28449672, %v3889_v46  ;;  %v3938_v7 = vmul.f32 %v16960_v32, %v3906_v41 }
 0x607   : > { %v3922_v53 = vadd.f32 -0.28449672, %v3890_v61  ;;  %v3923_v5 = vadd.f32 -0.28449672, %v3891_v56  ;;  %v3924_v8 = vadd.f32 -0.28449672, %v3892_v45  ;;  %v3943_v37 = vmul.f32 %v16941_v25, %v3911_v13 }
 0x608   : > { %v3925_v27 = vadd.f32 -0.28449672, %v3893_v19  ;;  %v3926_v6 = vadd.f32 -0.28449672, %v3894_v40  ;;  %v3927_v29 = vadd.f32 -0.28449672, %v3895_v54  ;;  %v3944_v45 = vmul.f32 %v16942_v60, %v3912_v26 }
 0x609   : > { %v3928_v18 = vadd.f32 -0.28449672, %v3896_v43  ;;  %v3929_v1 = vadd.f32 -0.28449672, %v3897_v30  ;;  %v16961_v2 = vld [vmem:[#allocation103_spill] sm:$0xff]  ;;  %v16962_v57 = vld [vmem:[#allocation105_spill] sm:$0xff]  ;;  %v3953_v13 = vmul.f32 %v16951_v62, %v3921_v52 }
 0x60a   : > { %v3939_v50 = vmul.f32 %v16961_v2, %v3907_v10  ;;  %v3930_v9 = vadd.f32 -0.28449672, %v3898_v34  ;;  %v3931_v23 = vadd.f32 -0.28449672, %v3899_v0  ;;  %v3940_v4 = vmul.f32 %v16962_v57, %v3908_v38  ;;  %v16963_v15 = vld [vmem:[#allocation107_spill] sm:$0xff]  ;;  %v16964_v61 = vld [vmem:[#allocation110_spill] sm:$0xff] }
 0x60b   : > { %v3941_v46 = vmul.f32 %v16963_v15, %v3909_v12  ;;  %v3942_v56 = vmul.f32 %v16964_v61, %v3910_v44  ;;  %v16965_v40 = vld [vmem:[#allocation113_spill] sm:$0xff]  ;;  %v16966_v41 = vld [vmem:[#allocation114_spill] sm:$0xff]  ;;  %v16967_v43 = vld [vmem:[#allocation115_spill] sm:$0xff]  ;;  %v3951_v12 = vmul.f32 %v16949_v59, %v3919_v58  ;;  %v3952_v44 = vmul.f32 %v16950_v36, %v3920_v33 }
 0x60c   : > { %v3945_v19 = vmul.f32 %v16965_v40, %v3913_v48  ;;  %v3946_v54 = vmul.f32 %v16966_v41, %v3914_v28  ;;  %v3947_v30 = vmul.f32 %v16967_v43, %v3915_v22  ;;  %v16968_v32 = vld [vmem:[#allocation116_spill] sm:$0xff]  ;;  %v16969_v34 = vld [vmem:[#allocation117_spill] sm:$0xff]  ;;  %v16970_v2 = vld [vmem:[#allocation118_spill] sm:$0xff]  ;;  %v3957_v22 = vmul.f32 %v16953_v63, %v3925_v27 }
 0x60d   : > { %v3948_v10 = vmul.f32 %v16968_v32, %v3916_v17  ;;  %v3949_v0 = vmul.f32 %v16969_v34, %v3917_v31  ;;  %v3950_v38 = vmul.f32 %v16970_v2, %v3918_v16  ;;  %v16971_v25 = vld [vmem:[#allocation122_spill] sm:$0xff]  ;;  %v16972_v60 = vld [vmem:[#allocation123_spill] sm:$0xff]  ;;  %v16973_v40 = vld [vmem:[#allocation124_spill] sm:$0xff]  ;;  %v3958_v17 = vmul.f32 %v16954_v35, %v3926_v6 }
 0x60e   : > { %v3954_v26 = vmul.f32 %v16971_v25, %v3922_v53  ;;  %v3955_v48 = vmul.f32 %v16972_v60, %v3923_v5  ;;  %v3956_v28 = vmul.f32 %v16973_v40, %v3924_v8  ;;  %v16974_v32 = vld [vmem:[#allocation127_spill] sm:$0xff]  ;;  %v3960_v16 = vmul.f32 %v16956_v47, %v3928_v18  ;;  %v16975_v58 = vld [vmem:[#allocation129_spill] sm:$0xff]  ;;  %v16976_v33 = vld [vmem:[#allocation130_spill] sm:$0xff] }
 0x60f   : > { %v3959_v31 = vmul.f32 %v16974_v32, %v3927_v29  ;;  %v3964_v2 = vadd.f32 0.2548296, %v3932_v3  ;;  %v3961_v59 = vmul.f32 %v16975_v58, %v3929_v1  ;;  %v3962_v36 = vmul.f32 %v16976_v33, %v3930_v9  ;;  %v16977_v52 = vld [vmem:[#allocation131_spill] sm:$0xff]  ;;  %v16980_v18 = vld [vmem:[#allocation76_spill] sm:$0xff] }
 0x610   : > { %v3963_v62 = vmul.f32 %v16977_v52, %v3931_v23  ;;  %v3965_v53 = vadd.f32 0.2548296, %v3933_v14  ;;  %v3966_v25 = vadd.f32 0.2548296, %v3934_v49  ;;  %v3967_v5 = vadd.f32 0.2548296, %v3935_v21 }
 0x611   : > { %v3968_v60 = vadd.f32 0.2548296, %v3936_v51  ;;  %v16978_v8 = vld [vmem:[#allocation75_spill] sm:$0xff]  ;;  %v3969_v6 = vadd.f32 0.2548296, %v3937_v42  ;;  %v16981_v3 = vsub.f32 0.0, %v16980_v18  ;;  %v13869_v14 = vmul.f32 %v13555_v39, %v3964_v2 }
 0x612   : > { %v16979_v27 = vsub.f32 0.0, %v16978_v8  ;;  %v3970_v29 = vadd.f32 0.2548296, %v3938_v7  ;;  %v3971_v32 = vadd.f32 0.2548296, %v3939_v50 }
 0x613   : > { %v13866_v1 = vmul.f32 %v16981_v3, %v16980_v18  ;;  %v3972_v9 = vadd.f32 0.2548296, %v3940_v4  ;;  %v3973_v33 = vadd.f32 0.2548296, %v3941_v46  ;;  %v3974_v23 = vadd.f32 0.2548296, %v3942_v56 }
 0x614   : > { %v13861_v63 = vmul.f32 %v16979_v27, %v16978_v8  ;;  %v3975_v49 = vadd.f32 0.2548296, %v3943_v37  ;;  %v3976_v21 = vadd.f32 0.2548296, %v3944_v45  ;;  %v3977_v51 = vadd.f32 0.2548296, %v3945_v19 }
 0x615   : > { %v13872_v8 = vmul.f32 %v13560_v24, %v3965_v53  ;;  %v3978_v42 = vadd.f32 0.2548296, %v3946_v54  ;;  %v3979_v7 = vadd.f32 0.2548296, %v3947_v30  ;;  %v3980_v50 = vadd.f32 0.2548296, %v3948_v10 }
 0x616   : > { %v13875_v27 = vmul.f32 %v13565_v20, %v3966_v25  ;;  %v3981_v18 = vadd.f32 0.2548296, %v3949_v0  ;;  %v3982_v3 = vadd.f32 0.2548296, %v3950_v38  ;;  %v3983_v4 = vadd.f32 0.2548296, %v3951_v12 }
 0x617   : > { %v16982_v46 = vld [vmem:[#allocation101_spill] sm:$0xff]  ;;  %v3984_v39 = vadd.f32 0.2548296, %v3952_v44  ;;  %v3985_v2 = vadd.f32 0.2548296, %v3953_v13  ;;  %v13881_v45 = vmul.f32 %v13575_v55, %v3968_v60  ;;  %v13884_v30 = vmul.f32 %v13581_v11, %v3969_v6  ;;  %v16983_v0 = vld [vmem:[#allocation102_spill] sm:$0xff] }
 0x618   : > { %v13878_v56 = vmul.f32 %v16982_v46, %v3967_v5  ;;  %v3986_v37 = vadd.f32 0.2548296, %v3954_v26  ;;  %v3987_v24 = vadd.f32 0.2548296, %v3955_v48  ;;  %v3988_v19 = vadd.f32 0.2548296, %v3956_v28 }
 0x619   : > { %v3989_v54 = vadd.f32 0.2548296, %v3957_v22  ;;  %v3990_v20 = vadd.f32 0.2548296, %v3958_v17  ;;  %v3991_v25 = vadd.f32 0.2548296, %v3959_v31  ;;  %v13887_v38 = vmul.f32 %v16983_v0, %v3970_v29 }
 0x61a   : > { %v3992_v10 = vadd.f32 0.2548296, %v3960_v16  ;;  %v3993_v12 = vadd.f32 0.2548296, %v3961_v59  ;;  %v3994_v53 = vadd.f32 0.2548296, %v3962_v36  ;;  %v13893_v55 = vmul.f32 %v16962_v57, %v3972_v9 }
 0x61b   : > { %v3995_v44 = vadd.f32 0.2548296, %v3963_v62  ;;  %v16984_v13 = vld [vmem:[#allocation103_spill] sm:$0xff]  ;;  %v13896_v60 = vmul.f32 %v16963_v15, %v3973_v33  ;;  %v13899_v11 = vmul.f32 %v16964_v61, %v3974_v23  ;;  %v16986_v22 = vld [vmem:[#allocation112_spill] sm:$0xff]  ;;  %v16987_v36 = vld [vmem:[#allocation113_spill] sm:$0xff]  ;;  %v13911_v62 = vmul.f32 %v16966_v41, %v3978_v42 }
 0x61c   : > { %v13890_v26 = vmul.f32 %v16984_v13, %v3971_v32  ;;  %v16985_v48 = vld [vmem:[#allocation111_spill] sm:$0xff]  ;;  %v13905_v17 = vmul.f32 %v16986_v22, %v3976_v21  ;;  %v13908_v59 = vmul.f32 %v16987_v36, %v3977_v51  ;;  %v13914_v32 = vmul.f32 %v16967_v43, %v3979_v7  ;;  %v16988_v57 = vld [vmem:[#allocation116_spill] sm:$0xff]  ;;  %v16989_v31 = vld [vmem:[#allocation118_spill] sm:$0xff] }
 0x61d   : > { %v13902_v28 = vmul.f32 %v16985_v48, %v3975_v49  ;;  %v13917_v15 = vmul.f32 %v16988_v57, %v3980_v50  ;;  %v13920_v61 = vmul.f32 %v16969_v34, %v3981_v18  ;;  %v13923_v16 = vmul.f32 %v16989_v31, %v3982_v3  ;;  %v16990_v33 = vld [vmem:[#allocation119_spill] sm:$0xff]  ;;  %v16991_v6 = vld [vmem:[#allocation120_spill] sm:$0xff]  ;;  %v16992_v41 = vld [vmem:[#allocation121_spill] sm:$0xff] }
 0x61e   : > { %v13926_v5 = vmul.f32 %v16990_v33, %v3983_v4  ;;  %v13929_v29 = vmul.f32 %v16991_v6, %v3984_v39  ;;  %v13932_v9 = vmul.f32 %v16992_v41, %v3985_v2  ;;  %v16993_v43 = vld [vmem:[#allocation122_spill] sm:$0xff]  ;;  %v16994_v49 = vld [vmem:[#allocation123_spill] sm:$0xff]  ;;  %v13941_v34 = vmul.f32 %v16973_v40, %v3988_v19  ;;  %v16996_v51 = vld [vmem:[#allocation125_spill] sm:$0xff] }
 0x61f   : > { %v13935_v23 = vmul.f32 %v16993_v43, %v3986_v37  ;;  %v13938_v21 = vmul.f32 %v16994_v49, %v3987_v24  ;;  %v13944_v42 = vmul.f32 %v16996_v51, %v3989_v54  ;;  %v13947_v7 = vmul.f32 %v16954_v35, %v3990_v20  ;;  %v16999_v50 = vld [vmem:[#allocation127_spill] sm:$0xff]  ;;  %v17003_v46 = vld [vmem:[#allocation130_spill] sm:$0xff]  ;;  %v17006_v2 = vld [vmem:[#allocation77_spill] sm:$0xff] }
 0x620   : > { %16995 = vst [vmem:[#allocation128_spill] sm:$0xff] %v13941_v34  ;;  %v13950_v18 = vmul.f32 %v16999_v50, %v3991_v25  ;;  %v13953_v3 = vmul.f32 %v16956_v47, %v3992_v10  ;;  %v13956_v4 = vmul.f32 %v16975_v58, %v3993_v12  ;;  %v13959_v39 = vmul.f32 %v17003_v46, %v3994_v53  ;;  %v17008_v24 = vld [vmem:[#allocation78_spill] sm:$0xff]  ;;  %v17010_v20 = vld [vmem:[#allocation79_spill] sm:$0xff]  ;;  %v17012_v58 = vld [vmem:[#allocation80_spill] sm:$0xff] }
 0x621   : > { %16997 = vst [vmem:[#allocation74_spill] sm:$0xff] %v13944_v42  ;;  %16998 = vst [vmem:[#allocation105_spill] sm:$0xff] %v13947_v7  ;;  %v13962_v40 = vmul.f32 %v16977_v52, %v3995_v44  ;;  %v17007_v37 = vsub.f32 0.0, %v17006_v2  ;;  %v17009_v19 = vsub.f32 0.0, %v17008_v24  ;;  %v17011_v47 = vsub.f32 0.0, %v17010_v20  ;;  %v17014_v12 = vld [vmem:[#allocation81_spill] sm:$0xff] }
 0x622   : > { %17000 = vst [vmem:[#allocation107_spill] sm:$0xff] %v13950_v18  ;;  %17001 = vst [vmem:[#allocation110_spill] sm:$0xff] %v13953_v3  ;;  %v17013_v10 = vsub.f32 0.0, %v17012_v58  ;;  %v17015_v52 = vsub.f32 0.0, %v17014_v12  ;;  %v17016_v44 = vld [vmem:[#allocation82_spill] sm:$0xff]  ;;  %v17018_v22 = vld [vmem:[#allocation83_spill] sm:$0xff] }
 0x623   : > { %17002 = vst [vmem:[#allocation114_spill] sm:$0xff] %v13956_v4  ;;  %17004 = vst [vmem:[#allocation115_spill] sm:$0xff] %v13959_v39  ;;  %v4068_v35 = vmul.f32 %v17007_v37, %v17006_v2  ;;  %v4069_v54 = vmul.f32 %v17009_v19, %v17008_v24  ;;  %v4070_v25 = vmul.f32 %v17011_v47, %v17010_v20  ;;  %v17017_v13 = vsub.f32 0.0, %v17016_v44  ;;  %v17020_v31 = vld [vmem:[#allocation84_spill] sm:$0xff]  ;;  %v4390_v41 = vld [vmem:[#allocation3] sm:$0xff] }
 0x624   : > { %17005 = vst [vmem:[#allocation117_spill] sm:$0xff] %v13962_v40  ;;  %v4071_v0 = vmul.f32 %v17013_v10, %v17012_v58  ;;  %v4072_v53 = vmul.f32 %v17015_v52, %v17014_v12  ;;  %v17019_v36 = vsub.f32 0.0, %v17018_v22  ;;  %v17021_v33 = vsub.f32 0.0, %v17020_v31  ;;  %v4391_v43 = vld [vmem:[#allocation3 + $0x8] sm:$0xff]  ;;  %v17022_v49 = vld [vmem:[#allocation85_spill] sm:$0xff]  ;;  %v17026_v24 = vld [vmem:[#allocation87_spill] sm:$0xff] }
 0x625   : > { %v4073_v48 = vmul.f32 %v17017_v13, %v17016_v44  ;;  %v17023_v51 = vsub.f32 0.0, %v17022_v49  ;;  %v17024_v46 = vld [vmem:[#allocation86_spill] sm:$0xff]  ;;  %v17027_v19 = vsub.f32 0.0, %v17026_v24  ;;  %v17028_v47 = vld [vmem:[#allocation88_spill] sm:$0xff]  ;;  %v17030_v12 = vld [vmem:[#allocation89_spill] sm:$0xff] }
 0x626   : > { %v4074_v57 = vmul.f32 %v17019_v36, %v17018_v22  ;;  %v4075_v6 = vmul.f32 %v17021_v33, %v17020_v31  ;;  %v17025_v2 = vsub.f32 0.0, %v17024_v46  ;;  %v17029_v58 = vsub.f32 0.0, %v17028_v47  ;;  %v17032_v13 = vld [vmem:[#allocation90_spill] sm:$0xff]  ;;  %v17034_v31 = vld [vmem:[#allocation104_spill] sm:$0xff]  ;;  %v17039_v39 = vld [vmem:[#allocation109_spill] sm:$0xff] }
 0x627   : > { %v4076_v50 = vmul.f32 %v17023_v51, %v17022_v49  ;;  %v4078_v20 = vmul.f32 %v17027_v19, %v17026_v24  ;;  %v17031_v52 = vsub.f32 0.0, %v17030_v12  ;;  %v17033_v22 = vsub.f32 0.0, %v17032_v13  ;;  %v17035_v49 = vld [vmem:[#allocation106_spill] sm:$0xff]  ;;  %v17038_v19 = vld [vmem:[#allocation108_spill] sm:$0xff]  ;;  %v17042_v3 = vld [vmem:[#allocation93_spill] sm:$0xff] }
 0x628   : > { %v4077_v37 = vmul.f32 %v17025_v2, %v17024_v46  ;;  %v4079_v10 = vmul.f32 %v17029_v58, %v17028_v47  ;;  %v4092_v33 = vmul.f32 1.442695, %v17034_v31  ;;  %v4094_v51 = vmul.f32 1.442695, %v17035_v49  ;;  %v17036_v46 = vld [vmem:[#allocation91_spill] sm:$0xff]  ;;  %v17040_v4 = vld [vmem:[#allocation92_spill] sm:$0xff] }
 0x629   : > { %v4080_v44 = vmul.f32 %v17031_v52, %v17030_v12  ;;  %v4081_v36 = vmul.f32 %v17033_v22, %v17032_v13  ;;  %v17037_v2 = vsub.f32 0.0, %v17036_v46  ;;  %v4096_v40 = vmul.f32 1.442695, %v17038_v19  ;;  %v17044_v31 = vld [vmem:[#allocation132_spill] sm:$0xff]  ;;  %v17045_v18 = vld [vmem:[#allocation94_spill] sm:$0xff] }
 0x62a   : > { %v4098_v47 = vmul.f32 1.442695, %v17039_v39  ;;  %v4422_v58 = vpack.c.bf16 %v4391_v43, %v4390_v41  ;;  %v17041_v12 = vsub.f32 0.0, %v17040_v4  ;;  %v17043_v13 = vsub.f32 0.0, %v17042_v3  ;;  %v17049_v41 = vld [vmem:[#allocation126_spill] sm:$0xff] }
 0x62b   : > { %v4082_v24 = vmul.f32 %v17037_v2, %v17036_v46  ;;  %11563 = vpow2.f32 %v4092_v33  ;;  %v4100_v49 = vmul.f32 1.442695, %v17044_v31  ;;  %v17046_v7 = vsub.f32 0.0, %v17045_v18  ;;  %v17047_v2 = vld [vmem:[#allocation95_spill] sm:$0xff] }
 0x62c   : > { %v4083_v52 = vmul.f32 %v17041_v12, %v17040_v4  ;;  %v4084_v22 = vmul.f32 %v17043_v13, %v17042_v3  ;;  %v17048_v19 = vsub.f32 0.0, %v17047_v2  ;;  %11565 = vpow2.f32 %v4094_v51  ;;  %10527 = vmatprep.mubr.msk.bf16.mxu1 %vm17050_vm4, %v4422_v58  ;;  %v17051_v4 = vld [vmem:[#allocation96_spill] sm:$0xff]  ;;  %v17053_v12 = vld [vmem:[#allocation97_spill] sm:$0xff]  ;;  %vm17140_vm4 = vmmov %vm17118_vm0 }
 0x62d   : > { %v4085_v46 = vmul.f32 %v17046_v7, %v17045_v18  ;;  %v4102_v43 = vmul.f32 1.442695, %v17049_v41  ;;  %v17052_v3 = vsub.f32 0.0, %v17051_v4  ;;  %v17054_v13 = vsub.f32 0.0, %v17053_v12  ;;  %v17055_v18 = vld [vmem:[#allocation98_spill] sm:$0xff] }
 0x62e   : > { %v14026_v39 = vmul.f32 %v17048_v19, %v17047_v2  ;;  %11567 = vpow2.f32 %v4096_v40  ;;  %v4104_v7 = vmul.f32 1.442695, %v13861_v63  ;;  %v17056_v51 = vsub.f32 0.0, %v17055_v18  ;;  %v17057_v19 = vld [vmem:[#allocation99_spill] sm:$0xff] }
 0x62f   : > { %v14033_v33 = vmul.f32 %v17052_v3, %v17051_v4  ;;  %v14038_v31 = vmul.f32 %v17054_v13, %v17053_v12  ;;  %v17058_v58 = vsub.f32 0.0, %v17057_v19  ;;  %11569 = vpow2.f32 %v4098_v47  ;;  %v17059_v3 = vld [vmem:[#allocation100_spill] sm:$0xff] }
 0x630   : > { %v14044_v2 = vmul.f32 %v17056_v51, %v17055_v18  ;;  %v4106_v4 = vmul.f32 1.442695, %v13866_v1  ;;  %v17060_v12 = vsub.f32 0.0, %v17059_v3  ;;  %11571 = vpow2.f32 %v4100_v49 }
 0x631   : > { %v14049_v41 = vmul.f32 %v17058_v58, %v17057_v19  ;;  %v4108_v63 = vmul.f32 1.442695, %v4068_v35  ;;  %v4110_v40 = vmul.f32 1.442695, %v4069_v54  ;;  %11573 = vpow2.f32 %v4102_v43 }
 0x632   : > { %v14055_v13 = vmul.f32 %v17060_v12, %v17059_v3  ;;  %v4112_v42 = vmul.f32 1.442695, %v4070_v25  ;;  %v4114_v18 = vmul.f32 1.442695, %v4071_v0  ;;  %v4116_v51 = vmul.f32 1.442695, %v4072_v53 }
 0x633   : > { %11575 = vpow2.f32 %v4104_v7  ;;  %v14057_v34 = vmul.f32 1.442695, %v4073_v48  ;;  %v14059_v19 = vmul.f32 1.442695, %v4074_v57  ;;  %v14061_v47 = vmul.f32 1.442695, %v4075_v6 }
 0x634   : > { %11577 = vpow2.f32 %v4106_v4  ;;  %v14063_v1 = vmul.f32 1.442695, %v4076_v50  ;;  %v14065_v58 = vmul.f32 1.442695, %v4077_v37  ;;  %v14067_v3 = vmul.f32 1.442695, %v4078_v20 }
 0x635   : > { %11579 = vpow2.f32 %v4108_v63  ;;  %v14069_v35 = vmul.f32 1.442695, %v4079_v10  ;;  %v14071_v54 = vmul.f32 1.442695, %v4080_v44  ;;  %v14073_v25 = vmul.f32 1.442695, %v4081_v36  ;;  %v11564_v53 = vpop.eup %11563 }
 0x636   : > { %11581 = vpow2.f32 %v4110_v40  ;;  %v14075_v0 = vmul.f32 1.442695, %v4082_v24  ;;  %v14077_v48 = vmul.f32 1.442695, %v4083_v52  ;;  %v14079_v57 = vmul.f32 1.442695, %v4084_v22 }
 0x637   : > { %11583 = vpow2.f32 %v4112_v42  ;;  %v14081_v6 = vmul.f32 1.442695, %v4085_v46  ;;  %v17061_v50 = vmov 0.0   ;;  %v11566_v42 = vpop.eup %11565  ;;  %v14152_v37 = vmul.f32 1.442695, %v14026_v39 }
 0x638   : > { %4326 = vst.msk [vmem:[#allocation3 + $0x18] sm:$0x1] %vm4325_vm5, %v17061_v50  ;;  %4327 = vst.msk [vmem:[#allocation3 + $0x30] sm:$0x1] %vm4325_vm5, %v17061_v50  ;;  %11585 = vpow2.f32 %v4114_v18  ;;  %v14155_v20 = vmul.f32 1.442695, %v14033_v33  ;;  %v4156_v10 = vmul.f32 %v11564_v53, %v13869_v14  ;;  %v11568_v44 = vpop.eup %11567  ;;  %v4157_v52 = vmul.f32 %v11566_v42, %v13872_v8 }
 0x639   : > { %4328 = vst.msk [vmem:[#allocation3 + $0x48] sm:$0x1] %vm4325_vm5, %v17061_v50  ;;  %4329 = vst.msk [vmem:[#allocation3 + $0x60] sm:$0x1] %vm4325_vm5, %v17061_v50  ;;  %11587 = vpow2.f32 %v4116_v51  ;;  %v14159_v36 = vmul.f32 1.442695, %v14038_v31  ;;  %v11570_v22 = vpop.eup %11569  ;;  %v4158_v46 = vmul.f32 %v11568_v44, %v13875_v27 }
 0x63a   : > { %4330 = vst.msk [vmem:[#allocation3 + $0x78] sm:$0x1] %vm4325_vm5, %v17061_v50  ;;  %4331 = vst.msk [vmem:[#allocation3 + $0x90] sm:$0x1] %vm4325_vm5, %v17061_v50  ;;  %v14162_v24 = vmul.f32 1.442695, %v14044_v2  ;;  %11589 = vpow2.f32 %v14057_v34  ;;  %v11572_v14 = vpop.eup %11571  ;;  %v4159_v33 = vmul.f32 %v11570_v22, %v13878_v56 }
 0x63b   : > { %4332 = vst.msk [vmem:[#allocation3 + $0xa8] sm:$0x1] %vm4325_vm5, %v17061_v50  ;;  %4333 = vst.msk [vmem:[#allocation3 + $0xc0] sm:$0x1] %vm4325_vm5, %v17061_v50  ;;  %v14167_v49 = vmul.f32 1.442695, %v14049_v41  ;;  %11591 = vpow2.f32 %v14059_v19  ;;  %v11574_v7 = vpop.eup %11573  ;;  %v4160_v8 = vmul.f32 %v11572_v14, %v13881_v45 }
 0x63c   : > { %4334 = vst.msk [vmem:[#allocation3 + $0xd8] sm:$0x1] %vm4325_vm5, %v17061_v50  ;;  %4335 = vst.msk [vmem:[#allocation3 + $0xf0] sm:$0x1] %vm4325_vm5, %v17061_v50  ;;  %v4188_v39 = vsub.f32 1.0, %v4156_v10  ;;  %v4189_v31 = vsub.f32 1.0, %v4157_v52  ;;  %11593 = vpow2.f32 %v14061_v47  ;;  %v4161_v4 = vmul.f32 %v11574_v7, %v13884_v30 }
 0x63d   : > { %4336 = vst.msk [vmem:[#allocation3 + $0x108] sm:$0x1] %vm4325_vm5, %v17061_v50  ;;  %4337 = vst.msk [vmem:[#allocation3 + $0x120] sm:$0x1] %vm4325_vm5, %v17061_v50  ;;  %v14172_v43 = vmul.f32 1.442695, %v14055_v13  ;;  %v11576_v27 = vpop.eup %11575  ;;  %11595 = vpow2.f32 %v14063_v1 }
 0x63e   : > { %4338 = vst.msk [vmem:[#allocation3 + $0x138] sm:$0x1] %vm4325_vm5, %v17061_v50  ;;  %4339 = vst.msk [vmem:[#allocation3 + $0x150] sm:$0x1] %vm4325_vm5, %v17061_v50  ;;  %v4190_v34 = vsub.f32 1.0, %v4158_v46  ;;  %v17062_v2 = vld [vmem:[#allocation42_spill] sm:$0xff]  ;;  %v11578_v56 = vpop.eup %11577  ;;  %11597 = vpow2.f32 %v14065_v58  ;;  %v4162_v40 = vmul.f32 %v11576_v27, %v13887_v38 }
 0x63f   : > { %4340 = vst.msk [vmem:[#allocation3 + $0x168] sm:$0x1] %vm4325_vm5, %v17061_v50  ;;  %4341 = vst.msk [vmem:[#allocation3 + $0x180] sm:$0x1] %vm4325_vm5, %v17061_v50  ;;  %v14178_v41 = vmul.f32 %v4188_v39, %v17062_v2  ;;  %v4191_v12 = vsub.f32 1.0, %v4159_v33  ;;  %v17063_v13 = vld [vmem:[#allocation43_spill] sm:$0xff]  ;;  %v11580_v19 = vpop.eup %11579  ;;  %11599 = vpow2.f32 %v14067_v3  ;;  %v4163_v47 = vmul.f32 %v11578_v56, %v13890_v26 }
 0x640   : > { %4342 = vst.msk [vmem:[#allocation3 + $0x29] sm:$0x1] %vm4325_vm5, %v17061_v50  ;;  %4343 = vst.msk [vmem:[#allocation3 + $0x41] sm:$0x1] %vm4325_vm5, %v17061_v50  ;;  %v14183_v63 = vmul.f32 %v4189_v31, %v17063_v13  ;;  %v4192_v18 = vsub.f32 1.0, %v4160_v8  ;;  %v17064_v45 = vld [vmem:[#allocation44_spill] sm:$0xff]  ;;  %v11582_v42 = vpop.eup %11581  ;;  %11601 = vpow2.f32 %v14069_v35  ;;  %v4164_v58 = vmul.f32 %v11580_v19, %v13893_v55 }
 0x641   : > { %4344 = vst.msk [vmem:[#allocation3 + $0x59] sm:$0x1] %vm4325_vm5, %v17061_v50  ;;  %4345 = vst.msk [vmem:[#allocation3 + $0x71] sm:$0x1] %vm4325_vm5, %v17061_v50  ;;  %v14188_v51 = vmul.f32 %v4190_v34, %v17064_v45  ;;  %v4193_v1 = vsub.f32 1.0, %v4161_v4  ;;  %v17065_v30 = vld [vmem:[#allocation45_spill] sm:$0xff]  ;;  %v11584_v52 = vpop.eup %11583  ;;  %11603 = vpow2.f32 %v14071_v54  ;;  %v4165_v3 = vmul.f32 %v11582_v42, %v13896_v60 }
 0x642   : > { %4346 = vst.msk [vmem:[#allocation3 + $0x89] sm:$0x1] %vm4325_vm5, %v17061_v50  ;;  %4347 = vst.msk [vmem:[#allocation3 + $0xa1] sm:$0x1] %vm4325_vm5, %v17061_v50  ;;  %v14193_v53 = vmul.f32 %v4191_v12, %v17065_v30  ;;  %v4194_v10 = vsub.f32 1.0, %v4162_v40  ;;  %v17066_v38 = vld [vmem:[#allocation46_spill] sm:$0xff]  ;;  %v11586_v39 = vpop.eup %11585  ;;  %11605 = vpow2.f32 %v14073_v25  ;;  %v4166_v35 = vmul.f32 %v11584_v52, %v13899_v11 }
 0x643   : > { %4348 = vst.msk [vmem:[#allocation3 + $0xb9] sm:$0x1] %vm4325_vm5, %v17061_v50  ;;  %4349 = vst.msk [vmem:[#allocation3 + $0xd1] sm:$0x1] %vm4325_vm5, %v17061_v50  ;;  %v14198_v44 = vmul.f32 %v4192_v18, %v17066_v38  ;;  %v4195_v22 = vsub.f32 1.0, %v4163_v47  ;;  %v17067_v26 = vld [vmem:[#allocation47_spill] sm:$0xff]  ;;  %v11588_v31 = vpop.eup %11587  ;;  %11607 = vpow2.f32 %v14075_v0  ;;  %v4167_v54 = vmul.f32 %v11586_v39, %v13902_v28 }
 0x644   : > { %4350 = vst.msk [vmem:[#allocation3 + $0xe9] sm:$0x1] %vm4325_vm5, %v17061_v50  ;;  %4351 = vst.msk [vmem:[#allocation3 + $0x101] sm:$0x1] %vm4325_vm5, %v17061_v50  ;;  %v14203_v46 = vmul.f32 %v4193_v1, %v17067_v26  ;;  %v4196_v14 = vsub.f32 1.0, %v4164_v58  ;;  %v17068_v55 = vld [vmem:[#allocation48_spill] sm:$0xff]  ;;  %v11590_v34 = vpop.eup %11589  ;;  %11609 = vpow2.f32 %v14077_v48  ;;  %v4168_v25 = vmul.f32 %v11588_v31, %v13905_v17 }
 0x645   : > { %4352 = vst.msk [vmem:[#allocation3 + $0x119] sm:$0x1] %vm4325_vm5, %v17061_v50  ;;  %4353 = vst.msk [vmem:[#allocation3 + $0x131] sm:$0x1] %vm4325_vm5, %v17061_v50  ;;  %v14208_v33 = vmul.f32 %v4194_v10, %v17068_v55  ;;  %v4197_v7 = vsub.f32 1.0, %v4165_v3  ;;  %v17069_v60 = vld [vmem:[#allocation49_spill] sm:$0xff]  ;;  %v11592_v4 = vpop.eup %11591  ;;  %11611 = vpow2.f32 %v14079_v57  ;;  %v4169_v0 = vmul.f32 %v11590_v34, %v13908_v59 }
 0x646   : > { %4354 = vst.msk [vmem:[#allocation3 + $0x149] sm:$0x1] %vm4325_vm5, %v17061_v50  ;;  %4355 = vst.msk [vmem:[#allocation3 + $0x161] sm:$0x1] %vm4325_vm5, %v17061_v50  ;;  %v14213_v8 = vmul.f32 %v4195_v22, %v17069_v60  ;;  %v4198_v2 = vsub.f32 1.0, %v4166_v35  ;;  %v17070_v11 = vld [vmem:[#allocation50_spill] sm:$0xff]  ;;  %v11594_v56 = vpop.eup %11593  ;;  %11613 = vpow2.f32 %v14081_v6  ;;  %v4170_v48 = vmul.f32 %v11592_v4, %v13911_v62 }
 0x647   : > { %4356 = vst.msk [vmem:[#allocation3 + $0x179] sm:$0x1] %vm4325_vm5, %v17061_v50  ;;  %4357 = vst.msk [vmem:[#allocation3 + $0x191] sm:$0x1] %vm4325_vm5, %v17061_v50  ;;  %v14218_v27 = vmul.f32 %v4196_v14, %v17070_v11  ;;  %v4199_v12 = vsub.f32 1.0, %v4167_v54  ;;  %v17071_v28 = vld [vmem:[#allocation51_spill] sm:$0xff]  ;;  %v11596_v45 = vpop.eup %11595  ;;  %11615 = vpow2.f32 %v14152_v37  ;;  %v4171_v57 = vmul.f32 %v11594_v56, %v13914_v32 }
 0x648   : > { %4319 = vst.msk [vmem:[#allocation3 + $0x10] sm:$0x3] %vm16771_vm12, %v17061_v50  ;;  %4323 = vst.msk [vmem:[#allocation3 + $0x1a8] sm:$0x3] %vm16771_vm12, %v17061_v50  ;;  %v14223_v13 = vmul.f32 %v4197_v7, %v17071_v28  ;;  %v4200_v40 = vsub.f32 1.0, %v4168_v25  ;;  %v17072_v17 = vld [vmem:[#allocation52_spill] sm:$0xff]  ;;  %v11598_v1 = vpop.eup %11597  ;;  %11617 = vpow2.f32 %v14155_v20  ;;  %v4172_v6 = vmul.f32 %v11596_v45, %v13917_v15 }
 0x649   : > { %v14228_v18 = vmul.f32 %v4198_v2, %v17072_v17  ;;  %v4201_v19 = vsub.f32 1.0, %v4169_v0  ;;  %v17073_v59 = vld [vmem:[#allocation53_spill] sm:$0xff]  ;;  %v4202_v30 = vsub.f32 1.0, %v4170_v48  ;;  %v17074_v62 = vld [vmem:[#allocation54_spill] sm:$0xff]  ;;  %v11600_v58 = vpop.eup %11599  ;;  %11619 = vpow2.f32 %v14159_v36  ;;  %v17075_v32 = vld [vmem:[#allocation55_spill] sm:$0xff] }
 0x64a   : > { %v14233_v47 = vmul.f32 %v4199_v12, %v17073_v59  ;;  %v14238_v42 = vmul.f32 %v4200_v40, %v17074_v62  ;;  %v4173_v37 = vmul.f32 %v11598_v1, %v13920_v61  ;;  %v4203_v10 = vsub.f32 1.0, %v4171_v57  ;;  %v11602_v52 = vpop.eup %11601  ;;  %v17076_v15 = vld [vmem:[#allocation56_spill] sm:$0xff]  ;;  %v17077_v61 = vld [vmem:[#allocation57_spill] sm:$0xff]  ;;  %v17084_v59 = vld [vmem:[#allocation74_spill] sm:$0xff] }
 0x64b   : > { %v14243_v38 = vmul.f32 %v4201_v19, %v17075_v32  ;;  %11621 = vpow2.f32 %v14162_v24  ;;  %v4174_v20 = vmul.f32 %v11600_v58, %v13923_v16  ;;  %v4204_v3 = vsub.f32 1.0, %v4172_v6  ;;  %v11604_v26 = vpop.eup %11603  ;;  %v17078_v16 = vld [vmem:[#allocation58_spill] sm:$0xff]  ;;  %v17082_v40 = vld [vmem:[#allocation128_spill] sm:$0xff]  ;;  %vm17141_vm5 = vmmov %vm17118_vm0 }
 0x64c   : > { %v14248_v22 = vmul.f32 %v4202_v30, %v17076_v15  ;;  %11623 = vpow2.f32 %v14167_v49  ;;  %v4175_v36 = vmul.f32 %v11602_v52, %v13926_v5  ;;  %v4205_v39 = vsub.f32 1.0, %v4173_v37  ;;  %v11606_v14 = vpop.eup %11605  ;;  %v17079_v49 = vld [vmem:[#allocation59_spill] sm:$0xff]  ;;  %v17087_v32 = vld [vmem:[#allocation64_spill] sm:$0xff] }
 0x64d   : > { %v14253_v35 = vmul.f32 %v4203_v10, %v17077_v61  ;;  %11625 = vpow2.f32 %v14172_v43  ;;  %v4176_v24 = vmul.f32 %v11604_v26, %v13929_v29  ;;  %v4206_v55 = vsub.f32 1.0, %v4174_v20  ;;  %v11608_v54 = vpop.eup %11607  ;;  %v17080_v43 = vld [vmem:[#allocation60_spill] sm:$0xff]  ;;  %v17088_v15 = vld [vmem:[#allocation107_spill] sm:$0xff] }
 0x64e   : > { %v14258_v31 = vmul.f32 %v4204_v3, %v17078_v16  ;;  %v4177_v7 = vmul.f32 %v11606_v14, %v13932_v9  ;;  %v4207_v60 = vsub.f32 1.0, %v4175_v36  ;;  %v4237_v34 = vmul.f32 %v4205_v39, %v17079_v49  ;;  %v11610_v25 = vpop.eup %11609  ;;  %v17081_v9 = vld [vmem:[#allocation61_spill] sm:$0xff]  ;;  %v17091_v16 = vld [vmem:[#allocation66_spill] sm:$0xff] }
 0x64f   : > { %v14263_v5 = vadd.f32 1.0, %v14178_v41  ;;  %v4178_v2 = vmul.f32 %v11608_v54, %v13935_v23  ;;  %v4208_v11 = vsub.f32 1.0, %v4176_v24  ;;  %v4238_v4 = vmul.f32 %v4206_v55, %v17080_v43  ;;  %v11612_v0 = vpop.eup %11611  ;;  %v17083_v23 = vld [vmem:[#allocation62_spill] sm:$0xff]  ;;  %v17089_v36 = vld [vmem:[#allocation65_spill] sm:$0xff] }
 0x650   : > { %v14268_v29 = vadd.f32 1.0, %v14183_v63  ;;  %v4179_v12 = vmul.f32 %v11610_v25, %v13938_v21  ;;  %v4209_v28 = vsub.f32 1.0, %v4177_v7  ;;  %v4239_v56 = vmul.f32 %v4207_v60, %v17081_v9  ;;  %v11614_v41 = vpop.eup %11613  ;;  %v17085_v21 = vld [vmem:[#allocation63_spill] sm:$0xff]  ;;  %v17090_v24 = vld [vmem:[#allocation110_spill] sm:$0xff]  ;;  %v17095_v9 = vld [vmem:[#allocation68_spill] sm:$0xff] }
 0x651   : > { %v14273_v48 = vadd.f32 1.0, %v14188_v51  ;;  %v4180_v17 = vmul.f32 %v11612_v0, %v17082_v40  ;;  %v4210_v45 = vsub.f32 1.0, %v4178_v2  ;;  %v4240_v57 = vmul.f32 %v4208_v11, %v17083_v23  ;;  %v11616_v63 = vpop.eup %11615  ;;  %v17086_v51 = vld [vmem:[#allocation105_spill] sm:$0xff]  ;;  %v17092_v49 = vld [vmem:[#allocation114_spill] sm:$0xff]  ;;  %v17093_v2 = vld [vmem:[#allocation67_spill] sm:$0xff] }
 0x652   : > { %v14278_v19 = vadd.f32 1.0, %v14193_v53  ;;  %v4181_v1 = vmul.f32 %v11614_v41, %v17084_v59  ;;  %v4211_v6 = vsub.f32 1.0, %v4179_v12  ;;  %v4241_v30 = vmul.f32 %v4209_v28, %v17085_v21  ;;  %v11618_v58 = vpop.eup %11617  ;;  %v17094_v12 = vld [vmem:[#allocation115_spill] sm:$0xff] }
 0x653   : > { %v4256_v62 = vadd.f32 1.0, %v14198_v44  ;;  %v4182_v37 = vmul.f32 %v11616_v63, %v17086_v51  ;;  %v4212_v10 = vsub.f32 1.0, %v4180_v17  ;;  %v4242_v52 = vmul.f32 %v4210_v45, %v17087_v32  ;;  %v11620_v3 = vpop.eup %11619  ;;  %v17096_v17 = vld [vmem:[#allocation117_spill] sm:$0xff] }
 0x654   : > { %v4257_v20 = vadd.f32 1.0, %v14203_v46  ;;  %v4183_v53 = vmul.f32 %v11618_v58, %v17088_v15  ;;  %v4213_v26 = vsub.f32 1.0, %v4181_v1  ;;  %v4243_v39 = vmul.f32 %v4211_v6, %v17089_v36  ;;  %v17098_v6 = vld [vmem:[#allocation70_spill] sm:$0xff]  ;;  %v17101_v36 = vld [vmem:[#allocation73_spill] sm:$0xff] }
 0x655   : > { %v4258_v61 = vadd.f32 1.0, %v14208_v33  ;;  %v11622_v14 = vpop.eup %11621  ;;  %v4184_v55 = vmul.f32 %v11620_v3, %v17090_v24  ;;  %v4214_v44 = vsub.f32 1.0, %v4182_v37  ;;  %v4244_v54 = vmul.f32 %v4212_v10, %v17091_v16  ;;  %v17099_v37 = vld [vmem:[#allocation71_spill] sm:$0xff]  ;;  %v17100_v3 = vld [vmem:[#allocation72_spill] sm:$0xff] }
 0x656   : > { %v4259_v7 = vadd.f32 1.0, %v14213_v8  ;;  %v11624_v60 = vpop.eup %11623  ;;  %v4185_v25 = vmul.f32 %v11622_v14, %v17092_v49  ;;  %v4215_v46 = vsub.f32 1.0, %v4183_v53  ;;  %v4245_v11 = vmul.f32 %v4213_v26, %v17093_v2  ;;  %v17097_v8 = vld [vmem:[#allocation69_spill] sm:$0xff] }
 0x657   : > { %v4260_v43 = vadd.f32 1.0, %v14218_v27  ;;  %v11626_v0 = vpop.eup %11625  ;;  %v4186_v28 = vmul.f32 %v11624_v60, %v17094_v12  ;;  %v4216_v33 = vsub.f32 1.0, %v4184_v55  ;;  %v4246_v41 = vmul.f32 %v4214_v44, %v17095_v9  ;;  %v17109_v9 = vld [vmem:[#allocation17_spill] sm:$0xff] }
 0x658   : > { %v4261_v40 = vadd.f32 1.0, %v14223_v13  ;;  %v4187_v45 = vmul.f32 %v11626_v0, %v17096_v17  ;;  %v4217_v23 = vsub.f32 1.0, %v4185_v25  ;;  %v4247_v63 = vmul.f32 %v4215_v46, %v17097_v8  ;;  %v17110_v17 = vld [vmem:[#allocation18_spill] sm:$0xff] }
 0x659   : > { %v4262_v59 = vadd.f32 1.0, %v14228_v18  ;;  %v4218_v1 = vsub.f32 1.0, %v4186_v28  ;;  %v4248_v21 = vmul.f32 %v4216_v33, %v17098_v6  ;;  %v4263_v27 = vadd.f32 1.0, %v14233_v47  ;;  %v17108_v28 = vld [vmem:[#allocation16_spill] sm:$0xff]  ;;  %v17123_v6 = vld [vmem:[#allocation26_spill] sm:$0xff] }
 0x65a   : > { %v4264_v58 = vadd.f32 1.0, %v14238_v42  ;;  %v4219_v51 = vsub.f32 1.0, %v4187_v45  ;;  %v4249_v10 = vmul.f32 %v4217_v23, %v17099_v37  ;;  %v4265_v32 = vadd.f32 1.0, %v14243_v38  ;;  %v17113_v23 = vld [vmem:[#allocation20_spill] sm:$0xff]  ;;  %v17130_v37 = vld [vmem:[#allocation29_spill] sm:$0xff] }
 0x65b   : > { %v4266_v13 = vadd.f32 1.0, %v14248_v22  ;;  %v4250_v15 = vmul.f32 %v4218_v1, %v17100_v3  ;;  %v4267_v53 = vadd.f32 1.0, %v14253_v35  ;;  %v4268_v18 = vadd.f32 1.0, %v14258_v31  ;;  %v17102_v35 = vld [vmem:[#allocation10_spill] sm:$0xff]  ;;  %v17136_v3 = vld [vmem:[#allocation31_spill] sm:$0xff] }
 0x65c   : > { %v4269_v26 = vadd.f32 1.0, %v4237_v34  ;;  %v4251_v14 = vmul.f32 %v4219_v51, %v17101_v36  ;;  %v4270_v24 = vadd.f32 1.0, %v4238_v4  ;;  %v4271_v47 = vadd.f32 1.0, %v4239_v56  ;;  %v17103_v34 = vld [vmem:[#allocation11_spill] sm:$0xff]  ;;  %v17104_v4 = vld [vmem:[#allocation12_spill] sm:$0xff]  ;;  %v17115_v1 = vld [vmem:[#allocation22_spill] sm:$0xff] }
 0x65d   : > { %v4272_v55 = vadd.f32 1.0, %v4240_v57  ;;  %v4273_v42 = vadd.f32 1.0, %v4241_v30  ;;  %v4274_v44 = vadd.f32 1.0, %v4242_v52  ;;  %v4275_v16 = vadd.f32 1.0, %v4243_v39  ;;  %v17105_v57 = vld [vmem:[#allocation13_spill] sm:$0xff]  ;;  %v17106_v52 = vld [vmem:[#allocation14_spill] sm:$0xff] }
 0x65e   : > { %v4276_v60 = vadd.f32 1.0, %v4244_v54  ;;  %v4277_v49 = vadd.f32 1.0, %v4245_v11  ;;  %v4278_v38 = vadd.f32 1.0, %v4246_v41  ;;  %v4279_v25 = vadd.f32 1.0, %v4247_v63  ;;  %v17107_v54 = vld [vmem:[#allocation15_spill] sm:$0xff]  ;;  %v17138_v36 = vld [vmem:[#allocation33_spill] sm:$0xff] }
 0x65f   : > { %v4280_v22 = vadd.f32 1.0, %v4248_v21  ;;  %v4281_v46 = vadd.f32 1.0, %v4249_v10  ;;  %v4282_v2 = vadd.f32 1.0, %v4250_v15  ;;  %v4283_v0 = vadd.f32 1.0, %v4251_v14  ;;  %v17128_v21 = vld [vmem:[#allocation27_spill] sm:$0xff]  ;;  %v17139_v14 = vld [vmem:[#allocation34_spill] sm:$0xff] }
 0x660   : > { %v4284_v31 = vmul.f32 %v14263_v5, %v17102_v35  ;;  %v4285_v12 = vmul.f32 %v14268_v29, %v17103_v34  ;;  %v4286_v56 = vmul.f32 %v14273_v48, %v17104_v4  ;;  %v4287_v30 = vmul.f32 %v14278_v19, %v17105_v57  ;;  %v17112_v5 = vld [vmem:[#allocation19_spill] sm:$0xff]  ;;  %v17114_v48 = vld [vmem:[#allocation21_spill] sm:$0xff]  ;;  %v17145_v35 = vld [vmem:[#allocation36_spill] sm:$0xff] }
 0x661   : > { %v4288_v39 = vmul.f32 %v4256_v62, %v17106_v52  ;;  %v4289_v11 = vmul.f32 %v4257_v20, %v17107_v54  ;;  %v4290_v33 = vmul.f32 %v4258_v61, %v17108_v28  ;;  %v4291_v41 = vmul.f32 %v4259_v7, %v17109_v9  ;;  %v17120_v62 = vld [vmem:[#allocation23_spill] sm:$0xff]  ;;  %v17121_v61 = vld [vmem:[#allocation24_spill] sm:$0xff]  ;;  %v17146_v34 = vld [vmem:[#allocation37_spill] sm:$0xff] }
 0x662   : > { %v4292_v45 = vmul.f32 %v4260_v43, %v17110_v17  ;;  %4358 = vst.msk [vmem:[#allocation3 + $0x19] sm:$0xff] %vm17111_vm13, %v4284_v31  ;;  %v4293_v29 = vmul.f32 %v4261_v40, %v17112_v5  ;;  %v4294_v8 = vmul.f32 %v4262_v59, %v17113_v23  ;;  %v4295_v63 = vmul.f32 %v4263_v27, %v17114_v48  ;;  %v17122_v43 = vld [vmem:[#allocation25_spill] sm:$0xff]  ;;  %vm17142_vm13 = vmmov %vm17118_vm0  ;;  %v17152_v4 = vld [vmem:[#allocation40_spill] sm:$0xff] }
 0x663   : > { %v4296_v19 = vmul.f32 %v4264_v58, %v17115_v1  ;;  %4359 = vst.msk [vmem:[#allocation3 + $0x21] sm:$0xff] %vm17116_vm14, %v4285_v12  ;;  %v4297_v20 = vmul.f32 %v4265_v32, %v17120_v62  ;;  %v4298_v7 = vmul.f32 %v4266_v13, %v17121_v61  ;;  %v4299_v40 = vmul.f32 %v4267_v53, %v17122_v43  ;;  %v17129_v58 = vld [vmem:[#allocation28_spill] sm:$0xff]  ;;  %v17131_v32 = vld [vmem:[#allocation30_spill] sm:$0xff]  ;;  %vm17143_vm14 = vmmov %vm17118_vm0 }
 0x664   : > { %4360 = vst.msk [vmem:[#allocation3 + $0x31] sm:$0xff] %vm17117_vm15, %v4286_v56  ;;  %v4300_v59 = vmul.f32 %v4268_v18, %v17123_v6  ;;  %v4301_v27 = vmul.f32 %v4269_v26, %v17128_v21  ;;  %v4302_v51 = vmul.f32 %v4270_v24, %v17129_v58  ;;  %v4303_v10 = vmul.f32 %v4271_v47, %v17130_v37  ;;  %v17137_v53 = vld [vmem:[#allocation32_spill] sm:$0xff]  ;;  %v17144_v47 = vld [vmem:[#allocation35_spill] sm:$0xff]  ;;  %v17147_v12 = vld [vmem:[#allocation38_spill] sm:$0xff] }
 0x665   : > { %4361 = vst.msk [vmem:[#allocation3 + $0x39] sm:$0xff] %vm17118_vm0, %v4287_v30  ;;  %v4304_v13 = vmul.f32 %v4272_v55, %v17131_v32  ;;  %v4305_v15 = vmul.f32 %v4273_v42, %v17136_v3  ;;  %v4306_v18 = vmul.f32 %v4274_v44, %v17137_v53  ;;  %v4307_v26 = vmul.f32 %v4275_v16, %v17138_v36  ;;  %vm17148_vm15 = vmmov %vm17118_vm0  ;;  %v17151_v16 = vld [vmem:[#allocation39_spill] sm:$0xff]  ;;  %v17153_v57 = vld [vmem:[#allocation41_spill] sm:$0xff] }
 0x666   : > { %4362 = vst.msk [vmem:[#allocation3 + $0x49] sm:$0xff] %vm17119_vm1, %v4288_v39  ;;  %v4308_v24 = vmul.f32 %v4276_v60, %v17139_v14  ;;  %v4309_v55 = vmul.f32 %v4277_v49, %v17144_v47  ;;  %v4310_v31 = vmul.f32 %v4278_v38, %v17145_v35  ;;  %v4311_v42 = vmul.f32 %v4279_v25, %v17146_v34  ;;  %vm17149_vm1 = vmmov %vm17118_vm0  ;;  %v14386_v30 = vld [vmem:[%s16613_s2 + $0x10] sm:$0xff]   ;;  %v11757_v52 = vld [vmem:[%s16613_s2 + $0x8] sm:$0xff]  }
 0x667   : > { %4363 = vst.msk [vmem:[#allocation3 + $0x51] sm:$0xff] %vm17124_vm2, %v4289_v11  ;;  %v4312_v44 = vmul.f32 %v4280_v22, %v17147_v12  ;;  %vm17150_vm2 = vmmov %vm17118_vm0  ;;  %v4313_v60 = vmul.f32 %v4281_v46, %v17151_v16  ;;  %v4314_v56 = vmul.f32 %v4282_v2, %v17152_v4  ;;  %v4315_v49 = vmul.f32 %v4283_v0, %v17153_v57  ;;  %v4692_v36 = vld [vmem:[#allocation3 + $0x9] sm:$0xff] }
 0x668   : > { %4364 = vst.msk [vmem:[#allocation3 + $0x61] sm:$0xff] %vm17125_vm3, %v4290_v33  ;;  %vm17154_vm3 = vmmov %vm17118_vm0  ;;  %v14454_v12 = vld [vmem:[%s16613_s2 + $0x18] sm:$0xff]  }
 0x669   : > { %4365 = vst.msk [vmem:[#allocation3 + $0x69] sm:$0xff] %vm17126_vm10, %v4291_v41  ;;  %vm17155_vm10 = vmmov %vm17118_vm0  ;;  %v4392_v38 = vld [vmem:[#allocation3 + $0x18] sm:$0xff] }
 0x66a   : > { %4366 = vst.msk [vmem:[#allocation3 + $0x79] sm:$0xff] %vm17127_vm11, %v4292_v45  ;;  %vm17156_vm11 = vmmov %vm17118_vm0  ;;  %v4393_v25 = vld [vmem:[#allocation3 + $0x20] sm:$0xff] }
 0x66b   : > { %4367 = vst.msk [vmem:[#allocation3 + $0x81] sm:$0xff] %vm17132_vm6, %v4293_v29  ;;  %vm17157_vm6 = vmmov %vm17118_vm0  ;;  %v4394_v22 = vld [vmem:[#allocation3 + $0x30] sm:$0xff]  ;;  %v14379_v2 = vpack.c.bf16 %v4393_v25, %v4392_v38  ;;  %v4694_v35 = vld [vmem:[#allocation3 + $0x21] sm:$0xff] }
 0x66c   : > { %4368 = vst.msk [vmem:[#allocation3 + $0x91] sm:$0xff] %vm17133_vm7, %v4294_v8  ;;  %vm17158_vm7 = vmmov %vm17118_vm0  ;;  %v4395_v46 = vld [vmem:[#allocation3 + $0x38] sm:$0xff] }
 0x66d   : > { %4369 = vst.msk [vmem:[#allocation3 + $0x99] sm:$0xff] %vm17134_vm8, %v4295_v63  ;;  %vm17159_vm8 = vmmov %vm17118_vm0  ;;  %v14381_v0 = vpack.c.bf16 %v4395_v46, %v4394_v22  ;;  %v4396_v39 = vld [vmem:[#allocation3 + $0x48] sm:$0xff]  ;;  %v4696_v34 = vld [vmem:[#allocation3 + $0x39] sm:$0xff] }
 0x66e   : > { %4370 = vst.msk [vmem:[#allocation3 + $0xa9] sm:$0xff] %vm17135_vm9, %v4296_v19  ;;  %vm17160_vm9 = vmmov %vm17118_vm0  ;;  %v4397_v54 = vld [vmem:[#allocation3 + $0x50] sm:$0xff] }
 0x66f   : > { %4371 = vst.msk [vmem:[#allocation3 + $0xb1] sm:$0xff] %vm17140_vm4, %v4297_v20  ;;  %vm17161_vm4 = vmmov %vm17118_vm0  ;;  %v4398_v11 = vld [vmem:[#allocation3 + $0x60] sm:$0xff]  ;;  %v14396_v33 = vpack.c.bf16 %v4397_v54, %v4396_v39  ;;  %v4697_v16 = vld [vmem:[#allocation3 + $0x49] sm:$0xff] }
 0x670   : > { %4372 = vst.msk [vmem:[#allocation3 + $0xc1] sm:$0xff] %vm17141_vm5, %v4298_v7  ;;  %vm17162_vm5 = vmmov %vm17118_vm0  ;;  %v4399_v28 = vld [vmem:[#allocation3 + $0x68] sm:$0xff] }
 0x671   : > { %4373 = vst.msk [vmem:[#allocation3 + $0xc9] sm:$0xff] %vm17142_vm13, %v4299_v40  ;;  %vm17163_vm13 = vmmov %vm17118_vm0  ;;  %v14398_v9 = vpack.c.bf16 %v4399_v28, %v4398_v11  ;;  %v4400_v41 = vld [vmem:[#allocation3 + $0x78] sm:$0xff]  ;;  %v4699_v4 = vld [vmem:[#allocation3 + $0x61] sm:$0xff] }
 0x672   : > { %4374 = vst.msk [vmem:[#allocation3 + $0xd9] sm:$0xff] %vm17143_vm14, %v4300_v59  ;;  %vm17164_vm14 = vmmov %vm17118_vm0  ;;  %v4401_v17 = vld [vmem:[#allocation3 + $0x80] sm:$0xff] }
 0x673   : > { %4375 = vst.msk [vmem:[#allocation3 + $0xe1] sm:$0xff] %vm17148_vm15, %v4301_v27  ;;  %vm17165_vm15 = vmmov %vm17118_vm0  ;;  %v4402_v45 = vld [vmem:[#allocation3 + $0x90] sm:$0xff]  ;;  %v14404_v29 = vpack.c.bf16 %v4401_v17, %v4400_v41  ;;  %v4701_v38 = vld [vmem:[#allocation3 + $0x79] sm:$0xff] }
 0x674   : > { %4376 = vst.msk [vmem:[#allocation3 + $0xf1] sm:$0xff] %vm17118_vm0, %v4302_v51  ;;  %10528 = vmatmul.mubr.msk.bf16.vlgmr.msra.gmra.mrb[4].mxu1 %vm17165_vm15, %v14379_v2  ;;  %v4403_v5 = vld [vmem:[#allocation3 + $0x98] sm:$0xff]  ;;  %vm17179_vm15 = vmmov %vm17118_vm0  ;;  %v4702_v25 = vld [vmem:[#allocation3 + $0x81] sm:$0xff] }
 0x675   : > { %4377 = vst.msk [vmem:[#allocation3 + $0xf9] sm:$0xff] %vm17149_vm1, %v4303_v10  ;;  %10560 = vmatpush3.bf16.msra.mxu1 %v11757_v52  ;;  %10531 = vmatprep.mubr.msk.bf16.mxu1 %vm17118_vm0, %v14381_v0  ;;  %vm17166_vm1 = vmmov %vm17118_vm0  ;;  %v14406_v23 = vpack.c.bf16 %v4403_v5, %v4402_v45  ;;  %v4404_v8 = vld [vmem:[#allocation3 + $0xa8] sm:$0xff]  ;;  %v4703_v22 = vld [vmem:[#allocation3 + $0x91] sm:$0xff] }
 0x676   : > { %4378 = vst.msk [vmem:[#allocation3 + $0x109] sm:$0xff] %vm17150_vm2, %v4304_v13  ;;  %10593 = vmatprep.subr.bf16.mxu1 %v14386_v30  ;;  %vm17167_vm2 = vmmov %vm17118_vm0  ;;  %v4405_v48 = vld [vmem:[#allocation3 + $0xb0] sm:$0xff]  ;;  %v4704_v46 = vld [vmem:[#allocation3 + $0x99] sm:$0xff] }
 0x677   : > { %4379 = vst.msk [vmem:[#allocation3 + $0x111] sm:$0xff] %vm17154_vm3, %v4305_v15  ;;  %vm17168_vm3 = vmmov %vm17118_vm0  ;;  %v4406_v63 = vld [vmem:[#allocation3 + $0xc0] sm:$0xff]  ;;  %v14412_v19 = vpack.c.bf16 %v4405_v48, %v4404_v8  ;;  %v14474_v52 = vpack.c.bf16 %v4704_v46, %v4703_v22  ;;  %v4705_v39 = vld [vmem:[#allocation3 + $0xa9] sm:$0xff] }
 0x678   : > { %4380 = vst.msk [vmem:[#allocation3 + $0x121] sm:$0xff] %vm17155_vm10, %v4306_v18  ;;  %vm17169_vm10 = vmmov %vm17118_vm0  ;;  %v4407_v1 = vld [vmem:[#allocation3 + $0xc8] sm:$0xff]  ;;  %v4706_v54 = vld [vmem:[#allocation3 + $0xb1] sm:$0xff] }
 0x679   : > { %4381 = vst.msk [vmem:[#allocation3 + $0x129] sm:$0xff] %vm17156_vm11, %v4307_v26  ;;  %v14414_v62 = vpack.c.bf16 %v4407_v1, %v4406_v63  ;;  %vm17170_vm11 = vmmov %vm17118_vm0  ;;  %v4408_v20 = vld [vmem:[#allocation3 + $0xd8] sm:$0xff]  ;;  %v4691_v18 = vld [vmem:[#allocation3 + $0x1] sm:$0xff]  ;;  %v14480_v41 = vpack.c.bf16 %v4706_v54, %v4705_v39 }
 0x67a   : > { %4382 = vst.msk [vmem:[#allocation3 + $0x139] sm:$0xff] %vm17157_vm6, %v4308_v24  ;;  %vm17171_vm6 = vmmov %vm17118_vm0  ;;  %v4409_v61 = vld [vmem:[#allocation3 + $0xe0] sm:$0xff]  ;;  %v4723_v24 = vpack.c.bf16 %v4692_v36, %v4691_v18  ;;  %v4708_v28 = vld [vmem:[#allocation3 + $0xc9] sm:$0xff] }
 0x67b   : > { %4383 = vst.msk [vmem:[#allocation3 + $0x141] sm:$0xff] %vm17158_vm7, %v4309_v55  ;;  %v4410_v7 = vld [vmem:[#allocation3 + $0xf0] sm:$0xff]  ;;  %v14420_v40 = vpack.c.bf16 %v4409_v61, %v4408_v20  ;;  %vm17172_vm7 = vmmov %vm17118_vm0  ;;  %v4693_v55 = vld [vmem:[#allocation3 + $0x19] sm:$0xff] }
 0x67c   : > { %4384 = vst.msk [vmem:[#allocation3 + $0x151] sm:$0xff] %vm17159_vm8, %v4310_v31  ;;  %10532 = vmatmul.mubr.msk.bf16.gmra.mrb[8].mxu1 %vm17166_vm1, %v14396_v33  ;;  %v4411_v43 = vld [vmem:[#allocation3 + $0xf8] sm:$0xff]  ;;  %vm17173_vm8 = vmmov %vm17118_vm0  ;;  %v4707_v11 = vld [vmem:[#allocation3 + $0xc1] sm:$0xff] }
 0x67d   : > { %4385 = vst.msk [vmem:[#allocation3 + $0x159] sm:$0xff] %vm17160_vm9, %v4311_v42  ;;  %10535 = vmatprep.mubr.msk.bf16.mxu1 %vm17167_vm2, %v14398_v9  ;;  %v14422_v6 = vpack.c.bf16 %v4411_v43, %v4410_v7  ;;  %v4412_v59 = vld [vmem:[#allocation3 + $0x108] sm:$0xff]  ;;  %vm17174_vm9 = vmmov %vm17118_vm0  ;;  %v4695_v31 = vld [vmem:[#allocation3 + $0x31] sm:$0xff]  ;;  %v14449_v42 = vpack.c.bf16 %v4694_v35, %v4693_v55  ;;  %v14482_v17 = vpack.c.bf16 %v4708_v28, %v4707_v11 }
 0x67e   : > { %4386 = vst.msk [vmem:[#allocation3 + $0x169] sm:$0xff] %vm17161_vm4, %v4312_v44  ;;  %v4413_v21 = vld [vmem:[#allocation3 + $0x110] sm:$0xff]  ;;  %vm17175_vm4 = vmmov %vm17118_vm0  ;;  %v14456_v44 = vpack.c.bf16 %v4696_v34, %v4695_v31  ;;  %v4709_v45 = vld [vmem:[#allocation3 + $0xd9] sm:$0xff] }
 0x67f   : > { %4387 = vst.msk [vmem:[#allocation3 + $0x171] sm:$0xff] %vm17162_vm5, %v4313_v60  ;;  %v4414_v27 = vld [vmem:[#allocation3 + $0x120] sm:$0xff]  ;;  %v14428_v51 = vpack.c.bf16 %v4413_v21, %v4412_v59  ;;  %vm17176_vm5 = vmmov %vm17118_vm0  ;;  %v4698_v60 = vld [vmem:[#allocation3 + $0x51] sm:$0xff] }
 0x680   : > { %4388 = vst.msk [vmem:[#allocation3 + $0x181] sm:$0xff] %vm17163_vm13, %v4314_v56  ;;  %v4415_v58 = vld [vmem:[#allocation3 + $0x128] sm:$0xff]  ;;  %vm17177_vm13 = vmmov %vm17118_vm0  ;;  %v14464_v57 = vpack.c.bf16 %v4698_v60, %v4697_v16  ;;  %v4711_v8 = vld [vmem:[#allocation3 + $0xf1] sm:$0xff] }
 0x681   : > { %4389 = vst.msk [vmem:[#allocation3 + $0x189] sm:$0xff] %vm17164_vm14, %v4315_v49  ;;  %v14430_v37 = vpack.c.bf16 %v4415_v58, %v4414_v27  ;;  %v4416_v10 = vld [vmem:[#allocation3 + $0x138] sm:$0xff]  ;;  %vm17178_vm14 = vmmov %vm17118_vm0  ;;  %v4700_v56 = vld [vmem:[#allocation3 + $0x69] sm:$0xff] }
 0x682   : > { %v4417_v32 = vld [vmem:[#allocation3 + $0x140] sm:$0xff]  ;;  %vm17180_vm1 = vmmov %vm17118_vm0  ;;  %v14466_v49 = vpack.c.bf16 %v4700_v56, %v4699_v4  ;;  %v4713_v20 = vld [vmem:[#allocation3 + $0x109] sm:$0xff] }
 0x683   : > { %v4418_v13 = vld [vmem:[#allocation3 + $0x150] sm:$0xff]  ;;  %v14436_v15 = vpack.c.bf16 %v4417_v32, %v4416_v10  ;;  %vm17181_vm2 = vmmov %vm17118_vm0  ;;  %v4710_v5 = vld [vmem:[#allocation3 + $0xe1] sm:$0xff] }
 0x684   : > { %10536 = vmatmul.mubr.msk.bf16.gmra.mrb[12].mxu1 %vm17168_vm3, %v14404_v29  ;;  %v4419_v3 = vld [vmem:[#allocation3 + $0x158] sm:$0xff]  ;;  %vm17182_vm3 = vmmov %vm17118_vm0  ;;  %v14488_v63 = vpack.c.bf16 %v4710_v5, %v4709_v45  ;;  %v4715_v7 = vld [vmem:[#allocation3 + $0x121] sm:$0xff] }
 0x685   : > { %10539 = vmatprep.mubr.msk.bf16.mxu1 %vm17169_vm10, %v14406_v23  ;;  %v14438_v53 = vpack.c.bf16 %v4419_v3, %v4418_v13  ;;  %v4420_v26 = vld [vmem:[#allocation3 + $0x168] sm:$0xff]  ;;  %vm17183_vm10 = vmmov %vm17118_vm0  ;;  %v4712_v48 = vld [vmem:[#allocation3 + $0xf9] sm:$0xff] }
 0x686   : > { %v4421_v14 = vld [vmem:[#allocation3 + $0x170] sm:$0xff]  ;;  %v14490_v1 = vpack.c.bf16 %v4712_v48, %v4711_v8  ;;  %v4717_v27 = vld [vmem:[#allocation3 + $0x139] sm:$0xff]  ;;  %v4718_v58 = vld [vmem:[#allocation3 + $0x141] sm:$0xff] }
 0x687   : > { %v14444_v47 = vpack.c.bf16 %v4421_v14, %v4420_v26  ;;  %v4714_v61 = vld [vmem:[#allocation3 + $0x111] sm:$0xff]  ;;  %v4716_v43 = vld [vmem:[#allocation3 + $0x129] sm:$0xff]  ;;  %v4720_v32 = vld [vmem:[#allocation3 + $0x159] sm:$0xff]  ;;  %v14504_v13 = vpack.c.bf16 %v4718_v58, %v4717_v27 }
 0x688   : > { %v14496_v59 = vpack.c.bf16 %v4714_v61, %v4713_v20  ;;  %v14498_v21 = vpack.c.bf16 %v4716_v43, %v4715_v7  ;;  %v4719_v10 = vld [vmem:[#allocation3 + $0x151] sm:$0xff]  ;;  %v4989_v18 = vld [vmem:[#allocation3 + $0x2] sm:$0xff]  ;;  %v4991_v35 = vld [vmem:[#allocation3 + $0x1a] sm:$0xff] }
 0x689   : > { %v14506_v3 = vpack.c.bf16 %v4720_v32, %v4719_v10  ;;  %v4990_v36 = vld [vmem:[#allocation3 + $0xa] sm:$0xff]  ;;  %v4992_v31 = vld [vmem:[#allocation3 + $0x22] sm:$0xff]  ;;  %v4993_v34 = vld [vmem:[#allocation3 + $0x32] sm:$0xff] }
 0x68a   : > { %v4721_v26 = vld [vmem:[#allocation3 + $0x169] sm:$0xff]  ;;  %v4722_v14 = vld [vmem:[#allocation3 + $0x171] sm:$0xff]  ;;  %v4994_v16 = vld [vmem:[#allocation3 + $0x3a] sm:$0xff]  ;;  %v14517_v60 = vpack.c.bf16 %v4992_v31, %v4991_v35 }
 0x68b   : > { %v14512_v55 = vpack.c.bf16 %v4722_v14, %v4721_v26  ;;  %v11492_v4 = vld [vmem:[%s16613_s2 + $0x20] sm:$0xff]   ;;  %v14522_v56 = vpack.c.bf16 %v4994_v16, %v4993_v34  ;;  %v4997_v22 = vld [vmem:[#allocation3 + $0x62] sm:$0xff]  ;;  %v4999_v11 = vld [vmem:[#allocation3 + $0x7a] sm:$0xff] }
 0x68c   : > { %10540 = vmatmul.mubr.msk.bf16.gmra.mrb[16].mxu1 %vm17170_vm11, %v14412_v19  ;;  %vm17184_vm11 = vmmov %vm17118_vm0  ;;  %v4998_v46 = vld [vmem:[#allocation3 + $0x6a] sm:$0xff]  ;;  %v5001_v28 = vld [vmem:[#allocation3 + $0x92] sm:$0xff] }
 0x68d   : > { %10543 = vmatprep.mubr.msk.bf16.mxu1 %vm17171_vm6, %v14414_v62  ;;  %vm17185_vm6 = vmmov %vm17118_vm0  ;;  %v14531_v54 = vpack.c.bf16 %v4998_v46, %v4997_v22  ;;  %v5002_v45 = vld [vmem:[#allocation3 + $0x9a] sm:$0xff]  ;;  %v5003_v48 = vld [vmem:[#allocation3 + $0xaa] sm:$0xff] }
 0x68e   : > { %v14539_v8 = vpack.c.bf16 %v5002_v45, %v5001_v28  ;;  %v5004_v20 = vld [vmem:[#allocation3 + $0xb2] sm:$0xff]  ;;  %v5005_v61 = vld [vmem:[#allocation3 + $0xc2] sm:$0xff]  ;;  %v5006_v7 = vld [vmem:[#allocation3 + $0xca] sm:$0xff] }
 0x68f   : > { %v14545_v43 = vpack.c.bf16 %v5004_v20, %v5003_v48  ;;  %v14547_v27 = vpack.c.bf16 %v5006_v7, %v5005_v61  ;;  %v5007_v58 = vld [vmem:[#allocation3 + $0xda] sm:$0xff]  ;;  %v5008_v10 = vld [vmem:[#allocation3 + $0xe2] sm:$0xff]  ;;  %v5009_v32 = vld [vmem:[#allocation3 + $0xf2] sm:$0xff] }
 0x690   : > { %v5011_v14 = vld [vmem:[#allocation3 + $0x10a] sm:$0xff]  ;;  %v5013_v35 = vld [vmem:[#allocation3 + $0x122] sm:$0xff]  ;;  %v5017_v22 = vld [vmem:[#allocation3 + $0x152] sm:$0xff] }
 0x691   : > { %v5014_v31 = vld [vmem:[#allocation3 + $0x12a] sm:$0xff]  ;;  %v5018_v46 = vld [vmem:[#allocation3 + $0x15a] sm:$0xff]  ;;  %v5020_v45 = vld [vmem:[#allocation3 + $0x172] sm:$0xff] }
 0x692   : > { %v14563_v16 = vpack.c.bf16 %v5014_v31, %v5013_v35  ;;  %v5019_v28 = vld [vmem:[#allocation3 + $0x16a] sm:$0xff]  ;;  %v11493_v20 = vld [vmem:[%s16613_s2 + $0x28] sm:$0xff]   ;;  %v11494_v7 = vld [vmem:[%s16613_s2 + $0x30] sm:$0xff]  }
 0x693   : > { %v14577_v48 = vpack.c.bf16 %v5020_v45, %v5019_v28 }
 0x694   : > { %10544 = vmatmul.mubr.msk.bf16.gmra.mrb[20].mxu1 %vm17172_vm7, %v14420_v40  ;;  %vm17186_vm7 = vmmov %vm17118_vm0 }
 0x695   : > { %10547 = vmatprep.mubr.msk.bf16.mxu1 %vm17173_vm8, %v14422_v6  ;;  %vm17187_vm8 = vmmov %vm17118_vm0 }
 0x69c   : > { %10548 = vmatmul.mubr.msk.bf16.gmra.mrb[24].mxu1 %vm17174_vm9, %v14428_v51  ;;  %vm17188_vm9 = vmmov %vm17118_vm0 }
 0x69d   : > { %10551 = vmatprep.mubr.msk.bf16.mxu1 %vm17175_vm4, %v14430_v37  ;;  %vm17189_vm4 = vmmov %vm17118_vm0 }
 0x6a4   : > { %10552 = vmatmul.mubr.msk.bf16.gmra.mrb[28].mxu1 %vm17176_vm5, %v14436_v15  ;;  %vm17190_vm5 = vmmov %vm17118_vm0 }
 0x6a5   : > { %10555 = vmatprep.mubr.msk.bf16.mxu1 %vm17177_vm13, %v14438_v53  ;;  %vm17191_vm13 = vmmov %vm17118_vm0 }
 0x6ac   : > { %10556 = vmatmul.mubr.msk.bf16.gmra.mrb[32].mxu1 %vm17178_vm14, %v14444_v47  ;;  %vm17192_vm14 = vmmov %vm17118_vm0 }
 0x6ad   : > { %10561 = vmatprep.mubr.msk.bf16.mxu1 %vm17179_vm15, %v4723_v24  ;;  %v5021_v24 = vpack.c.bf16 %v4990_v36, %v4989_v18  ;;  %vm17193_vm15 = vmmov %vm17118_vm0  ;;  %v5010_v18 = vld [vmem:[#allocation3 + $0xfa] sm:$0xff]  ;;  %v14553_v36 = vpack.c.bf16 %v5008_v10, %v5007_v58  ;;  %v5616_v58 = vld [vmem:[#allocation3 + $0x189] sm:$0xff] }
 0x6ae   : > { %v14555_v26 = vpack.c.bf16 %v5010_v18, %v5009_v32  ;;  %v11495_v32 = vld [vmem:[%s16613_s2 + $0x38] sm:$0xff]  }
 0x6af   : > { %v5914_v18 = vld [vmem:[#allocation3 + $0x18a] sm:$0xff] }
 0x6b4   : > { %10562 = vmatmul.mubr.msk.bf16.vlgmr.msra.gmra.mrb[4].mxu1 %vm17118_vm0, %v14449_v42 }
 0x6b5   : > { %10594 = vmatpush3.bf16.msra.mxu1 %v14386_v30  ;;  %10565 = vmatprep.mubr.msk.bf16.mxu1 %vm17180_vm1, %v14456_v44  ;;  %v14472_v30 = vpack.c.bf16 %v4702_v25, %v4701_v38  ;;  %vm17194_vm1 = vmmov %vm17118_vm0  ;;  %v4995_v38 = vld [vmem:[#allocation3 + $0x4a] sm:$0xff]  ;;  %v4996_v25 = vld [vmem:[#allocation3 + $0x52] sm:$0xff] }
 0x6b6   : > { %10627 = vmatprep.subr.bf16.mxu1 %v14454_v12  ;;  %v14529_v39 = vpack.c.bf16 %v4996_v25, %v4995_v38  ;;  %v5015_v38 = vld [vmem:[#allocation3 + $0x13a] sm:$0xff]  ;;  %v5016_v25 = vld [vmem:[#allocation3 + $0x142] sm:$0xff] }
 0x6bc   : > { %10566 = vmatmul.mubr.msk.bf16.gmra.mrb[8].mxu1 %vm17181_vm2, %v14464_v57  ;;  %vm17195_vm2 = vmmov %vm17118_vm0 }
 0x6bd   : > { %10569 = vmatprep.mubr.msk.bf16.mxu1 %vm17182_vm3, %v14466_v49  ;;  %vm17196_vm3 = vmmov %vm17118_vm0 }
 0x6c4   : > { %10570 = vmatmul.mubr.msk.bf16.gmra.mrb[12].mxu1 %vm17183_vm10, %v14472_v30  ;;  %vm17197_vm10 = vmmov %vm17118_vm0 }
 0x6c5   : > { %10573 = vmatprep.mubr.msk.bf16.mxu1 %vm17184_vm11, %v14474_v52  ;;  %vm17198_vm11 = vmmov %vm17118_vm0 }
 0x6cc   : > { %10574 = vmatmul.mubr.msk.bf16.gmra.mrb[16].mxu1 %vm17185_vm6, %v14480_v41  ;;  %vm17199_vm6 = vmmov %vm17118_vm0 }
 0x6cd   : > { %10577 = vmatprep.mubr.msk.bf16.mxu1 %vm17186_vm7, %v14482_v17  ;;  %vm17200_vm7 = vmmov %vm17118_vm0 }
 0x6d4   : > { %10578 = vmatmul.mubr.msk.bf16.gmra.mrb[20].mxu1 %vm17187_vm8, %v14488_v63  ;;  %vm17201_vm8 = vmmov %vm17118_vm0 }
 0x6d5   : > { %10581 = vmatprep.mubr.msk.bf16.mxu1 %vm17188_vm9, %v14490_v1  ;;  %vm17202_vm9 = vmmov %vm17118_vm0 }
 0x6dc   : > { %10582 = vmatmul.mubr.msk.bf16.gmra.mrb[24].mxu1 %vm17189_vm4, %v14496_v59  ;;  %vm17203_vm4 = vmmov %vm17118_vm0 }
 0x6dd   : > { %10585 = vmatprep.mubr.msk.bf16.mxu1 %vm17190_vm5, %v14498_v21  ;;  %vm17204_vm5 = vmmov %vm17118_vm0 }
 0x6e4   : > { %10586 = vmatmul.mubr.msk.bf16.gmra.mrb[28].mxu1 %vm17191_vm13, %v14504_v13  ;;  %vm17205_vm13 = vmmov %vm17118_vm0 }
 0x6e5   : > { %10589 = vmatprep.mubr.msk.bf16.mxu1 %vm17192_vm14, %v14506_v3  ;;  %vm17206_vm14 = vmmov %vm17118_vm0 }
 0x6ec   : > { %10590 = vmatmul.mubr.msk.bf16.gmra.mrb[32].mxu1 %vm17193_vm15, %v14512_v55  ;;  %vm17207_vm15 = vmmov %vm17118_vm0 }
 0x6ed   : > { %10595 = vmatprep.mubr.msk.bf16.mxu1 %vm17118_vm0, %v5021_v24  ;;  %v5012_v24 = vld [vmem:[#allocation3 + $0x112] sm:$0xff] }
 0x6ee   : > { %v14561_v34 = vpack.c.bf16 %v5012_v24, %v5011_v14  ;;  %v11496_v24 = vld [vmem:[%s16613_s2 + $0x40] sm:$0xff]  }
 0x6f4   : > { %10596 = vmatmul.mubr.msk.bf16.vlgmr.msra.gmra.mrb[4].mxu1 %vm17194_vm1, %v14517_v60  ;;  %vm17208_vm1 = vmmov %vm17118_vm0 }
 0x6f5   : > { %10628 = vmatpush3.bf16.msra.mxu1 %v14454_v12  ;;  %10599 = vmatprep.mubr.msk.bf16.mxu1 %vm17195_vm2, %v14522_v56  ;;  %v5000_v12 = vld [vmem:[#allocation3 + $0x82] sm:$0xff]  ;;  %vm17209_vm2 = vmmov %vm17118_vm0 }
 0x6f6   : > { %10661 = vmatprep.subr.bf16.mxu1 %v11492_v4  ;;  %v14537_v5 = vpack.c.bf16 %v5000_v12, %v4999_v11  ;;  %v14569_v11 = vpack.c.bf16 %v5016_v25, %v5015_v38  ;;  %v14571_v12 = vpack.c.bf16 %v5018_v46, %v5017_v22 }
 0x6fc   : > { %10600 = vmatmul.mubr.msk.bf16.gmra.mrb[8].mxu1 %vm17196_vm3, %v14529_v39  ;;  %vm17210_vm3 = vmmov %vm17118_vm0 }
 0x6fd   : > { %10603 = vmatprep.mubr.msk.bf16.mxu1 %vm17197_vm10, %v14531_v54  ;;  %vm17211_vm10 = vmmov %vm17118_vm0 }
 0x704   : > { %10604 = vmatmul.mubr.msk.bf16.gmra.mrb[12].mxu1 %vm17198_vm11, %v14537_v5  ;;  %vm17212_vm11 = vmmov %vm17118_vm0 }
 0x705   : > { %10607 = vmatprep.mubr.msk.bf16.mxu1 %vm17199_vm6, %v14539_v8  ;;  %vm17213_vm6 = vmmov %vm17118_vm0 }
 0x70c   : > { %10608 = vmatmul.mubr.msk.bf16.gmra.mrb[16].mxu1 %vm17200_vm7, %v14545_v43  ;;  %vm17214_vm7 = vmmov %vm17118_vm0 }
 0x70d   : > { %10611 = vmatprep.mubr.msk.bf16.mxu1 %vm17201_vm8, %v14547_v27  ;;  %vm17215_vm8 = vmmov %vm17118_vm0 }
 0x714   : > { %10612 = vmatmul.mubr.msk.bf16.gmra.mrb[20].mxu1 %vm17202_vm9, %v14553_v36  ;;  %vm17216_vm9 = vmmov %vm17118_vm0 }
 0x715   : > { %10615 = vmatprep.mubr.msk.bf16.mxu1 %vm17203_vm4, %v14555_v26  ;;  %vm17217_vm4 = vmmov %vm17118_vm0 }
 0x71c   : > { %10616 = vmatmul.mubr.msk.bf16.gmra.mrb[24].mxu1 %vm17204_vm5, %v14561_v34  ;;  %vm17218_vm5 = vmmov %vm17118_vm0 }
 0x71d   : > { %10619 = vmatprep.mubr.msk.bf16.mxu1 %vm17205_vm13, %v14563_v16  ;;  %vm17219_vm13 = vmmov %vm17118_vm0 }
 0x724   : > { %10620 = vmatmul.mubr.msk.bf16.gmra.mrb[28].mxu1 %vm17206_vm14, %v14569_v11  ;;  %vm17220_vm14 = vmmov %vm17118_vm0 }
 0x725   : > { %10623 = vmatprep.mubr.msk.bf16.mxu1 %vm17207_vm15, %v14571_v12  ;;  %vm17221_vm15 = vmmov %vm17118_vm0 }
 0x72c   : > { %10624 = vmatmul.mubr.msk.bf16.gmra.mrb[32].mxu1 %vm17118_vm0, %v14577_v48 }
 0x72d   : > { %10629 = vmatprep.mubr.msk.bf16.mxu1 %vm17208_vm1, %v14379_v2  ;;  %v5317_v2 = vld [vmem:[#allocation3 + $0x180] sm:$0xff]  ;;  %vm17222_vm1 = vmmov %vm17118_vm0 }
 0x734   : > { %10630 = vmatmul.mubr.msk.bf16.vlgmr.msra.gmra.mrb[4].mxu1 %vm17209_vm2, %v14381_v0  ;;  %vm17223_vm2 = vmmov %vm17118_vm0 }
 0x735   : > { %10662 = vmatpush3.bf16.msra.mxu1 %v11492_v4  ;;  %10633 = vmatprep.mubr.msk.bf16.mxu1 %vm17210_vm3, %v14396_v33  ;;  %v5318_v4 = vld [vmem:[#allocation3 + $0x188] sm:$0xff]  ;;  %vm17224_vm3 = vmmov %vm17118_vm0 }
 0x736   : > { %10695 = vmatprep.subr.bf16.mxu1 %v11493_v20  ;;  %v14614_v61 = vpack.c.bf16 %v5318_v4, %v5317_v2 }
 0x73c   : > { %10634 = vmatmul.mubr.msk.bf16.gmra.mrb[8].mxu1 %vm17211_vm10, %v14398_v9  ;;  %vm17225_vm10 = vmmov %vm17118_vm0 }
 0x73d   : > { %10637 = vmatprep.mubr.msk.bf16.mxu1 %vm17212_vm11, %v14404_v29  ;;  %vm17226_vm11 = vmmov %vm17118_vm0 }
 0x744   : > { %10638 = vmatmul.mubr.msk.bf16.gmra.mrb[12].mxu1 %vm17213_vm6, %v14406_v23  ;;  %vm17227_vm6 = vmmov %vm17118_vm0 }
 0x745   : > { %10641 = vmatprep.mubr.msk.bf16.mxu1 %vm17214_vm7, %v14412_v19  ;;  %vm17228_vm7 = vmmov %vm17118_vm0 }
 0x74c   : > { %10642 = vmatmul.mubr.msk.bf16.gmra.mrb[16].mxu1 %vm17215_vm8, %v14414_v62  ;;  %vm17229_vm8 = vmmov %vm17118_vm0 }
 0x74d   : > { %10645 = vmatprep.mubr.msk.bf16.mxu1 %vm17216_vm9, %v14420_v40  ;;  %vm17230_vm9 = vmmov %vm17118_vm0 }
 0x754   : > { %10646 = vmatmul.mubr.msk.bf16.gmra.mrb[20].mxu1 %vm17217_vm4, %v14422_v6  ;;  %vm17231_vm4 = vmmov %vm17118_vm0 }
 0x755   : > { %10649 = vmatprep.mubr.msk.bf16.mxu1 %vm17218_vm5, %v14428_v51  ;;  %vm17232_vm5 = vmmov %vm17118_vm0 }
 0x75c   : > { %10650 = vmatmul.mubr.msk.bf16.gmra.mrb[24].mxu1 %vm17219_vm13, %v14430_v37  ;;  %vm17233_vm13 = vmmov %vm17118_vm0 }
 0x75d   : > { %10653 = vmatprep.mubr.msk.bf16.mxu1 %vm17220_vm14, %v14436_v15  ;;  %vm17234_vm14 = vmmov %vm17118_vm0 }
 0x764   : > { %10654 = vmatmul.mubr.msk.bf16.gmra.mrb[28].mxu1 %vm17221_vm15, %v14438_v53  ;;  %vm17235_vm15 = vmmov %vm17118_vm0 }
 0x765   : > { %10657 = vmatprep.mubr.msk.bf16.mxu1 %vm17118_vm0, %v14444_v47 }
 0x76c   : > { %10658 = vmatmul.mubr.msk.bf16.gmra.mrb[32].mxu1 %vm17222_vm1, %v14614_v61  ;;  %vm17236_vm1 = vmmov %vm17118_vm0 }
 0x76d   : > { %10663 = vmatprep.mubr.msk.bf16.mxu1 %vm17223_vm2, %v14449_v42  ;;  %v5615_v42 = vld [vmem:[#allocation3 + $0x181] sm:$0xff]  ;;  %vm17237_vm2 = vmmov %vm17118_vm0 }
 0x76e   : > { %v5632_v10 = vpack.c.bf16 %v5616_v58, %v5615_v42 }
 0x774   : > { %10664 = vmatmul.mubr.msk.bf16.vlgmr.msra.gmra.mrb[4].mxu1 %vm17224_vm3, %v14456_v44  ;;  %vm17238_vm3 = vmmov %vm17118_vm0 }
 0x775   : > { %10696 = vmatpush3.bf16.msra.mxu1 %v11493_v20  ;;  %10667 = vmatprep.mubr.msk.bf16.mxu1 %vm17225_vm10, %v14464_v57  ;;  %vm17239_vm10 = vmmov %vm17118_vm0 }
 0x776   : > { %10729 = vmatprep.subr.bf16.mxu1 %v11494_v7 }
 0x77c   : > { %10668 = vmatmul.mubr.msk.bf16.gmra.mrb[8].mxu1 %vm17226_vm11, %v14466_v49  ;;  %vm17240_vm11 = vmmov %vm17118_vm0 }
 0x77d   : > { %10671 = vmatprep.mubr.msk.bf16.mxu1 %vm17227_vm6, %v14472_v30  ;;  %vm17241_vm6 = vmmov %vm17118_vm0 }
 0x784   : > { %10672 = vmatmul.mubr.msk.bf16.gmra.mrb[12].mxu1 %vm17228_vm7, %v14474_v52  ;;  %vm17242_vm7 = vmmov %vm17118_vm0 }
 0x785   : > { %10675 = vmatprep.mubr.msk.bf16.mxu1 %vm17229_vm8, %v14480_v41  ;;  %vm17243_vm8 = vmmov %vm17118_vm0 }
 0x78c   : > { %10676 = vmatmul.mubr.msk.bf16.gmra.mrb[16].mxu1 %vm17230_vm9, %v14482_v17  ;;  %vm17244_vm9 = vmmov %vm17118_vm0 }
 0x78d   : > { %10679 = vmatprep.mubr.msk.bf16.mxu1 %vm17231_vm4, %v14488_v63  ;;  %vm17245_vm4 = vmmov %vm17118_vm0 }
 0x794   : > { %10680 = vmatmul.mubr.msk.bf16.gmra.mrb[20].mxu1 %vm17232_vm5, %v14490_v1  ;;  %vm17246_vm5 = vmmov %vm17118_vm0 }
 0x795   : > { %10683 = vmatprep.mubr.msk.bf16.mxu1 %vm17233_vm13, %v14496_v59  ;;  %vm17247_vm13 = vmmov %vm17118_vm0 }
 0x79c   : > { %10684 = vmatmul.mubr.msk.bf16.gmra.mrb[24].mxu1 %vm17234_vm14, %v14498_v21  ;;  %vm17248_vm14 = vmmov %vm17118_vm0 }
 0x79d   : > { %10687 = vmatprep.mubr.msk.bf16.mxu1 %vm17235_vm15, %v14504_v13  ;;  %vm17249_vm15 = vmmov %vm17118_vm0 }
 0x7a4   : > { %10688 = vmatmul.mubr.msk.bf16.gmra.mrb[28].mxu1 %vm17118_vm0, %v14506_v3 }
 0x7a5   : > { %10691 = vmatprep.mubr.msk.bf16.mxu1 %vm17236_vm1, %v14512_v55  ;;  %vm17250_vm1 = vmmov %vm17118_vm0 }
 0x7ac   : > { %10692 = vmatmul.mubr.msk.bf16.gmra.mrb[32].mxu1 %vm17237_vm2, %v5632_v10  ;;  %vm17251_vm2 = vmmov %vm17118_vm0 }
 0x7ad   : > { %10697 = vmatprep.mubr.msk.bf16.mxu1 %vm17238_vm3, %v14517_v60  ;;  %v5913_v60 = vld [vmem:[#allocation3 + $0x182] sm:$0xff]  ;;  %vm17252_vm3 = vmmov %vm17118_vm0 }
 0x7ae   : > { %v5930_v14 = vpack.c.bf16 %v5914_v18, %v5913_v60 }
 0x7b4   : > { %10698 = vmatmul.mubr.msk.bf16.vlgmr.msra.gmra.mrb[4].mxu1 %vm17239_vm10, %v14522_v56  ;;  %vm17253_vm10 = vmmov %vm17118_vm0 }
 0x7b5   : > { %10730 = vmatpush3.bf16.msra.mxu1 %v11494_v7  ;;  %10701 = vmatprep.mubr.msk.bf16.mxu1 %vm17240_vm11, %v14529_v39  ;;  %vm17254_vm11 = vmmov %vm17118_vm0 }
 0x7b6   : > { %10763 = vmatprep.subr.bf16.mxu1 %v11495_v32 }
 0x7bc   : > { %10702 = vmatmul.mubr.msk.bf16.gmra.mrb[8].mxu1 %vm17241_vm6, %v14531_v54  ;;  %vm17255_vm6 = vmmov %vm17118_vm0 }
 0x7bd   : > { %10705 = vmatprep.mubr.msk.bf16.mxu1 %vm17242_vm7, %v14537_v5  ;;  %vm17256_vm7 = vmmov %vm17118_vm0 }
 0x7c4   : > { %10706 = vmatmul.mubr.msk.bf16.gmra.mrb[12].mxu1 %vm17243_vm8, %v14539_v8  ;;  %vm17257_vm8 = vmmov %vm17118_vm0 }
 0x7c5   : > { %10709 = vmatprep.mubr.msk.bf16.mxu1 %vm17244_vm9, %v14545_v43  ;;  %vm17258_vm9 = vmmov %vm17118_vm0 }
 0x7cc   : > { %10710 = vmatmul.mubr.msk.bf16.gmra.mrb[16].mxu1 %vm17245_vm4, %v14547_v27  ;;  %vm17259_vm4 = vmmov %vm17118_vm0 }
 0x7cd   : > { %10713 = vmatprep.mubr.msk.bf16.mxu1 %vm17246_vm5, %v14553_v36  ;;  %vm17260_vm5 = vmmov %vm17118_vm0 }
 0x7d4   : > { %10714 = vmatmul.mubr.msk.bf16.gmra.mrb[20].mxu1 %vm17247_vm13, %v14555_v26  ;;  %vm17261_vm13 = vmmov %vm17118_vm0 }
 0x7d5   : > { %10717 = vmatprep.mubr.msk.bf16.mxu1 %vm17248_vm14, %v14561_v34  ;;  %vm17262_vm14 = vmmov %vm17118_vm0 }
 0x7dc   : > { %10718 = vmatmul.mubr.msk.bf16.gmra.mrb[24].mxu1 %vm17249_vm15, %v14563_v16  ;;  %vm17263_vm15 = vmmov %vm17118_vm0 }
 0x7dd   : > { %10721 = vmatprep.mubr.msk.bf16.mxu1 %vm17118_vm0, %v14569_v11 }
 0x7e4   : > { %10722 = vmatmul.mubr.msk.bf16.gmra.mrb[28].mxu1 %vm17250_vm1, %v14571_v12  ;;  %vm17264_vm1 = vmmov %vm17118_vm0 }
 0x7e5   : > { %10725 = vmatprep.mubr.msk.bf16.mxu1 %vm17251_vm2, %v14577_v48  ;;  %vm17265_vm2 = vmmov %vm17118_vm0 }
 0x7ec   : > { %10726 = vmatmul.mubr.msk.bf16.gmra.mrb[32].mxu1 %vm17252_vm3, %v5930_v14  ;;  %vm17266_vm3 = vmmov %vm17118_vm0 }
 0x7ed   : > { %10731 = vmatprep.mubr.msk.bf16.mxu1 %vm17253_vm10, %v14381_v0  ;;  %v6212_v0 = vld [vmem:[#allocation3 + $0x198] sm:$0xff]  ;;  %vm17267_vm10 = vmmov %vm17118_vm0 }
 0x7f4   : > { %10732 = vmatmul.mubr.msk.bf16.vlgmr.msra.gmra.mrb[4].mxu1 %vm17254_vm11, %v14396_v33  ;;  %v6213_v33 = vld [vmem:[#allocation3 + $0x1a0] sm:$0xff]  ;;  %vm17268_vm11 = vmmov %vm17118_vm0 }
 0x7f5   : > { %10764 = vmatpush3.bf16.msra.mxu1 %v11495_v32  ;;  %10735 = vmatprep.mubr.msk.bf16.mxu1 %vm17255_vm6, %v14398_v9  ;;  %v6229_v9 = vpack.c.bf16 %v6213_v33, %v6212_v0  ;;  %vm17269_vm6 = vmmov %vm17118_vm0 }
 0x7f6   : > { %10797 = vmatprep.subr.bf16.mxu1 %v11496_v24 }
 0x7fc   : > { %10736 = vmatmul.mubr.msk.bf16.gmra.mrb[8].mxu1 %vm17256_vm7, %v14404_v29  ;;  %vm17270_vm7 = vmmov %vm17118_vm0  ;;  %v6510_v29 = vld [vmem:[#allocation3 + $0x199] sm:$0xff] }
 0x7fd   : > { %10739 = vmatprep.mubr.msk.bf16.mxu1 %vm17257_vm8, %v14406_v23  ;;  %vm17271_vm8 = vmmov %vm17118_vm0  ;;  %v6511_v23 = vld [vmem:[#allocation3 + $0x1a1] sm:$0xff] }
 0x804   : > { %10740 = vmatmul.mubr.msk.bf16.gmra.mrb[12].mxu1 %vm17258_vm9, %v14412_v19  ;;  %vm17272_vm9 = vmmov %vm17118_vm0  ;;  %v6527_v19 = vpack.c.bf16 %v6511_v23, %v6510_v29 }
 0x805   : > { %10743 = vmatprep.mubr.msk.bf16.mxu1 %vm17259_vm4, %v14414_v62  ;;  %vm17273_vm4 = vmmov %vm17118_vm0  ;;  %v6808_v62 = vld [vmem:[#allocation3 + $0x19a] sm:$0xff] }
 0x80c   : > { %10744 = vmatmul.mubr.msk.bf16.gmra.mrb[16].mxu1 %vm17260_vm5, %v14420_v40  ;;  %vm17274_vm5 = vmmov %vm17118_vm0  ;;  %v6809_v40 = vld [vmem:[#allocation3 + $0x1a2] sm:$0xff] }
 0x80d   : > { %10747 = vmatprep.mubr.msk.bf16.mxu1 %vm17261_vm13, %v14422_v6  ;;  %vm17275_vm13 = vmmov %vm17118_vm0  ;;  %v6825_v6 = vpack.c.bf16 %v6809_v40, %v6808_v62 }
 0x814   : > { %10748 = vmatmul.mubr.msk.bf16.gmra.mrb[20].mxu1 %vm17262_vm14, %v14428_v51  ;;  %vm17276_vm14 = vmmov %vm17118_vm0  ;;  %v14783_v51 = vld [vmem:[%s16614_s3 + $0x3] ss:$0 sm:$0xff] }
 0x815   : > { %10751 = vmatprep.mubr.msk.bf16.mxu1 %vm17263_vm15, %v14430_v37  ;;  %vm17277_vm15 = vmmov %vm17118_vm0 }
 0x81c   : > { %10752 = vmatmul.mubr.msk.bf16.gmra.mrb[24].mxu1 %vm17118_vm0, %v14436_v15 }
 0x81d   : > { %10755 = vmatprep.mubr.msk.bf16.mxu1 %vm17264_vm1, %v14438_v53  ;;  %vm17278_vm1 = vmmov %vm17118_vm0 }
 0x824   : > { %10756 = vmatmul.mubr.msk.bf16.gmra.mrb[28].mxu1 %vm17265_vm2, %v14444_v47  ;;  %vm17279_vm2 = vmmov %vm17118_vm0 }
 0x825   : > { %10759 = vmatprep.mubr.msk.bf16.mxu1 %vm17266_vm3, %v14614_v61  ;;  %vm17280_vm3 = vmmov %vm17118_vm0 }
 0x82c   : > { %10760 = vmatmul.mubr.msk.bf16.gmra.mrb[32].mxu1 %vm17267_vm10, %v6229_v9  ;;  %vm17281_vm10 = vmmov %vm17118_vm0 }
 0x82d   : > { %10765 = vmatprep.mubr.msk.bf16.mxu1 %vm17268_vm11, %v14456_v44  ;;  %vm17282_vm11 = vmmov %vm17118_vm0 }
 0x834   : > { %10766 = vmatmul.mubr.msk.bf16.vlgmr.msra.gmra.mrb[4].mxu1 %vm17269_vm6, %v14464_v57  ;;  %vm17283_vm6 = vmmov %vm17118_vm0 }
 0x835   : > { %10798 = vmatpush3.bf16.msra.mxu1 %v11496_v24  ;;  %10769 = vmatprep.mubr.msk.bf16.mxu1 %vm17270_vm7, %v14466_v49  ;;  %vm17284_vm7 = vmmov %vm17118_vm0 }
 0x83c   : > { %10770 = vmatmul.mubr.msk.bf16.gmra.mrb[8].mxu1 %vm17271_vm8, %v14472_v30  ;;  %vm17285_vm8 = vmmov %vm17118_vm0 }
 0x83d   : > { %10773 = vmatprep.mubr.msk.bf16.mxu1 %vm17272_vm9, %v14474_v52  ;;  %vm17286_vm9 = vmmov %vm17118_vm0 }
 0x844   : > { %10774 = vmatmul.mubr.msk.bf16.gmra.mrb[12].mxu1 %vm17273_vm4, %v14480_v41  ;;  %vm17287_vm4 = vmmov %vm17118_vm0 }
 0x845   : > { %10777 = vmatprep.mubr.msk.bf16.mxu1 %vm17274_vm5, %v14482_v17  ;;  %vm17288_vm5 = vmmov %vm17118_vm0 }
 0x84c   : > { %10778 = vmatmul.mubr.msk.bf16.gmra.mrb[16].mxu1 %vm17275_vm13, %v14488_v63  ;;  %vm17289_vm13 = vmmov %vm17118_vm0 }
 0x84d   : > { %10781 = vmatprep.mubr.msk.bf16.mxu1 %vm17276_vm14, %v14490_v1  ;;  %vm17290_vm14 = vmmov %vm17118_vm0 }
 0x854   : > { %10782 = vmatmul.mubr.msk.bf16.gmra.mrb[20].mxu1 %vm17277_vm15, %v14496_v59  ;;  %vm17291_vm15 = vmmov %vm17118_vm0 }
 0x855   : > { %10785 = vmatprep.mubr.msk.bf16.mxu1 %vm17118_vm0, %v14498_v21 }
 0x85c   : > { %10786 = vmatmul.mubr.msk.bf16.gmra.mrb[24].mxu1 %vm17278_vm1, %v14504_v13  ;;  %vm17292_vm1 = vmmov %vm17118_vm0 }
 0x85d   : > { %10789 = vmatprep.mubr.msk.bf16.mxu1 %vm17279_vm2, %v14506_v3  ;;  %vm17293_vm2 = vmmov %vm17118_vm0 }
 0x864   : > { %10790 = vmatmul.mubr.msk.bf16.gmra.mrb[28].mxu1 %vm17280_vm3, %v14512_v55  ;;  %vm17294_vm3 = vmmov %vm17118_vm0 }
 0x865   : > { %10793 = vmatprep.mubr.msk.bf16.mxu1 %vm17281_vm10, %v5632_v10  ;;  %vm17295_vm10 = vmmov %vm17118_vm0 }
 0x86c   : > { %10794 = vmatmul.mubr.msk.bf16.gmra.mrb[32].mxu1 %vm17282_vm11, %v6527_v19  ;;  %vm17296_vm11 = vmmov %vm17118_vm0 }
 0x86d   : > { %10799 = vmatprep.mubr.msk.bf16.mxu1 %vm17283_vm6, %v14522_v56  ;;  %vm17297_vm6 = vmmov %vm17118_vm0 }
 0x874   : > { %10800 = vmatmul.mubr.msk.bf16.vlgmr.msra.gmra.mrb[4].mxu1 %vm17284_vm7, %v14529_v39  ;;  %vm17298_vm7 = vmmov %vm17118_vm0 }
 0x875   : > { %10803 = vmatprep.mubr.msk.bf16.mxu1 %vm17285_vm8, %v14531_v54  ;;  %vm17299_vm8 = vmmov %vm17118_vm0 }
 0x87c   : > { %10804 = vmatmul.mubr.msk.bf16.gmra.mrb[8].mxu1 %vm17286_vm9, %v14537_v5  ;;  %vm17300_vm9 = vmmov %vm17118_vm0 }
 0x87d   : > { %10807 = vmatprep.mubr.msk.bf16.mxu1 %vm17287_vm4, %v14539_v8  ;;  %vm17301_vm4 = vmmov %vm17118_vm0 }
 0x884   : > { %10808 = vmatmul.mubr.msk.bf16.gmra.mrb[12].mxu1 %vm17288_vm5, %v14545_v43  ;;  %vm17302_vm5 = vmmov %vm17118_vm0 }
 0x885   : > { %10811 = vmatprep.mubr.msk.bf16.mxu1 %vm17289_vm13, %v14547_v27  ;;  %vm17303_vm13 = vmmov %vm17118_vm0 }
 0x88c   : > { %10812 = vmatmul.mubr.msk.bf16.gmra.mrb[16].mxu1 %vm17290_vm14, %v14553_v36  ;;  %vm17304_vm14 = vmmov %vm17118_vm0 }
 0x88d   : > { %10815 = vmatprep.mubr.msk.bf16.mxu1 %vm17291_vm15, %v14555_v26  ;;  %vm17305_vm15 = vmmov %vm17118_vm0 }
 0x894   : > { %10816 = vmatmul.mubr.msk.bf16.gmra.mrb[20].mxu1 %vm17118_vm0, %v14561_v34 }
 0x895   : > { %10819 = vmatprep.mubr.msk.bf16.mxu1 %vm17292_vm1, %v14563_v16  ;;  %vm17306_vm1 = vmmov %vm17118_vm0 }
 0x89c   : > { %10820 = vmatmul.mubr.msk.bf16.gmra.mrb[24].mxu1 %vm17293_vm2, %v14569_v11  ;;  %vm17307_vm2 = vmmov %vm17118_vm0 }
 0x89d   : > { %10823 = vmatprep.mubr.msk.bf16.mxu1 %vm17294_vm3, %v14571_v12  ;;  %vm17308_vm3 = vmmov %vm17118_vm0 }
 0x8a4   : > { %10824 = vmatmul.mubr.msk.bf16.gmra.mrb[28].mxu1 %vm17295_vm10, %v14577_v48  ;;  %vm17309_vm10 = vmmov %vm17118_vm0 }
 0x8a5   : > { %10827 = vmatprep.mubr.msk.bf16.mxu1 %vm17296_vm11, %v5930_v14  ;;  %vm17310_vm11 = vmmov %vm17118_vm0 }
 0x8ac   : > { %10828 = vmatmul.mubr.msk.bf16.gmra.mrb[32].mxu1 %vm17297_vm6, %v6825_v6  ;;  %vm17311_vm6 = vmmov %vm17118_vm0 }
 0x947   : > { %v10801_v37 = vpop.f32.mrb[4].mxu1 }
 0x948   : > { %v6917_v15 = vpop.f32.mrb[5].mxu1  ;;  %v14789_v57 = vadd.f32 %v10801_v37, %v14783_v51 }
 0x949   : > { %v14786_v53 = vadd.f32 %v14783_v51, %v6917_v15  ;;  %v10802_v47 = vpop.f32.mrb[6].mxu1 }
 0x94a   : > { %v6920_v44 = vpop.f32.mrb[7].mxu1  ;;  %v14797_v52 = vadd.f32 %v10802_v47, %v14783_v51  ;;  %v7079_v63 = vsel %vm17300_vm9, %v14789_v57, 0.0  ;;  %vm17314_vm9 = vmmov %vm17118_vm0 }
 0x94b   : > { %v14792_v49 = vadd.f32 %v14783_v51, %v6920_v44  ;;  %v7076_v30 = vsel %vm17298_vm7, %v14786_v53, 0.0  ;;  %vm17312_vm7 = vmmov %vm17118_vm0 }
 0x94c   : > { %v7081_v13 = vsel %vm17301_vm4, %v14797_v52, 0.0  ;;  %vm17315_vm4 = vmmov %vm17118_vm0 }
 0x94d   : > { %v7077_v41 = vsel %vm17299_vm8, %v14792_v49, 0.0  ;;  %vm17313_vm8 = vmmov %vm17118_vm0 }
 0x94e   : > { %v7078_v17 = vadd.f32 %v7077_v41, %v7076_v30 }
 0x94f   : > { %v10805_v1 = vpop.f32.mrb[8].mxu1 }
 0x950   : > { %v7080_v59 = vadd.f32 %v7079_v63, %v7078_v17  ;;  %v6933_v21 = vpop.f32.mrb[9].mxu1  ;;  %v14809_v54 = vadd.f32 %v10805_v1, %v14783_v51 }
 0x951   : > { %v14806_v3 = vadd.f32 %v14783_v51, %v6933_v21  ;;  %v10806_v55 = vpop.f32.mrb[10].mxu1 }
 0x952   : > { %v7082_v56 = vadd.f32 %v7081_v13, %v7080_v59  ;;  %v6936_v39 = vpop.f32.mrb[11].mxu1  ;;  %v14817_v27 = vadd.f32 %v10806_v55, %v14783_v51  ;;  %v7087_v35 = vsel %vm17304_vm14, %v14809_v54, 0.0  ;;  %vm17318_vm14 = vmmov %vm17118_vm0 }
 0x953   : > { %v7083_v5 = vsel %vm17302_vm5, %v14806_v3, 0.0  ;;  %v14814_v8 = vadd.f32 %v14783_v51, %v6936_v39  ;;  %vm17316_vm5 = vmmov %vm17118_vm0 }
 0x954   : > { %v7084_v43 = vadd.f32 %v7083_v5, %v7082_v56  ;;  %v7089_v38 = vsel %vm17305_vm15, %v14817_v27, 0.0  ;;  %vm17319_vm15 = vmmov %vm17118_vm0 }
 0x955   : > { %v7085_v36 = vsel %vm17303_vm13, %v14814_v8, 0.0  ;;  %vm17317_vm13 = vmmov %vm17118_vm0 }
 0x956   : > { %v7086_v26 = vadd.f32 %v7085_v36, %v7084_v43 }
 0x957   : > { %v10809_v31 = vpop.f32.mrb[12].mxu1 }
 0x958   : > { %v7088_v34 = vadd.f32 %v7087_v35, %v7086_v26  ;;  %v6949_v16 = vpop.f32.mrb[13].mxu1  ;;  %v14829_v12 = vadd.f32 %v10809_v31, %v14783_v51 }
 0x959   : > { %v14826_v25 = vadd.f32 %v14783_v51, %v6949_v16  ;;  %v10810_v22 = vpop.f32.mrb[14].mxu1 }
 0x95a   : > { %v7090_v46 = vadd.f32 %v7089_v38, %v7088_v34  ;;  %v6952_v11 = vpop.f32.mrb[15].mxu1  ;;  %v14837_v20 = vadd.f32 %v10810_v22, %v14783_v51  ;;  %v7095_v61 = vsel %vm17307_vm2, %v14829_v12, 0.0  ;;  %vm17321_vm2 = vmmov %vm17118_vm0 }
 0x95b   : > { %v7091_v28 = vsel %vm17118_vm0, %v14826_v25, 0.0  ;;  %v14834_v45 = vadd.f32 %v14783_v51, %v6952_v11 }
 0x95c   : > { %v7092_v48 = vadd.f32 %v7091_v28, %v7090_v46  ;;  %v7097_v10 = vsel %vm17308_vm3, %v14837_v20, 0.0  ;;  %vm17322_vm3 = vmmov %vm17118_vm0 }
 0x95d   : > { %v7093_v2 = vsel %vm17306_vm1, %v14834_v45, 0.0  ;;  %vm17320_vm1 = vmmov %vm17118_vm0 }
 0x95e   : > { %v7094_v4 = vadd.f32 %v7093_v2, %v7092_v48 }
 0x95f   : > { %v10813_v7 = vpop.f32.mrb[16].mxu1 }
 0x960   : > { %v7096_v42 = vadd.f32 %v7095_v61, %v7094_v4  ;;  %v6965_v58 = vpop.f32.mrb[17].mxu1  ;;  %v14849_v24 = vadd.f32 %v10813_v7, %v14783_v51 }
 0x961   : > { %v14846_v32 = vadd.f32 %v14783_v51, %v6965_v58  ;;  %v10814_v60 = vpop.f32.mrb[18].mxu1 }
 0x962   : > { %v7098_v18 = vadd.f32 %v7097_v10, %v7096_v42  ;;  %v6968_v14 = vpop.f32.mrb[19].mxu1  ;;  %v14857_v29 = vadd.f32 %v10814_v60, %v14783_v51  ;;  %v7103_v62 = vsel %vm17311_vm6, %v14849_v24, 0.0  ;;  %vm17325_vm6 = vmmov %vm17118_vm0 }
 0x963   : > { %v7099_v0 = vsel %vm17309_vm10, %v14846_v32, 0.0  ;;  %v14854_v33 = vadd.f32 %v14783_v51, %v6968_v14  ;;  %vm17323_vm10 = vmmov %vm17118_vm0 }
 0x964   : > { %v7100_v9 = vadd.f32 %v7099_v0, %v7098_v18  ;;  %v7105_v15 = vsel %vm17312_vm7, %v14857_v29, 0.0  ;;  %vm17326_vm7 = vmmov %vm17118_vm0 }
 0x965   : > { %v7101_v23 = vsel %vm17310_vm11, %v14854_v33, 0.0  ;;  %vm17324_vm11 = vmmov %vm17118_vm0 }
 0x966   : > { %v7102_v19 = vadd.f32 %v7101_v23, %v7100_v9 }
 0x967   : > { %v10817_v40 = vpop.f32.mrb[20].mxu1 }
 0x968   : > { %v7104_v6 = vadd.f32 %v7103_v62, %v7102_v19  ;;  %v6981_v37 = vpop.f32.mrb[21].mxu1  ;;  %v14869_v17 = vadd.f32 %v10817_v40, %v14783_v51 }
 0x969   : > { %v14866_v47 = vadd.f32 %v14783_v51, %v6981_v37  ;;  %v10818_v44 = vpop.f32.mrb[22].mxu1 }
 0x96a   : > { %v7106_v30 = vadd.f32 %v7105_v15, %v7104_v6  ;;  %v6984_v41 = vpop.f32.mrb[23].mxu1  ;;  %v14877_v21 = vadd.f32 %v10818_v44, %v14783_v51  ;;  %v7111_v56 = vsel %vm17315_vm4, %v14869_v17, 0.0  ;;  %vm17330_vm4 = vmmov 0  }
 0x96b   : > { %v7107_v63 = vsel %vm17313_vm8, %v14866_v47, 0.0  ;;  %v14874_v1 = vadd.f32 %v14783_v51, %v6984_v41  ;;  %vm17327_vm8 = vmmov %vm17118_vm0 }
 0x96c   : > { %v7108_v59 = vadd.f32 %v7107_v63, %v7106_v30  ;;  %v7113_v36 = vsel %vm17316_vm5, %v14877_v21, 0.0  ;;  %vm17332_vm5 = vmmov %vm17118_vm0 }
 0x96d   : > { %v7109_v13 = vsel %vm17314_vm9, %v14874_v1, 0.0  ;;  %vm17328_vm9 = vmmov %vm17118_vm0 }
 0x96e   : > { %v7110_v55 = vadd.f32 %v7109_v13, %v7108_v59 }
 0x96f   : > { %v10821_v39 = vpop.f32.mrb[24].mxu1 }
 0x970   : > { %v7112_v5 = vadd.f32 %v7111_v56, %v7110_v55  ;;  %v6997_v43 = vpop.f32.mrb[25].mxu1  ;;  %v14889_v16 = vadd.f32 %v10821_v39, %v14783_v51 }
 0x971   : > { %v14886_v26 = vadd.f32 %v14783_v51, %v6997_v43  ;;  %v10822_v35 = vpop.f32.mrb[26].mxu1 }
 0x972   : > { %v7114_v31 = vadd.f32 %v7113_v36, %v7112_v5  ;;  %v7000_v34 = vpop.f32.mrb[27].mxu1  ;;  %v14897_v11 = vadd.f32 %v10822_v35, %v14783_v51  ;;  %v7119_v2 = vsel %vm17319_vm15, %v14889_v16, 0.0  ;;  %vm17335_vm15 = vmmov %vm17118_vm0 }
 0x973   : > { %v7115_v38 = vsel %vm17317_vm13, %v14886_v26, 0.0  ;;  %v14894_v22 = vadd.f32 %v14783_v51, %v7000_v34  ;;  %vm17333_vm13 = vmmov %vm17118_vm0 }
 0x974   : > { %v7116_v46 = vadd.f32 %v7115_v38, %v7114_v31  ;;  %v7121_v42 = vsel %vm17118_vm0, %v14897_v11, 0.0 }
 0x975   : > { %v7117_v28 = vsel %vm17318_vm14, %v14894_v22, 0.0  ;;  %vm17334_vm14 = vmmov %vm17118_vm0 }
 0x976   : > { %v7118_v48 = vadd.f32 %v7117_v28, %v7116_v46 }
 0x977   : > { %v10825_v4 = vpop.f32.mrb[28].mxu1 }
 0x978   : > { %v7120_v61 = vadd.f32 %v7119_v2, %v7118_v48  ;;  %v7013_v7 = vpop.f32.mrb[29].mxu1  ;;  %v14909_v14 = vadd.f32 %v10825_v4, %v14783_v51 }
 0x979   : > { %v14906_v58 = vadd.f32 %v14783_v51, %v7013_v7  ;;  %v10826_v10 = vpop.f32.mrb[30].mxu1 }
 0x97a   : > { %v7122_v60 = vadd.f32 %v7121_v42, %v7120_v61  ;;  %v7016_v18 = vpop.f32.mrb[31].mxu1  ;;  %v14917_v19 = vadd.f32 %v10826_v10, %v14783_v51  ;;  %v7127_v6 = vsel %vm17322_vm3, %v14909_v14, 0.0  ;;  %vm17338_vm3 = vmmov %vm17118_vm0 }
 0x97b   : > { %v7123_v0 = vsel %vm17320_vm1, %v14906_v58, 0.0  ;;  %v14914_v9 = vadd.f32 %v14783_v51, %v7016_v18  ;;  %vm17336_vm1 = vmmov %vm17118_vm0 }
 0x97c   : > { %v7124_v23 = vadd.f32 %v7123_v0, %v7122_v60  ;;  %v7129_v30 = vsel %vm17323_vm10, %v14917_v19, 0.0  ;;  %v17331_v60 = vld [vmem:[#allocation9_spill] sm:$0xff]  ;;  %vm17339_vm10 = vmmov %vm17118_vm0 }
 0x97d   : > { %v7125_v62 = vsel %vm17321_vm2, %v14914_v9, 0.0  ;;  %vm17337_vm2 = vmmov %vm17118_vm0 }
 0x97e   : > { %v7126_v40 = vadd.f32 %v7125_v62, %v7124_v23 }
 0x97f   : > { %v10829_v37 = vpop.f32.mrb[32].mxu1 }
 0x980   : > { %v7128_v15 = vadd.f32 %v7127_v6, %v7126_v40  ;;  %v7029_v44 = vpop.f32.mrb[33].mxu1  ;;  %v14929_v55 = vadd.f32 %v10829_v37, %v14783_v51 }
 0x981   : > { %v14926_v41 = vadd.f32 %v14783_v51, %v7029_v44  ;;  %v10830_v63 = vpop.f32.mrb[34].mxu1 }
 0x982   : > { %v7130_v59 = vadd.f32 %v7129_v30, %v7128_v15  ;;  %v7032_v13 = vpop.f32.mrb[35].mxu1  ;;  %v14937_v43 = vadd.f32 %v10830_v63, %v14783_v51  ;;  %v7135_v31 = vsel %vm17326_vm7, %v14929_v55, 0.0  ;;  %vm17342_vm7 = vmmov %vm17118_vm0 }
 0x983   : > { %v7131_v56 = vsel %vm17324_vm11, %v14926_v41, 0.0  ;;  %v14934_v39 = vadd.f32 %v14783_v51, %v7032_v13  ;;  %v17329_v51 = vld [vmem:[#allocation7_spill] sm:$0xff]  ;;  %vm17340_vm11 = vmmov %vm17118_vm0 }
 0x984   : > { %v7132_v5 = vadd.f32 %v7131_v56, %v7130_v59  ;;  %v7137_v38 = vsel %vm17327_vm8, %v14937_v43, 0.0  ;;  %vm17343_vm8 = vmmov %vm17118_vm0 }
 0x985   : > { %v7133_v36 = vsel %vm17325_vm6, %v14934_v39, 0.0  ;;  %vm17341_vm6 = vmmov %vm17118_vm0 }
 0x986   : > { %v7134_v35 = vadd.f32 %v7133_v36, %v7132_v5 }
 0x988   : > { %v7136_v34 = vadd.f32 %v7135_v31, %v7134_v35 }
 0x98a   : > { %v7138_v46 = vadd.f32 %v7137_v38, %v7136_v34 }
 0x98c   : > { %v7139_v28 = vrot.slane %v7138_v46, 4 }
 0x98e   : > { %v7140_v48 = vadd.f32 %v7139_v28, %v7138_v46 }
 0x990   : > { %v7141_v2 = vrot.slane %v7140_v48, 2 }
 0x992   : > { %v7142_v4 = vadd.f32 %v7141_v2, %v7140_v48 }
 0x994   : > { %v7143_v61 = vrot.slane %v7142_v4, 1 }
 0x996   : > { %v7144_v7 = vadd.f32 %v7143_v61, %v7142_v4 }
 0x998   : > { %10836 = vmatmul.mubr.msk.f32.vlgmr.msra.gmra.mrb[32].mxu0 %vm17328_vm9, %v7144_v7  ;;  %vm17344_vm9 = vmmov %vm17118_vm0 }
 0x999   : > { %10856 = vmatpush3.bf16.msra.mxu0 %v17329_v51  ;;  %10842 = vmatprep.mubr.msk.f32.mxu0 %vm17330_vm4, %v17061_v50  ;;  %vm17345_vm4 = vmmov %vm17118_vm0 }
 0xa6b   : > { %v7214_v42 = vpop.f32.mrb[32].mxu0 }
 0xa6c   : > { %v10837_v10 = vpop.f32.mrb[33].mxu0  ;;  %v14950_v18 = vrot.slane %v7214_v42, %v17331_v60 }
 0xa6e   : > { %v14954_v0 = vsub.f32 %v14786_v53, %v14950_v18  ;;  %v14958_v23 = vsub.f32 %v14792_v49, %v14950_v18  ;;  %v14962_v62 = vsub.f32 %v14789_v57, %v14950_v18  ;;  %v14966_v50 = vsub.f32 %v14797_v52, %v14950_v18 }
 0xa6f   : > { %v14974_v53 = vsub.f32 %v14806_v3, %v14950_v18  ;;  %v14980_v57 = vsub.f32 %v14814_v8, %v14950_v18  ;;  %v14988_v30 = vsub.f32 %v14809_v54, %v14950_v18  ;;  %v14995_v8 = vsub.f32 %v14817_v27, %v14950_v18 }
 0xa70   : > { %v7254_v40 = vmul.f32 %v14954_v0, %v14954_v0  ;;  %v7255_v6 = vmul.f32 %v14958_v23, %v14958_v23  ;;  %v7256_v49 = vmul.f32 %v14962_v62, %v14962_v62  ;;  %v7257_v52 = vmul.f32 %v14966_v50, %v14966_v50 }
 0xa71   : > { %v7258_v3 = vmul.f32 %v14974_v53, %v14974_v53  ;;  %v7259_v13 = vmul.f32 %v14980_v57, %v14980_v57  ;;  %v15002_v54 = vsub.f32 %v14826_v25, %v14950_v18  ;;  %v7260_v36 = vmul.f32 %v14988_v30, %v14988_v30 }
 0xa72   : > { %v7286_v37 = vsel %vm17332_vm5, %v7254_v40, 0.0  ;;  %v7287_v15 = vsel %vm17333_vm13, %v7255_v6, 0.0  ;;  %v7289_v63 = vsel %vm17334_vm14, %v7256_v49, 0.0  ;;  %v7291_v56 = vsel %vm17335_vm15, %v7257_v52, 0.0  ;;  %vm17346_vm5 = vmmov %vm17118_vm0 }
 0xa73   : > { %v7288_v44 = vadd.f32 %v7287_v15, %v7286_v37  ;;  %v7293_v35 = vsel %vm17118_vm0, %v7258_v3, 0.0  ;;  %v15009_v27 = vsub.f32 %v14834_v45, %v14950_v18  ;;  %v7261_v34 = vmul.f32 %v14995_v8, %v14995_v8  ;;  %vm17347_vm13 = vmmov %vm17118_vm0 }
 0xa74   : > { %v7295_v38 = vsel %vm17336_vm1, %v7259_v13, 0.0  ;;  %v15016_v25 = vsub.f32 %v14829_v12, %v14950_v18  ;;  %v7262_v28 = vmul.f32 %v15002_v54, %v15002_v54  ;;  %v7297_v48 = vsel %vm17337_vm2, %v7260_v36, 0.0  ;;  %vm17348_vm14 = vmmov %vm17118_vm0 }
 0xa75   : > { %v7290_v59 = vadd.f32 %v7289_v63, %v7288_v44  ;;  %v15023_v45 = vsub.f32 %v14837_v20, %v14950_v18  ;;  %v7263_v4 = vmul.f32 %v15009_v27, %v15009_v27  ;;  %v7299_v61 = vsel %vm17338_vm3, %v7261_v34, 0.0  ;;  %vm17349_vm15 = vmmov %vm17118_vm0 }
 0xa76   : > { %v15030_v12 = vsub.f32 %v14846_v32, %v14950_v18  ;;  %v7264_v51 = vmul.f32 %v15016_v25, %v15016_v25  ;;  %v7301_v42 = vsel %vm17339_vm10, %v7262_v28, 0.0  ;;  %v15037_v20 = vsub.f32 %v14854_v33, %v14950_v18  ;;  %vm17350_vm1 = vmmov %vm17118_vm0 }
 0xa77   : > { %v7292_v5 = vadd.f32 %v7291_v56, %v7290_v59  ;;  %v7265_v40 = vmul.f32 %v15023_v45, %v15023_v45  ;;  %v7303_v6 = vsel %vm17340_vm11, %v7263_v4, 0.0  ;;  %v15044_v32 = vsub.f32 %v14849_v24, %v14950_v18  ;;  %vm17351_vm2 = vmmov %vm17118_vm0 }
 0xa78   : > { %v7266_v52 = vmul.f32 %v15030_v12, %v15030_v12  ;;  %v7305_v37 = vsel %vm17341_vm6, %v7264_v51, 0.0  ;;  %v15051_v33 = vsub.f32 %v14857_v29, %v14950_v18  ;;  %v7267_v44 = vmul.f32 %v15037_v20, %v15037_v20  ;;  %vm17352_vm3 = vmmov %vm17118_vm0 }
 0xa79   : > { %v7294_v31 = vadd.f32 %v7293_v35, %v7292_v5  ;;  %v7307_v3 = vsel %vm17342_vm7, %v7265_v40, 0.0  ;;  %v15058_v24 = vsub.f32 %v14866_v47, %v14950_v18  ;;  %v7268_v59 = vmul.f32 %v15044_v32, %v15044_v32  ;;  %vm17353_vm10 = vmmov %vm17118_vm0 }
 0xa7a   : > { %v7309_v13 = vsel %vm17343_vm8, %v7266_v52, 0.0  ;;  %v15065_v29 = vsub.f32 %v14874_v1, %v14950_v18  ;;  %v7269_v5 = vmul.f32 %v15051_v33, %v15051_v33  ;;  %v7311_v36 = vsel %vm17344_vm9, %v7267_v44, 0.0  ;;  %vm17354_vm11 = vmmov %vm17118_vm0 }
 0xa7b   : > { %v7296_v46 = vadd.f32 %v7295_v38, %v7294_v31  ;;  %v15072_v47 = vsub.f32 %v14869_v17, %v14950_v18  ;;  %v7270_v31 = vmul.f32 %v15058_v24, %v15058_v24  ;;  %v7313_v34 = vsel %vm17345_vm4, %v7268_v59, 0.0  ;;  %vm17355_vm6 = vmmov %vm17118_vm0 }
 0xa7c   : > { %v15079_v1 = vsub.f32 %v14877_v21, %v14950_v18  ;;  %v7315_v28 = vsel %vm17346_vm5, %v7269_v5, 0.0  ;;  %v15086_v17 = vsub.f32 %v14886_v26, %v14950_v18  ;;  %v15093_v21 = vsub.f32 %v14894_v22, %v14950_v18  ;;  %vm17356_vm7 = vmmov %vm17118_vm0 }
 0xa7d   : > { %v7298_v2 = vadd.f32 %v7297_v48, %v7296_v46  ;;  %v7271_v46 = vmul.f32 %v15065_v29, %v15065_v29  ;;  %v7317_v4 = vsel %vm17347_vm13, %v7270_v31, 0.0  ;;  %v15100_v26 = vsub.f32 %v14889_v16, %v14950_v18  ;;  %vm17357_vm8 = vmmov %vm17118_vm0 }
 0xa7e   : > { %v15107_v22 = vsub.f32 %v14897_v11, %v14950_v18  ;;  %v15114_v16 = vsub.f32 %v14906_v58, %v14950_v18  ;;  %v15121_v11 = vsub.f32 %v14914_v9, %v14950_v18  ;;  %v15128_v58 = vsub.f32 %v14909_v14, %v14950_v18  ;;  %vm17358_vm9 = vmmov %vm17118_vm0 }
 0xa7f   : > { %v7300_v7 = vadd.f32 %v7299_v61, %v7298_v2  ;;  %v7272_v2 = vmul.f32 %v15072_v47, %v15072_v47  ;;  %v7319_v51 = vsel %vm17348_vm14, %v7271_v46, 0.0  ;;  %v15135_v9 = vsub.f32 %v14917_v19, %v14950_v18  ;;  %vm17359_vm4 = vmmov %vm17118_vm0 }
 0xa80   : > { %v15142_v14 = vsub.f32 %v14926_v41, %v14950_v18  ;;  %v7251_v19 = vsub.f32 %v14934_v39, %v14950_v18  ;;  %vm17360_vm5 = vmmov %vm17118_vm0 }
 0xa81   : > { %v7302_v10 = vadd.f32 %v7301_v42, %v7300_v7  ;;  %v7273_v7 = vmul.f32 %v15079_v1, %v15079_v1  ;;  %v7321_v40 = vsel %vm17349_vm15, %v7272_v2, 0.0  ;;  %vm17361_vm13 = vmmov %vm17118_vm0 }
 0xa82   : > { %v7282_v41 = vmul.f32 %v15142_v14, %v15142_v14  ;;  %vm17362_vm14 = vmmov %vm17118_vm0 }
 0xa83   : > { %v7304_v49 = vadd.f32 %v7303_v6, %v7302_v10  ;;  %v7274_v10 = vmul.f32 %v15086_v17, %v15086_v17  ;;  %v7323_v52 = vsel %vm17118_vm0, %v7273_v7, 0.0 }
 0xa85   : > { %v7306_v15 = vadd.f32 %v7305_v37, %v7304_v49  ;;  %v7275_v49 = vmul.f32 %v15093_v21, %v15093_v21  ;;  %v7325_v44 = vsel %vm17350_vm1, %v7274_v10, 0.0  ;;  %v7283_v10 = vmul.f32 %v7251_v19, %v7251_v19 }
 0xa87   : > { %v7308_v63 = vadd.f32 %v7307_v3, %v7306_v15  ;;  %v7276_v15 = vmul.f32 %v15100_v26, %v15100_v26  ;;  %v7327_v59 = vsel %vm17351_vm2, %v7275_v49, 0.0  ;;  %v7341_v49 = vsel %vm17358_vm9, %v7282_v41, 0.0 }
 0xa88   : > { %vm9285_vm9 = vcmask 1043459  }
 0xa89   : > { %v7310_v56 = vadd.f32 %v7309_v13, %v7308_v63  ;;  %v7277_v63 = vmul.f32 %v15107_v22, %v15107_v22  ;;  %v7329_v5 = vsel %vm17352_vm3, %v7276_v15, 0.0 }
 0xa8b   : > { %v7312_v35 = vadd.f32 %v7311_v36, %v7310_v56  ;;  %v7278_v56 = vmul.f32 %v15114_v16, %v15114_v16  ;;  %v7331_v31 = vsel %vm17353_vm10, %v7277_v63, 0.0  ;;  %vm17377_vm10 = vmmov %vm17352_vm3 }
 0xa8d   : > { %v7314_v38 = vadd.f32 %v7313_v34, %v7312_v35  ;;  %v7279_v35 = vmul.f32 %v15121_v11, %v15121_v11  ;;  %v7333_v46 = vsel %vm17354_vm11, %v7278_v56, 0.0  ;;  %vm17378_vm11 = vmmov %vm17352_vm3 }
 0xa8f   : > { %v7316_v48 = vadd.f32 %v7315_v28, %v7314_v38  ;;  %v7280_v38 = vmul.f32 %v15128_v58, %v15128_v58  ;;  %v7335_v2 = vsel %vm17355_vm6, %v7279_v35, 0.0  ;;  %vm17379_vm6 = vmmov %vm17352_vm3 }
 0xa91   : > { %v7318_v61 = vadd.f32 %v7317_v4, %v7316_v48  ;;  %v7281_v48 = vmul.f32 %v15135_v9, %v15135_v9  ;;  %v7337_v7 = vsel %vm17356_vm7, %v7280_v38, 0.0  ;;  %vm9281_vm7 = vcmask 1041409  }
 0xa93   : > { %v7320_v42 = vadd.f32 %v7319_v51, %v7318_v61  ;;  %v7252_v61 = vsub.f32 %v14929_v55, %v14950_v18  ;;  %v7339_v39 = vsel %vm17357_vm8, %v7281_v48, 0.0  ;;  %v7343_v55 = vsel %vm17359_vm4, %v7283_v10, 0.0 }
 0xa94   : > { %vm9283_vm8 = vcmask 1042434   ;;  %vm9287_vm4 = vcmask 1044484  }
 0xa95   : > { %v7322_v6 = vadd.f32 %v7321_v40, %v7320_v42  ;;  %v7253_v42 = vsub.f32 %v14937_v43, %v14950_v18 }
 0xa97   : > { %v7324_v37 = vadd.f32 %v7323_v52, %v7322_v6  ;;  %v7284_v6 = vmul.f32 %v7252_v61, %v7252_v61 }
 0xa99   : > { %v7326_v3 = vadd.f32 %v7325_v44, %v7324_v37  ;;  %v7285_v37 = vmul.f32 %v7253_v42, %v7253_v42  ;;  %v7345_v44 = vsel %vm17360_vm5, %v7284_v6, 0.0  ;;  %vm9289_vm5 = vcmask 1045509  }
 0xa9b   : > { %v7328_v13 = vadd.f32 %v7327_v59, %v7326_v3  ;;  %v7347_v63 = vsel %vm17361_vm13, %v7285_v37, 0.0  ;;  %vm9291_vm13 = vcmask 1046534  }
 0xa9d   : > { %v7330_v36 = vadd.f32 %v7329_v5, %v7328_v13 }
 0xa9f   : > { %v7332_v34 = vadd.f32 %v7331_v31, %v7330_v36 }
 0xaa1   : > { %v7334_v28 = vadd.f32 %v7333_v46, %v7332_v34 }
 0xaa3   : > { %v7336_v4 = vadd.f32 %v7335_v2, %v7334_v28 }
 0xaa5   : > { %v7338_v51 = vadd.f32 %v7337_v7, %v7336_v4 }
 0xaa7   : > { %v7340_v40 = vadd.f32 %v7339_v39, %v7338_v51 }
 0xaa9   : > { %v7342_v52 = vadd.f32 %v7341_v49, %v7340_v40 }
 0xaab   : > { %v7344_v15 = vadd.f32 %v7343_v55, %v7342_v52 }
 0xaad   : > { %v7346_v3 = vadd.f32 %v7345_v44, %v7344_v15  ;;  %v15257_v44 = vld [vmem:[%s16614_s3 + $0x5] ss:$0 sm:$0xff] }
 0xaaf   : > { %v7348_v59 = vadd.f32 %v7347_v63, %v7346_v3 }
 0xab1   : > { %v7349_v13 = vrot.slane %v7348_v59, 4 }
 0xab3   : > { %v7350_v43 = vadd.f32 %v7349_v13, %v7348_v59 }
 0xab5   : > { %v7351_v18 = vrot.slane %v7350_v43, 2 }
 0xab7   : > { %v7352_v56 = vadd.f32 %v7351_v18, %v7350_v43 }
 0xab9   : > { %v7353_v5 = vrot.slane %v7352_v56, 1 }
 0xabb   : > { %v7354_v36 = vadd.f32 %v7353_v5, %v7352_v56 }
 0xabd   : > { %10843 = vmatmul.mubr.msk.f32.vlgmr.msra.gmra.mrb[34].mxu0 %vm17362_vm14, %v7354_v36 }
 0xb90   : > { %v7424_v35 = vpop.f32.mrb[34].mxu0 }
 0xb91   : > { %v7425_v31 = vadd.f32 1e-05, %v7424_v35  ;;  %v10844_v34 = vpop.f32.mrb[35].mxu0 }
 0xb93   : > { %11627 = vrsqrt.f32 %v7425_v31 }
 0xb9d   : > { %v11628_v38 = vpop.eup %11627 }
 0xb9e   : > { %v15166_v46 = vrot.slane %v11628_v38, %v17331_v60 }
 0xba0   : > { %v7433_v28 = vmul.f32 %v15166_v46, %v14954_v0  ;;  %v7434_v48 = vmul.f32 %v15166_v46, %v14958_v23  ;;  %v7435_v2 = vmul.f32 %v15166_v46, %v14962_v62  ;;  %v7436_v4 = vmul.f32 %v15166_v46, %v14966_v50 }
 0xba1   : > { %v7441_v41 = vmul.f32 %v15166_v46, %v15002_v54  ;;  %v7442_v7 = vmul.f32 %v15166_v46, %v15009_v27  ;;  %v7443_v60 = vmul.f32 %v15166_v46, %v15016_v25  ;;  %v7444_v0 = vmul.f32 %v15166_v46, %v15023_v45 }
 0xba2   : > { %v7445_v23 = vmul.f32 %v15166_v46, %v15030_v12  ;;  %v7446_v62 = vmul.f32 %v15166_v46, %v15037_v20  ;;  %v7447_v50 = vmul.f32 %v15166_v46, %v15044_v32  ;;  %v7448_v54 = vmul.f32 %v15166_v46, %v15051_v33  ;;  %v15203_v20 = vld [vmem:[%s16614_s3 + $0x4] ss:$0 sm:$0xff] }
 0xba3   : > { %v7449_v27 = vmul.f32 %v15166_v46, %v15058_v24  ;;  %v7450_v25 = vmul.f32 %v15166_v46, %v15065_v29  ;;  %v7451_v45 = vmul.f32 %v15166_v46, %v15072_v47  ;;  %v7452_v12 = vmul.f32 %v15166_v46, %v15079_v1 }
 0xba4   : > { %v7453_v32 = vmul.f32 %v15166_v46, %v15086_v17  ;;  %v7454_v33 = vmul.f32 %v15166_v46, %v15093_v21  ;;  %v7455_v24 = vmul.f32 %v15166_v46, %v15100_v26  ;;  %v7456_v29 = vmul.f32 %v15166_v46, %v15107_v22 }
 0xba5   : > { %v7457_v47 = vmul.f32 %v15166_v46, %v15114_v16  ;;  %v7458_v1 = vmul.f32 %v15166_v46, %v15121_v11  ;;  %v7459_v51 = vmul.f32 %v15166_v46, %v15128_v58  ;;  %v7460_v17 = vmul.f32 %v15166_v46, %v15135_v9 }
 0xba6   : > { %v7461_v21 = vmul.f32 %v15166_v46, %v15142_v14  ;;  %v7462_v26 = vmul.f32 %v15166_v46, %v7251_v19  ;;  %v7463_v10 = vmul.f32 %v15166_v46, %v7252_v61  ;;  %v7464_v22 = vmul.f32 %v15166_v46, %v7253_v42 }
 0xba7   : > { %v7469_v16 = vmul.f32 %v15203_v20, %v7433_v28  ;;  %v7470_v39 = vmul.f32 %v15203_v20, %v7434_v48  ;;  %v7471_v11 = vmul.f32 %v15203_v20, %v7435_v2  ;;  %v7472_v58 = vmul.f32 %v15203_v20, %v7436_v4 }
 0xba8   : > { %v7477_v40 = vmul.f32 %v15203_v20, %v7441_v41  ;;  %v7478_v9 = vmul.f32 %v15203_v20, %v7442_v7  ;;  %v7479_v14 = vmul.f32 %v15203_v20, %v7443_v60  ;;  %v7480_v19 = vmul.f32 %v15203_v20, %v7444_v0 }
 0xba9   : > { %v7481_v61 = vmul.f32 %v15203_v20, %v7445_v23  ;;  %v7482_v42 = vmul.f32 %v15203_v20, %v7446_v62  ;;  %v15237_v6 = vmul.f32 %v15203_v20, %v7447_v50  ;;  %v15240_v49 = vmul.f32 %v15203_v20, %v7448_v54 }
 0xbaa   : > { %v15243_v52 = vmul.f32 %v15203_v20, %v7449_v27  ;;  %v15246_v37 = vmul.f32 %v15203_v20, %v7450_v25  ;;  %v15249_v55 = vmul.f32 %v15203_v20, %v7451_v45  ;;  %v15252_v15 = vmul.f32 %v15203_v20, %v7452_v12 }
 0xbab   : > { %v15260_v3 = vmul.f32 %v15203_v20, %v7453_v32  ;;  %v15263_v63 = vmul.f32 %v15203_v20, %v7454_v33  ;;  %v15266_v59 = vmul.f32 %v15203_v20, %v7455_v24  ;;  %v15269_v13 = vmul.f32 %v15203_v20, %v7456_v29 }
 0xbac   : > { %v15272_v43 = vmul.f32 %v15203_v20, %v7457_v47  ;;  %v15275_v18 = vmul.f32 %v15203_v20, %v7458_v1  ;;  %v15278_v56 = vmul.f32 %v15203_v20, %v7459_v51  ;;  %v15281_v5 = vmul.f32 %v15203_v20, %v7460_v17 }
 0xbad   : > { %v15284_v36 = vmul.f32 %v15203_v20, %v7461_v21  ;;  %v15287_v35 = vmul.f32 %v15203_v20, %v7462_v26  ;;  %v15290_v31 = vmul.f32 %v15203_v20, %v7463_v10  ;;  %v15293_v34 = vmul.f32 %v15203_v20, %v7464_v22 }
 0xbae   : > { %v15296_v38 = vadd.f32 %v15257_v44, %v7469_v16  ;;  %v15299_v28 = vadd.f32 %v15257_v44, %v7470_v39  ;;  %v15302_v48 = vadd.f32 %v15257_v44, %v7471_v11  ;;  %v15305_v2 = vadd.f32 %v15257_v44, %v7472_v58 }
 0xbaf   : > { %v7437_v4 = vmul.f32 %v15166_v46, %v14974_v53  ;;  %v7438_v41 = vmul.f32 %v15166_v46, %v14980_v57  ;;  %v7439_v7 = vmul.f32 %v15166_v46, %v14988_v30  ;;  %v15323_v62 = vadd.f32 %v15257_v44, %v7477_v40 }
 0xbb0   : > { %v15314_v60 = vmul.f32 0.70710677, %v15296_v38  ;;  %v15317_v0 = vmul.f32 0.70710677, %v15299_v28  ;;  %v15320_v23 = vmul.f32 0.70710677, %v15302_v48  ;;  %v15329_v57 = vadd.f32 %v15257_v44, %v7478_v9 }
 0xbb1   : > { %v15326_v53 = vmul.f32 0.70710677, %v15305_v2  ;;  %v15332_v30 = vadd.f32 %v15257_v44, %v7479_v14  ;;  %v15335_v50 = vadd.f32 %v15257_v44, %v7480_v19  ;;  %v11826_v54 = vmov 1983009808  }
 0xbb2   : > { %v8435_v27 = vunpack.c.l.s4 %v11826_v54  ;;  %v7665_v25 = vand.u32 2147483647, %v15314_v60  ;;  %v7440_v45 = vmul.f32 %v15166_v46, %v14995_v8  ;;  %v7473_v12 = vmul.f32 %v15203_v20, %v7437_v4 }
 0xbb3   : > { %v7474_v32 = vmul.f32 %v15203_v20, %v7438_v41  ;;  %v7475_v33 = vmul.f32 %v15203_v20, %v7439_v7  ;;  %v7666_v24 = vand.u32 2147483647, %v15317_v0  ;;  %v7667_v29 = vand.u32 2147483647, %v15320_v23 }
 0xbb4   : > { %v7668_v47 = vand.u32 2147483647, %v15326_v53  ;;  %v7697_v1 = vmul.f32 0.3275911, %v7665_v25  ;;  %v15347_v51 = vadd.f32 %v15257_v44, %v7481_v61  ;;  %v15350_v17 = vadd.f32 %v15257_v44, %v7482_v42 }
 0xbb5   : > { %v8436_v8 = vunpack.c.0.s8 %v8435_v27  ;;  %v7698_v46 = vmul.f32 0.3275911, %v7666_v24  ;;  %v7699_v21 = vmul.f32 0.3275911, %v7667_v29  ;;  %v7476_v26 = vmul.f32 %v15203_v20, %v7440_v45 }
 0xbb6   : > { %v7700_v10 = vmul.f32 0.3275911, %v7668_v47  ;;  %v7729_v22 = vadd.f32 1.0, %v7697_v1  ;;  %v8081_v16 = vsub.f32 0.0, %v7665_v25  ;;  %v15354_v58 = vadd.f32 %v15257_v44, %v7473_v12 }
 0xbb7   : > { %v7730_v39 = vadd.f32 1.0, %v7698_v46  ;;  %v7731_v11 = vadd.f32 1.0, %v7699_v21  ;;  %v15357_v40 = vadd.f32 %v15257_v44, %v7474_v32  ;;  %v8082_v14 = vsub.f32 0.0, %v7666_v24 }
 0xbb8   : > { %v7732_v9 = vadd.f32 1.0, %v7700_v10  ;;  %11629 = vrcp.f32 %v7729_v22  ;;  %v15360_v19 = vadd.f32 %v15257_v44, %v7475_v33  ;;  %v8083_v61 = vsub.f32 0.0, %v7667_v29 }
 0xbb9   : > { %11631 = vrcp.f32 %v7730_v39  ;;  %v8084_v20 = vsub.f32 0.0, %v7668_v47  ;;  %v15364_v42 = vadd.f32 %v15257_v44, %v15237_v6  ;;  %v8113_v4 = vmul.f32 %v8081_v16, %v7665_v25 }
 0xbba   : > { %11633 = vrcp.f32 %v7731_v11  ;;  %v15368_v41 = vadd.f32 %v15257_v44, %v15240_v49  ;;  %v15372_v7 = vadd.f32 %v15257_v44, %v15243_v52  ;;  %v15376_v54 = vadd.f32 %v15257_v44, %v15246_v37 }
 0xbbb   : > { %11635 = vrcp.f32 %v7732_v9  ;;  %v15380_v27 = vadd.f32 %v15257_v44, %v15249_v55  ;;  %v15384_v6 = vadd.f32 %v15257_v44, %v15252_v15  ;;  %v8114_v25 = vmul.f32 %v8082_v14, %v7666_v24  ;;  %v17374_v24 = vld [vmem:[#allocation8_spill] sm:$0xff] }
 0xbbc   : > { %v15388_v49 = vadd.f32 %v15257_v44, %v15260_v3  ;;  %v15392_v52 = vadd.f32 %v15257_v44, %v15263_v63  ;;  %v15396_v37 = vadd.f32 %v15257_v44, %v15266_v59  ;;  %v8115_v45 = vmul.f32 %v8083_v61, %v7667_v29 }
 0xbbd   : > { %v15400_v55 = vadd.f32 %v15257_v44, %v15269_v13  ;;  %v15404_v15 = vadd.f32 %v15257_v44, %v15272_v43  ;;  %v15408_v3 = vadd.f32 %v15257_v44, %v15275_v18  ;;  %v8116_v12 = vmul.f32 %v8084_v20, %v7668_v47 }
 0xbbe   : > { %17363 = vst [vmem:[#allocation124_spill] sm:$0xff] %v15392_v52  ;;  %17364 = vst [vmem:[#allocation129_spill] sm:$0xff] %v15396_v37  ;;  %v15412_v63 = vadd.f32 %v15257_v44, %v15278_v56  ;;  %v15416_v59 = vadd.f32 %v15257_v44, %v15281_v5  ;;  %v15420_v13 = vadd.f32 %v15257_v44, %v15284_v36  ;;  %v8145_v32 = vmul.f32 1.442695, %v8113_v4 }
 0xbbf   : > { %17365 = vst [vmem:[#allocation131_spill] sm:$0xff] %v15400_v55  ;;  %17366 = vst [vmem:[#allocation75_spill] sm:$0xff] %v15404_v15  ;;  %v15424_v43 = vadd.f32 %v15257_v44, %v15287_v35  ;;  %v15428_v18 = vadd.f32 %v15257_v44, %v15290_v31  ;;  %v15432_v56 = vadd.f32 %v15257_v44, %v15293_v34  ;;  %v8147_v33 = vmul.f32 1.442695, %v8114_v25 }
 0xbc0   : > { %17367 = vst [vmem:[#allocation76_spill] sm:$0xff] %v15408_v3  ;;  %17368 = vst [vmem:[#allocation101_spill] sm:$0xff] %v15412_v63  ;;  %v15435_v5 = vadd.f32 %v15257_v44, %v7476_v26  ;;  %v15438_v36 = vsub.s32 %v8436_v8, %v17374_v24  ;;  %v8149_v29 = vmul.f32 1.442695, %v8115_v45  ;;  %v15443_v35 = vmul.f32 0.5, %v15296_v38 }
 0xbc1   : > { %17369 = vst [vmem:[#allocation102_spill] sm:$0xff] %v15416_v59  ;;  %17370 = vst [vmem:[#allocation103_spill] sm:$0xff] %v15420_v13  ;;  %v15446_v31 = vmul.f32 0.5, %v15299_v28  ;;  %v8151_v1 = vmul.f32 1.442695, %v8116_v12  ;;  %11637 = vpow2.f32 %v8145_v32  ;;  %v15463_v28 = vmul.f32 0.5, %v15302_v48 }
 0xbc2   : > { %17371 = vst [vmem:[#allocation111_spill] sm:$0xff] %v15424_v43  ;;  %17372 = vst [vmem:[#allocation112_spill] sm:$0xff] %v15428_v18  ;;  %v15440_v47 = vpop.eup %11629  ;;  %v15449_v34 = vmul.f32 0.70710677, %v15354_v58  ;;  %v15455_v8 = vmul.f32 0.70710677, %v15357_v40  ;;  %11639 = vpow2.f32 %v8147_v33 }
 0xbc3   : > { %17373 = vst [vmem:[#allocation113_spill] sm:$0xff] %v15432_v56  ;;  %17375 = vst [vmem:[#allocation116_spill] sm:$0xff] %v15438_v36  ;;  %v15451_v46 = vpop.eup %11631  ;;  %v7793_v44 = vmul.f32 1.0614054, %v15440_v47  ;;  %v15458_v21 = vmul.f32 0.70710677, %v15360_v19  ;;  %11641 = vpow2.f32 %v8149_v29 }
 0xbc4   : > { %v15460_v38 = vpop.eup %11633  ;;  %v7794_v26 = vmul.f32 1.0614054, %v15451_v46  ;;  %v15467_v10 = vmul.f32 0.70710677, %v15435_v5  ;;  %v15472_v16 = vmul.f32 0.5, %v15305_v2  ;;  %11643 = vpow2.f32 %v8151_v1 }
 0xbc5   : > { %v15469_v22 = vpop.eup %11635  ;;  %v7795_v39 = vmul.f32 1.0614054, %v15460_v38  ;;  %v7825_v11 = vadd.f32 -1.4531521, %v7793_v44  ;;  %v7669_v48 = vand.u32 2147483647, %v15449_v34 }
 0xbc6   : > { %v7796_v9 = vmul.f32 1.0614054, %v15469_v22  ;;  %v7826_v14 = vadd.f32 -1.4531521, %v7794_v26  ;;  %v7670_v4 = vand.u32 2147483647, %v15455_v8 }
 0xbc7   : > { %v7827_v61 = vadd.f32 -1.4531521, %v7795_v39  ;;  %v7857_v20 = vmul.f32 %v15440_v47, %v7825_v11  ;;  %v7671_v25 = vand.u32 2147483647, %v15458_v21  ;;  %vm7601_vm15 = vcmp.ge.f32.partialorder %v15314_v60, 0.0 }
 0xbc8   : > { %v7828_v2 = vadd.f32 -1.4531521, %v7796_v9  ;;  %v7858_v45 = vmul.f32 %v15451_v46, %v7826_v14  ;;  %v7672_v12 = vand.u32 2147483647, %v15467_v10  ;;  %v7701_v32 = vmul.f32 0.3275911, %v7669_v48 }
 0xbc9   : > { %vm7602_vm0 = vcmp.ge.f32.partialorder %v15317_v0, 0.0  ;;  %v7859_v33 = vmul.f32 %v15460_v38, %v7827_v61  ;;  %v7889_v24 = vadd.f32 1.4214138, %v7857_v20  ;;  %v7702_v29 = vmul.f32 0.3275911, %v7670_v4 }
 0xbca   : > { %v7703_v1 = vmul.f32 0.3275911, %v7671_v25  ;;  %v7860_v44 = vmul.f32 %v15469_v22, %v7828_v2  ;;  %v7890_v26 = vadd.f32 1.4214138, %v7858_v45  ;;  %v7704_v39 = vmul.f32 0.3275911, %v7672_v12 }
 0xbcb   : > { %v7733_v11 = vadd.f32 1.0, %v7701_v32  ;;  %v7891_v56 = vadd.f32 1.4214138, %v7859_v33  ;;  %v7921_v9 = vmul.f32 %v15440_v47, %v7889_v24  ;;  %v7734_v18 = vadd.f32 1.0, %v7702_v29  ;;  %v11638_v63 = vpop.eup %11637 }
 0xbcc   : > { %v7735_v14 = vadd.f32 1.0, %v7703_v1  ;;  %v7892_v43 = vadd.f32 1.4214138, %v7860_v44  ;;  %v7922_v13 = vmul.f32 %v15451_v46, %v7890_v26  ;;  %v7736_v59 = vadd.f32 1.0, %v7704_v39  ;;  %v11640_v2 = vpop.eup %11639 }
 0xbcd   : > { %11645 = vrcp.f32 %v7733_v11  ;;  %v7923_v61 = vmul.f32 %v15460_v38, %v7891_v56  ;;  %v7953_v20 = vadd.f32 -0.28449672, %v7921_v9  ;;  %v8085_v3 = vsub.f32 0.0, %v7669_v48  ;;  %v11642_v24 = vpop.eup %11641 }
 0xbce   : > { %11647 = vrcp.f32 %v7734_v18  ;;  %v7924_v45 = vmul.f32 %v15469_v22, %v7892_v43  ;;  %v7954_v32 = vadd.f32 -0.28449672, %v7922_v13  ;;  %v8086_v33 = vsub.f32 0.0, %v7670_v4  ;;  %v11644_v26 = vpop.eup %11643 }
 0xbcf   : > { %11649 = vrcp.f32 %v7735_v14  ;;  %v7955_v29 = vadd.f32 -0.28449672, %v7923_v61  ;;  %v7985_v1 = vmul.f32 %v15440_v47, %v7953_v20  ;;  %v8087_v44 = vsub.f32 0.0, %v7671_v25 }
 0xbd0   : > { %11651 = vrcp.f32 %v7736_v59  ;;  %v7956_v39 = vadd.f32 -0.28449672, %v7924_v45  ;;  %v7986_v11 = vmul.f32 %v15451_v46, %v7954_v32  ;;  %v8088_v56 = vsub.f32 0.0, %v7672_v12 }
 0xbd1   : > { %v8117_v9 = vmul.f32 %v8085_v3, %v7669_v48  ;;  %vm7603_vm1 = vcmp.ge.f32.partialorder %v15320_v23, 0.0  ;;  %vm7604_vm2 = vcmp.ge.f32.partialorder %v15326_v53, 0.0  ;;  %v7987_v13 = vmul.f32 %v15460_v38, %v7955_v29 }
 0xbd2   : > { %v8017_v43 = vadd.f32 0.2548296, %v7985_v1  ;;  %v7988_v18 = vmul.f32 %v15469_v22, %v7956_v39  ;;  %v8018_v14 = vadd.f32 0.2548296, %v7986_v11  ;;  %v8118_v61 = vmul.f32 %v8086_v33, %v7670_v4 }
 0xbd3   : > { %v8119_v20 = vmul.f32 %v8087_v44, %v7671_v25  ;;  %v17376_v59 = vmov -1.0   ;;  %v8019_v15 = vadd.f32 0.2548296, %v7987_v13  ;;  %v8153_v3 = vmul.f32 1.442695, %v8117_v9 }
 0xbd4   : > { %v7633_v45 = vsel %vm7601_vm15, 1.0, %v17376_v59  ;;  %v8049_v32 = vmul.f32 %v15440_v47, %v8017_v43  ;;  %v7634_v48 = vsel %vm7602_vm0, 1.0, %v17376_v59  ;;  %v8020_v55 = vadd.f32 0.2548296, %v7988_v18 }
 0xbd5   : > { %v8050_v29 = vmul.f32 %v15451_v46, %v8018_v14  ;;  %v8120_v1 = vmul.f32 %v8088_v56, %v7672_v12  ;;  %v7635_v4 = vsel %vm7603_vm1, 1.0, %v17376_v59  ;;  %v7636_v60 = vsel %vm7604_vm2, 1.0, %v17376_v59 }
 0xbd6   : > { %v8051_v25 = vmul.f32 %v15460_v38, %v8019_v15  ;;  %v8209_v47 = vmul.f32 %v11638_v63, %v8049_v32  ;;  %v8052_v0 = vmul.f32 %v15469_v22, %v8020_v55  ;;  %v8155_v39 = vmul.f32 1.442695, %v8118_v61 }
 0xbd7   : > { %v15511_v33 = vpop.eup %11645  ;;  %v8210_v44 = vmul.f32 %v11640_v2, %v8050_v29  ;;  %v8157_v11 = vmul.f32 1.442695, %v8119_v20  ;;  %11653 = vpow2.f32 %v8153_v3  ;;  %v8159_v63 = vmul.f32 1.442695, %v8120_v1 }
 0xbd8   : > { %v15514_v46 = vpop.eup %11647  ;;  %v8211_v12 = vmul.f32 %v11642_v24, %v8051_v25  ;;  %v8241_v56 = vsub.f32 1.0, %v8209_v47  ;;  %v7797_v23 = vmul.f32 1.0614054, %v15511_v33  ;;  %v8212_v53 = vmul.f32 %v11644_v26, %v8052_v0 }
 0xbd9   : > { %v15517_v9 = vpop.eup %11649  ;;  %v8242_v13 = vsub.f32 1.0, %v8210_v44  ;;  %v7798_v15 = vmul.f32 1.0614054, %v15514_v46  ;;  %11655 = vpow2.f32 %v8155_v39  ;;  %vm7605_vm14 = vcmp.ge.f32.partialorder %v15449_v34, 0.0 }
 0xbda   : > { %v15520_v38 = vpop.eup %11651  ;;  %v8243_v55 = vsub.f32 1.0, %v8211_v12  ;;  %v8273_v22 = vmul.f32 %v8241_v56, %v7633_v45  ;;  %v7799_v2 = vmul.f32 1.0614054, %v15517_v9  ;;  %v7829_v43 = vadd.f32 -1.4531521, %v7797_v23 }
 0xbdb   : > { %v8244_v18 = vsub.f32 1.0, %v8212_v53  ;;  %v8274_v24 = vmul.f32 %v8242_v13, %v7634_v48  ;;  %v7800_v14 = vmul.f32 1.0614054, %v15520_v38  ;;  %v7830_v61 = vadd.f32 -1.4531521, %v7798_v15 }
 0xbdc   : > { %v8275_v20 = vmul.f32 %v8243_v55, %v7635_v4  ;;  %v8305_v32 = vadd.f32 1.0, %v8273_v22  ;;  %v7831_v3 = vadd.f32 -1.4531521, %v7799_v2  ;;  %v7861_v26 = vmul.f32 %v15511_v33, %v7829_v43 }
 0xbdd   : > { %v8276_v29 = vmul.f32 %v8244_v18, %v7636_v60  ;;  %v8306_v25 = vadd.f32 1.0, %v8274_v24  ;;  %v7832_v1 = vadd.f32 -1.4531521, %v7800_v14  ;;  %v7862_v47 = vmul.f32 %v15514_v46, %v7830_v61 }
 0xbde   : > { %v8307_v0 = vadd.f32 1.0, %v8275_v20  ;;  %v8337_v45 = vmul.f32 %v8305_v32, %v15443_v35  ;;  %v7863_v44 = vmul.f32 %v15517_v9, %v7831_v3  ;;  %v7893_v12 = vadd.f32 1.4214138, %v7861_v26 }
 0xbdf   : > { %v8308_v48 = vadd.f32 1.0, %v8276_v29  ;;  %v8338_v56 = vmul.f32 %v8306_v25, %v15446_v31  ;;  %v7864_v4 = vmul.f32 %v15520_v38, %v7832_v1  ;;  %v7894_v23 = vadd.f32 1.4214138, %v7862_v47 }
 0xbe0   : > { %v8339_v53 = vmul.f32 %v8307_v0, %v15463_v28  ;;  %v8369_v60 = vsel %vm17352_vm3, %v8337_v45, -inf  ;;  %v7895_v13 = vadd.f32 1.4214138, %v7863_v44  ;;  %v7925_v15 = vmul.f32 %v15511_v33, %v7893_v12 }
 0xbe1   : > { %v8340_v55 = vmul.f32 %v8308_v48, %v15472_v16  ;;  %v8372_v35 = vsel %vm17377_vm10, %v8338_v56, -inf  ;;  %v7896_v22 = vadd.f32 1.4214138, %v7864_v4  ;;  %v7926_v2 = vmul.f32 %v15514_v46, %v7894_v23  ;;  %v15536_v43 = vpop.eup %11653  ;;  %vm17380_vm10 = vmmov %vm17352_vm3 }
 0xbe2   : > { %v8370_v31 = vsel %vm17378_vm11, %v8339_v53, -inf  ;;  %v7927_v18 = vmul.f32 %v15517_v9, %v7895_v13  ;;  %v7957_v24 = vadd.f32 -0.28449672, %v7925_v15  ;;  %11657 = vpow2.f32 %v8157_v11  ;;  %vm17381_vm11 = vmmov %vm17352_vm3 }
 0xbe3   : > { %v8371_v28 = vmax.f32 %v8369_v60, %v8370_v31  ;;  %v8373_v14 = vsel %vm17379_vm6, %v8340_v55, -inf  ;;  %v7928_v61 = vmul.f32 %v15520_v38, %v7896_v22  ;;  %v7958_v20 = vadd.f32 -0.28449672, %v7926_v2  ;;  %vm17382_vm6 = vmmov %vm17352_vm3 }
 0xbe4   : > { %v8374_v16 = vmax.f32 %v8372_v35, %v8373_v14  ;;  %v7959_v32 = vadd.f32 -0.28449672, %v7927_v18  ;;  %v7989_v3 = vmul.f32 %v15511_v33, %v7957_v24  ;;  %11659 = vpow2.f32 %v8159_v63 }
 0xbe5   : > { %v8433_v26 = vcombine.high %v8371_v28, %v8371_v28  ;;  %v8440_v29 = vrot.slane %v8371_v28, %v15438_v36  ;;  %v7960_v25 = vadd.f32 -0.28449672, %v7928_v61  ;;  %v15546_v39 = vmul.f32 %v15514_v46, %v7958_v20  ;;  %v15562_v28 = vpop.eup %11655 }
 0xbe6   : > { %v8450_v1 = vcombine.high %v8374_v16, %v8374_v16  ;;  %v8457_v47 = vrot.slane %v8374_v16, %v15438_v36  ;;  %v15549_v0 = vmul.f32 %v15517_v9, %v7959_v32  ;;  %v15553_v11 = vadd.f32 0.2548296, %v7989_v3 }
 0xbe7   : > { %v8447_v45 = vrot.slane %v8433_v26, %v15438_v36  ;;  %v8448_v44 = vcombine.high %v8440_v29, %v8440_v29  ;;  %v8769_v12 = vsel %vm16771_vm12, %v8440_v29, -inf  ;;  %vm9293_vm15 = vcmask 1047559  }
 0xbe8   : > { %v8464_v48 = vrot.slane %v8450_v1, %v15438_v36  ;;  %v8465_v56 = vcombine.high %v8457_v47, %v8457_v47  ;;  %v8770_v63 = vrot.slane %v8769_v12, 4  ;;  %v8797_v4 = vsel %vm16771_vm12, %v8457_v47, -inf }
 0xbe9   : > { %v8449_v23 = vcombine.high %v8447_v45, %v8447_v45  ;;  %v8776_v53 = vsel %vm16771_vm12, %v8448_v44, -inf  ;;  %v8783_v60 = vsel %vm16771_vm12, %v8447_v45, -inf  ;;  %v8798_v13 = vrot.slane %v8797_v4, 4 }
 0xbea   : > { %v8466_v15 = vcombine.high %v8464_v48, %v8464_v48  ;;  %v8771_v55 = vmax.f32 %v8769_v12, %v8770_v63  ;;  %v8777_v35 = vrot.slane %v8776_v53, 4  ;;  %v8784_v22 = vrot.slane %v8783_v60, 4 }
 0xbeb   : > { %v8790_v2 = vsel %vm16771_vm12, %v8449_v23, -inf  ;;  %v8799_v31 = vmax.f32 %v8797_v4, %v8798_v13  ;;  %v8804_v18 = vsel %vm16771_vm12, %v8465_v56, -inf  ;;  %v8811_v24 = vsel %vm16771_vm12, %v8464_v48, -inf }
 0xbec   : > { %v8772_v14 = vrot.slane %v8771_v55, 2  ;;  %v8778_v61 = vmax.f32 %v8776_v53, %v8777_v35  ;;  %v8785_v20 = vmax.f32 %v8783_v60, %v8784_v22  ;;  %v8791_v16 = vrot.slane %v8790_v2, 4  ;;  %v11658_v1 = vpop.eup %11657 }
 0xbed   : > { %v8800_v32 = vrot.slane %v8799_v31, 2  ;;  %v8805_v3 = vrot.slane %v8804_v18, 4  ;;  %v8812_v26 = vrot.slane %v8811_v24, 4  ;;  %v8818_v29 = vsel %vm16771_vm12, %v8466_v15, -inf }
 0xbee   : > { %v8773_v47 = vmax.f32 %v8771_v55, %v8772_v14  ;;  %v8779_v45 = vrot.slane %v8778_v61, 2  ;;  %v8786_v44 = vrot.slane %v8785_v20, 2  ;;  %v8792_v12 = vmax.f32 %v8790_v2, %v8791_v16  ;;  %v11660_v48 = vpop.eup %11659 }
 0xbef   : > { %v8801_v56 = vmax.f32 %v8799_v31, %v8800_v32  ;;  %v8806_v63 = vmax.f32 %v8804_v18, %v8805_v3  ;;  %v8813_v4 = vmax.f32 %v8811_v24, %v8812_v26  ;;  %v8819_v23 = vrot.slane %v8818_v29, 4 }
 0xbf0   : > { %v8774_v53 = vrot.slane %v8773_v47, 1  ;;  %v8780_v60 = vmax.f32 %v8778_v61, %v8779_v45  ;;  %v8787_v13 = vmax.f32 %v8785_v20, %v8786_v44  ;;  %v8793_v35 = vrot.slane %v8792_v12, 2 }
 0xbf1   : > { %v8807_v15 = vrot.slane %v8806_v63, 2  ;;  %v8814_v22 = vrot.slane %v8813_v4, 2  ;;  %v8820_v55 = vmax.f32 %v8818_v29, %v8819_v23  ;;  %v7992_v2 = vmul.f32 %v15520_v38, %v7960_v25 }
 0xbf2   : > { %v8781_v14 = vrot.slane %v8780_v60, 1  ;;  %v8788_v16 = vrot.slane %v8787_v13, 1  ;;  %v8794_v31 = vmax.f32 %v8792_v12, %v8793_v35  ;;  %v8802_v18 = vrot.slane %v8801_v56, 1 }
 0xbf3   : > { %vm7606_vm0 = vcmp.ge.f32.partialorder %v15455_v8, 0.0  ;;  %vm7607_vm1 = vcmp.ge.f32.partialorder %v15458_v21, 0.0  ;;  %vm7608_vm2 = vcmp.ge.f32.partialorder %v15467_v10, 0.0  ;;  %v8775_v24 = vmax.f32 %v8773_v47, %v8774_v53 }
 0xbf4   : > { %v8808_v61 = vmax.f32 %v8806_v63, %v8807_v15  ;;  %v8815_v20 = vmax.f32 %v8813_v4, %v8814_v22  ;;  %v8821_v32 = vrot.slane %v8820_v55, 2  ;;  %v8782_v3 = vmax.f32 %v8780_v60, %v8781_v14 }
 0xbf5   : > { %v8789_v26 = vmax.f32 %v8787_v13, %v8788_v16  ;;  %v8795_v29 = vrot.slane %v8794_v31, 1  ;;  %v8022_v45 = vadd.f32 0.2548296, %v15546_v39  ;;  %v8023_v12 = vadd.f32 0.2548296, %v15549_v0 }
 0xbf6   : > { %v8809_v25 = vrot.slane %v8808_v61, 1  ;;  %v8816_v44 = vrot.slane %v8815_v20, 1  ;;  %v8822_v23 = vmax.f32 %v8820_v55, %v8821_v32  ;;  %v9282_v37 = vsel %vm9281_vm7, %v8782_v3, %v8775_v24 }
 0xbf7   : > { %v8796_v35 = vmax.f32 %v8794_v31, %v8795_v29  ;;  %v8024_v52 = vadd.f32 0.2548296, %v7992_v2  ;;  %v8053_v47 = vmul.f32 %v15511_v33, %v15553_v11  ;;  %v8803_v63 = vmax.f32 %v8801_v56, %v8802_v18 }
 0xbf8   : > { %v8810_v4 = vmax.f32 %v8808_v61, %v8809_v25  ;;  %v8823_v53 = vrot.slane %v8822_v23, 1  ;;  %v9284_v60 = vsel %vm9283_vm8, %v8789_v26, %v9282_v37  ;;  %v8054_v39 = vmul.f32 %v15514_v46, %v8022_v45 }
 0xbf9   : > { %v9286_v13 = vsel %vm9285_vm9, %v8796_v35, %v9284_v60  ;;  %v8055_v15 = vmul.f32 %v15517_v9, %v8023_v12  ;;  %v8056_v0 = vmul.f32 %v15520_v38, %v8024_v52  ;;  %v8817_v22 = vmax.f32 %v8815_v20, %v8816_v44 }
 0xbfa   : > { %v8824_v55 = vmax.f32 %v8822_v23, %v8823_v53  ;;  %v9288_v2 = vsel %vm9287_vm4, %v8803_v63, %v9286_v13  ;;  %v8213_v14 = vmul.f32 %v15536_v43, %v8053_v47  ;;  %v8214_v11 = vmul.f32 %v15562_v28, %v8054_v39 }
 0xbfb   : > { %v9290_v33 = vsel %vm9289_vm5, %v8810_v4, %v9288_v2  ;;  %v8215_v56 = vmul.f32 %v11658_v1, %v8055_v15  ;;  %v8216_v37 = vmul.f32 %v11660_v48, %v8056_v0  ;;  %v7637_v46 = vsel %vm7605_vm14, 1.0, %v17376_v59 }
 0xbfc   : > { %v9292_v16 = vsel %vm9291_vm13, %v8817_v22, %v9290_v33  ;;  %v8245_v9 = vsub.f32 1.0, %v8213_v14  ;;  %v8246_v38 = vsub.f32 1.0, %v8214_v11  ;;  %v7638_v43 = vsel %vm7606_vm0, 1.0, %v17376_v59 }
 0xbfd   : > { %v9294_v52 = vsel %vm9293_vm15, %v8824_v55, %v9292_v16  ;;  %v8247_v31 = vsub.f32 1.0, %v8215_v56  ;;  %v8248_v18 = vsub.f32 1.0, %v8216_v37  ;;  %v7639_v28 = vsel %vm7607_vm1, 1.0, %v17376_v59 }
 0xbfe   : > { %9352 = vxpose.xlu0.b32.start [1/8] (short) (narrow) %v9294_v52, 16  ;;  %v7640_v34 = vsel %vm7608_vm2, 1.0, %v17376_v59  ;;  %v8277_v1 = vmul.f32 %v8245_v9, %v7637_v46  ;;  %v8278_v48 = vmul.f32 %v8246_v38, %v7638_v43  ;;  %v7541_v20 = vmul.f32 0.5, %v15354_v58 }
 0xbff   : > { %v8279_v24 = vmul.f32 %v8247_v31, %v7639_v28  ;;  %v8280_v61 = vmul.f32 %v8248_v18, %v7640_v34  ;;  %v7542_v32 = vmul.f32 0.5, %v15357_v40  ;;  %v7543_v3 = vmul.f32 0.5, %v15360_v19 }
 0xc00   : > { %v8309_v8 = vadd.f32 1.0, %v8277_v1  ;;  %v7544_v26 = vmul.f32 0.5, %v15435_v5  ;;  %v8310_v29 = vadd.f32 1.0, %v8278_v48  ;;  %v15609_v60 = vmul.f32 0.5, %v15323_v62 }
 0xc01   : > { %v8311_v21 = vadd.f32 1.0, %v8279_v24  ;;  %v8312_v45 = vadd.f32 1.0, %v8280_v61  ;;  %v15616_v2 = vmul.f32 0.5, %v15329_v57  ;;  %v15619_v14 = vmul.f32 0.5, %v15332_v30 }
 0xc02   : > { %v8341_v25 = vmul.f32 %v8309_v8, %v7541_v20  ;;  %v8342_v44 = vmul.f32 %v8310_v29, %v7542_v32 }
 0xc03   : > { %v8343_v10 = vmul.f32 %v8311_v21, %v7543_v3  ;;  %v8344_v23 = vmul.f32 %v8312_v45, %v7544_v26 }
 0xc04   : > { %v8375_v12 = vsel %vm17352_vm3, %v8341_v25, -inf  ;;  %v8378_v58 = vsel %vm17381_vm11, %v8342_v44, -inf  ;;  %vm17429_vm11 = vmmov %vm17382_vm6 }
 0xc05   : > { %v8376_v35 = vsel %vm17380_vm10, %v8343_v10, -inf  ;;  %v8379_v40 = vsel %vm17382_vm6, %v8344_v23, -inf }
 0xc06   : > { %v8377_v47 = vmax.f32 %v8375_v12, %v8376_v35  ;;  %v8380_v19 = vmax.f32 %v8378_v58, %v8379_v40 }
 0xc08   : > { %v8467_v63 = vcombine.high %v8377_v47, %v8377_v47  ;;  %v8474_v5 = vrot.slane %v8377_v47, %v15438_v36  ;;  %v8484_v4 = vcombine.high %v8380_v19, %v8380_v19  ;;  %v8491_v53 = vrot.slane %v8380_v19, %v15438_v36 }
 0xc0a   : > { %v8481_v13 = vrot.slane %v8467_v63, %v15438_v36  ;;  %v8482_v39 = vcombine.high %v8474_v5, %v8474_v5  ;;  %v8498_v15 = vrot.slane %v8484_v4, %v15438_v36  ;;  %v8499_v0 = vcombine.high %v8491_v53, %v8491_v53 }
 0xc0b   : > { %v8825_v22 = vsel %vm16771_vm12, %v8474_v5, -inf  ;;  %v8853_v55 = vsel %vm16771_vm12, %v8491_v53, -inf  ;;  %v15628_v53 = vmul.f32 0.5, %v15335_v50 }
 0xc0c   : > { %v8483_v33 = vcombine.high %v8481_v13, %v8481_v13  ;;  %v8500_v11 = vcombine.high %v8498_v15, %v8498_v15  ;;  %v8826_v56 = vrot.slane %v8825_v22, 4  ;;  %v8832_v37 = vsel %vm16771_vm12, %v8482_v39, -inf }
 0xc0d   : > { %v8833_v16 = vrot.slane %v8832_v37, 4  ;;  %v8839_v46 = vsel %vm16771_vm12, %v8481_v13, -inf  ;;  %v8854_v9 = vrot.slane %v8853_v55, 4  ;;  %v8860_v52 = vsel %vm16771_vm12, %v8499_v0, -inf }
 0xc0e   : > { %v8827_v38 = vmax.f32 %v8825_v22, %v8826_v56  ;;  %v8840_v31 = vrot.slane %v8839_v46, 4  ;;  %v8846_v18 = vsel %vm16771_vm12, %v8483_v33, -inf  ;;  %v8861_v43 = vrot.slane %v8860_v52, 4 }
 0xc0f   : > { %v8834_v28 = vmax.f32 %v8832_v37, %v8833_v16  ;;  %v8847_v34 = vrot.slane %v8846_v18, 4  ;;  %v8855_v1 = vmax.f32 %v8853_v55, %v8854_v9  ;;  %v8867_v48 = vsel %vm16771_vm12, %v8498_v15, -inf }
 0xc10   : > { %v8828_v24 = vrot.slane %v8827_v38, 2  ;;  %v8841_v61 = vmax.f32 %v8839_v46, %v8840_v31  ;;  %v8862_v20 = vmax.f32 %v8860_v52, %v8861_v43  ;;  %v8868_v32 = vrot.slane %v8867_v48, 4 }
 0xc11   : > { %v8835_v3 = vrot.slane %v8834_v28, 2  ;;  %v8848_v8 = vmax.f32 %v8846_v18, %v8847_v34  ;;  %v8856_v26 = vrot.slane %v8855_v1, 2  ;;  %v8874_v29 = vsel %vm16771_vm12, %v8500_v11, -inf }
 0xc12   : > { %v8829_v21 = vmax.f32 %v8827_v38, %v8828_v24  ;;  %v8842_v45 = vrot.slane %v8841_v61, 2  ;;  %v8863_v25 = vrot.slane %v8862_v20, 2  ;;  %v8869_v44 = vmax.f32 %v8867_v48, %v8868_v32 }
 0xc13   : > { %v8836_v10 = vmax.f32 %v8834_v28, %v8835_v3  ;;  %v8849_v23 = vrot.slane %v8848_v8, 2  ;;  %v8857_v12 = vmax.f32 %v8855_v1, %v8856_v26  ;;  %v8875_v35 = vrot.slane %v8874_v29, 4 }
 0xc14   : > { %v8830_v58 = vrot.slane %v8829_v21, 1  ;;  %v8843_v40 = vmax.f32 %v8841_v61, %v8842_v45  ;;  %v8864_v47 = vmax.f32 %v8862_v20, %v8863_v25  ;;  %v8870_v19 = vrot.slane %v8869_v44, 2 }
 0xc15   : > { %v8837_v63 = vrot.slane %v8836_v10, 1  ;;  %v8850_v5 = vmax.f32 %v8848_v8, %v8849_v23  ;;  %v8876_v4 = vmax.f32 %v8874_v29, %v8875_v35  ;;  %v8858_v15 = vrot.slane %v8857_v12, 1  ;;  %v17392_v23 = vld [vmem:[#allocation124_spill] sm:$0xff] }
 0xc16   : > { %v8831_v13 = vmax.f32 %v8829_v21, %v8830_v58  ;;  %v8844_v39 = vrot.slane %v8843_v40, 1  ;;  %v8871_v0 = vmax.f32 %v8869_v44, %v8870_v19  ;;  %v8865_v33 = vrot.slane %v8864_v47, 1  ;;  %v17400_v19 = vld [vmem:[#allocation76_spill] sm:$0xff] }
 0xc17   : > { %v8838_v22 = vmax.f32 %v8836_v10, %v8837_v63  ;;  %v8851_v55 = vrot.slane %v8850_v5, 1  ;;  %v8877_v11 = vrot.slane %v8876_v4, 2  ;;  %v15631_v16 = vmul.f32 0.5, %v15347_v51 }
 0xc18   : > { %v8845_v56 = vmax.f32 %v8843_v40, %v8844_v39  ;;  %v8872_v37 = vrot.slane %v8871_v0, 1  ;;  %v15634_v46 = vmul.f32 0.5, %v15350_v17  ;;  %v15638_v31 = vmul.f32 0.5, %v15364_v42  ;;  %v17398_v40 = vld [vmem:[#allocation75_spill] sm:$0xff] }
 0xc19   : > { %17383 = vst [vmem:[#allocation118_spill] sm:$0xff] %v15631_v16  ;;  %v8852_v9 = vmax.f32 %v8850_v5, %v8851_v55  ;;  %v8878_v52 = vmax.f32 %v8876_v4, %v8877_v11  ;;  %v9295_v38 = vsel %vm9281_vm7, %v8838_v22, %v8831_v13  ;;  %v8859_v18 = vmax.f32 %v8857_v12, %v8858_v15  ;;  %v17402_v5 = vld [vmem:[#allocation101_spill] sm:$0xff]  ;;  %v17404_v22 = vld [vmem:[#allocation102_spill] sm:$0xff] }
 0xc1a   : > { %17384 = vst [vmem:[#allocation119_spill] sm:$0xff] %v15634_v46  ;;  %17385 = vst [vmem:[#allocation120_spill] sm:$0xff] %v15638_v31  ;;  %v9296_v43 = vsel %vm9283_vm8, %v8845_v56, %v9295_v38  ;;  %v15642_v28 = vmul.f32 0.5, %v15368_v41  ;;  %v15645_v34 = vmul.f32 0.5, %v15372_v7  ;;  %v8866_v1 = vmax.f32 %v8864_v47, %v8865_v33  ;;  %v17406_v33 = vld [vmem:[#allocation103_spill] sm:$0xff] }
 0xc1b   : > { %v8879_v48 = vrot.slane %v8878_v52, 1  ;;  %v9297_v24 = vsel %vm9285_vm9, %v8852_v9, %v9296_v43  ;;  %v15649_v61 = vmul.f32 0.5, %v15376_v54  ;;  %v8873_v20 = vmax.f32 %v8871_v0, %v8872_v37  ;;  %v17408_v56 = vld [vmem:[#allocation111_spill] sm:$0xff]  ;;  %v17410_v43 = vld [vmem:[#allocation112_spill] sm:$0xff] }
 0xc1c   : > { %17386 = vst [vmem:[#allocation121_spill] sm:$0xff] %v15642_v28  ;;  %17387 = vst [vmem:[#allocation122_spill] sm:$0xff] %v15645_v34  ;;  %v9298_v32 = vsel %vm9287_vm4, %v8859_v18, %v9297_v24  ;;  %v15653_v3 = vmul.f32 0.70710677, %v15323_v62  ;;  %v15656_v8 = vmul.f32 0.70710677, %v15329_v57 }
 0xc1d   : > { %17388 = vst [vmem:[#allocation123_spill] sm:$0xff] %v15649_v61  ;;  %v8880_v26 = vmax.f32 %v8878_v52, %v8879_v48  ;;  %v9299_v29 = vsel %vm9289_vm5, %v8866_v1, %v9298_v32  ;;  %v15660_v21 = vmul.f32 0.70710677, %v15332_v30  ;;  %v15663_v45 = vmul.f32 0.70710677, %v15335_v50  ;;  %v17394_v30 = vld [vmem:[#allocation129_spill] sm:$0xff] }
 0xc1e   : > { %v9300_v25 = vsel %vm9291_vm13, %v8873_v20, %v9299_v29  ;;  %v15667_v44 = vmul.f32 0.5, %v15380_v27  ;;  %v15670_v62 = vmul.f32 0.5, %v15384_v6  ;;  %v15673_v57 = vmul.f32 0.5, %v15388_v49  ;;  %v17396_v50 = vld [vmem:[#allocation131_spill] sm:$0xff]  ;;  %v17412_v48 = vld [vmem:[#allocation113_spill] sm:$0xff] }
 0xc1f   : > { %v9301_v10 = vsel %vm9293_vm15, %v8880_v26, %v9300_v25  ;;  %v15677_v12 = vmul.f32 0.5, %v17392_v23  ;;  %v15680_v35 = vmul.f32 0.5, %v17394_v30  ;;  %v15683_v58 = vmul.f32 0.5, %v17396_v50 }
 0xc20   : > { %17389 = vst [vmem:[#allocation125_spill] sm:$0xff] %v15667_v44  ;;  %17390 = vst [vmem:[#allocation127_spill] sm:$0xff] %v15670_v62  ;;  %9353 = vxpose.xlu0.b32.cont [2/8] (short) (narrow) %v9301_v10, 16  ;;  %v15686_v47 = vmul.f32 0.5, %v17398_v40  ;;  %v15689_v63 = vmul.f32 0.5, %v17400_v19  ;;  %v15692_v4 = vmul.f32 0.5, %v17402_v5 }
 0xc21   : > { %17391 = vst [vmem:[#allocation130_spill] sm:$0xff] %v15673_v57  ;;  %17393 = vst [vmem:[#allocation77_spill] sm:$0xff] %v15677_v12  ;;  %v7673_v13 = vand.u32 2147483647, %v15653_v3  ;;  %v7674_v39 = vand.u32 2147483647, %v15656_v8 }
 0xc22   : > { %17395 = vst [vmem:[#allocation78_spill] sm:$0xff] %v15680_v35  ;;  %17397 = vst [vmem:[#allocation79_spill] sm:$0xff] %v15683_v58  ;;  %v7675_v15 = vand.u32 2147483647, %v15660_v21  ;;  %v7676_v0 = vand.u32 2147483647, %v15663_v45 }
 0xc23   : > { %17399 = vst [vmem:[#allocation80_spill] sm:$0xff] %v15686_v47  ;;  %17401 = vst [vmem:[#allocation81_spill] sm:$0xff] %v15689_v63  ;;  %v15699_v55 = vmul.f32 0.5, %v17404_v22  ;;  %v15702_v11 = vmul.f32 0.5, %v17406_v33  ;;  %v15705_v37 = vmul.f32 0.5, %v17408_v56  ;;  %v15708_v1 = vmul.f32 0.5, %v17410_v43 }
 0xc24   : > { %17403 = vst [vmem:[#allocation82_spill] sm:$0xff] %v15692_v4  ;;  %v7705_v9 = vmul.f32 0.3275911, %v7673_v13  ;;  %v7706_v52 = vmul.f32 0.3275911, %v7674_v39  ;;  %v15711_v24 = vmul.f32 0.5, %v17412_v48 }
 0xc25   : > { %17405 = vst [vmem:[#allocation83_spill] sm:$0xff] %v15699_v55  ;;  %17407 = vst [vmem:[#allocation84_spill] sm:$0xff] %v15702_v11  ;;  %v7707_v38 = vmul.f32 0.3275911, %v7675_v15  ;;  %v7708_v18 = vmul.f32 0.3275911, %v7676_v0 }
 0xc26   : > { %17409 = vst [vmem:[#allocation85_spill] sm:$0xff] %v15705_v37  ;;  %17411 = vst [vmem:[#allocation86_spill] sm:$0xff] %v15708_v1  ;;  %v15714_v20 = vmul.f32 0.70710677, %v15347_v51  ;;  %v7737_v32 = vadd.f32 1.0, %v7705_v9  ;;  %v7738_v26 = vadd.f32 1.0, %v7706_v52 }
 0xc27   : > { %17413 = vst [vmem:[#allocation87_spill] sm:$0xff] %v15711_v24  ;;  %v7739_v29 = vadd.f32 1.0, %v7707_v38  ;;  %v7740_v25 = vadd.f32 1.0, %v7708_v18  ;;  %v8089_v10 = vsub.f32 0.0, %v7673_v13  ;;  %v15717_v37 = vmul.f32 0.70710677, %v15350_v17 }
 0xc28   : > { %v15720_v11 = vmul.f32 0.70710677, %v15364_v42  ;;  %11661 = vrcp.f32 %v7737_v32  ;;  %v8090_v55 = vsub.f32 0.0, %v7674_v39  ;;  %v15723_v1 = vmul.f32 0.70710677, %v15368_v41 }
 0xc29   : > { %v15726_v24 = vmul.f32 0.70710677, %v15372_v7  ;;  %11663 = vrcp.f32 %v7738_v26  ;;  %v8091_v51 = vsub.f32 0.0, %v7675_v15  ;;  %v15729_v9 = vmul.f32 0.70710677, %v15376_v54 }
 0xc2a   : > { %v15732_v52 = vmul.f32 0.70710677, %v15380_v27  ;;  %11665 = vrcp.f32 %v7739_v29  ;;  %v8092_v17 = vsub.f32 0.0, %v7676_v0  ;;  %v15735_v42 = vmul.f32 0.70710677, %v15384_v6 }
 0xc2b   : > { %v15738_v38 = vmul.f32 0.70710677, %v15388_v49  ;;  %11667 = vrcp.f32 %v7740_v25  ;;  %v8121_v41 = vmul.f32 %v8089_v10, %v7673_v13  ;;  %v15741_v7 = vmul.f32 0.70710677, %v17392_v23 }
 0xc2c   : > { %v15744_v18 = vmul.f32 0.70710677, %v17394_v30  ;;  %v15747_v54 = vmul.f32 0.70710677, %v17396_v50  ;;  %v8122_v27 = vmul.f32 %v8090_v55, %v7674_v39  ;;  %v15750_v32 = vmul.f32 0.70710677, %v17398_v40 }
 0xc2d   : > { %v15753_v6 = vmul.f32 0.70710677, %v17400_v19  ;;  %v15756_v49 = vmul.f32 0.70710677, %v17402_v5  ;;  %v8123_v13 = vmul.f32 %v8091_v51, %v7675_v15  ;;  %v15759_v23 = vmul.f32 0.70710677, %v17404_v22 }
 0xc2e   : > { %vm7609_vm14 = vcmp.ge.f32.partialorder %v15653_v3, 0.0  ;;  %vm7610_vm0 = vcmp.ge.f32.partialorder %v15656_v8, 0.0  ;;  %v8124_v30 = vmul.f32 %v8092_v17, %v7676_v0  ;;  %v15764_v50 = vmul.f32 0.70710677, %v17406_v33 }
 0xc2f   : > { %17414 = vst [vmem:[#allocation88_spill] sm:$0xff] %v15759_v23  ;;  %vm7611_vm1 = vcmp.ge.f32.partialorder %v15660_v21, 0.0  ;;  %vm7612_vm2 = vcmp.ge.f32.partialorder %v15663_v45, 0.0  ;;  %v8161_v40 = vmul.f32 1.442695, %v8121_v41  ;;  %v15778_v8 = vsel %vm7609_vm14, 1.0, %v17376_v59  ;;  %vm17430_vm14 = vmmov %vm17382_vm6 }
 0xc30   : > { %17415 = vst [vmem:[#allocation89_spill] sm:$0xff] %v15764_v50  ;;  %v15769_v19 = vmul.f32 0.70710677, %v17408_v56  ;;  %v15772_v5 = vmul.f32 0.70710677, %v17410_v43  ;;  %v15781_v15 = vsel %vm7610_vm0, 1.0, %v17376_v59  ;;  %vm17431_vm0 = vmmov %vm17382_vm6 }
 0xc31   : > { %v8163_v39 = vmul.f32 1.442695, %v8122_v27  ;;  %v15775_v3 = vmul.f32 0.70710677, %v17412_v48  ;;  %v8165_v21 = vmul.f32 1.442695, %v8123_v13  ;;  %11669 = vpow2.f32 %v8161_v40 }
 0xc32   : > { %17416 = vst [vmem:[#allocation90_spill] sm:$0xff] %v15769_v19  ;;  %17417 = vst [vmem:[#allocation104_spill] sm:$0xff] %v15772_v5  ;;  %v15783_v0 = vpop.eup %11661  ;;  %v15786_v45 = vsel %vm7611_vm1, 1.0, %v17376_v59  ;;  %v15789_v22 = vsel %vm7612_vm2, 1.0, %v17376_v59  ;;  %v8167_v55 = vmul.f32 1.442695, %v8124_v30 }
 0xc33   : > { %17418 = vst [vmem:[#allocation106_spill] sm:$0xff] %v15775_v3  ;;  %v15792_v33 = vand.u32 2147483647, %v15714_v20  ;;  %v15794_v56 = vpop.eup %11663  ;;  %v7801_v43 = vmul.f32 1.0614054, %v15783_v0  ;;  %11671 = vpow2.f32 %v8163_v39  ;;  %vm7613_vm3 = vcmp.ge.f32.partialorder %v15714_v20, 0.0 }
 0xc34   : > { %v15798_v48 = vand.u32 2147483647, %v15717_v37  ;;  %v15801_v26 = vand.u32 2147483647, %v15720_v11  ;;  %v15803_v29 = vpop.eup %11665  ;;  %v7802_v25 = vmul.f32 1.0614054, %v15794_v56  ;;  %11673 = vpow2.f32 %v8165_v21 }
 0xc35   : > { %v15807_v10 = vand.u32 2147483647, %v15723_v1  ;;  %v15810_v51 = vand.u32 2147483647, %v15726_v24  ;;  %v15812_v17 = vpop.eup %11667  ;;  %v7803_v41 = vmul.f32 1.0614054, %v15803_v29  ;;  %11675 = vpow2.f32 %v8167_v55 }
 0xc36   : > { %v7833_v27 = vadd.f32 -1.4531521, %v7801_v43  ;;  %v15816_v13 = vand.u32 2147483647, %v15729_v9  ;;  %v7804_v30 = vmul.f32 1.0614054, %v15812_v17 }
 0xc37   : > { %v7834_v40 = vadd.f32 -1.4531521, %v7802_v25  ;;  %v15820_v39 = vand.u32 2147483647, %v15732_v52  ;;  %v7835_v4 = vadd.f32 -1.4531521, %v7803_v41 }
 0xc38   : > { %v7865_v63 = vmul.f32 %v15783_v0, %v7833_v27  ;;  %v15824_v47 = vand.u32 2147483647, %v15735_v42  ;;  %v15827_v58 = vand.u32 2147483647, %v15738_v38  ;;  %v7836_v21 = vadd.f32 -1.4531521, %v7804_v30 }
 0xc39   : > { %v7866_v43 = vmul.f32 %v15794_v56, %v7834_v40  ;;  %v15831_v35 = vand.u32 2147483647, %v15741_v7  ;;  %v15834_v55 = vand.u32 2147483647, %v15744_v18  ;;  %v7867_v25 = vmul.f32 %v15803_v29, %v7835_v4 }
 0xc3a   : > { %17419 = vst [vmem:[#allocation91_spill] sm:$0xff] %v15824_v47  ;;  %17420 = vst [vmem:[#allocation108_spill] sm:$0xff] %v15827_v58  ;;  %v7897_v41 = vadd.f32 1.4214138, %v7865_v63  ;;  %v15838_v27 = vand.u32 2147483647, %v15747_v54  ;;  %v7868_v57 = vmul.f32 %v15812_v17, %v7836_v21 }
 0xc3b   : > { %17421 = vst [vmem:[#allocation109_spill] sm:$0xff] %v15831_v35  ;;  %17422 = vst [vmem:[#allocation92_spill] sm:$0xff] %v15834_v55  ;;  %v15841_v12 = vand.u32 2147483647, %v15750_v32  ;;  %v7898_v30 = vadd.f32 1.4214138, %v7866_v43  ;;  %v11670_v28 = vpop.eup %11669 }
 0xc3c   : > { %17423 = vst [vmem:[#allocation93_spill] sm:$0xff] %v15838_v27  ;;  %v15845_v40 = vand.u32 2147483647, %v15753_v6  ;;  %v15848_v62 = vand.u32 2147483647, %v15756_v49  ;;  %v7929_v61 = vmul.f32 %v15783_v0, %v7897_v41  ;;  %vm7614_vm10 = vcmp.ge.f32.partialorder %v15717_v37, 0.0 }
 0xc3d   : > { %17424 = vst [vmem:[#allocation132_spill] sm:$0xff] %v15841_v12  ;;  %v7899_v44 = vadd.f32 1.4214138, %v7867_v25  ;;  %v15852_v63 = vand.u32 2147483647, %v15759_v23  ;;  %v7930_v12 = vmul.f32 %v15794_v56, %v7898_v30  ;;  %v11672_v23 = vpop.eup %11671  ;;  %v8093_v16 = vsub.f32 0.0, %v15792_v33 }
 0xc3e   : > { %17425 = vst [vmem:[#allocation94_spill] sm:$0xff] %v15845_v40  ;;  %17426 = vst [vmem:[#allocation95_spill] sm:$0xff] %v15848_v62  ;;  %v7709_v4 = vmul.f32 0.3275911, %v15792_v33  ;;  %v7900_v34 = vadd.f32 1.4214138, %v7868_v57  ;;  %v11674_v55 = vpop.eup %11673 }
 0xc3f   : > { %17427 = vst [vmem:[#allocation126_spill] sm:$0xff] %v15852_v63  ;;  %v7710_v21 = vmul.f32 0.3275911, %v15798_v48  ;;  %v7711_v43 = vmul.f32 0.3275911, %v15801_v26  ;;  %v7931_v40 = vmul.f32 %v15803_v29, %v7899_v44  ;;  %vm7615_vm1 = vcmp.ge.f32.partialorder %v15720_v11, 0.0 }
 0xc40   : > { %v7961_v27 = vadd.f32 -0.28449672, %v7929_v61  ;;  %v7712_v25 = vmul.f32 0.3275911, %v15807_v10  ;;  %v7741_v41 = vadd.f32 1.0, %v7709_v4  ;;  %v7932_v57 = vmul.f32 %v15812_v17, %v7900_v34  ;;  %v11676_v61 = vpop.eup %11675 }
 0xc41   : > { %v7962_v63 = vadd.f32 -0.28449672, %v7930_v12  ;;  %v7742_v30 = vadd.f32 1.0, %v7710_v21  ;;  %v7743_v62 = vadd.f32 1.0, %v7711_v43  ;;  %v7963_v35 = vadd.f32 -0.28449672, %v7931_v40 }
 0xc42   : > { %v7993_v31 = vmul.f32 %v15783_v0, %v7961_v27  ;;  %v7744_v58 = vadd.f32 1.0, %v7712_v25  ;;  %11677 = vrcp.f32 %v7741_v41  ;;  %v7964_v44 = vadd.f32 -0.28449672, %v7932_v57 }
 0xc43   : > { %v7994_v46 = vmul.f32 %v15794_v56, %v7962_v63  ;;  %11679 = vrcp.f32 %v7742_v30  ;;  %v7995_v4 = vmul.f32 %v15803_v29, %v7963_v35  ;;  %v8094_v34 = vsub.f32 0.0, %v15798_v48 }
 0xc44   : > { %v8025_v47 = vadd.f32 0.2548296, %v7993_v31  ;;  %11681 = vrcp.f32 %v7743_v62  ;;  %v7996_v12 = vmul.f32 %v15812_v17, %v7964_v44  ;;  %v8095_v27 = vsub.f32 0.0, %v15801_v26 }
 0xc45   : > { %v8026_v40 = vadd.f32 0.2548296, %v7994_v46  ;;  %11683 = vrcp.f32 %v7744_v58  ;;  %v8027_v21 = vadd.f32 0.2548296, %v7995_v4  ;;  %v8096_v63 = vsub.f32 0.0, %v15807_v10 }
 0xc46   : > { %v8057_v43 = vmul.f32 %v15783_v0, %v8025_v47  ;;  %v8125_v25 = vmul.f32 %v8093_v16, %v15792_v33  ;;  %v8028_v41 = vadd.f32 0.2548296, %v7996_v12  ;;  %v15875_v31 = vand.u32 2147483647, %v15764_v50 }
 0xc47   : > { %v8058_v35 = vmul.f32 %v15794_v56, %v8026_v40  ;;  %v15878_v62 = vand.u32 2147483647, %v15769_v19  ;;  %v8059_v46 = vmul.f32 %v15803_v29, %v8027_v21  ;;  %v8126_v57 = vmul.f32 %v8094_v34, %v15798_v48 }
 0xc48   : > { %v8217_v58 = vmul.f32 %v11670_v28, %v8057_v43  ;;  %v8127_v47 = vmul.f32 %v8095_v27, %v15801_v26  ;;  %v8060_v0 = vmul.f32 %v15812_v17, %v8028_v41  ;;  %v15885_v16 = vand.u32 2147483647, %v15772_v5 }
 0xc49   : > { %v8218_v30 = vmul.f32 %v11672_v23, %v8058_v35  ;;  %v8169_v33 = vmul.f32 1.442695, %v8125_v25  ;;  %v8219_v56 = vmul.f32 %v11674_v55, %v8059_v46  ;;  %v15888_v4 = vand.u32 2147483647, %v15775_v3 }
 0xc4a   : > { %v8249_v44 = vsub.f32 1.0, %v8217_v58  ;;  %v8128_v12 = vmul.f32 %v8096_v63, %v15807_v10  ;;  %v8220_v29 = vmul.f32 %v11676_v61, %v8060_v0  ;;  %v15894_v48 = vsel %vm7613_vm3, 1.0, %v17376_v59 }
 0xc4b   : > { %17428 = vst [vmem:[#allocation96_spill] sm:$0xff] %v15888_v4  ;;  %v8250_v28 = vsub.f32 1.0, %v8218_v30  ;;  %v15899_v23 = vsel %vm7614_vm10, 1.0, %v17376_v59  ;;  %v8251_v17 = vsub.f32 1.0, %v8219_v56  ;;  %v8171_v34 = vmul.f32 1.442695, %v8126_v57 }
 0xc4c   : > { %v15901_v26 = vpop.eup %11677  ;;  %v8281_v55 = vmul.f32 %v8249_v44, %v15778_v8  ;;  %v8173_v40 = vmul.f32 1.442695, %v8127_v47  ;;  %v8252_v61 = vsub.f32 1.0, %v8220_v29  ;;  %11685 = vpow2.f32 %v8169_v33 }
 0xc4d   : > { %v15904_v10 = vpop.eup %11679  ;;  %v8282_v27 = vmul.f32 %v8250_v28, %v15781_v15  ;;  %v7805_v20 = vmul.f32 1.0614054, %v15901_v26  ;;  %v8283_v37 = vmul.f32 %v8251_v17, %v15786_v45  ;;  %v8175_v25 = vmul.f32 1.442695, %v8128_v12 }
 0xc4e   : > { %v15908_v21 = vpop.eup %11681  ;;  %v8313_v43 = vadd.f32 1.0, %v8281_v55  ;;  %v7806_v63 = vmul.f32 1.0614054, %v15904_v10  ;;  %v8284_v8 = vmul.f32 %v8252_v61, %v15789_v22  ;;  %11687 = vpow2.f32 %v8171_v34 }
 0xc4f   : > { %v15912_v41 = vpop.eup %11683  ;;  %v8314_v35 = vadd.f32 1.0, %v8282_v27  ;;  %v7807_v46 = vmul.f32 1.0614054, %v15908_v21  ;;  %v7837_v58 = vadd.f32 -1.4531521, %v7805_v20  ;;  %v8315_v15 = vadd.f32 1.0, %v8283_v37 }
 0xc50   : > { %v8345_v57 = vmul.f32 %v8313_v43, %v15609_v60  ;;  %v7808_v47 = vmul.f32 1.0614054, %v15912_v41  ;;  %v7838_v0 = vadd.f32 -1.4531521, %v7806_v63  ;;  %v8316_v30 = vadd.f32 1.0, %v8284_v8 }
 0xc51   : > { %v8346_v45 = vmul.f32 %v8314_v35, %v15616_v2  ;;  %v7839_v33 = vadd.f32 -1.4531521, %v7807_v46  ;;  %v7869_v56 = vmul.f32 %v15901_v26, %v7837_v58  ;;  %v8347_v44 = vmul.f32 %v8315_v15, %v15619_v14 }
 0xc52   : > { %v8381_v22 = vsel %vm17429_vm11, %v8345_v57, -inf  ;;  %v7840_v12 = vadd.f32 -1.4531521, %v7808_v47  ;;  %v7870_v29 = vmul.f32 %v15904_v10, %v7838_v0  ;;  %v8348_v28 = vmul.f32 %v8316_v30, %v15628_v53 }
 0xc53   : > { %v8384_v60 = vsel %vm17382_vm6, %v8346_v45, -inf  ;;  %v7871_v17 = vmul.f32 %v15908_v21, %v7839_v33  ;;  %v7901_v55 = vadd.f32 1.4214138, %v7869_v56  ;;  %v8382_v61 = vsel %vm17430_vm14, %v8347_v44, -inf }
 0xc54   : > { %v7872_v2 = vmul.f32 %v15912_v41, %v7840_v12  ;;  %v7902_v27 = vadd.f32 1.4214138, %v7870_v29  ;;  %v8383_v20 = vmax.f32 %v8381_v22, %v8382_v61  ;;  %v8385_v14 = vsel %vm17431_vm0, %v8348_v28, -inf }
 0xc55   : > { %v7903_v37 = vadd.f32 1.4214138, %v7871_v17  ;;  %v7933_v43 = vmul.f32 %v15901_v26, %v7901_v55  ;;  %v8386_v63 = vmax.f32 %v8384_v60, %v8385_v14  ;;  %11689 = vpow2.f32 %v8173_v40 }
 0xc56   : > { %v7904_v8 = vadd.f32 1.4214138, %v7872_v2  ;;  %v7934_v53 = vmul.f32 %v15904_v10, %v7902_v27  ;;  %v15931_v35 = vpop.eup %11685  ;;  %v8501_v46 = vcombine.high %v8383_v20, %v8383_v20  ;;  %v8508_v58 = vrot.slane %v8383_v20, %v15438_v36 }
 0xc57   : > { %v7935_v15 = vmul.f32 %v15908_v21, %v7903_v37  ;;  %11691 = vpow2.f32 %v8175_v25  ;;  %v8518_v34 = vcombine.high %v8386_v63, %v8386_v63  ;;  %v8525_v57 = vrot.slane %v8386_v63, %v15438_v36 }
 0xc58   : > { %v15937_v47 = vmul.f32 %v15912_v41, %v7904_v8  ;;  %v15939_v0 = vadd.f32 -0.28449672, %v7933_v43  ;;  %v8515_v30 = vrot.slane %v8501_v46, %v15438_v36  ;;  %v8516_v45 = vcombine.high %v8508_v58, %v8508_v58  ;;  %v15952_v43 = vpop.eup %11687 }
 0xc59   : > { %v8881_v40 = vsel %vm16771_vm12, %v8508_v58, -inf  ;;  %v15943_v33 = vadd.f32 -0.28449672, %v7934_v53  ;;  %v8532_v56 = vrot.slane %v8518_v34, %v15438_v36  ;;  %v8533_v44 = vcombine.high %v8525_v57, %v8525_v57 }
 0xc5a   : > { %v8882_v22 = vrot.slane %v8881_v40, 4  ;;  %v8909_v25 = vsel %vm16771_vm12, %v8525_v57, -inf  ;;  %v8517_v12 = vcombine.high %v8515_v30, %v8515_v30  ;;  %v8888_v29 = vsel %vm16771_vm12, %v8516_v45, -inf }
 0xc5b   : > { %v8895_v28 = vsel %vm16771_vm12, %v8515_v30, -inf  ;;  %v8910_v60 = vrot.slane %v8909_v25, 4  ;;  %v8534_v17 = vcombine.high %v8532_v56, %v8532_v56  ;;  %v8889_v61 = vrot.slane %v8888_v29, 4 }
 0xc5c   : > { %v8883_v55 = vmax.f32 %v8881_v40, %v8882_v22  ;;  %v8896_v2 = vrot.slane %v8895_v28, 4  ;;  %v8902_v27 = vsel %vm16771_vm12, %v8517_v12, -inf  ;;  %v8916_v14 = vsel %vm16771_vm12, %v8533_v44, -inf }
 0xc5d   : > { %v8911_v20 = vmax.f32 %v8909_v25, %v8910_v60  ;;  %v8923_v37 = vsel %vm16771_vm12, %v8532_v56, -inf  ;;  %v8890_v8 = vmax.f32 %v8888_v29, %v8889_v61  ;;  %v8903_v46 = vrot.slane %v8902_v27, 4 }
 0xc5e   : > { %v8884_v63 = vrot.slane %v8883_v55, 2  ;;  %v8897_v53 = vmax.f32 %v8895_v28, %v8896_v2  ;;  %v8917_v34 = vrot.slane %v8916_v14, 4  ;;  %v8924_v57 = vrot.slane %v8923_v37, 4 }
 0xc5f   : > { %v8912_v58 = vrot.slane %v8911_v20, 2  ;;  %v8930_v30 = vsel %vm16771_vm12, %v8534_v17, -inf  ;;  %v15955_v45 = vpop.eup %11689  ;;  %v8891_v22 = vrot.slane %v8890_v8, 2  ;;  %v8904_v12 = vmax.f32 %v8902_v27, %v8903_v46 }
 0xc60   : > { %v8885_v40 = vmax.f32 %v8883_v55, %v8884_v63  ;;  %v8898_v25 = vrot.slane %v8897_v53, 2  ;;  %v8918_v60 = vmax.f32 %v8916_v14, %v8917_v34  ;;  %v8925_v3 = vmax.f32 %v8923_v37, %v8924_v57 }
 0xc61   : > { %v15957_v44 = vpop.eup %11691  ;;  %v8913_v56 = vmax.f32 %v8911_v20, %v8912_v58  ;;  %v8931_v5 = vrot.slane %v8930_v30, 4  ;;  %v8892_v28 = vmax.f32 %v8890_v8, %v8891_v22  ;;  %v8905_v2 = vrot.slane %v8904_v12, 2 }
 0xc62   : > { %v8886_v29 = vrot.slane %v8885_v40, 1  ;;  %v8899_v61 = vmax.f32 %v8897_v53, %v8898_v25  ;;  %vm7616_vm2 = vcmp.ge.f32.partialorder %v15723_v1, 0.0  ;;  %v8919_v17 = vrot.slane %v8918_v60, 2 }
 0xc63   : > { %v8926_v19 = vrot.slane %v8925_v3, 2  ;;  %v8932_v55 = vmax.f32 %v8930_v30, %v8931_v5  ;;  %v7967_v63 = vadd.f32 -0.28449672, %v7935_v15  ;;  %v8893_v50 = vrot.slane %v8892_v28, 1 }
 0xc64   : > { %v8900_v27 = vrot.slane %v8899_v61, 1  ;;  %v8906_v46 = vmax.f32 %v8904_v12, %v8905_v2  ;;  %v8914_v4 = vrot.slane %v8913_v56, 1  ;;  %vm7617_vm3 = vcmp.ge.f32.partialorder %v15726_v24, 0.0 }
 0xc65   : > { %vm7618_vm10 = vcmp.ge.f32.partialorder %v15729_v9, 0.0  ;;  %v8887_v20 = vmax.f32 %v8885_v40, %v8886_v29  ;;  %v8920_v14 = vmax.f32 %v8918_v60, %v8919_v17  ;;  %v8927_v37 = vmax.f32 %v8925_v3, %v8926_v19 }
 0xc66   : > { %v8933_v8 = vrot.slane %v8932_v55, 2  ;;  %v8894_v53 = vmax.f32 %v8892_v28, %v8893_v50  ;;  %v8901_v58 = vmax.f32 %v8899_v61, %v8900_v27  ;;  %v8907_v5 = vrot.slane %v8906_v46, 1 }
 0xc67   : > { %vm7622_vm0 = vcmp.ge.f32.partialorder %v15741_v7, 0.0  ;;  %vm7623_vm12 = vcmp.ge.f32.partialorder %v15744_v18, 0.0  ;;  %v7968_v15 = vadd.f32 -0.28449672, %v15937_v47  ;;  %v8921_v34 = vrot.slane %v8920_v14, 1 }
 0xc68   : > { %v8928_v57 = vrot.slane %v8927_v37, 1  ;;  %v8934_v30 = vmax.f32 %v8932_v55, %v8933_v8  ;;  %v7997_v19 = vmul.f32 %v15901_v26, %v15939_v0  ;;  %v8908_v3 = vmax.f32 %v8906_v46, %v8907_v5 }
 0xc69   : > { %v9302_v50 = vsel %vm9281_vm7, %v8894_v53, %v8887_v20  ;;  %vm7625_vm6 = vcmp.ge.f32.partialorder %v15750_v32, 0.0  ;;  %vm7626_vm14 = vcmp.ge.f32.partialorder %v15753_v6, 0.0  ;;  %v7998_v40 = vmul.f32 %v15904_v10, %v15943_v33  ;;  %v17447_v6 = vld [vmem:[#allocation91_spill] sm:$0xff] }
 0xc6a   : > { %v7999_v47 = vmul.f32 %v15908_v21, %v7967_v63  ;;  %v8915_v22 = vmax.f32 %v8913_v56, %v8914_v4  ;;  %v8922_v25 = vmax.f32 %v8920_v14, %v8921_v34  ;;  %v8935_v12 = vrot.slane %v8934_v30, 1 }
 0xc6b   : > { %v9303_v60 = vsel %vm9283_vm8, %v8901_v58, %v9302_v50  ;;  %vm7627_vm11 = vcmp.ge.f32.partialorder %v15756_v49, 0.0  ;;  %v8000_v0 = vmul.f32 %v15912_v41, %v7968_v15  ;;  %v8029_v28 = vadd.f32 0.2548296, %v7997_v19 }
 0xc6c   : > { %v9304_v29 = vsel %vm9285_vm9, %v8908_v3, %v9303_v60  ;;  %v8030_v61 = vadd.f32 0.2548296, %v7998_v40  ;;  %v8929_v2 = vmax.f32 %v8927_v37, %v8928_v57  ;;  %v8936_v17 = vmax.f32 %v8934_v30, %v8935_v12  ;;  %v17450_v60 = vld [vmem:[#allocation108_spill] sm:$0xff] }
 0xc6d   : > { %v9305_v55 = vsel %vm9287_vm4, %v8915_v22, %v9304_v29  ;;  %v8031_v33 = vadd.f32 0.2548296, %v7999_v47  ;;  %v8032_v4 = vadd.f32 0.2548296, %v8000_v0  ;;  %v8061_v56 = vmul.f32 %v15901_v26, %v8029_v28  ;;  %v17448_v47 = vld [vmem:[#allocation118_spill] sm:$0xff]  ;;  %v17451_v0 = vld [vmem:[#allocation120_spill] sm:$0xff] }
 0xc6e   : > { %v9306_v63 = vsel %vm9289_vm5, %v8922_v25, %v9305_v55  ;;  %v8062_v27 = vmul.f32 %v15904_v10, %v8030_v61  ;;  %v7647_v20 = vsel %vm7615_vm1, 1.0, %v17376_v59  ;;  %v7648_v14 = vsel %vm7616_vm2, 1.0, %v17376_v59  ;;  %v17449_v25 = vld [vmem:[#allocation119_spill] sm:$0xff]  ;;  %v17452_v61 = vld [vmem:[#allocation109_spill] sm:$0xff] }
 0xc6f   : > { %v9307_v46 = vsel %vm9291_vm13, %v8929_v2, %v9306_v63  ;;  %v8063_v37 = vmul.f32 %v15908_v21, %v8031_v33  ;;  %v8064_v53 = vmul.f32 %v15912_v41, %v8032_v4  ;;  %v8221_v26 = vmul.f32 %v15931_v35, %v8061_v56  ;;  %v17453_v2 = vld [vmem:[#allocation92_spill] sm:$0xff]  ;;  %v17454_v55 = vld [vmem:[#allocation93_spill] sm:$0xff] }
 0xc70   : > { %v9308_v8 = vsel %vm9293_vm15, %v8936_v17, %v9307_v46  ;;  %v8222_v10 = vmul.f32 %v15952_v43, %v8062_v27  ;;  %v16002_v11 = vsel %vm7617_vm3, 1.0, %v17376_v59  ;;  %v16007_v1 = vsel %vm7618_vm10, 1.0, %v17376_v59  ;;  %v17455_v63 = vld [vmem:[#allocation121_spill] sm:$0xff]  ;;  %v17458_v46 = vld [vmem:[#allocation132_spill] sm:$0xff] }
 0xc71   : > { %9354 = vxpose.xlu0.b32.cont [3/8] (short) (narrow) %v9308_v8, 16  ;;  %v8223_v58 = vmul.f32 %v15955_v45, %v8063_v37  ;;  %17432 = vst [vmem:[#allocation97_spill] sm:$0xff] %v16002_v11  ;;  %17433 = vst [vmem:[#allocation98_spill] sm:$0xff] %v16007_v1  ;;  %vm17434_vm1 = vcmp.ge.f32.partialorder %v15732_v52, 0.0  ;;  %v8224_v41 = vmul.f32 %v15957_v44, %v8064_v53  ;;  %v8253_v35 = vsub.f32 1.0, %v8221_v26  ;;  %v17460_v37 = vld [vmem:[#allocation94_spill] sm:$0xff] }
 0xc72   : > { %v16012_v21 = vsel %vm17434_vm1, 1.0, %v17376_v59  ;;  %v8254_v43 = vsub.f32 1.0, %v8222_v10  ;;  %vm17436_vm2 = vcmp.ge.f32.partialorder %v15735_v42, 0.0  ;;  %vm17438_vm3 = vcmp.ge.f32.partialorder %v15738_v38, 0.0  ;;  %v17461_v53 = vld [vmem:[#allocation95_spill] sm:$0xff] }
 0xc73   : > { %17435 = vst [vmem:[#allocation99_spill] sm:$0xff] %v16012_v21  ;;  %v16018_v24 = vsel %vm17436_vm2, 1.0, %v17376_v59  ;;  %v8255_v45 = vsub.f32 1.0, %v8223_v58  ;;  %v16023_v9 = vsel %vm17438_vm3, 1.0, %v17376_v59  ;;  %v16028_v52 = vsel %vm7622_vm0, 1.0, %v17376_v59 }
 0xc74   : > { %17437 = vst [vmem:[#allocation100_spill] sm:$0xff] %v16018_v24  ;;  %17439 = vst [vmem:[#allocation42_spill] sm:$0xff] %v16023_v9  ;;  %v16033_v44 = vsel %vm7623_vm12, 1.0, %v17376_v59  ;;  %v8256_v5 = vsub.f32 1.0, %v8224_v41  ;;  %v8285_v42 = vmul.f32 %v8253_v35, %v15894_v48  ;;  %v8286_v15 = vmul.f32 %v8254_v43, %v15899_v23  ;;  %v17463_v35 = vld [vmem:[#allocation126_spill] sm:$0xff] }
 0xc75   : > { %17440 = vst [vmem:[#allocation43_spill] sm:$0xff] %v16028_v52  ;;  %17441 = vst [vmem:[#allocation44_spill] sm:$0xff] %v16033_v44  ;;  %vm17442_vm10 = vcmp.ge.f32.partialorder %v15747_v54, 0.0  ;;  %v8287_v34 = vmul.f32 %v8255_v45, %v7647_v20  ;;  %v16045_v7 = vsel %vm7625_vm6, 1.0, %v17376_v59  ;;  %v16050_v18 = vsel %vm7626_vm14, 1.0, %v17376_v59 }
 0xc76   : > { %v16040_v38 = vsel %vm17442_vm10, 1.0, %v17376_v59  ;;  %17444 = vst [vmem:[#allocation46_spill] sm:$0xff] %v16045_v7  ;;  %17445 = vst [vmem:[#allocation47_spill] sm:$0xff] %v16050_v18  ;;  %v16053_v48 = vmul.f32 0.3275911, %v15810_v51  ;;  %v8288_v23 = vmul.f32 %v8256_v5, %v7648_v14  ;;  %v8317_v57 = vadd.f32 1.0, %v8285_v42 }
 0xc77   : > { %17443 = vst [vmem:[#allocation45_spill] sm:$0xff] %v16040_v38  ;;  %v8318_v30 = vadd.f32 1.0, %v8286_v15  ;;  %v16056_v54 = vmul.f32 0.3275911, %v15816_v13  ;;  %v8319_v19 = vadd.f32 1.0, %v8287_v34  ;;  %v16061_v32 = vsel %vm7627_vm11, 1.0, %v17376_v59 }
 0xc78   : > { %17446 = vst [vmem:[#allocation48_spill] sm:$0xff] %v16061_v32  ;;  %v16064_v3 = vmul.f32 0.3275911, %v15820_v39  ;;  %v16067_v50 = vmul.f32 0.3275911, %v17447_v6  ;;  %v8320_v40 = vadd.f32 1.0, %v8288_v23  ;;  %v8349_v22 = vmul.f32 %v8317_v57, %v17448_v47 }
 0xc79   : > { %v8350_v12 = vmul.f32 %v8318_v30, %v17449_v25  ;;  %v16072_v29 = vmul.f32 0.3275911, %v17450_v60  ;;  %v8351_v28 = vmul.f32 %v8319_v19, %v17451_v0  ;;  %v16076_v49 = vmul.f32 0.3275911, %v17452_v61  ;;  %v17464_v30 = vld [vmem:[#allocation96_spill] sm:$0xff] }
 0xc7a   : > { %v16079_v17 = vmul.f32 0.3275911, %v17453_v2  ;;  %v16082_v33 = vmul.f32 0.3275911, %v17454_v55  ;;  %v8352_v4 = vmul.f32 %v8320_v40, %v17455_v63  ;;  %vm17456_vm12 = vcmask 130048  }
 0xc7b   : > { %v8387_v56 = vsel %vm17456_vm12, %v8349_v22, -inf  ;;  %vm17457_vm11 = vmmov %vm17456_vm12  ;;  %v16088_v20 = vmul.f32 0.3275911, %v17458_v46  ;;  %v16092_v8 = vmul.f32 0.3275911, %v17460_v37  ;;  %vm17466_vm0 = vcmask 123904  }
 0xc7c   : > { %v8390_v27 = vsel %vm17457_vm11, %v8350_v12, -inf  ;;  %vm17459_vm6 = vmmov %vm17457_vm11  ;;  %v16095_v26 = vmul.f32 0.3275911, %v17461_v53  ;;  %v16100_v43 = vmul.f32 0.3275911, %v17463_v35 }
 0xc7d   : > { %v8388_v14 = vsel %vm17459_vm6, %v8351_v28, -inf  ;;  %vm17462_vm14 = vmmov %vm17459_vm6  ;;  %v16103_v45 = vmul.f32 0.3275911, %v15875_v31  ;;  %v16106_v42 = vmul.f32 0.3275911, %v15878_v62 }
 0xc7e   : > { %v8389_v58 = vmax.f32 %v8387_v56, %v8388_v14  ;;  %v8391_v41 = vsel %vm17462_vm14, %v8352_v4, -inf  ;;  %v16109_v15 = vmul.f32 0.3275911, %v15885_v16  ;;  %v16114_v19 = vmul.f32 0.3275911, %v17464_v30  ;;  %vm17467_vm1 = vmmov %vm17466_vm0 }
 0xc7f   : > { %v8392_v5 = vmax.f32 %v8390_v27, %v8391_v41  ;;  %vm17468_vm2 = vmmov %vm17466_vm0 }
 0xc80   : > { %v8535_v23 = vcombine.high %v8389_v58, %v8389_v58  ;;  %v8542_v57 = vrot.slane %v8389_v58, %v15438_v36  ;;  %17465 = vst [vmem:[#allocation49_spill] sm:$0xff] %v16114_v19  ;;  %vm17469_vm3 = vmmov %vm17466_vm0 }
 0xc81   : > { %v8552_v47 = vcombine.high %v8392_v5, %v8392_v5  ;;  %v8559_v22 = vrot.slane %v8392_v5, %v15438_v36  ;;  %vm17470_vm10 = vmmov %vm17466_vm0 }
 0xc82   : > { %v8549_v0 = vrot.slane %v8535_v23, %v15438_v36  ;;  %v8550_v28 = vcombine.high %v8542_v57, %v8542_v57  ;;  %v8937_v63 = vsel %vm17466_vm0, %v8542_v57, -inf  ;;  %vm17471_vm12 = vmmov %vm17466_vm0 }
 0xc83   : > { %v8566_v56 = vrot.slane %v8552_v47, %v15438_v36  ;;  %v8567_v27 = vcombine.high %v8559_v22, %v8559_v22  ;;  %v8938_v14 = vrot.slane %v8937_v63, 4  ;;  %v8965_v58 = vsel %vm17467_vm1, %v8559_v22, -inf  ;;  %vm17472_vm11 = vmmov %vm17466_vm0 }
 0xc84   : > { %v8551_v41 = vcombine.high %v8549_v0, %v8549_v0  ;;  %v8944_v5 = vsel %vm17468_vm2, %v8550_v28, -inf  ;;  %v8951_v25 = vsel %vm17469_vm3, %v8549_v0, -inf  ;;  %v8966_v40 = vrot.slane %v8965_v58, 4  ;;  %vm17473_vm6 = vmmov %vm17466_vm0 }
 0xc85   : > { %v8568_v12 = vcombine.high %v8566_v56, %v8566_v56  ;;  %v8939_v34 = vmax.f32 %v8937_v63, %v8938_v14  ;;  %v8945_v23 = vrot.slane %v8944_v5, 4  ;;  %v8952_v10 = vrot.slane %v8951_v25, 4  ;;  %vm17489_vm0 = vmmov %vm17462_vm14 }
 0xc86   : > { %v8958_v57 = vsel %vm17470_vm10, %v8551_v41, -inf  ;;  %v8967_v32 = vmax.f32 %v8965_v58, %v8966_v40  ;;  %v8972_v4 = vsel %vm17471_vm12, %v8567_v27, -inf  ;;  %v8979_v47 = vsel %vm17472_vm11, %v8566_v56, -inf  ;;  %vm17490_vm1 = vmmov %vm17489_vm0 }
 0xc87   : > { %v8940_v18 = vrot.slane %v8939_v34, 2  ;;  %v8946_v7 = vmax.f32 %v8944_v5, %v8945_v23  ;;  %v8953_v22 = vmax.f32 %v8951_v25, %v8952_v10  ;;  %v8959_v59 = vrot.slane %v8958_v57, 4  ;;  %vm17491_vm2 = vmmov %vm17489_vm0 }
 0xc88   : > { %v8968_v38 = vrot.slane %v8967_v32, 2  ;;  %v8973_v28 = vrot.slane %v8972_v4, 4  ;;  %v8980_v44 = vrot.slane %v8979_v47, 4  ;;  %v8986_v0 = vsel %vm17473_vm6, %v8568_v12, -inf  ;;  %vm17497_vm10 = vmmov %vm17469_vm3 }
 0xc89   : > { %v8941_v52 = vmax.f32 %v8939_v34, %v8940_v18  ;;  %v8947_v63 = vrot.slane %v8946_v7, 2  ;;  %v8954_v14 = vrot.slane %v8953_v22, 2  ;;  %v8960_v36 = vmax.f32 %v8958_v57, %v8959_v59  ;;  %vm17498_vm12 = vmmov %vm17469_vm3 }
 0xc8a   : > { %v8969_v9 = vmax.f32 %v8967_v32, %v8968_v38  ;;  %v8974_v41 = vmax.f32 %v8972_v4, %v8973_v28  ;;  %v8981_v40 = vmax.f32 %v8979_v47, %v8980_v44  ;;  %v8987_v58 = vrot.slane %v8986_v0, 4  ;;  %vm17499_vm11 = vmmov %vm17469_vm3 }
 0xc8b   : > { %v8942_v27 = vrot.slane %v8941_v52, 1  ;;  %v8948_v24 = vmax.f32 %v8946_v7, %v8947_v63  ;;  %v8955_v56 = vmax.f32 %v8953_v22, %v8954_v14  ;;  %v8961_v21 = vrot.slane %v8960_v36, 2  ;;  %vm17500_vm6 = vmmov %vm17469_vm3 }
 0xc8c   : > { %v8975_v5 = vrot.slane %v8974_v41, 2  ;;  %v8982_v10 = vrot.slane %v8981_v40, 2  ;;  %v8988_v25 = vmax.f32 %v8986_v0, %v8987_v58  ;;  %v8103_v23 = vsub.f32 0.0, %v17453_v2 }
 0xc8d   : > { %v8949_v1 = vrot.slane %v8948_v24, 1  ;;  %v8956_v11 = vrot.slane %v8955_v56, 1  ;;  %v8962_v12 = vmax.f32 %v8960_v36, %v8961_v21  ;;  %v8970_v18 = vrot.slane %v8969_v9, 1 }
 0xc8e   : > { %v8976_v34 = vmax.f32 %v8974_v41, %v8975_v5  ;;  %v8983_v19 = vmax.f32 %v8981_v40, %v8982_v10  ;;  %v8989_v59 = vrot.slane %v8988_v25, 2  ;;  %v8104_v38 = vsub.f32 0.0, %v17454_v55 }
 0xc8f   : > { %v8943_v44 = vmax.f32 %v8941_v52, %v8942_v27  ;;  %v8950_v32 = vmax.f32 %v8948_v24, %v8949_v1  ;;  %v8957_v4 = vmax.f32 %v8955_v56, %v8956_v11  ;;  %v8963_v7 = vrot.slane %v8962_v12, 1 }
 0xc90   : > { %v8977_v57 = vrot.slane %v8976_v34, 1  ;;  %v8984_v47 = vrot.slane %v8983_v19, 1  ;;  %v8990_v22 = vmax.f32 %v8988_v25, %v8989_v59  ;;  %v8105_v28 = vsub.f32 0.0, %v17458_v46 }
 0xc91   : > { %v8964_v0 = vmax.f32 %v8962_v12, %v8963_v7  ;;  %v8971_v63 = vmax.f32 %v8969_v9, %v8970_v18  ;;  %v9309_v14 = vsel %vm9281_vm7, %v8950_v32, %v8943_v44  ;;  %v8106_v36 = vsub.f32 0.0, %v17460_v37 }
 0xc92   : > { %v8991_v21 = vrot.slane %v8990_v22, 1  ;;  %v9310_v41 = vsel %vm9283_vm8, %v8957_v4, %v9309_v14  ;;  %v8107_v40 = vsub.f32 0.0, %v17461_v53  ;;  %v8108_v1 = vsub.f32 0.0, %v17463_v35 }
 0xc93   : > { %v8978_v11 = vmax.f32 %v8976_v34, %v8977_v57  ;;  %v8985_v24 = vmax.f32 %v8983_v19, %v8984_v47  ;;  %v9311_v52 = vsel %vm9285_vm9, %v8964_v0, %v9310_v41  ;;  %v8109_v58 = vsub.f32 0.0, %v15875_v31 }
 0xc94   : > { %v8992_v27 = vmax.f32 %v8990_v22, %v8991_v21  ;;  %v9312_v9 = vsel %vm9287_vm4, %v8971_v63, %v9311_v52  ;;  %v7745_v56 = vadd.f32 1.0, %v16053_v48  ;;  %v7746_v5 = vadd.f32 1.0, %v16056_v54 }
 0xc95   : > { %v9313_v10 = vsel %vm9289_vm5, %v8978_v11, %v9312_v9  ;;  %v7747_v25 = vadd.f32 1.0, %v16064_v3  ;;  %v7748_v12 = vadd.f32 1.0, %v16067_v50  ;;  %v17474_v19 = vsub.f32 0.0, %v15810_v51 }
 0xc96   : > { %v9314_v34 = vsel %vm9291_vm13, %v8985_v24, %v9313_v10  ;;  %11693 = vrcp.f32 %v7745_v56  ;;  %v17475_v59 = vsub.f32 0.0, %v15816_v13  ;;  %v17476_v48 = vsub.f32 0.0, %v15820_v39 }
 0xc97   : > { %v8129_v18 = vmul.f32 %v17474_v19, %v15810_v51  ;;  %v9315_v32 = vsel %vm9293_vm15, %v8992_v27, %v9314_v34  ;;  %11695 = vrcp.f32 %v7746_v5  ;;  %v17477_v3 = vsub.f32 0.0, %v17447_v6 }
 0xc98   : > { %v8130_v44 = vmul.f32 %v17475_v59, %v15816_v13  ;;  %v8131_v54 = vmul.f32 %v17476_v48, %v15820_v39  ;;  %9355 = vxpose.xlu0.b32.cont [4/8] (short) (narrow) %v9315_v32, 16  ;;  %v8110_v51 = vsub.f32 0.0, %v15878_v62  ;;  %11697 = vrcp.f32 %v7747_v25 }
 0xc99   : > { %v8132_v50 = vmul.f32 %v17477_v3, %v17447_v6  ;;  %v8177_v4 = vmul.f32 1.442695, %v8129_v18  ;;  %v8111_v13 = vsub.f32 0.0, %v15885_v16  ;;  %v8112_v47 = vsub.f32 0.0, %v17464_v30 }
 0xc9a   : > { %v8179_v7 = vmul.f32 1.442695, %v8130_v44  ;;  %v8181_v57 = vmul.f32 1.442695, %v8131_v54  ;;  %11699 = vrcp.f32 %v7748_v12  ;;  %v7749_v39 = vadd.f32 1.0, %v16072_v29 }
 0xc9b   : > { %11701 = vpow2.f32 %v8177_v4  ;;  %v8183_v22 = vmul.f32 1.442695, %v8132_v50  ;;  %v7750_v0 = vadd.f32 1.0, %v16076_v49  ;;  %v7751_v6 = vadd.f32 1.0, %v16079_v17 }
 0xc9c   : > { %11703 = vpow2.f32 %v8179_v7  ;;  %v7752_v63 = vadd.f32 1.0, %v16082_v33  ;;  %v7753_v14 = vadd.f32 1.0, %v16088_v20  ;;  %v16170_v21 = vadd.f32 1.0, %v16092_v8 }
 0xc9d   : > { %11705 = vpow2.f32 %v8181_v57  ;;  %v16173_v41 = vadd.f32 1.0, %v16095_v26  ;;  %v16176_v29 = vadd.f32 1.0, %v16100_v43  ;;  %v16179_v11 = vadd.f32 1.0, %v16103_v45  ;;  %v17480_v43 = vld [vmem:[#allocation49_spill] sm:$0xff] }
 0xc9e   : > { %v16182_v49 = vadd.f32 1.0, %v16106_v42  ;;  %v16185_v17 = vadd.f32 1.0, %v16109_v15  ;;  %v17478_v33 = vsub.f32 0.0, %v17450_v60  ;;  %v17479_v8 = vsub.f32 0.0, %v17452_v61 }
 0xc9f   : > { %11707 = vpow2.f32 %v8183_v22  ;;  %v16194_v24 = vadd.f32 1.0, %v17480_v43  ;;  %v8135_v45 = vmul.f32 %v8103_v23, %v17453_v2  ;;  %v8136_v42 = vmul.f32 %v8104_v38, %v17454_v55 }
 0xca0   : > { %v8133_v20 = vmul.f32 %v17478_v33, %v17450_v60  ;;  %v8134_v26 = vmul.f32 %v17479_v8, %v17452_v61  ;;  %v8137_v15 = vmul.f32 %v8105_v28, %v17458_v46  ;;  %v8138_v60 = vmul.f32 %v8106_v36, %v17460_v37  ;;  %v16206_v27 = vpop.eup %11693 }
 0xca1   : > { %v8139_v52 = vmul.f32 %v8107_v40, %v17461_v53  ;;  %v8140_v61 = vmul.f32 %v8108_v1, %v17463_v35  ;;  %v8141_v9 = vmul.f32 %v8109_v58, %v15875_v31  ;;  %v8142_v56 = vmul.f32 %v8110_v51, %v15878_v62  ;;  %v16210_v23 = vpop.eup %11695 }
 0xca2   : > { %11709 = vrcp.f32 %v7749_v39  ;;  %v8185_v2 = vmul.f32 1.442695, %v8133_v20  ;;  %v7809_v55 = vmul.f32 1.0614054, %v16206_v27  ;;  %v8143_v46 = vmul.f32 %v8111_v13, %v15885_v16  ;;  %v16214_v38 = vpop.eup %11697 }
 0xca3   : > { %11711 = vrcp.f32 %v7750_v0  ;;  %v8187_v37 = vmul.f32 1.442695, %v8134_v26  ;;  %v7810_v53 = vmul.f32 1.0614054, %v16210_v23  ;;  %v16218_v35 = vmul.f32 %v8112_v47, %v17464_v30 }
 0xca4   : > { %11713 = vrcp.f32 %v7751_v6  ;;  %v8189_v31 = vmul.f32 1.442695, %v8135_v45  ;;  %v16220_v62 = vpop.eup %11699  ;;  %v7811_v28 = vmul.f32 1.0614054, %v16214_v38  ;;  %v7841_v36 = vadd.f32 -1.4531521, %v7809_v55 }
 0xca5   : > { %11715 = vrcp.f32 %v7752_v63  ;;  %v8191_v40 = vmul.f32 1.442695, %v8136_v42  ;;  %v16223_v1 = vpop.eup %11701  ;;  %v7812_v16 = vmul.f32 1.0614054, %v16220_v62  ;;  %v7842_v58 = vadd.f32 -1.4531521, %v7810_v53 }
 0xca6   : > { %11717 = vpow2.f32 %v8185_v2  ;;  %v16226_v5 = vmul.f32 1.442695, %v8137_v15  ;;  %v16228_v10 = vpop.eup %11703  ;;  %v7843_v30 = vadd.f32 -1.4531521, %v7811_v28  ;;  %v7873_v25 = vmul.f32 %v16206_v27, %v7841_v36 }
 0xca7   : > { %11719 = vpow2.f32 %v8187_v37  ;;  %v16231_v12 = vmul.f32 1.442695, %v8138_v60  ;;  %v16233_v19 = vpop.eup %11705  ;;  %v7844_v18 = vadd.f32 -1.4531521, %v7812_v16  ;;  %v7874_v34 = vmul.f32 %v16210_v23, %v7842_v58 }
 0xca8   : > { %11721 = vpow2.f32 %v8189_v31  ;;  %v16236_v59 = vmul.f32 1.442695, %v8139_v52  ;;  %v7875_v44 = vmul.f32 %v16214_v38, %v7843_v30  ;;  %v7905_v48 = vadd.f32 1.4214138, %v7873_v25 }
 0xca9   : > { %11723 = vpow2.f32 %v8191_v40  ;;  %v16239_v54 = vmul.f32 1.442695, %v8140_v61  ;;  %v16241_v32 = vpop.eup %11707  ;;  %v7876_v3 = vmul.f32 %v16220_v62, %v7844_v18  ;;  %v7906_v50 = vadd.f32 1.4214138, %v7874_v34 }
 0xcaa   : > { %11725 = vrcp.f32 %v7753_v14  ;;  %v16244_v4 = vmul.f32 1.442695, %v8141_v9  ;;  %v7907_v51 = vadd.f32 1.4214138, %v7875_v44  ;;  %v7937_v7 = vmul.f32 %v16206_v27, %v7905_v48 }
 0xcab   : > { %11727 = vrcp.f32 %v16170_v21  ;;  %v16248_v57 = vmul.f32 1.442695, %v8142_v56  ;;  %v7908_v47 = vadd.f32 1.4214138, %v7876_v3  ;;  %v7938_v39 = vmul.f32 %v16210_v23, %v7906_v50 }
 0xcac   : > { %v16250_v13 = vpop.eup %11709  ;;  %11729 = vrcp.f32 %v16173_v41  ;;  %v16254_v22 = vmul.f32 1.442695, %v8143_v46  ;;  %v7939_v6 = vmul.f32 %v16214_v38, %v7907_v51  ;;  %v7969_v63 = vadd.f32 -0.28449672, %v7937_v7 }
 0xcad   : > { %v16256_v0 = vpop.eup %11711  ;;  %v7813_v14 = vmul.f32 1.0614054, %v16250_v13  ;;  %11731 = vrcp.f32 %v16176_v29  ;;  %v7940_v33 = vmul.f32 %v16220_v62, %v7908_v47  ;;  %v7970_v20 = vadd.f32 -0.28449672, %v7938_v39 }
 0xcae   : > { %v16261_v21 = vpop.eup %11713  ;;  %v7814_v8 = vmul.f32 1.0614054, %v16256_v0  ;;  %11733 = vrcp.f32 %v16179_v11  ;;  %v7971_v26 = vadd.f32 -0.28449672, %v7939_v6  ;;  %v8001_v43 = vmul.f32 %v16206_v27, %v7969_v63 }
 0xcaf   : > { %v16266_v41 = vpop.eup %11715  ;;  %v7815_v45 = vmul.f32 1.0614054, %v16261_v21  ;;  %v7845_v42 = vadd.f32 -1.4531521, %v7813_v14  ;;  %v7972_v29 = vadd.f32 -0.28449672, %v7940_v33  ;;  %v8002_v60 = vmul.f32 %v16210_v23, %v7970_v20 }
 0xcb0   : > { %v16270_v15 = vpop.eup %11717  ;;  %v7816_v52 = vmul.f32 1.0614054, %v16266_v41  ;;  %v7846_v61 = vadd.f32 -1.4531521, %v7814_v8  ;;  %v8003_v11 = vmul.f32 %v16214_v38, %v7971_v26  ;;  %v8033_v56 = vadd.f32 0.2548296, %v8001_v43 }
 0xcb1   : > { %v16274_v9 = vpop.eup %11719  ;;  %v7847_v2 = vadd.f32 -1.4531521, %v7815_v45  ;;  %v7877_v55 = vmul.f32 %v16250_v13, %v7845_v42  ;;  %v8004_v37 = vmul.f32 %v16220_v62, %v7972_v29  ;;  %v8034_v53 = vadd.f32 0.2548296, %v8002_v60  ;;  %v17481_v42 = vld [vmem:[#allocation97_spill] sm:$0xff] }
 0xcb2   : > { %v16278_v46 = vpop.eup %11721  ;;  %v7848_v31 = vadd.f32 -1.4531521, %v7816_v52  ;;  %v7878_v28 = vmul.f32 %v16256_v0, %v7846_v61  ;;  %v8035_v40 = vadd.f32 0.2548296, %v8003_v11  ;;  %v8065_v16 = vmul.f32 %v16206_v27, %v8033_v56 }
 0xcb3   : > { %v16282_v36 = vpop.eup %11723  ;;  %v7879_v58 = vmul.f32 %v16261_v21, %v7847_v2  ;;  %v7909_v30 = vadd.f32 1.4214138, %v7877_v55  ;;  %v8036_v18 = vadd.f32 0.2548296, %v8004_v37  ;;  %v8066_v34 = vmul.f32 %v16210_v23, %v8034_v53  ;;  %v17483_v55 = vld [vmem:[#allocation99_spill] sm:$0xff] }
 0xcb4   : > { %v16286_v25 = vpop.eup %11725  ;;  %v7880_v44 = vmul.f32 %v16266_v41, %v7848_v31  ;;  %v7910_v48 = vadd.f32 1.4214138, %v7878_v28  ;;  %v8067_v50 = vmul.f32 %v16214_v38, %v8035_v40  ;;  %v8225_v51 = vmul.f32 %v16223_v1, %v8065_v16  ;;  %v17484_v28 = vld [vmem:[#allocation100_spill] sm:$0xff] }
 0xcb5   : > { %v16290_v3 = vpop.eup %11727  ;;  %v7911_v7 = vadd.f32 1.4214138, %v7879_v58  ;;  %v7941_v27 = vmul.f32 %v16250_v13, %v7909_v30  ;;  %v8068_v39 = vmul.f32 %v16220_v62, %v8036_v18  ;;  %v8226_v6 = vmul.f32 %v16228_v10, %v8066_v34  ;;  %v17485_v34 = vld [vmem:[#allocation122_spill] sm:$0xff] }
 0xcb6   : > { %v16295_v47 = vpop.eup %11729  ;;  %v7912_v63 = vadd.f32 1.4214138, %v7880_v44  ;;  %v7942_v23 = vmul.f32 %v16256_v0, %v7910_v48  ;;  %v8227_v33 = vmul.f32 %v16233_v19, %v8067_v50  ;;  %v8257_v20 = vsub.f32 1.0, %v8225_v51  ;;  %v17482_v19 = vld [vmem:[#allocation98_spill] sm:$0xff] }
 0xcb7   : > { %v16300_v14 = vpop.eup %11731  ;;  %v7943_v38 = vmul.f32 %v16261_v21, %v7911_v7  ;;  %v7973_v1 = vadd.f32 -0.28449672, %v7941_v27  ;;  %v8228_v26 = vmul.f32 %v16241_v32, %v8068_v39  ;;  %v8258_v43 = vsub.f32 1.0, %v8226_v6  ;;  %v17486_v7 = vld [vmem:[#allocation123_spill] sm:$0xff] }
 0xcb8   : > { %v16304_v8 = vpop.eup %11733  ;;  %v7944_v62 = vmul.f32 %v16266_v41, %v7912_v63  ;;  %v7974_v45 = vadd.f32 -0.28449672, %v7942_v23  ;;  %v8259_v10 = vsub.f32 1.0, %v8227_v33  ;;  %v8289_v29 = vmul.f32 %v8257_v20, %v17481_v42  ;;  %v17487_v63 = vld [vmem:[#allocation125_spill] sm:$0xff] }
 0xcb9   : > { %v7975_v60 = vadd.f32 -0.28449672, %v7943_v38  ;;  %v8005_v52 = vmul.f32 %v16250_v13, %v7973_v1  ;;  %v8260_v61 = vsub.f32 1.0, %v8228_v26  ;;  %v8290_v11 = vmul.f32 %v8258_v43, %v17482_v19  ;;  %v17488_v1 = vld [vmem:[#allocation127_spill] sm:$0xff] }
 0xcba   : > { %v7976_v56 = vadd.f32 -0.28449672, %v7944_v62  ;;  %v8006_v2 = vmul.f32 %v16256_v0, %v7974_v45  ;;  %v8291_v37 = vmul.f32 %v8259_v10, %v17483_v55  ;;  %v8321_v53 = vadd.f32 1.0, %v8289_v29 }
 0xcbb   : > { %v8007_v32 = vmul.f32 %v16261_v21, %v7975_v60  ;;  %v8037_v31 = vadd.f32 0.2548296, %v8005_v52  ;;  %v8292_v40 = vmul.f32 %v8260_v61, %v17484_v28  ;;  %v8322_v16 = vadd.f32 1.0, %v8290_v11  ;;  %v17492_v61 = vld [vmem:[#allocation42_spill] sm:$0xff] }
 0xcbc   : > { %v8008_v58 = vmul.f32 %v16266_v41, %v7976_v56  ;;  %v8038_v30 = vadd.f32 0.2548296, %v8006_v2  ;;  %v8323_v18 = vadd.f32 1.0, %v8291_v37  ;;  %v8353_v44 = vmul.f32 %v8321_v53, %v17485_v34  ;;  %v17495_v37 = vld [vmem:[#allocation44_spill] sm:$0xff] }
 0xcbd   : > { %v8039_v48 = vadd.f32 0.2548296, %v8007_v32  ;;  %v8069_v50 = vmul.f32 %v16250_v13, %v8037_v31  ;;  %v8324_v51 = vadd.f32 1.0, %v8292_v40  ;;  %v8354_v27 = vmul.f32 %v8322_v16, %v17486_v7 }
 0xcbe   : > { %v8040_v39 = vadd.f32 0.2548296, %v8008_v58  ;;  %v8070_v6 = vmul.f32 %v16256_v0, %v8038_v30  ;;  %v8355_v23 = vmul.f32 %v8323_v18, %v17487_v63  ;;  %v8393_v33 = vsel %vm17462_vm14, %v8353_v44, -inf  ;;  %vm17501_vm14 = vmmov %vm17469_vm3 }
 0xcbf   : > { %v8071_v20 = vmul.f32 %v16261_v21, %v8039_v48  ;;  %v8229_v38 = vmul.f32 %v16270_v15, %v8069_v50  ;;  %v8356_v26 = vmul.f32 %v8324_v51, %v17488_v1  ;;  %v8396_v43 = vsel %vm17489_vm0, %v8354_v27, -inf  ;;  %vm17502_vm0 = vmmov %vm17469_vm3 }
 0xcc0   : > { %v8072_v13 = vmul.f32 %v16266_v41, %v8040_v39  ;;  %v8230_v62 = vmul.f32 %v16274_v9, %v8070_v6  ;;  %v8394_v45 = vsel %vm17490_vm1, %v8355_v23, -inf  ;;  %11735 = vrcp.f32 %v16182_v49  ;;  %v17493_v9 = vld [vmem:[#allocation116_spill] sm:$0xff]  ;;  %vm17503_vm1 = vmmov %vm17502_vm0 }
 0xcc1   : > { %v8231_v0 = vmul.f32 %v16278_v46, %v8071_v20  ;;  %v8261_v10 = vsub.f32 1.0, %v8229_v38  ;;  %v8395_v42 = vmax.f32 %v8393_v33, %v8394_v45  ;;  %v8397_v21 = vsel %vm17491_vm2, %v8356_v26, -inf  ;;  %v17494_v46 = vld [vmem:[#allocation43_spill] sm:$0xff] }
 0xcc2   : > { %v8232_v15 = vmul.f32 %v16282_v36, %v8072_v13  ;;  %v8262_v29 = vsub.f32 1.0, %v8230_v62  ;;  %v8398_v60 = vmax.f32 %v8396_v43, %v8397_v21  ;;  %11737 = vrcp.f32 %v16185_v17  ;;  %v17496_v17 = vld [vmem:[#allocation45_spill] sm:$0xff] }
 0xcc3   : > { %v8263_v52 = vsub.f32 1.0, %v8231_v0  ;;  %v8293_v19 = vmul.f32 %v8261_v10, %v17492_v61  ;;  %v8569_v41 = vcombine.high %v8395_v42, %v8395_v42  ;;  %v8576_v11 = vrot.slane %v8395_v42, %v17493_v9 }
 0xcc4   : > { %v8264_v56 = vsub.f32 1.0, %v8232_v15  ;;  %v8294_v2 = vmul.f32 %v8262_v29, %v17494_v46  ;;  %v8586_v55 = vcombine.high %v8398_v60, %v8398_v60  ;;  %v8593_v49 = vrot.slane %v8398_v60, %v17493_v9 }
 0xcc5   : > { %v16339_v53 = vmul.f32 %v8263_v52, %v17495_v37  ;;  %v16341_v36 = vadd.f32 1.0, %v8293_v19  ;;  %v8583_v32 = vrot.slane %v8569_v41, %v17493_v9  ;;  %v8584_v31 = vcombine.high %v8576_v11, %v8576_v11 }
 0xcc6   : > { %v8993_v28 = vsel %vm17469_vm3, %v8576_v11, -inf  ;;  %v8296_v40 = vmul.f32 %v8264_v56, %v17496_v17  ;;  %v8600_v16 = vrot.slane %v8586_v55, %v17493_v9  ;;  %v8601_v58 = vcombine.high %v8593_v49, %v8593_v49  ;;  %vm17508_vm3 = vmmov %vm17491_vm2 }
 0xcc7   : > { %v8994_v30 = vrot.slane %v8993_v28, 4  ;;  %v9021_v18 = vsel %vm17497_vm10, %v8593_v49, -inf  ;;  %v8585_v34 = vcombine.high %v8583_v32, %v8583_v32  ;;  %v9000_v44 = vsel %vm17498_vm12, %v8584_v31, -inf  ;;  %vm17509_vm10 = vmmov %vm17491_vm2 }
 0xcc8   : > { %v9007_v48 = vsel %vm17499_vm11, %v8583_v32, -inf  ;;  %v9022_v50 = vrot.slane %v9021_v18, 4  ;;  %v8602_v51 = vcombine.high %v8600_v16, %v8600_v16  ;;  %v9001_v27 = vrot.slane %v9000_v44, 4  ;;  %vm17510_vm12 = vmmov %vm17491_vm2 }
 0xcc9   : > { %v8995_v7 = vmax.f32 %v8993_v28, %v8994_v30  ;;  %v9008_v39 = vrot.slane %v9007_v48, 4  ;;  %v9014_v6 = vsel %vm17500_vm6, %v8585_v34, -inf  ;;  %v9028_v23 = vsel %vm17501_vm14, %v8601_v58, -inf  ;;  %vm17511_vm11 = vmmov %vm17502_vm0 }
 0xcca   : > { %v9023_v63 = vmax.f32 %v9021_v18, %v9022_v50  ;;  %v9035_v33 = vsel %vm17502_vm0, %v8600_v16, -inf  ;;  %v16353_v20 = vpop.eup %11735  ;;  %v9002_v1 = vmax.f32 %v9000_v44, %v9001_v27  ;;  %v9015_v43 = vrot.slane %v9014_v6, 4  ;;  %vm17512_vm6 = vmmov %vm17502_vm0 }
 0xccb   : > { %v8996_v38 = vrot.slane %v8995_v7, 2  ;;  %v9009_v26 = vmax.f32 %v9007_v48, %v9008_v39  ;;  %v9029_v62 = vrot.slane %v9028_v23, 4  ;;  %v9036_v45 = vrot.slane %v9035_v33, 4  ;;  %vm17513_vm14 = vmmov %vm17502_vm0 }
 0xccc   : > { %v9024_v13 = vrot.slane %v9023_v63, 2  ;;  %v9042_v0 = vsel %vm17503_vm1, %v8602_v51, -inf  ;;  %v16356_v10 = vpop.eup %11737  ;;  %v9003_v21 = vrot.slane %v9002_v1, 2  ;;  %v9016_v29 = vmax.f32 %v9014_v6, %v9015_v43  ;;  %vm17514_vm1 = vmmov %vm17502_vm0 }
 0xccd   : > { %v8997_v42 = vmax.f32 %v8995_v7, %v8996_v38  ;;  %v9010_v15 = vrot.slane %v9009_v26, 2  ;;  %v9030_v52 = vmax.f32 %v9028_v23, %v9029_v62  ;;  %v9037_v61 = vmax.f32 %v9035_v33, %v9036_v45  ;;  %v17504_v38 = vld [vmem:[#allocation130_spill] sm:$0xff] }
 0xcce   : > { %v9025_v60 = vmax.f32 %v9023_v63, %v9024_v13  ;;  %v9043_v19 = vrot.slane %v9042_v0, 4  ;;  %v9004_v11 = vmax.f32 %v9002_v1, %v9003_v21  ;;  %v9017_v46 = vrot.slane %v9016_v29, 2 }
 0xccf   : > { %v8998_v41 = vrot.slane %v8997_v42, 1  ;;  %v9011_v56 = vmax.f32 %v9009_v26, %v9010_v15  ;;  %v9031_v49 = vrot.slane %v9030_v52, 2  ;;  %v9038_v37 = vrot.slane %v9037_v61, 2  ;;  %v17507_v15 = vld [vmem:[#allocation79_spill] sm:$0xff] }
 0xcd0   : > { %v9026_v55 = vrot.slane %v9025_v60, 1  ;;  %v9044_v32 = vmax.f32 %v9042_v0, %v9043_v19  ;;  %v9005_v28 = vrot.slane %v9004_v11, 1  ;;  %v9018_v16 = vmax.f32 %v9016_v29, %v9017_v46 }
 0xcd1   : > { %v8999_v31 = vmax.f32 %v8997_v42, %v8998_v41  ;;  %v9012_v17 = vrot.slane %v9011_v56, 1  ;;  %v9032_v30 = vmax.f32 %v9030_v52, %v9031_v49  ;;  %v9039_v18 = vmax.f32 %v9037_v61, %v9038_v37  ;;  %v17506_v42 = vld [vmem:[#allocation78_spill] sm:$0xff] }
 0xcd2   : > { %v9027_v58 = vmax.f32 %v9025_v60, %v9026_v55  ;;  %v9045_v34 = vrot.slane %v9044_v32, 2  ;;  %v9006_v44 = vmax.f32 %v9004_v11, %v9005_v28  ;;  %v9019_v50 = vrot.slane %v9018_v16, 1 }
 0xcd3   : > { %v9013_v48 = vmax.f32 %v9011_v56, %v9012_v17  ;;  %v8326_v51 = vadd.f32 1.0, %v8294_v2  ;;  %v9033_v7 = vrot.slane %v9032_v30, 1  ;;  %v9040_v27 = vrot.slane %v9039_v18, 1  ;;  %v17505_v2 = vld [vmem:[#allocation77_spill] sm:$0xff] }
 0xcd4   : > { %v9046_v39 = vmax.f32 %v9044_v32, %v9045_v34  ;;  %v8327_v6 = vadd.f32 1.0, %v16339_v53  ;;  %v9020_v63 = vmax.f32 %v9018_v16, %v9019_v50  ;;  %v9316_v23 = vsel %vm9281_vm7, %v9006_v44, %v8999_v31 }
 0xcd5   : > { %v8328_v33 = vadd.f32 1.0, %v8296_v40  ;;  %v8357_v1 = vmul.f32 %v16341_v36, %v17504_v38  ;;  %v9034_v26 = vmax.f32 %v9032_v30, %v9033_v7  ;;  %v9041_v43 = vmax.f32 %v9039_v18, %v9040_v27 }
 0xcd6   : > { %v9047_v13 = vrot.slane %v9046_v39, 1  ;;  %v9317_v62 = vsel %vm9283_vm8, %v9013_v48, %v9316_v23  ;;  %v8358_v0 = vmul.f32 %v8326_v51, %v17505_v2  ;;  %v8359_v21 = vmul.f32 %v8327_v6, %v17506_v42 }
 0xcd7   : > { %v9318_v45 = vsel %vm9285_vm9, %v9020_v63, %v9317_v62  ;;  %v8360_v53 = vmul.f32 %v8328_v33, %v17507_v15  ;;  %v8399_v40 = vsel %vm17491_vm2, %v8357_v1, -inf  ;;  %11739 = vrcp.f32 %v16194_v24  ;;  %vm17515_vm2 = vmmov %vm17502_vm0 }
 0xcd8   : > { %v9048_v29 = vmax.f32 %v9046_v39, %v9047_v13  ;;  %v9319_v60 = vsel %vm9287_vm4, %v9027_v58, %v9318_v45  ;;  %v8400_v52 = vsel %vm17508_vm3, %v8359_v21, -inf  ;;  %v8402_v61 = vsel %vm17509_vm10, %v8358_v0, -inf  ;;  %vm17516_vm3 = vmmov %vm17502_vm0 }
 0xcd9   : > { %v9320_v36 = vsel %vm9289_vm5, %v9034_v26, %v9319_v60  ;;  %v8403_v19 = vsel %vm17510_vm12, %v8360_v53, -inf  ;;  %v8401_v11 = vmax.f32 %v8399_v40, %v8400_v52  ;;  %v7817_v46 = vmul.f32 1.0614054, %v16286_v25  ;;  %vm17517_vm10 = vmmov %vm17502_vm0 }
 0xcda   : > { %v9321_v41 = vsel %vm9291_vm13, %v9041_v43, %v9320_v36  ;;  %v8404_v56 = vmax.f32 %v8402_v61, %v8403_v19  ;;  %v7818_v49 = vmul.f32 1.0614054, %v16290_v3  ;;  %v7819_v24 = vmul.f32 1.0614054, %v16295_v47 }
 0xcdb   : > { %v9322_v55 = vsel %vm9293_vm15, %v9048_v29, %v9321_v41  ;;  %v7820_v37 = vmul.f32 1.0614054, %v16300_v14  ;;  %v8603_v32 = vcombine.high %v8401_v11, %v8401_v11  ;;  %v8610_v31 = vrot.slane %v8401_v11, %v17493_v9 }
 0xcdc   : > { %9356 = vxpose.xlu0.b32.cont [5/8] (short) (narrow) %v9322_v55, 16  ;;  %v8620_v28 = vcombine.high %v8404_v56, %v8404_v56  ;;  %v8627_v17 = vrot.slane %v8404_v56, %v17493_v9  ;;  %v7849_v16 = vadd.f32 -1.4531521, %v7817_v46  ;;  %v16382_v58 = vadd.f32 -1.4531521, %v7818_v49 }
 0xcdd   : > { %v16384_v30 = vadd.f32 -1.4531521, %v7819_v24  ;;  %11741 = vpow2.f32 %v16226_v5  ;;  %v8617_v18 = vrot.slane %v8603_v32, %v17493_v9  ;;  %v8618_v34 = vcombine.high %v8610_v31, %v8610_v31 }
 0xcde   : > { %v8634_v44 = vrot.slane %v8620_v28, %v17493_v9  ;;  %v8635_v48 = vcombine.high %v8627_v17, %v8627_v17  ;;  %v9049_v50 = vsel %vm17511_vm11, %v8610_v31, -inf  ;;  %v9077_v51 = vsel %vm17512_vm6, %v8627_v17, -inf }
 0xcdf   : > { %v16391_v7 = vadd.f32 -1.4531521, %v7820_v37  ;;  %v16394_v27 = vmul.f32 %v16286_v25, %v7849_v16  ;;  %v8619_v39 = vcombine.high %v8617_v18, %v8617_v18  ;;  %v9050_v63 = vrot.slane %v9049_v50, 4  ;;  %v17518_v16 = vld [vmem:[#allocation88_spill] sm:$0xff] }
 0xce0   : > { %v8636_v6 = vcombine.high %v8634_v44, %v8634_v44  ;;  %v9056_v5 = vsel %vm17513_vm14, %v8618_v34, -inf  ;;  %v9063_v33 = vsel %vm17502_vm0, %v8617_v18, -inf  ;;  %v9078_v38 = vrot.slane %v9077_v51, 4 }
 0xce1   : > { %v9057_v23 = vrot.slane %v9056_v5, 4  ;;  %v9084_v1 = vsel %vm17514_vm1, %v8635_v48, -inf  ;;  %v16399_v26 = vpop.eup %11739  ;;  %v9051_v43 = vmax.f32 %v9049_v50, %v9050_v63  ;;  %v9064_v13 = vrot.slane %v9063_v33, 4 }
 0xce2   : > { %v9070_v62 = vsel %vm17515_vm2, %v8619_v39, -inf  ;;  %v9085_v45 = vrot.slane %v9084_v1, 4  ;;  %v9079_v42 = vmax.f32 %v9077_v51, %v9078_v38  ;;  %v9091_v21 = vsel %vm17516_vm3, %v8634_v44, -inf }
 0xce3   : > { %v9058_v2 = vmax.f32 %v9056_v5, %v9057_v23  ;;  %v9071_v0 = vrot.slane %v9070_v62, 4  ;;  %v9052_v15 = vrot.slane %v9051_v43, 2  ;;  %v9065_v53 = vmax.f32 %v9063_v33, %v9064_v13 }
 0xce4   : > { %v9086_v29 = vmax.f32 %v9084_v1, %v9085_v45  ;;  %v9092_v60 = vrot.slane %v9091_v21, 4  ;;  %v9080_v52 = vrot.slane %v9079_v42, 2  ;;  %v9098_v61 = vsel %vm17517_vm10, %v8636_v6, -inf }
 0xce5   : > { %v9059_v40 = vrot.slane %v9058_v2, 2  ;;  %v9072_v36 = vmax.f32 %v9070_v62, %v9071_v0  ;;  %v9053_v19 = vmax.f32 %v9051_v43, %v9052_v15  ;;  %v9066_v41 = vrot.slane %v9065_v53, 2 }
 0xce6   : > { %v9087_v11 = vrot.slane %v9086_v29, 2  ;;  %v9093_v56 = vmax.f32 %v9091_v21, %v9092_v60  ;;  %v9081_v24 = vmax.f32 %v9079_v42, %v9080_v52  ;;  %v9099_v37 = vrot.slane %v9098_v61, 4 }
 0xce7   : > { %v16404_v46 = vpop.eup %11741  ;;  %v9060_v55 = vmax.f32 %v9058_v2, %v9059_v40  ;;  %v9073_v49 = vrot.slane %v9072_v36, 2  ;;  %v9054_v32 = vrot.slane %v9053_v19, 1  ;;  %v9067_v31 = vmax.f32 %v9065_v53, %v9066_v41 }
 0xce8   : > { %v9088_v28 = vmax.f32 %v9086_v29, %v9087_v11  ;;  %v9094_v17 = vrot.slane %v9093_v56, 2  ;;  %vm7628_vm12 = vcmp.ge.f32.partialorder %v17518_v16, 0.0  ;;  %v9082_v44 = vrot.slane %v9081_v24, 1 }
 0xce9   : > { %v9061_v18 = vrot.slane %v9060_v55, 1  ;;  %v9074_v34 = vmax.f32 %v9072_v36, %v9073_v49  ;;  %v9100_v48 = vmax.f32 %v9098_v61, %v9099_v37  ;;  %v9055_v50 = vmax.f32 %v9053_v19, %v9054_v32 }
 0xcea   : > { %v9068_v51 = vrot.slane %v9067_v31, 1  ;;  %v9089_v39 = vrot.slane %v9088_v28, 1  ;;  %v9095_v6 = vmax.f32 %v9093_v56, %v9094_v17  ;;  %v9083_v23 = vmax.f32 %v9081_v24, %v9082_v44 }
 0xceb   : > { %v9062_v63 = vmax.f32 %v9060_v55, %v9061_v18  ;;  %v9075_v5 = vrot.slane %v9074_v34, 1  ;;  %v9101_v33 = vrot.slane %v9100_v48, 2  ;;  %v7882_v13 = vmul.f32 %v16290_v3, %v16382_v58 }
 0xcec   : > { %v9069_v38 = vmax.f32 %v9067_v31, %v9068_v51  ;;  %v9090_v1 = vmax.f32 %v9088_v28, %v9089_v39  ;;  %v9096_v43 = vrot.slane %v9095_v6, 1  ;;  %v7883_v0 = vmul.f32 %v16295_v47, %v16384_v30 }
 0xced   : > { %v9076_v62 = vmax.f32 %v9074_v34, %v9075_v5  ;;  %v9102_v45 = vmax.f32 %v9100_v48, %v9101_v33  ;;  %v9323_v2 = vsel %vm9281_vm7, %v9062_v63, %v9055_v50  ;;  %v7884_v15 = vmul.f32 %v16300_v14, %v16391_v7 }
 0xcee   : > { %v9097_v42 = vmax.f32 %v9095_v6, %v9096_v43  ;;  %v9324_v21 = vsel %vm9283_vm8, %v9069_v38, %v9323_v2  ;;  %v7913_v53 = vadd.f32 1.4214138, %v16394_v27  ;;  %v7914_v40 = vadd.f32 1.4214138, %v7882_v13 }
 0xcef   : > { %v9103_v29 = vrot.slane %v9102_v45, 1  ;;  %v9325_v60 = vsel %vm9285_vm9, %v9076_v62, %v9324_v21  ;;  %v7915_v58 = vadd.f32 1.4214138, %v7883_v0  ;;  %v7916_v52 = vadd.f32 1.4214138, %v7884_v15 }
 0xcf0   : > { %v9326_v36 = vsel %vm9287_vm4, %v9083_v23, %v9325_v60  ;;  %v7945_v61 = vmul.f32 %v16286_v25, %v7913_v53  ;;  %11743 = vpow2.f32 %v16231_v12  ;;  %v7946_v41 = vmul.f32 %v16290_v3, %v7914_v40  ;;  %v17520_v23 = vld [vmem:[#allocation89_spill] sm:$0xff]  ;;  %v17522_v60 = vld [vmem:[#allocation104_spill] sm:$0xff] }
 0xcf1   : > { %v9104_v30 = vmax.f32 %v9102_v45, %v9103_v29  ;;  %v9327_v19 = vsel %vm9289_vm5, %v9090_v1, %v9326_v36  ;;  %v7947_v7 = vmul.f32 %v16295_v47, %v7915_v58  ;;  %v7948_v11 = vmul.f32 %v16300_v14, %v7916_v52 }
 0xcf2   : > { %v9328_v27 = vsel %vm9291_vm13, %v9097_v42, %v9327_v19  ;;  %v7977_v56 = vadd.f32 -0.28449672, %v7945_v61  ;;  %11745 = vpow2.f32 %v16236_v59  ;;  %v7978_v49 = vadd.f32 -0.28449672, %v7946_v41  ;;  %v17524_v61 = vld [vmem:[#allocation106_spill] sm:$0xff]  ;;  %v17525_v19 = vld [vmem:[#allocation47_spill] sm:$0xff] }
 0xcf3   : > { %v9329_v55 = vsel %vm9293_vm15, %v9104_v30, %v9328_v27  ;;  %v7979_v24 = vadd.f32 -0.28449672, %v7947_v7  ;;  %11747 = vpow2.f32 %v16239_v54  ;;  %v17519_v12 = vmov -1.0  }
 0xcf4   : > { %v16431_v37 = vsel %vm7628_vm12, 1.0, %v17519_v12  ;;  %9357 = vxpose.xlu0.b32.cont [6/8] (short) (narrow) %v9329_v55, 16  ;;  %v7980_v32 = vadd.f32 -0.28449672, %v7948_v11  ;;  %v8009_v31 = vmul.f32 %v16286_v25, %v7977_v56  ;;  %v7821_v28 = vmul.f32 1.0614054, %v16304_v8 }
 0xcf5   : > { %v8010_v17 = vmul.f32 %v16290_v3, %v7978_v49  ;;  %v8011_v59 = vmul.f32 %v16295_v47, %v7979_v24  ;;  %v7822_v18 = vmul.f32 1.0614054, %v16353_v20  ;;  %v7823_v34 = vmul.f32 1.0614054, %v16356_v10 }
 0xcf6   : > { %v8207_v54 = vmul.f32 1.442695, %v16218_v35  ;;  %v8012_v16 = vmul.f32 %v16300_v14, %v7980_v32  ;;  %v8041_v44 = vadd.f32 0.2548296, %v8009_v31  ;;  %v7824_v48 = vmul.f32 1.0614054, %v16399_v26 }
 0xcf7   : > { %v8042_v50 = vadd.f32 0.2548296, %v8010_v17  ;;  %v8043_v51 = vadd.f32 0.2548296, %v8011_v59  ;;  %11749 = vpow2.f32 %v16244_v4  ;;  %v7853_v39 = vadd.f32 -1.4531521, %v7821_v28 }
 0xcf8   : > { %v8044_v6 = vadd.f32 0.2548296, %v8012_v16  ;;  %v8073_v63 = vmul.f32 %v16286_v25, %v8041_v44  ;;  %11751 = vpow2.f32 %v16248_v57  ;;  %v7854_v5 = vadd.f32 -1.4531521, %v7822_v18  ;;  %v17526_v32 = vld [vmem:[#allocation48_spill] sm:$0xff] }
 0xcf9   : > { %vm7629_vm11 = vcmp.ge.f32.partialorder %v17520_v23, 0.0  ;;  %v8074_v35 = vmul.f32 %v16290_v3, %v8042_v50  ;;  %v8075_v33 = vmul.f32 %v16295_v47, %v8043_v51  ;;  %v7855_v38 = vadd.f32 -1.4531521, %v7823_v34  ;;  %v17521_v47 = vld [vmem:[#allocation90_spill] sm:$0xff]  ;;  %v17528_v51 = vld [vmem:[#allocation81_spill] sm:$0xff] }
 0xcfa   : > { %v7856_v1 = vadd.f32 -1.4531521, %v7824_v48  ;;  %v11744_v43 = vpop.eup %11743  ;;  %v8076_v13 = vmul.f32 %v16300_v14, %v8044_v6  ;;  %v8233_v4 = vmul.f32 %v16404_v46, %v8073_v63  ;;  %v7885_v62 = vmul.f32 %v16304_v8, %v7853_v39 }
 0xcfb   : > { %v7886_v25 = vmul.f32 %v16353_v20, %v7854_v5  ;;  %v8234_v45 = vmul.f32 %v11744_v43, %v8074_v35  ;;  %11753 = vpow2.f32 %v16254_v22  ;;  %v7887_v57 = vmul.f32 %v16356_v10, %v7855_v38  ;;  %v17523_v22 = vld [vmem:[#allocation46_spill] sm:$0xff] }
 0xcfc   : > { %v7888_v3 = vmul.f32 %v16399_v26, %v7856_v1  ;;  %v11746_v2 = vpop.eup %11745  ;;  %vm7630_vm6 = vcmp.ge.f32.partialorder %v17521_v47, 0.0  ;;  %v8265_v0 = vsub.f32 1.0, %v8233_v4  ;;  %11755 = vpow2.f32 %v8207_v54  ;;  %v17527_v54 = vld [vmem:[#allocation80_spill] sm:$0xff]  ;;  %v17529_v1 = vld [vmem:[#allocation82_spill] sm:$0xff] }
 0xcfd   : > { %v7917_v42 = vadd.f32 1.4214138, %v7885_v62  ;;  %v7918_v14 = vadd.f32 1.4214138, %v7886_v25  ;;  %v11748_v21 = vpop.eup %11747  ;;  %v8235_v46 = vmul.f32 %v11746_v2, %v8075_v33  ;;  %v8266_v15 = vsub.f32 1.0, %v8234_v45  ;;  %v17531_v45 = vld [vmem:[#allocation83_spill] sm:$0xff] }
 0xcfe   : > { %v7919_v53 = vadd.f32 1.4214138, %v7887_v57  ;;  %v7920_v29 = vadd.f32 1.4214138, %v7888_v3  ;;  %vm7631_vm14 = vcmp.ge.f32.partialorder %v17522_v60, 0.0  ;;  %v8236_v40 = vmul.f32 %v11748_v21, %v8076_v13 }
 0xcff   : > { %v8297_v58 = vmul.f32 %v8265_v0, %v17523_v22  ;;  %v7949_v36 = vmul.f32 %v16304_v8, %v7917_v42  ;;  %v7950_v52 = vmul.f32 %v16353_v20, %v7918_v14  ;;  %vm7632_vm0 = vcmp.ge.f32.partialorder %v17524_v61, 0.0 }
 0xd00   : > { %v8267_v30 = vsub.f32 1.0, %v8235_v46  ;;  %v8298_v41 = vmul.f32 %v8266_v15, %v17525_v19  ;;  %v7951_v7 = vmul.f32 %v16356_v10, %v7919_v53  ;;  %v7952_v27 = vmul.f32 %v16399_v26, %v7920_v29 }
 0xd01   : > { %v8268_v11 = vsub.f32 1.0, %v8236_v40  ;;  %v8329_v56 = vadd.f32 1.0, %v8297_v58  ;;  %v7981_v55 = vadd.f32 -0.28449672, %v7949_v36  ;;  %v7982_v49 = vadd.f32 -0.28449672, %v7950_v52  ;;  %v11750_v24 = vpop.eup %11749 }
 0xd02   : > { %v8299_v31 = vmul.f32 %v8267_v30, %v17526_v32  ;;  %v8330_v28 = vadd.f32 1.0, %v8298_v41  ;;  %v7983_v17 = vadd.f32 -0.28449672, %v7951_v7  ;;  %v7984_v59 = vadd.f32 -0.28449672, %v7952_v27  ;;  %v11752_v18 = vpop.eup %11751 }
 0xd03   : > { %v8300_v34 = vmul.f32 %v8268_v11, %v16431_v37  ;;  %v8361_v16 = vmul.f32 %v8329_v56, %v17527_v54  ;;  %v8013_v44 = vmul.f32 %v16304_v8, %v7981_v55  ;;  %v8014_v48 = vmul.f32 %v16353_v20, %v7982_v49 }
 0xd04   : > { %v8331_v50 = vadd.f32 1.0, %v8299_v31  ;;  %v8362_v39 = vmul.f32 %v8330_v28, %v17528_v51  ;;  %v8015_v6 = vmul.f32 %v16356_v10, %v7983_v17  ;;  %v8016_v63 = vmul.f32 %v16399_v26, %v7984_v59 }
 0xd05   : > { %v16475_v5 = vsel %vm7629_vm11, 1.0, %v17519_v12  ;;  %v8332_v35 = vadd.f32 1.0, %v8300_v34  ;;  %v8045_v37 = vadd.f32 0.2548296, %v8013_v44  ;;  %v8046_v33 = vadd.f32 0.2548296, %v8014_v48  ;;  %v11754_v38 = vpop.eup %11753 }
 0xd06   : > { %v8363_v43 = vmul.f32 %v8331_v50, %v17529_v1  ;;  %vm17530_vm1 = vcmask 130048   ;;  %v8047_v4 = vadd.f32 0.2548296, %v8015_v6  ;;  %v8048_v62 = vadd.f32 0.2548296, %v8016_v63  ;;  %v11756_v25 = vpop.eup %11755 }
 0xd07   : > { %v8405_v13 = vsel %vm17530_vm1, %v8361_v16, -inf  ;;  %v8364_v57 = vmul.f32 %v8332_v35, %v17531_v45  ;;  %vm17532_vm2 = vmmov %vm17530_vm1  ;;  %v8077_v2 = vmul.f32 %v16304_v8, %v8045_v37  ;;  %v8078_v23 = vmul.f32 %v16353_v20, %v8046_v33 }
 0xd08   : > { %v8408_v3 = vsel %vm17532_vm2, %v8362_v39, -inf  ;;  %v16486_v0 = vsel %vm7630_vm6, 1.0, %v17519_v12  ;;  %vm17533_vm3 = vmmov %vm17530_vm1  ;;  %v8079_v14 = vmul.f32 %v16356_v10, %v8047_v4  ;;  %v8080_v21 = vmul.f32 %v16399_v26, %v8048_v62 }
 0xd09   : > { %v8406_v42 = vsel %vm17533_vm3, %v8363_v43, -inf  ;;  %vm17534_vm10 = vmmov %vm17530_vm1  ;;  %v8237_v53 = vmul.f32 %v11750_v24, %v8077_v2  ;;  %v16492_v29 = vmul.f32 %v11752_v18, %v8078_v23  ;;  %v16497_v8 = vsel %vm7631_vm14, 1.0, %v17519_v12 }
 0xd0a   : > { %v8407_v46 = vmax.f32 %v8405_v13, %v8406_v42  ;;  %v8409_v15 = vsel %vm17534_vm10, %v8364_v57, -inf  ;;  %v16499_v47 = vmul.f32 %v11754_v38, %v8079_v14  ;;  %v16501_v40 = vmul.f32 %v11756_v25, %v8080_v21 }
 0xd0b   : > { %v8410_v20 = vmax.f32 %v8408_v3, %v8409_v15  ;;  %v16506_v10 = vsel %vm7632_vm0, 1.0, %v17519_v12  ;;  %v8269_v58 = vsub.f32 1.0, %v8237_v53  ;;  %v8270_v60 = vsub.f32 1.0, %v16492_v29 }
 0xd0c   : > { %v8637_v26 = vcombine.high %v8407_v46, %v8407_v46  ;;  %v8644_v22 = vrot.slane %v8407_v46, %v17493_v9  ;;  %v8271_v30 = vsub.f32 1.0, %v16499_v47  ;;  %vm17535_vm12 = vcmask 123904  }
 0xd0d   : > { %v8654_v36 = vcombine.high %v8410_v20, %v8410_v20  ;;  %v8661_v52 = vrot.slane %v8410_v20, %v17493_v9  ;;  %v8272_v61 = vsub.f32 1.0, %v16501_v40  ;;  %vm17536_vm11 = vmmov %vm17535_vm12  ;;  %v8301_v14 = vmul.f32 %v8269_v58, %v16475_v5 }
 0xd0e   : > { %v8651_v19 = vrot.slane %v8637_v26, %v17493_v9  ;;  %v8652_v41 = vcombine.high %v8644_v22, %v8644_v22  ;;  %v9105_v7 = vsel %vm17535_vm12, %v8644_v22, -inf  ;;  %vm17537_vm6 = vmmov %vm17536_vm11 }
 0xd0f   : > { %v8668_v12 = vrot.slane %v8654_v36, %v17493_v9  ;;  %v8669_v27 = vcombine.high %v8661_v52, %v8661_v52  ;;  %v9106_v11 = vrot.slane %v9105_v7, 4  ;;  %v9133_v56 = vsel %vm17536_vm11, %v8661_v52, -inf  ;;  %vm17538_vm14 = vmmov %vm17537_vm6 }
 0xd10   : > { %v8653_v55 = vcombine.high %v8651_v19, %v8651_v19  ;;  %v9112_v49 = vsel %vm17537_vm6, %v8652_v41, -inf  ;;  %v9119_v24 = vsel %vm17538_vm14, %v8651_v19, -inf  ;;  %v9134_v32 = vrot.slane %v9133_v56, 4  ;;  %vm17539_vm0 = vmmov %vm17537_vm6 }
 0xd11   : > { %v8670_v31 = vcombine.high %v8668_v12, %v8668_v12  ;;  %v9107_v28 = vmax.f32 %v9105_v7, %v9106_v11  ;;  %v9113_v17 = vrot.slane %v9112_v49, 4  ;;  %v9120_v59 = vrot.slane %v9119_v24, 4  ;;  %vm17540_vm1 = vmmov %vm17539_vm0 }
 0xd12   : > { %v9126_v18 = vsel %vm17539_vm0, %v8653_v55, -inf  ;;  %v9135_v34 = vmax.f32 %v9133_v56, %v9134_v32  ;;  %v9140_v54 = vsel %vm17540_vm1, %v8669_v27, -inf  ;;  %vm17541_vm2 = vmmov %vm17539_vm0  ;;  %v8302_v52 = vmul.f32 %v8270_v60, %v16486_v0 }
 0xd13   : > { %v9147_v16 = vsel %vm17541_vm2, %v8668_v12, -inf  ;;  %v9108_v44 = vrot.slane %v9107_v28, 2  ;;  %v9114_v48 = vmax.f32 %v9112_v49, %v9113_v17  ;;  %v9121_v50 = vmax.f32 %v9119_v24, %v9120_v59  ;;  %vm17542_vm3 = vmmov %vm17539_vm0 }
 0xd14   : > { %v9127_v51 = vrot.slane %v9126_v18, 4  ;;  %v9136_v39 = vrot.slane %v9135_v34, 2  ;;  %v9141_v6 = vrot.slane %v9140_v54, 4  ;;  %v9148_v63 = vrot.slane %v9147_v16, 4  ;;  %vm17547_vm12 = vmmov %vm17534_vm10 }
 0xd15   : > { %v9154_v35 = vsel %vm17542_vm3, %v8670_v31, -inf  ;;  %v9109_v37 = vmax.f32 %v9107_v28, %v9108_v44  ;;  %v9115_v33 = vrot.slane %v9114_v48, 2  ;;  %v9122_v38 = vrot.slane %v9121_v50, 2  ;;  %vm17548_vm11 = vmmov %vm17534_vm10 }
 0xd16   : > { %v9128_v1 = vmax.f32 %v9126_v18, %v9127_v51  ;;  %v9137_v43 = vmax.f32 %v9135_v34, %v9136_v39  ;;  %v9142_v13 = vmax.f32 %v9140_v54, %v9141_v6  ;;  %v9149_v4 = vmax.f32 %v9147_v16, %v9148_v63  ;;  %v17545_v34 = vld [vmem:[#allocation86_spill] sm:$0xff]  ;;  %v17546_v16 = vld [vmem:[#allocation87_spill] sm:$0xff]  ;;  %vm17549_vm6 = vmmov %vm17534_vm10 }
 0xd17   : > { %v9155_v62 = vrot.slane %v9154_v35, 4  ;;  %v9110_v25 = vrot.slane %v9109_v37, 1  ;;  %v9116_v45 = vmax.f32 %v9114_v48, %v9115_v33  ;;  %v9123_v57 = vmax.f32 %v9121_v50, %v9122_v38  ;;  %vm17550_vm14 = vmmov %vm17539_vm0 }
 0xd18   : > { %v9129_v3 = vrot.slane %v9128_v1, 2  ;;  %v9143_v2 = vrot.slane %v9142_v13, 2  ;;  %v9150_v23 = vrot.slane %v9149_v4, 2  ;;  %v9138_v53 = vrot.slane %v9137_v43, 1  ;;  %vm17551_vm1 = vmmov %vm17539_vm0 }
 0xd19   : > { %v9156_v42 = vmax.f32 %v9154_v35, %v9155_v62  ;;  %v9117_v21 = vrot.slane %v9116_v45, 1  ;;  %v9124_v46 = vrot.slane %v9123_v57, 1  ;;  %v9111_v29 = vmax.f32 %v9109_v37, %v9110_v25  ;;  %vm17552_vm2 = vmmov %vm17539_vm0 }
 0xd1a   : > { %v9130_v15 = vmax.f32 %v9128_v1, %v9129_v3  ;;  %v9144_v20 = vmax.f32 %v9142_v13, %v9143_v2  ;;  %v9151_v47 = vmax.f32 %v9149_v4, %v9150_v23  ;;  %v8303_v12 = vmul.f32 %v8271_v30, %v16497_v8  ;;  %v17543_v30 = vld [vmem:[#allocation84_spill] sm:$0xff]  ;;  %vm17553_vm3 = vmmov %vm17539_vm0 }
 0xd1b   : > { %v9157_v40 = vrot.slane %v9156_v42, 2  ;;  %v9118_v26 = vmax.f32 %v9116_v45, %v9117_v21  ;;  %v9125_v22 = vmax.f32 %v9123_v57, %v9124_v46  ;;  %v8304_v58 = vmul.f32 %v8272_v61, %v16506_v10  ;;  %v17544_v10 = vld [vmem:[#allocation85_spill] sm:$0xff] }
 0xd1c   : > { %v9131_v36 = vrot.slane %v9130_v15, 1  ;;  %v9145_v19 = vrot.slane %v9144_v20, 1  ;;  %v9152_v41 = vrot.slane %v9151_v47, 1  ;;  %v8333_v11 = vadd.f32 1.0, %v8301_v14 }
 0xd1d   : > { %v9158_v7 = vmax.f32 %v9156_v42, %v9157_v40  ;;  %v9330_v5 = vsel %vm9281_vm7, %v9118_v26, %v9111_v29  ;;  %v9139_v56 = vmax.f32 %v9137_v43, %v9138_v53  ;;  %v8334_v31 = vadd.f32 1.0, %v8302_v52 }
 0xd1e   : > { %v9132_v27 = vmax.f32 %v9130_v15, %v9131_v36  ;;  %v9146_v55 = vmax.f32 %v9144_v20, %v9145_v19  ;;  %v9331_v24 = vsel %vm9283_vm8, %v9125_v22, %v9330_v5  ;;  %v8335_v0 = vadd.f32 1.0, %v8303_v12 }
 0xd1f   : > { %v9159_v49 = vrot.slane %v9158_v7, 1  ;;  %v8336_v60 = vadd.f32 1.0, %v8304_v58  ;;  %v9153_v28 = vmax.f32 %v9151_v47, %v9152_v41  ;;  %v8365_v59 = vmul.f32 %v8333_v11, %v17543_v30 }
 0xd20   : > { %v9332_v32 = vsel %vm9285_vm9, %v9132_v27, %v9331_v24  ;;  %v8366_v61 = vmul.f32 %v8334_v31, %v17544_v10  ;;  %v8367_v54 = vmul.f32 %v8335_v0, %v17545_v34 }
 0xd21   : > { %v9160_v17 = vmax.f32 %v9158_v7, %v9159_v49  ;;  %v9333_v8 = vsel %vm9287_vm4, %v9139_v56, %v9332_v32  ;;  %v8368_v44 = vmul.f32 %v8336_v60, %v17546_v16  ;;  %v8411_v50 = vsel %vm17534_vm10, %v8365_v59, -inf  ;;  %vm17554_vm10 = vmmov %vm17539_vm0 }
 0xd22   : > { %v9334_v18 = vsel %vm9289_vm5, %v9146_v55, %v9333_v8  ;;  %v8412_v39 = vsel %vm17547_vm12, %v8367_v54, -inf  ;;  %v8414_v6 = vsel %vm17548_vm11, %v8366_v61, -inf  ;;  %vm17555_vm12 = vmmov %vm17539_vm0 }
 0xd23   : > { %v9335_v48 = vsel %vm9291_vm13, %v9153_v28, %v9334_v18  ;;  %v8415_v63 = vsel %vm17549_vm6, %v8368_v44, -inf  ;;  %v8413_v35 = vmax.f32 %v8411_v50, %v8412_v39  ;;  %vm17556_vm11 = vmmov %vm17539_vm0 }
 0xd24   : > { %v9336_v51 = vsel %vm9293_vm15, %v9160_v17, %v9335_v48  ;;  %v8416_v37 = vmax.f32 %v8414_v6, %v8415_v63 }
 0xd25   : > { %9358 = vxpose.xlu0.b32.cont [7/8] (short) (narrow) %v9336_v51, 16  ;;  %v8671_v33 = vcombine.high %v8413_v35, %v8413_v35  ;;  %v8678_v38 = vrot.slane %v8413_v35, %v17493_v9 }
 0xd26   : > { %v8688_v1 = vcombine.high %v8416_v37, %v8416_v37  ;;  %v8695_v43 = vrot.slane %v8416_v37, %v17493_v9 }
 0xd27   : > { %v8685_v13 = vrot.slane %v8671_v33, %v17493_v9  ;;  %v8686_v4 = vcombine.high %v8678_v38, %v8678_v38  ;;  %v9161_v45 = vsel %vm17550_vm14, %v8678_v38, -inf }
 0xd28   : > { %v8702_v62 = vrot.slane %v8688_v1, %v17493_v9  ;;  %v8703_v25 = vcombine.high %v8695_v43, %v8695_v43  ;;  %v9189_v57 = vsel %vm17539_vm0, %v8695_v43, -inf  ;;  %v9162_v23 = vrot.slane %v9161_v45, 4 }
 0xd29   : > { %v8687_v3 = vcombine.high %v8685_v13, %v8685_v13  ;;  %v9168_v42 = vsel %vm17551_vm1, %v8686_v4, -inf  ;;  %v9175_v21 = vsel %vm17552_vm2, %v8685_v13, -inf  ;;  %v9190_v46 = vrot.slane %v9189_v57, 4 }
 0xd2a   : > { %v8704_v2 = vcombine.high %v8702_v62, %v8702_v62  ;;  %v9169_v14 = vrot.slane %v9168_v42, 4  ;;  %v9196_v15 = vsel %vm17553_vm3, %v8703_v25, -inf  ;;  %v9163_v53 = vmax.f32 %v9161_v45, %v9162_v23 }
 0xd2b   : > { %v9176_v29 = vrot.slane %v9175_v21, 4  ;;  %v9182_v9 = vsel %vm17554_vm10, %v8687_v3, -inf  ;;  %v9197_v20 = vrot.slane %v9196_v15, 4  ;;  %v9191_v26 = vmax.f32 %v9189_v57, %v9190_v46 }
 0xd2c   : > { %v9170_v47 = vmax.f32 %v9168_v42, %v9169_v14  ;;  %v9183_v40 = vrot.slane %v9182_v9, 4  ;;  %v9203_v22 = vsel %vm17555_vm12, %v8702_v62, -inf  ;;  %v9164_v36 = vrot.slane %v9163_v53, 2 }
 0xd2d   : > { %v9177_v52 = vmax.f32 %v9175_v21, %v9176_v29  ;;  %v9198_v19 = vmax.f32 %v9196_v15, %v9197_v20  ;;  %v9204_v41 = vrot.slane %v9203_v22, 4  ;;  %v9192_v27 = vrot.slane %v9191_v26, 2 }
 0xd2e   : > { %v9171_v7 = vrot.slane %v9170_v47, 2  ;;  %v9184_v12 = vmax.f32 %v9182_v9, %v9183_v40  ;;  %v9210_v5 = vsel %vm17556_vm11, %v8704_v2, -inf  ;;  %v9165_v58 = vmax.f32 %v9163_v53, %v9164_v36 }
 0xd2f   : > { %v9178_v11 = vrot.slane %v9177_v52, 2  ;;  %v9199_v56 = vrot.slane %v9198_v19, 2  ;;  %v9205_v55 = vmax.f32 %v9203_v22, %v9204_v41  ;;  %v9193_v32 = vmax.f32 %v9191_v26, %v9192_v27 }
 0xd30   : > { %v9172_v49 = vmax.f32 %v9170_v47, %v9171_v7  ;;  %v9185_v24 = vrot.slane %v9184_v12, 2  ;;  %v9211_v31 = vrot.slane %v9210_v5, 4  ;;  %v9166_v0 = vrot.slane %v9165_v58, 1 }
 0xd31   : > { %v9179_v60 = vmax.f32 %v9177_v52, %v9178_v11  ;;  %v9200_v28 = vmax.f32 %v9198_v19, %v9199_v56  ;;  %v9206_v17 = vrot.slane %v9205_v55, 2  ;;  %v9194_v61 = vrot.slane %v9193_v32, 1 }
 0xd32   : > { %v9173_v8 = vrot.slane %v9172_v49, 1  ;;  %v9186_v30 = vmax.f32 %v9184_v12, %v9185_v24  ;;  %v9212_v59 = vmax.f32 %v9210_v5, %v9211_v31  ;;  %v9167_v18 = vmax.f32 %v9165_v58, %v9166_v0 }
 0xd33   : > { %v9180_v10 = vrot.slane %v9179_v60, 1  ;;  %v9207_v34 = vmax.f32 %v9205_v55, %v9206_v17  ;;  %v9201_v44 = vrot.slane %v9200_v28, 1  ;;  %v9195_v35 = vmax.f32 %v9193_v32, %v9194_v61 }
 0xd34   : > { %v9174_v54 = vmax.f32 %v9172_v49, %v9173_v8  ;;  %v9187_v16 = vrot.slane %v9186_v30, 1  ;;  %v9213_v48 = vrot.slane %v9212_v59, 2 }
 0xd35   : > { %v9181_v50 = vmax.f32 %v9179_v60, %v9180_v10  ;;  %v9208_v51 = vrot.slane %v9207_v34, 1  ;;  %v9202_v33 = vmax.f32 %v9200_v28, %v9201_v44 }
 0xd36   : > { %v9188_v39 = vmax.f32 %v9186_v30, %v9187_v16  ;;  %v9214_v6 = vmax.f32 %v9212_v59, %v9213_v48  ;;  %v9337_v63 = vsel %vm9281_vm7, %v9174_v54, %v9167_v18  ;;  %vm9384_vm7 = vcmask 523264  }
 0xd37   : > { %v9338_v37 = vsel %vm9283_vm8, %v9181_v50, %v9337_v63  ;;  %v9209_v43 = vmax.f32 %v9207_v34, %v9208_v51 }
 0xd38   : > { %v9215_v38 = vrot.slane %v9214_v6, 1  ;;  %v9339_v1 = vsel %vm9285_vm9, %v9188_v39, %v9338_v37 }
 0xd39   : > { %v9340_v13 = vsel %vm9287_vm4, %v9195_v35, %v9339_v1 }
 0xd3a   : > { %v9216_v4 = vmax.f32 %v9214_v6, %v9215_v38  ;;  %v9341_v62 = vsel %vm9289_vm5, %v9202_v33, %v9340_v13 }
 0xd3b   : > { %v9342_v25 = vsel %vm9291_vm13, %v9209_v43, %v9341_v62 }
 0xd3c   : > { %v9343_v45 = vsel %vm9293_vm15, %v9216_v4, %v9342_v25 }
 0xd3d   : > { %9359 = vxpose.xlu0.b32.end [8/8] (short) (narrow) %v9343_v45, 16 }
 0xda1   : > { %v9368_v57 = vpop.trf.xlu0 }
 0xda2   : > { %9385 = vst.msk [vmem:[%s217_s23] sm:$0xff] %vm9384_vm7, %v9368_v57 }
 0xda5   : > { %v9369_v3 = vpop.trf.xlu0 }
 0xda6   : > { %9386 = vst.msk [vmem:[%s217_s23 + $0x8] sm:$0xff] %vm9384_vm7, %v9369_v3 }
 0xda7   : > { %11771 = shalt.err (!%p11768_p3)
}
 0xda8   : > { %s11772_s12 = scalar_lea.hbm %s16568_s7, 256  ;;  %s11776_s15 = scalar_lea.hbm %s16616_s5, 512 }
 0xda9   : > { %p11773_p4 = scmp.ne.s32.totalorder %s16568_s7, %s11772_s12  ;;  %p11777_p9 = scmp.lt.u32.totalorder %s16568_s7, %s16616_s5 }
 0xdaa   : > { %p11778_p10 = scmp.lt.u32.totalorder %s11776_s15, %s11772_s12  ;;  %p11780_p12 = scmp.lt.u32.totalorder %s11772_s12, %s16568_s7 }
 0xdab   : > { %p11774_p7 = pnand %p11773_p4, %p11898_p5 }
 0xdac   : > { %p11779_p11 = por %p11778_p10, %p11777_p9 }
 0xdad   : > { %p11775_p8 = pneg %p11774_p7 }
 0xdae   : > { %p11781_p13 = por %p11780_p12, %p11779_p11 }
 0xdb0   : > { %p11782_p0 = pnand %p11781_p13, %p11775_p8 }
 0xdb2   : > { %11785 = shalt.err (!%p11782_p0)
}
 0xdb3   : > { %s11828_s23 = smov 128   ;;  %s11829_s26 = smov 8  }
 0xdb4   : > { %11442 = dma.vmem_to_hbm [thread:$0]  (%p11898_p5), %s16563_s25, 256, %s16568_s7, %s16570_s8, %s11828_s23, %s11828_s23, %s11829_s26  }
 0xdb5 PF: > { %p11448_p1 = scmp.ge.s32.totalorder %s11820_s21, 2  ;;  %s9416_s30 = sand.u32 1, %s11808_s18  }
 0xdb6   : > { %s9417_s6 = scalar_lea.sflag [#allocation5], %s9416_s30 }
 0xdb7   : > { %p11445_p2 = pnand %p11448_p1, %p11902_p6 }
 0xdb9   : > { %11803 = dma.done.wait (!%p11445_p2), %s9417_s6, 256  }
 0xdba   : > { %11805 = vsyncadd (!%p11445_p2), %s9417_s6, 4294967040  ;;  %p15_p3 = scmp.ge.s32.totalorder %s11885_s24, 4   ;;  %s17557_s18 = smov %s11812_s19 }
 0xdbb   : > { %s17558_s19 = smov %s11816_s20  ;;  %s17559_s20 = smov %s11896_s27 }
 0xdbc   : > { %s17560_s21 = smov %s11885_s24  ;;  %17 = sbr.rel (!%p15_p3) target bundleno = 3 (0x3), region = 97 }
 0xdc3   :  { %9422 = vsyncpa [#allocation5], 1 }
 0xdc4   :  { %9424 = vsyncpa [#allocation5 + $0x1], 1 }

</bundles_post_ra>
